<compile_context>
chip_gen: v7x
topology: tpu7x:2x2x1
jax: 0.10.0
libtpu: 0.0.40
codegen_flags: <defaults>
</compile_context>

<pallas_src>
import math
import functools

import jax
import jax.numpy as jnp
import numpy as np
from jax import lax
from jax.experimental import pallas as pl
from jax.experimental.pallas import tpu as pltpu

NUM_HEADS = 12


def _choose_heads_per_group(num_heads, head_dim, seq_len):
    """Shape-aware group width.

    Short sequences: collapse to a single group (one grid step per batch
    element, largest fused QKV projection, fewest per-step overheads, MXU-
    friendly N=3*H on the 256-wide arrays).
    Long sequences: smallest 128-lane-aligned group so the per-step (S,S)
    intermediates of the head unroll do not blow up vregs / VMEM.
    """
    if seq_len <= 512:
        return num_heads
    for g in range(1, num_heads + 1):
        if num_heads % g == 0 and (g * head_dim) % 128 == 0:
            return g
    return num_heads


def _use_bf16_exp():
    """bf16 EUP exists on v6e/v7x only; on v5e bf16 exp just adds converts."""
    try:
        kind = jax.devices()[0].device_kind.lower()
    except Exception:  # pragma: no cover - defensive, e.g. no devices yet
        return False
    return ("v6" in kind) or ("v7" in kind)


def pack_qkv_params(wq, wk, wv, bq, bk, bv, *, heads_per_group,
                    num_heads=NUM_HEADS):
    """One-time host-side packing (call at init, NOT per forward call).

    Returns:
      w_packed: (num_groups, H, 3*Gw) bf16, columns = [Wq_g | Wk_g | Wv_g],
                with 1/sqrt(head_dim) folded into the Wq columns.
      b_packed: (num_groups, 1, 3*Gw) f32, same layout / scaling.
    """
    H = wq.shape[0]
    assert H % num_heads == 0
    head_dim = H // num_heads
    assert num_heads % heads_per_group == 0
    num_groups = num_heads // heads_per_group
    Gw = heads_per_group * head_dim
    scale = 1.0 / math.sqrt(head_dim)

    wq_s = wq * scale            # fold q-scaling into the packed weights
    bq_s = bq * scale

    def split_w(w):
        return w.reshape(H, num_groups, Gw).transpose(1, 0, 2)

    def split_b(b):
        return b.reshape(num_groups, 1, Gw)

    w_packed = jnp.concatenate([split_w(wq_s), split_w(wk), split_w(wv)],
                               axis=-1).astype(jnp.bfloat16)
    b_packed = jnp.concatenate([split_b(bq_s), split_b(bk), split_b(bv)],
                               axis=-1).astype(jnp.float32)
    return w_packed, b_packed


def _attn_group_kernel(x_ref, w_ref, b_ref, mask_ref, out_ref, *,
                       heads_per_group, head_dim, use_bf16_exp):
    # x_ref:    (1, S, H)        bf16
    # w_ref:    (1, H, 3*Gw)     bf16   columns = [Wq_g | Wk_g | Wv_g], q pre-scaled
    # b_ref:    (1, 1, 3*Gw)     f32
    # mask_ref: (1, 1, S)        f32    additive attention mask (one row)
    # out_ref:  (1, S, Gw)
    Gw = heads_per_group * head_dim

    x = x_ref[0]                                     # (S, H)   bf16
    w = w_ref[0]                                     # (H, 3Gw) bf16
    bias = b_ref[0]                                  # (1, 3Gw) f32
    mask_row = mask_ref[0]                           # (1, S)   f32 (no (S,S) splat)

    # Fused Q/K/V projection for this head-group: one MXU matmul, f32 accumulate.
    qkv = jnp.dot(x, w, preferred_element_type=jnp.float32) + bias   # (S, 3Gw) f32

    # Slices at offsets 0, Gw, 2*Gw are multiples of 128 lanes -> free views.
    # 1/sqrt(head_dim) is already folded into Wq / bq.
    q = qkv[:, 0:Gw].astype(jnp.bfloat16)
    k = qkv[:, Gw:2 * Gw].astype(jnp.bfloat16)
    v = qkv[:, 2 * Gw:3 * Gw].astype(jnp.bfloat16)

    ctx_parts = []
    for h in range(heads_per_group):                 # static unroll over heads
        lo = h * head_dim
        hi = lo + head_dim
        qh = q[:, lo:hi]                             # (S, d) bf16
        kh = k[:, lo:hi]
        vh = v[:, lo:hi]

        # q @ k^T without an explicit transpose: contract the last dims.
        scores = lax.dot_general(
            qh, kh, dimension_numbers=(((1,), (1,)), ((), ())),
            preferred_element_type=jnp.float32)      # (S, S) f32
        scores = scores + mask_row                   # (1,S) sublane splat per head

        m = jnp.max(scores, axis=-1, keepdims=True)  # f32 row max
        shifted = scores - m
        if use_bf16_exp:
            probs = jnp.exp(shifted.astype(jnp.bfloat16))   # bf16 EUP (v6e/v7x)
        else:
            probs = jnp.exp(shifted)                          # f32 (v5e)
        denom = jnp.sum(probs, axis=-1, keepdims=True,
                        dtype=jnp.float32)            # f32 accumulation

        ctx = jnp.dot(probs.astype(jnp.bfloat16), vh,
                      preferred_element_type=jnp.float32)     # (S, d) f32
        # Normalize the (S,d) context instead of the (S,S) probs (cheaper),
        # using the approx EUP reciprocal.
        ctx = ctx * pl.reciprocal(denom, approx=True)
        ctx_parts.append(ctx)

    # Single lane-dense (S, Gw) store.
    out_ref[0] = jnp.concatenate(ctx_parts, axis=-1).astype(out_ref.dtype)


def roberta_self_attention(hidden_states, w_packed, b_packed, attention_mask,
                           *, num_heads=NUM_HEADS, out_dtype=None):
    """hidden_states: [B,S,H]; w_packed/b_packed from `pack_qkv_params`;
    attention_mask: [B,1,S] additive (or None). Returns the context layer
    [B,S,H] in `out_dtype` (default: hidden_states.dtype; pass bf16 to halve
    the output writeback if the downstream dense layer accepts it)."""
    B, S, H = hidden_states.shape
    assert H % num_heads == 0
    head_dim = H // num_heads

    num_groups = w_packed.shape[0]
    Gw = w_packed.shape[2] // 3
    heads_per_group = Gw // head_dim
    assert heads_per_group * num_groups == num_heads
    assert w_packed.shape == (num_groups, H, 3 * Gw)
    assert b_packed.shape == (num_groups, 1, 3 * Gw)

    if out_dtype is None:
        out_dtype = hidden_states.dtype

    x_bf16 = hidden_states.astype(jnp.bfloat16)
    if attention_mask is None:
        mask_f32 = jnp.zeros((B, 1, S), dtype=jnp.float32)
    else:
        mask_f32 = attention_mask.astype(jnp.float32)

    kernel = functools.partial(_attn_group_kernel,
                               heads_per_group=heads_per_group,
                               head_dim=head_dim,
                               use_bf16_exp=_use_bf16_exp())

    flops = 2 * B * S * H * 3 * H + 4 * B * num_heads * S * S * head_dim
    bytes_accessed = (x_bf16.size * 2 + w_packed.size * 2 + b_packed.size * 4
                      + mask_f32.size * 4
                      + B * S * H * jnp.dtype(out_dtype).itemsize)
    cost = pl.CostEstimate(flops=flops,
                           transcendentals=B * num_heads * S * S,
                           bytes_accessed=bytes_accessed)

    # Grid order (num_groups, B): the large packed-weight block has a constant
    # index along the inner batch axis, so Pallas keeps it resident and only
    # re-DMAs it when the group changes (num_groups fetches instead of B*G).
    out = pl.pallas_call(
        kernel,
        out_shape=jax.ShapeDtypeStruct((B, S, H), out_dtype),
        grid_spec=pltpu.PrefetchScalarGridSpec(
            num_scalar_prefetch=0,
            grid=(num_groups, B),
            in_specs=[
                pl.BlockSpec((1, S, H), lambda g, b: (b, 0, 0)),        # x (bf16)
                pl.BlockSpec((1, H, 3 * Gw), lambda g, b: (g, 0, 0)),   # packed W
                pl.BlockSpec((1, 1, 3 * Gw), lambda g, b: (g, 0, 0)),   # packed bias
                pl.BlockSpec((1, 1, S), lambda g, b: (b, 0, 0)),        # mask
            ],
            out_specs=pl.BlockSpec((1, S, Gw), lambda g, b: (b, 0, g)),
        ),
        compiler_params=pltpu.CompilerParams(
            dimension_semantics=("parallel", "parallel"),
            vmem_limit_bytes=32 * 1024 * 1024),
        cost_estimate=cost,
    )(x_bf16, w_packed, b_packed, mask_f32)
    return out


def _reference(hidden_states, wq, wk, wv, bq, bk, bv, attention_mask):
    """Pure-JAX f32 reference mirroring the PyTorch forward (eval mode)."""
    B, S, H = hidden_states.shape
    d = H // NUM_HEADS

    def proj(w, b):
        y = jnp.einsum("bsh,hd->bsd", hidden_states, w) + b
        return y.reshape(B, S, NUM_HEADS, d).transpose(0, 2, 1, 3)    # (B, nH, S, d)

    q = proj(wq, bq)
    k = proj(wk, bk)
    v = proj(wv, bv)
    scores = jnp.einsum("bhqd,bhkd->bhqk", q, k) / math.sqrt(d)
    scores = scores + attention_mask[:, None, :, :]                   # (B,1,1,S) broadcast
    probs = jax.nn.softmax(scores, axis=-1)
    ctx = jnp.einsum("bhqk,bhkd->bhqd", probs, v)
    return ctx.transpose(0, 2, 1, 3).reshape(B, S, H)


if __name__ == "__main__":
    # Small-but-aligned shapes: hidden must be a multiple of 12 heads.
    B, S, H = 2, 128, 384          # head_dim = 32
    key = jax.random.PRNGKey(0)
    k_x, k_q, k_k, k_v, k_bq, k_bk, k_bv = jax.random.split(key, 7)

    scale = 1.0 / math.sqrt(H)
    hidden_states = jax.random.normal(k_x, (B, S, H), dtype=jnp.float32)
    wq = jax.random.normal(k_q, (H, H), dtype=jnp.float32) * scale
    wk = jax.random.normal(k_k, (H, H), dtype=jnp.float32) * scale
    wv = jax.random.normal(k_v, (H, H), dtype=jnp.float32) * scale
    bq = jax.random.normal(k_bq, (H,), dtype=jnp.float32) * 0.02
    bk = jax.random.normal(k_bk, (H,), dtype=jnp.float32) * 0.02
    bv = jax.random.normal(k_bv, (H,), dtype=jnp.float32) * 0.02

    # Additive attention mask [B, 1, S]: mask out the last 16 tokens of batch 1.
    mask = np.zeros((B, 1, S), dtype=np.float32)
    mask[1, 0, -16:] = -1e9
    attention_mask = jnp.asarray(mask)

    # One-time packing (init-time, not per forward call): at S=128 the group
    # axis collapses to a single group (heads_per_group = 12, Gw = 384).
    head_dim = H // NUM_HEADS
    heads_per_group = _choose_heads_per_group(NUM_HEADS, head_dim, S)
    w_packed, b_packed = pack_qkv_params(wq, wk, wv, bq, bk, bv,
                                         heads_per_group=heads_per_group)
    w_packed, b_packed = jax.block_until_ready((w_packed, b_packed))

    out = roberta_self_attention(hidden_states, w_packed, b_packed,
                                 attention_mask)
    out = jax.block_until_ready(out)

    ref = _reference(hidden_states, wq, wk, wv, bq, bk, bv, attention_mask)
    # bf16 matmul operands / bf16 exp on v6e+ (f32 accumulation & softmax stats)
    # vs an all-f32 reference: loosen tolerance accordingly.
    np.testing.assert_allclose(np.asarray(out), np.asarray(ref),
                               rtol=3e-2, atol=3e-2)
    print("KERNEL_OK")
</pallas_src>

<mosaic_0001>
module attributes {stable_mosaic.version = 11 : i64} {
  func.func @_attn_group_kernel(%arg0: i32, %arg1: i32, %arg2: memref<1x128x384xbf16, #tpu.memory_space<vmem>>, %arg3: memref<1x384x1152xbf16, #tpu.memory_space<vmem>>, %arg4: memref<1x1x1152xf32, #tpu.memory_space<vmem>>, %arg5: memref<1x1x128xf32, #tpu.memory_space<vmem>>, %arg6: memref<1x128x384xf32, #tpu.memory_space<vmem>>) attributes {dimension_semantics = [#tpu.dimension_semantics<parallel>, #tpu.dimension_semantics<parallel>], iteration_bounds = array<i64: 1, 2>, scalar_prefetch = 0 : i64, scratch_operands = 0 : i64, tpu.core_type = #tpu.core_type<tc>, window_params = [{transform_indices = @transform_0, window_bounds = array<i64: 1, 128, 384>}, {transform_indices = @transform_1, window_bounds = array<i64: 1, 384, 1152>}, {transform_indices = @transform_2, window_bounds = array<i64: 1, 1, 1152>}, {transform_indices = @transform_3, window_bounds = array<i64: 1, 1, 128>}, {transform_indices = @transform_4, window_bounds = array<i64: 1, 128, 384>}]} {
    %c0 = arith.constant 0 : index
    %c0_0 = arith.constant 0 : index
    %c0_1 = arith.constant 0 : index
    %0 = vector.load %arg2[%c0, %c0_0, %c0_1] : memref<1x128x384xbf16, #tpu.memory_space<vmem>>, vector<1x128x384xbf16>
    %1 = vector.shape_cast %0 : vector<1x128x384xbf16> to vector<128x384xbf16>
    %c0_2 = arith.constant 0 : index
    %c0_3 = arith.constant 0 : index
    %c0_4 = arith.constant 0 : index
    %2 = vector.load %arg3[%c0_2, %c0_3, %c0_4] : memref<1x384x1152xbf16, #tpu.memory_space<vmem>>, vector<1x384x1152xbf16>
    %3 = vector.shape_cast %2 : vector<1x384x1152xbf16> to vector<384x1152xbf16>
    %c0_5 = arith.constant 0 : index
    %c0_6 = arith.constant 0 : index
    %c0_7 = arith.constant 0 : index
    %4 = vector.load %arg4[%c0_5, %c0_6, %c0_7] : memref<1x1x1152xf32, #tpu.memory_space<vmem>>, vector<1x1x1152xf32>
    %5 = vector.shape_cast %4 : vector<1x1x1152xf32> to vector<1x1152xf32>
    %c0_8 = arith.constant 0 : index
    %c0_9 = arith.constant 0 : index
    %c0_10 = arith.constant 0 : index
    %6 = vector.load %arg5[%c0_8, %c0_9, %c0_10] : memref<1x1x128xf32, #tpu.memory_space<vmem>>, vector<1x1x128xf32>
    %7 = vector.shape_cast %6 : vector<1x1x128xf32> to vector<1x128xf32>
    %cst = arith.constant dense<0.000000e+00> : vector<128x1152xf32>
    %8 = tpu.matmul %1, %3, %cst {dimension_numbers = #tpu.dot_dimension_numbers<[1], [0], [0], [1], [0, 0, 1, 1], [], []>} : vector<128x384xbf16>, vector<384x1152xbf16>, vector<128x1152xf32> -> vector<128x1152xf32>
    %9 = vector.broadcast %5 : vector<1x1152xf32> to vector<128x1152xf32>
    %10 = arith.addf %8, %9 : vector<128x1152xf32>
    %11 = vector.extract_strided_slice %10 {offsets = [0, 0], sizes = [128, 384], strides = [1, 1]} : vector<128x1152xf32> to vector<128x384xf32>
    %12 = arith.truncf %11 : vector<128x384xf32> to vector<128x384xbf16>
    %13 = vector.extract_strided_slice %10 {offsets = [0, 384], sizes = [128, 384], strides = [1, 1]} : vector<128x1152xf32> to vector<128x384xf32>
    %14 = arith.truncf %13 : vector<128x384xf32> to vector<128x384xbf16>
    %15 = vector.extract_strided_slice %10 {offsets = [0, 768], sizes = [128, 384], strides = [1, 1]} : vector<128x1152xf32> to vector<128x384xf32>
    %16 = arith.truncf %15 : vector<128x384xf32> to vector<128x384xbf16>
    %17 = vector.extract_strided_slice %12 {offsets = [0, 0], sizes = [128, 32], strides = [1, 1]} : vector<128x384xbf16> to vector<128x32xbf16>
    %18 = vector.extract_strided_slice %14 {offsets = [0, 0], sizes = [128, 32], strides = [1, 1]} : vector<128x384xbf16> to vector<128x32xbf16>
    %19 = vector.extract_strided_slice %16 {offsets = [0, 0], sizes = [128, 32], strides = [1, 1]} : vector<128x384xbf16> to vector<128x32xbf16>
    %cst_11 = arith.constant dense<0.000000e+00> : vector<128x128xf32>
    %20 = tpu.matmul %17, %18, %cst_11 {dimension_numbers = #tpu.dot_dimension_numbers<[1], [1], [0], [0], [0, 0, 1, 0], [], []>} : vector<128x32xbf16>, vector<128x32xbf16>, vector<128x128xf32> -> vector<128x128xf32>
    %21 = vector.broadcast %7 : vector<1x128xf32> to vector<128x128xf32>
    %22 = arith.addf %20, %21 : vector<128x128xf32>
    %cst_12 = arith.constant dense<0xFF800000> : vector<128xf32>
    %23 = vector.multi_reduction <maximumf>, %22, %cst_12 [1] : vector<128x128xf32> to vector<128xf32>
    %24 = vector.shape_cast %23 : vector<128xf32> to vector<128x1xf32>
    %25 = vector.broadcast %24 : vector<128x1xf32> to vector<128x128xf32>
    %26 = arith.subf %22, %25 : vector<128x128xf32>
    %27 = math.exp %26 : vector<128x128xf32>
    %cst_13 = arith.constant dense<0.000000e+00> : vector<128xf32>
    %28 = vector.multi_reduction <add>, %27, %cst_13 [1] : vector<128x128xf32> to vector<128xf32>
    %29 = vector.shape_cast %28 : vector<128xf32> to vector<128x1xf32>
    %30 = arith.truncf %27 : vector<128x128xf32> to vector<128x128xbf16>
    %cst_14 = arith.constant dense<0.000000e+00> : vector<128x32xf32>
    %31 = tpu.matmul %30, %19, %cst_14 {dimension_numbers = #tpu.dot_dimension_numbers<[1], [0], [0], [1], [0, 0, 1, 1], [], []>} : vector<128x128xbf16>, vector<128x32xbf16>, vector<128x32xf32> -> vector<128x32xf32>
    %32 = tpu.reciprocal %29 {approx = true} : vector<128x1xf32> -> vector<128x1xf32>
    %33 = vector.broadcast %32 : vector<128x1xf32> to vector<128x32xf32>
    %34 = arith.mulf %31, %33 : vector<128x32xf32>
    %35 = vector.extract_strided_slice %12 {offsets = [0, 32], sizes = [128, 32], strides = [1, 1]} : vector<128x384xbf16> to vector<128x32xbf16>
    %36 = vector.extract_strided_slice %14 {offsets = [0, 32], sizes = [128, 32], strides = [1, 1]} : vector<128x384xbf16> to vector<128x32xbf16>
    %37 = vector.extract_strided_slice %16 {offsets = [0, 32], sizes = [128, 32], strides = [1, 1]} : vector<128x384xbf16> to vector<128x32xbf16>
    %cst_15 = arith.constant dense<0.000000e+00> : vector<128x128xf32>
    %38 = tpu.matmul %35, %36, %cst_15 {dimension_numbers = #tpu.dot_dimension_numbers<[1], [1], [0], [0], [0, 0, 1, 0], [], []>} : vector<128x32xbf16>, vector<128x32xbf16>, vector<128x128xf32> -> vector<128x128xf32>
    %39 = vector.broadcast %7 : vector<1x128xf32> to vector<128x128xf32>
    %40 = arith.addf %38, %39 : vector<128x128xf32>
    %cst_16 = arith.constant dense<0xFF800000> : vector<128xf32>
    %41 = vector.multi_reduction <maximumf>, %40, %cst_16 [1] : vector<128x128xf32> to vector<128xf32>
    %42 = vector.shape_cast %41 : vector<128xf32> to vector<128x1xf32>
    %43 = vector.broadcast %42 : vector<128x1xf32> to vector<128x128xf32>
    %44 = arith.subf %40, %43 : vector<128x128xf32>
    %45 = math.exp %44 : vector<128x128xf32>
    %cst_17 = arith.constant dense<0.000000e+00> : vector<128xf32>
    %46 = vector.multi_reduction <add>, %45, %cst_17 [1] : vector<128x128xf32> to vector<128xf32>
    %47 = vector.shape_cast %46 : vector<128xf32> to vector<128x1xf32>
    %48 = arith.truncf %45 : vector<128x128xf32> to vector<128x128xbf16>
    %cst_18 = arith.constant dense<0.000000e+00> : vector<128x32xf32>
    %49 = tpu.matmul %48, %37, %cst_18 {dimension_numbers = #tpu.dot_dimension_numbers<[1], [0], [0], [1], [0, 0, 1, 1], [], []>} : vector<128x128xbf16>, vector<128x32xbf16>, vector<128x32xf32> -> vector<128x32xf32>
    %50 = tpu.reciprocal %47 {approx = true} : vector<128x1xf32> -> vector<128x1xf32>
    %51 = vector.broadcast %50 : vector<128x1xf32> to vector<128x32xf32>
    %52 = arith.mulf %49, %51 : vector<128x32xf32>
    %53 = vector.extract_strided_slice %12 {offsets = [0, 64], sizes = [128, 32], strides = [1, 1]} : vector<128x384xbf16> to vector<128x32xbf16>
    %54 = vector.extract_strided_slice %14 {offsets = [0, 64], sizes = [128, 32], strides = [1, 1]} : vector<128x384xbf16> to vector<128x32xbf16>
    %55 = vector.extract_strided_slice %16 {offsets = [0, 64], sizes = [128, 32], strides = [1, 1]} : vector<128x384xbf16> to vector<128x32xbf16>
    %cst_19 = arith.constant dense<0.000000e+00> : vector<128x128xf32>
    %56 = tpu.matmul %53, %54, %cst_19 {dimension_numbers = #tpu.dot_dimension_numbers<[1], [1], [0], [0], [0, 0, 1, 0], [], []>} : vector<128x32xbf16>, vector<128x32xbf16>, vector<128x128xf32> -> vector<128x128xf32>
    %57 = vector.broadcast %7 : vector<1x128xf32> to vector<128x128xf32>
    %58 = arith.addf %56, %57 : vector<128x128xf32>
    %cst_20 = arith.constant dense<0xFF800000> : vector<128xf32>
    %59 = vector.multi_reduction <maximumf>, %58, %cst_20 [1] : vector<128x128xf32> to vector<128xf32>
    %60 = vector.shape_cast %59 : vector<128xf32> to vector<128x1xf32>
    %61 = vector.broadcast %60 : vector<128x1xf32> to vector<128x128xf32>
    %62 = arith.subf %58, %61 : vector<128x128xf32>
    %63 = math.exp %62 : vector<128x128xf32>
    %cst_21 = arith.constant dense<0.000000e+00> : vector<128xf32>
    %64 = vector.multi_reduction <add>, %63, %cst_21 [1] : vector<128x128xf32> to vector<128xf32>
    %65 = vector.shape_cast %64 : vector<128xf32> to vector<128x1xf32>
    %66 = arith.truncf %63 : vector<128x128xf32> to vector<128x128xbf16>
    %cst_22 = arith.constant dense<0.000000e+00> : vector<128x32xf32>
    %67 = tpu.matmul %66, %55, %cst_22 {dimension_numbers = #tpu.dot_dimension_numbers<[1], [0], [0], [1], [0, 0, 1, 1], [], []>} : vector<128x128xbf16>, vector<128x32xbf16>, vector<128x32xf32> -> vector<128x32xf32>
    %68 = tpu.reciprocal %65 {approx = true} : vector<128x1xf32> -> vector<128x1xf32>
    %69 = vector.broadcast %68 : vector<128x1xf32> to vector<128x32xf32>
    %70 = arith.mulf %67, %69 : vector<128x32xf32>
    %71 = vector.extract_strided_slice %12 {offsets = [0, 96], sizes = [128, 32], strides = [1, 1]} : vector<128x384xbf16> to vector<128x32xbf16>
    %72 = vector.extract_strided_slice %14 {offsets = [0, 96], sizes = [128, 32], strides = [1, 1]} : vector<128x384xbf16> to vector<128x32xbf16>
    %73 = vector.extract_strided_slice %16 {offsets = [0, 96], sizes = [128, 32], strides = [1, 1]} : vector<128x384xbf16> to vector<128x32xbf16>
    %cst_23 = arith.constant dense<0.000000e+00> : vector<128x128xf32>
    %74 = tpu.matmul %71, %72, %cst_23 {dimension_numbers = #tpu.dot_dimension_numbers<[1], [1], [0], [0], [0, 0, 1, 0], [], []>} : vector<128x32xbf16>, vector<128x32xbf16>, vector<128x128xf32> -> vector<128x128xf32>
    %75 = vector.broadcast %7 : vector<1x128xf32> to vector<128x128xf32>
    %76 = arith.addf %74, %75 : vector<128x128xf32>
    %cst_24 = arith.constant dense<0xFF800000> : vector<128xf32>
    %77 = vector.multi_reduction <maximumf>, %76, %cst_24 [1] : vector<128x128xf32> to vector<128xf32>
    %78 = vector.shape_cast %77 : vector<128xf32> to vector<128x1xf32>
    %79 = vector.broadcast %78 : vector<128x1xf32> to vector<128x128xf32>
    %80 = arith.subf %76, %79 : vector<128x128xf32>
    %81 = math.exp %80 : vector<128x128xf32>
    %cst_25 = arith.constant dense<0.000000e+00> : vector<128xf32>
    %82 = vector.multi_reduction <add>, %81, %cst_25 [1] : vector<128x128xf32> to vector<128xf32>
    %83 = vector.shape_cast %82 : vector<128xf32> to vector<128x1xf32>
    %84 = arith.truncf %81 : vector<128x128xf32> to vector<128x128xbf16>
    %cst_26 = arith.constant dense<0.000000e+00> : vector<128x32xf32>
    %85 = tpu.matmul %84, %73, %cst_26 {dimension_numbers = #tpu.dot_dimension_numbers<[1], [0], [0], [1], [0, 0, 1, 1], [], []>} : vector<128x128xbf16>, vector<128x32xbf16>, vector<128x32xf32> -> vector<128x32xf32>
    %86 = tpu.reciprocal %83 {approx = true} : vector<128x1xf32> -> vector<128x1xf32>
    %87 = vector.broadcast %86 : vector<128x1xf32> to vector<128x32xf32>
    %88 = arith.mulf %85, %87 : vector<128x32xf32>
    %89 = vector.extract_strided_slice %12 {offsets = [0, 128], sizes = [128, 32], strides = [1, 1]} : vector<128x384xbf16> to vector<128x32xbf16>
    %90 = vector.extract_strided_slice %14 {offsets = [0, 128], sizes = [128, 32], strides = [1, 1]} : vector<128x384xbf16> to vector<128x32xbf16>
    %91 = vector.extract_strided_slice %16 {offsets = [0, 128], sizes = [128, 32], strides = [1, 1]} : vector<128x384xbf16> to vector<128x32xbf16>
    %cst_27 = arith.constant dense<0.000000e+00> : vector<128x128xf32>
    %92 = tpu.matmul %89, %90, %cst_27 {dimension_numbers = #tpu.dot_dimension_numbers<[1], [1], [0], [0], [0, 0, 1, 0], [], []>} : vector<128x32xbf16>, vector<128x32xbf16>, vector<128x128xf32> -> vector<128x128xf32>
    %93 = vector.broadcast %7 : vector<1x128xf32> to vector<128x128xf32>
    %94 = arith.addf %92, %93 : vector<128x128xf32>
    %cst_28 = arith.constant dense<0xFF800000> : vector<128xf32>
    %95 = vector.multi_reduction <maximumf>, %94, %cst_28 [1] : vector<128x128xf32> to vector<128xf32>
    %96 = vector.shape_cast %95 : vector<128xf32> to vector<128x1xf32>
    %97 = vector.broadcast %96 : vector<128x1xf32> to vector<128x128xf32>
    %98 = arith.subf %94, %97 : vector<128x128xf32>
    %99 = math.exp %98 : vector<128x128xf32>
    %cst_29 = arith.constant dense<0.000000e+00> : vector<128xf32>
    %100 = vector.multi_reduction <add>, %99, %cst_29 [1] : vector<128x128xf32> to vector<128xf32>
    %101 = vector.shape_cast %100 : vector<128xf32> to vector<128x1xf32>
    %102 = arith.truncf %99 : vector<128x128xf32> to vector<128x128xbf16>
    %cst_30 = arith.constant dense<0.000000e+00> : vector<128x32xf32>
    %103 = tpu.matmul %102, %91, %cst_30 {dimension_numbers = #tpu.dot_dimension_numbers<[1], [0], [0], [1], [0, 0, 1, 1], [], []>} : vector<128x128xbf16>, vector<128x32xbf16>, vector<128x32xf32> -> vector<128x32xf32>
    %104 = tpu.reciprocal %101 {approx = true} : vector<128x1xf32> -> vector<128x1xf32>
    %105 = vector.broadcast %104 : vector<128x1xf32> to vector<128x32xf32>
    %106 = arith.mulf %103, %105 : vector<128x32xf32>
    %107 = vector.extract_strided_slice %12 {offsets = [0, 160], sizes = [128, 32], strides = [1, 1]} : vector<128x384xbf16> to vector<128x32xbf16>
    %108 = vector.extract_strided_slice %14 {offsets = [0, 160], sizes = [128, 32], strides = [1, 1]} : vector<128x384xbf16> to vector<128x32xbf16>
    %109 = vector.extract_strided_slice %16 {offsets = [0, 160], sizes = [128, 32], strides = [1, 1]} : vector<128x384xbf16> to vector<128x32xbf16>
    %cst_31 = arith.constant dense<0.000000e+00> : vector<128x128xf32>
    %110 = tpu.matmul %107, %108, %cst_31 {dimension_numbers = #tpu.dot_dimension_numbers<[1], [1], [0], [0], [0, 0, 1, 0], [], []>} : vector<128x32xbf16>, vector<128x32xbf16>, vector<128x128xf32> -> vector<128x128xf32>
    %111 = vector.broadcast %7 : vector<1x128xf32> to vector<128x128xf32>
    %112 = arith.addf %110, %111 : vector<128x128xf32>
    %cst_32 = arith.constant dense<0xFF800000> : vector<128xf32>
    %113 = vector.multi_reduction <maximumf>, %112, %cst_32 [1] : vector<128x128xf32> to vector<128xf32>
    %114 = vector.shape_cast %113 : vector<128xf32> to vector<128x1xf32>
    %115 = vector.broadcast %114 : vector<128x1xf32> to vector<128x128xf32>
    %116 = arith.subf %112, %115 : vector<128x128xf32>
    %117 = math.exp %116 : vector<128x128xf32>
    %cst_33 = arith.constant dense<0.000000e+00> : vector<128xf32>
    %118 = vector.multi_reduction <add>, %117, %cst_33 [1] : vector<128x128xf32> to vector<128xf32>
    %119 = vector.shape_cast %118 : vector<128xf32> to vector<128x1xf32>
    %120 = arith.truncf %117 : vector<128x128xf32> to vector<128x128xbf16>
    %cst_34 = arith.constant dense<0.000000e+00> : vector<128x32xf32>
    %121 = tpu.matmul %120, %109, %cst_34 {dimension_numbers = #tpu.dot_dimension_numbers<[1], [0], [0], [1], [0, 0, 1, 1], [], []>} : vector<128x128xbf16>, vector<128x32xbf16>, vector<128x32xf32> -> vector<128x32xf32>
    %122 = tpu.reciprocal %119 {approx = true} : vector<128x1xf32> -> vector<128x1xf32>
    %123 = vector.broadcast %122 : vector<128x1xf32> to vector<128x32xf32>
    %124 = arith.mulf %121, %123 : vector<128x32xf32>
    %125 = vector.extract_strided_slice %12 {offsets = [0, 192], sizes = [128, 32], strides = [1, 1]} : vector<128x384xbf16> to vector<128x32xbf16>
    %126 = vector.extract_strided_slice %14 {offsets = [0, 192], sizes = [128, 32], strides = [1, 1]} : vector<128x384xbf16> to vector<128x32xbf16>
    %127 = vector.extract_strided_slice %16 {offsets = [0, 192], sizes = [128, 32], strides = [1, 1]} : vector<128x384xbf16> to vector<128x32xbf16>
    %cst_35 = arith.constant dense<0.000000e+00> : vector<128x128xf32>
    %128 = tpu.matmul %125, %126, %cst_35 {dimension_numbers = #tpu.dot_dimension_numbers<[1], [1], [0], [0], [0, 0, 1, 0], [], []>} : vector<128x32xbf16>, vector<128x32xbf16>, vector<128x128xf32> -> vector<128x128xf32>
    %129 = vector.broadcast %7 : vector<1x128xf32> to vector<128x128xf32>
    %130 = arith.addf %128, %129 : vector<128x128xf32>
    %cst_36 = arith.constant dense<0xFF800000> : vector<128xf32>
    %131 = vector.multi_reduction <maximumf>, %130, %cst_36 [1] : vector<128x128xf32> to vector<128xf32>
    %132 = vector.shape_cast %131 : vector<128xf32> to vector<128x1xf32>
    %133 = vector.broadcast %132 : vector<128x1xf32> to vector<128x128xf32>
    %134 = arith.subf %130, %133 : vector<128x128xf32>
    %135 = math.exp %134 : vector<128x128xf32>
    %cst_37 = arith.constant dense<0.000000e+00> : vector<128xf32>
    %136 = vector.multi_reduction <add>, %135, %cst_37 [1] : vector<128x128xf32> to vector<128xf32>
    %137 = vector.shape_cast %136 : vector<128xf32> to vector<128x1xf32>
    %138 = arith.truncf %135 : vector<128x128xf32> to vector<128x128xbf16>
    %cst_38 = arith.constant dense<0.000000e+00> : vector<128x32xf32>
    %139 = tpu.matmul %138, %127, %cst_38 {dimension_numbers = #tpu.dot_dimension_numbers<[1], [0], [0], [1], [0, 0, 1, 1], [], []>} : vector<128x128xbf16>, vector<128x32xbf16>, vector<128x32xf32> -> vector<128x32xf32>
    %140 = tpu.reciprocal %137 {approx = true} : vector<128x1xf32> -> vector<128x1xf32>
    %141 = vector.broadcast %140 : vector<128x1xf32> to vector<128x32xf32>
    %142 = arith.mulf %139, %141 : vector<128x32xf32>
    %143 = vector.extract_strided_slice %12 {offsets = [0, 224], sizes = [128, 32], strides = [1, 1]} : vector<128x384xbf16> to vector<128x32xbf16>
    %144 = vector.extract_strided_slice %14 {offsets = [0, 224], sizes = [128, 32], strides = [1, 1]} : vector<128x384xbf16> to vector<128x32xbf16>
    %145 = vector.extract_strided_slice %16 {offsets = [0, 224], sizes = [128, 32], strides = [1, 1]} : vector<128x384xbf16> to vector<128x32xbf16>
    %cst_39 = arith.constant dense<0.000000e+00> : vector<128x128xf32>
    %146 = tpu.matmul %143, %144, %cst_39 {dimension_numbers = #tpu.dot_dimension_numbers<[1], [1], [0], [0], [0, 0, 1, 0], [], []>} : vector<128x32xbf16>, vector<128x32xbf16>, vector<128x128xf32> -> vector<128x128xf32>
    %147 = vector.broadcast %7 : vector<1x128xf32> to vector<128x128xf32>
    %148 = arith.addf %146, %147 : vector<128x128xf32>
    %cst_40 = arith.constant dense<0xFF800000> : vector<128xf32>
    %149 = vector.multi_reduction <maximumf>, %148, %cst_40 [1] : vector<128x128xf32> to vector<128xf32>
    %150 = vector.shape_cast %149 : vector<128xf32> to vector<128x1xf32>
    %151 = vector.broadcast %150 : vector<128x1xf32> to vector<128x128xf32>
    %152 = arith.subf %148, %151 : vector<128x128xf32>
    %153 = math.exp %152 : vector<128x128xf32>
    %cst_41 = arith.constant dense<0.000000e+00> : vector<128xf32>
    %154 = vector.multi_reduction <add>, %153, %cst_41 [1] : vector<128x128xf32> to vector<128xf32>
    %155 = vector.shape_cast %154 : vector<128xf32> to vector<128x1xf32>
    %156 = arith.truncf %153 : vector<128x128xf32> to vector<128x128xbf16>
    %cst_42 = arith.constant dense<0.000000e+00> : vector<128x32xf32>
    %157 = tpu.matmul %156, %145, %cst_42 {dimension_numbers = #tpu.dot_dimension_numbers<[1], [0], [0], [1], [0, 0, 1, 1], [], []>} : vector<128x128xbf16>, vector<128x32xbf16>, vector<128x32xf32> -> vector<128x32xf32>
    %158 = tpu.reciprocal %155 {approx = true} : vector<128x1xf32> -> vector<128x1xf32>
    %159 = vector.broadcast %158 : vector<128x1xf32> to vector<128x32xf32>
    %160 = arith.mulf %157, %159 : vector<128x32xf32>
    %161 = vector.extract_strided_slice %12 {offsets = [0, 256], sizes = [128, 32], strides = [1, 1]} : vector<128x384xbf16> to vector<128x32xbf16>
    %162 = vector.extract_strided_slice %14 {offsets = [0, 256], sizes = [128, 32], strides = [1, 1]} : vector<128x384xbf16> to vector<128x32xbf16>
    %163 = vector.extract_strided_slice %16 {offsets = [0, 256], sizes = [128, 32], strides = [1, 1]} : vector<128x384xbf16> to vector<128x32xbf16>
    %cst_43 = arith.constant dense<0.000000e+00> : vector<128x128xf32>
    %164 = tpu.matmul %161, %162, %cst_43 {dimension_numbers = #tpu.dot_dimension_numbers<[1], [1], [0], [0], [0, 0, 1, 0], [], []>} : vector<128x32xbf16>, vector<128x32xbf16>, vector<128x128xf32> -> vector<128x128xf32>
    %165 = vector.broadcast %7 : vector<1x128xf32> to vector<128x128xf32>
    %166 = arith.addf %164, %165 : vector<128x128xf32>
    %cst_44 = arith.constant dense<0xFF800000> : vector<128xf32>
    %167 = vector.multi_reduction <maximumf>, %166, %cst_44 [1] : vector<128x128xf32> to vector<128xf32>
    %168 = vector.shape_cast %167 : vector<128xf32> to vector<128x1xf32>
    %169 = vector.broadcast %168 : vector<128x1xf32> to vector<128x128xf32>
    %170 = arith.subf %166, %169 : vector<128x128xf32>
    %171 = math.exp %170 : vector<128x128xf32>
    %cst_45 = arith.constant dense<0.000000e+00> : vector<128xf32>
    %172 = vector.multi_reduction <add>, %171, %cst_45 [1] : vector<128x128xf32> to vector<128xf32>
    %173 = vector.shape_cast %172 : vector<128xf32> to vector<128x1xf32>
    %174 = arith.truncf %171 : vector<128x128xf32> to vector<128x128xbf16>
    %cst_46 = arith.constant dense<0.000000e+00> : vector<128x32xf32>
    %175 = tpu.matmul %174, %163, %cst_46 {dimension_numbers = #tpu.dot_dimension_numbers<[1], [0], [0], [1], [0, 0, 1, 1], [], []>} : vector<128x128xbf16>, vector<128x32xbf16>, vector<128x32xf32> -> vector<128x32xf32>
    %176 = tpu.reciprocal %173 {approx = true} : vector<128x1xf32> -> vector<128x1xf32>
    %177 = vector.broadcast %176 : vector<128x1xf32> to vector<128x32xf32>
    %178 = arith.mulf %175, %177 : vector<128x32xf32>
    %179 = vector.extract_strided_slice %12 {offsets = [0, 288], sizes = [128, 32], strides = [1, 1]} : vector<128x384xbf16> to vector<128x32xbf16>
    %180 = vector.extract_strided_slice %14 {offsets = [0, 288], sizes = [128, 32], strides = [1, 1]} : vector<128x384xbf16> to vector<128x32xbf16>
    %181 = vector.extract_strided_slice %16 {offsets = [0, 288], sizes = [128, 32], strides = [1, 1]} : vector<128x384xbf16> to vector<128x32xbf16>
    %cst_47 = arith.constant dense<0.000000e+00> : vector<128x128xf32>
    %182 = tpu.matmul %179, %180, %cst_47 {dimension_numbers = #tpu.dot_dimension_numbers<[1], [1], [0], [0], [0, 0, 1, 0], [], []>} : vector<128x32xbf16>, vector<128x32xbf16>, vector<128x128xf32> -> vector<128x128xf32>
    %183 = vector.broadcast %7 : vector<1x128xf32> to vector<128x128xf32>
    %184 = arith.addf %182, %183 : vector<128x128xf32>
    %cst_48 = arith.constant dense<0xFF800000> : vector<128xf32>
    %185 = vector.multi_reduction <maximumf>, %184, %cst_48 [1] : vector<128x128xf32> to vector<128xf32>
    %186 = vector.shape_cast %185 : vector<128xf32> to vector<128x1xf32>
    %187 = vector.broadcast %186 : vector<128x1xf32> to vector<128x128xf32>
    %188 = arith.subf %184, %187 : vector<128x128xf32>
    %189 = math.exp %188 : vector<128x128xf32>
    %cst_49 = arith.constant dense<0.000000e+00> : vector<128xf32>
    %190 = vector.multi_reduction <add>, %189, %cst_49 [1] : vector<128x128xf32> to vector<128xf32>
    %191 = vector.shape_cast %190 : vector<128xf32> to vector<128x1xf32>
    %192 = arith.truncf %189 : vector<128x128xf32> to vector<128x128xbf16>
    %cst_50 = arith.constant dense<0.000000e+00> : vector<128x32xf32>
    %193 = tpu.matmul %192, %181, %cst_50 {dimension_numbers = #tpu.dot_dimension_numbers<[1], [0], [0], [1], [0, 0, 1, 1], [], []>} : vector<128x128xbf16>, vector<128x32xbf16>, vector<128x32xf32> -> vector<128x32xf32>
    %194 = tpu.reciprocal %191 {approx = true} : vector<128x1xf32> -> vector<128x1xf32>
    %195 = vector.broadcast %194 : vector<128x1xf32> to vector<128x32xf32>
    %196 = arith.mulf %193, %195 : vector<128x32xf32>
    %197 = vector.extract_strided_slice %12 {offsets = [0, 320], sizes = [128, 32], strides = [1, 1]} : vector<128x384xbf16> to vector<128x32xbf16>
    %198 = vector.extract_strided_slice %14 {offsets = [0, 320], sizes = [128, 32], strides = [1, 1]} : vector<128x384xbf16> to vector<128x32xbf16>
    %199 = vector.extract_strided_slice %16 {offsets = [0, 320], sizes = [128, 32], strides = [1, 1]} : vector<128x384xbf16> to vector<128x32xbf16>
    %cst_51 = arith.constant dense<0.000000e+00> : vector<128x128xf32>
    %200 = tpu.matmul %197, %198, %cst_51 {dimension_numbers = #tpu.dot_dimension_numbers<[1], [1], [0], [0], [0, 0, 1, 0], [], []>} : vector<128x32xbf16>, vector<128x32xbf16>, vector<128x128xf32> -> vector<128x128xf32>
    %201 = vector.broadcast %7 : vector<1x128xf32> to vector<128x128xf32>
    %202 = arith.addf %200, %201 : vector<128x128xf32>
    %cst_52 = arith.constant dense<0xFF800000> : vector<128xf32>
    %203 = vector.multi_reduction <maximumf>, %202, %cst_52 [1] : vector<128x128xf32> to vector<128xf32>
    %204 = vector.shape_cast %203 : vector<128xf32> to vector<128x1xf32>
    %205 = vector.broadcast %204 : vector<128x1xf32> to vector<128x128xf32>
    %206 = arith.subf %202, %205 : vector<128x128xf32>
    %207 = math.exp %206 : vector<128x128xf32>
    %cst_53 = arith.constant dense<0.000000e+00> : vector<128xf32>
    %208 = vector.multi_reduction <add>, %207, %cst_53 [1] : vector<128x128xf32> to vector<128xf32>
    %209 = vector.shape_cast %208 : vector<128xf32> to vector<128x1xf32>
    %210 = arith.truncf %207 : vector<128x128xf32> to vector<128x128xbf16>
    %cst_54 = arith.constant dense<0.000000e+00> : vector<128x32xf32>
    %211 = tpu.matmul %210, %199, %cst_54 {dimension_numbers = #tpu.dot_dimension_numbers<[1], [0], [0], [1], [0, 0, 1, 1], [], []>} : vector<128x128xbf16>, vector<128x32xbf16>, vector<128x32xf32> -> vector<128x32xf32>
    %212 = tpu.reciprocal %209 {approx = true} : vector<128x1xf32> -> vector<128x1xf32>
    %213 = vector.broadcast %212 : vector<128x1xf32> to vector<128x32xf32>
    %214 = arith.mulf %211, %213 : vector<128x32xf32>
    %215 = vector.extract_strided_slice %12 {offsets = [0, 352], sizes = [128, 32], strides = [1, 1]} : vector<128x384xbf16> to vector<128x32xbf16>
    %216 = vector.extract_strided_slice %14 {offsets = [0, 352], sizes = [128, 32], strides = [1, 1]} : vector<128x384xbf16> to vector<128x32xbf16>
    %217 = vector.extract_strided_slice %16 {offsets = [0, 352], sizes = [128, 32], strides = [1, 1]} : vector<128x384xbf16> to vector<128x32xbf16>
    %cst_55 = arith.constant dense<0.000000e+00> : vector<128x128xf32>
    %218 = tpu.matmul %215, %216, %cst_55 {dimension_numbers = #tpu.dot_dimension_numbers<[1], [1], [0], [0], [0, 0, 1, 0], [], []>} : vector<128x32xbf16>, vector<128x32xbf16>, vector<128x128xf32> -> vector<128x128xf32>
    %219 = vector.broadcast %7 : vector<1x128xf32> to vector<128x128xf32>
    %220 = arith.addf %218, %219 : vector<128x128xf32>
    %cst_56 = arith.constant dense<0xFF800000> : vector<128xf32>
    %221 = vector.multi_reduction <maximumf>, %220, %cst_56 [1] : vector<128x128xf32> to vector<128xf32>
    %222 = vector.shape_cast %221 : vector<128xf32> to vector<128x1xf32>
    %223 = vector.broadcast %222 : vector<128x1xf32> to vector<128x128xf32>
    %224 = arith.subf %220, %223 : vector<128x128xf32>
    %225 = math.exp %224 : vector<128x128xf32>
    %cst_57 = arith.constant dense<0.000000e+00> : vector<128xf32>
    %226 = vector.multi_reduction <add>, %225, %cst_57 [1] : vector<128x128xf32> to vector<128xf32>
    %227 = vector.shape_cast %226 : vector<128xf32> to vector<128x1xf32>
    %228 = arith.truncf %225 : vector<128x128xf32> to vector<128x128xbf16>
    %cst_58 = arith.constant dense<0.000000e+00> : vector<128x32xf32>
    %229 = tpu.matmul %228, %217, %cst_58 {dimension_numbers = #tpu.dot_dimension_numbers<[1], [0], [0], [1], [0, 0, 1, 1], [], []>} : vector<128x128xbf16>, vector<128x32xbf16>, vector<128x32xf32> -> vector<128x32xf32>
    %230 = tpu.reciprocal %227 {approx = true} : vector<128x1xf32> -> vector<128x1xf32>
    %231 = vector.broadcast %230 : vector<128x1xf32> to vector<128x32xf32>
    %232 = arith.mulf %229, %231 : vector<128x32xf32>
    %233 = tpu.concatenate %34, %52, %70, %88, %106, %124, %142, %160, %178, %196, %214, %232 in 1 : vector<128x32xf32>, vector<128x32xf32>, vector<128x32xf32>, vector<128x32xf32>, vector<128x32xf32>, vector<128x32xf32>, vector<128x32xf32>, vector<128x32xf32>, vector<128x32xf32>, vector<128x32xf32>, vector<128x32xf32>, vector<128x32xf32> -> vector<128x384xf32>
    %c0_59 = arith.constant 0 : index
    %c0_60 = arith.constant 0 : index
    %c0_61 = arith.constant 0 : index
    %234 = vector.load %arg6[%c0_59, %c0_60, %c0_61] : memref<1x128x384xf32, #tpu.memory_space<vmem>>, vector<1x128x384xf32>
    %235 = vector.shape_cast %234 : vector<1x128x384xf32> to vector<128x384xf32>
    %236 = vector.shape_cast %233 : vector<128x384xf32> to vector<1x128x384xf32>
    tpu.vector_store %arg6[%c0_59, %c0_60, %c0_61], %236 {strides = array<i32>} : memref<1x128x384xf32, #tpu.memory_space<vmem>>, vector<1x128x384xf32>,
    return
  }
  func.func @transform_0(%arg0: i32, %arg1: i32) -> (i32, i32, i32) {
    %c0_i32 = arith.constant 0 : i32
    %c0_i32_0 = arith.constant 0 : i32
    %c0_i32_1 = arith.constant 0 : i32
    return %arg1, %c0_i32, %c0_i32_0 : i32, i32, i32
  }
  func.func @transform_1(%arg0: i32, %arg1: i32) -> (i32, i32, i32) {
    %c0_i32 = arith.constant 0 : i32
    %c0_i32_0 = arith.constant 0 : i32
    %c0_i32_1 = arith.constant 0 : i32
    return %arg0, %c0_i32, %c0_i32_0 : i32, i32, i32
  }
  func.func @transform_2(%arg0: i32, %arg1: i32) -> (i32, i32, i32) {
    %c0_i32 = arith.constant 0 : i32
    %c0_i32_0 = arith.constant 0 : i32
    %c0_i32_1 = arith.constant 0 : i32
    return %arg0, %c0_i32, %c0_i32_0 : i32, i32, i32
  }
  func.func @transform_3(%arg0: i32, %arg1: i32) -> (i32, i32, i32) {
    %c0_i32 = arith.constant 0 : i32
    %c0_i32_0 = arith.constant 0 : i32
    %c0_i32_1 = arith.constant 0 : i32
    return %arg1, %c0_i32, %c0_i32_0 : i32, i32, i32
  }
  func.func @transform_4(%arg0: i32, %arg1: i32) -> (i32, i32, i32) {
    %c0_i32 = arith.constant 0 : i32
    %c0_i32_0 = arith.constant 0 : i32
    return %arg1, %c0_i32, %arg0 : i32, i32, i32
  }
}

</mosaic_0001>

<bundles_post_ra>
// kernel: tpu_custom_call.1
= control target key start
LH: loop header
LB: loop body
LE: loop exit
PB: predicated region body
PF: predicated region fallthrough
CT: control target
= control target key end

     0   :  { %9 = vsyncpa [#allocation3], 0  ;;  %s17839_s0 = inlined_call_operand.hbm [shape: bf16[2,128,384], index: 0, kind: input, shape index: {}]   ;;  %s17840_s1 = inlined_call_operand.hbm [shape: bf16[1,384,1152], index: 1, kind: input, shape index: {}]   ;;  %s17841_s2 = inlined_call_operand.hbm [shape: f32[1,1,1152], index: 2, kind: input, shape index: {}]   ;;  %s17842_s3 = inlined_call_operand.vmem [shape: f32[2,1,128], index: 3, kind: input, shape index: {}]   ;;  %s17843_s4 = inlined_call_operand.hbm [shape: f32[2,128,384], index: 4, kind: output, shape index: {}]  }
   0x1   :  { %11 = vsyncpa [#allocation3 + $0x1], 0 }
   0x2   :  { %12 = vsyncpa [#allocation6], 0 }
   0x3   :  { %13 = vsyncpa [#allocation4], 0 }
   0x4   :  { %15 = vsyncpa [#allocation4 + $0x1], 0  ;;  %s12637_s15 = smov 0   ;;  %s12639_s16 = smov 0  }
   0x5   :  { %s12641_s17 = smov 0   ;;  %s12643_s18 = smov 0  }
   0x6   :  { %s12645_s19 = smov 0   ;;  %s12647_s20 = smov 0  }
   0x7 LB: > { %s9226_s21 = sadd.s32 4294967295, %s12596_s20   ;;  %s9227_s22 = sadd.s32 4294967294, %s12596_s20   ;;  %s12596_s20 = sphi %s12647_s20, %s21_s20   ;;  %s12592_s19 = sphi %s12645_s19, %s19050_s19   ;;  %s12588_s18 = sphi %s12643_s18, %s19049_s18   ;;  %s12584_s17 = sphi %s12641_s17, %s19048_s17   ;;  %s12580_s16 = sphi %s12639_s16, %s19047_s16   ;;  %s12576_s15 = sphi %s12637_s15, %s19046_s15  }
   0x8   : > { %p53_p0 = scmp.ne.s32.totalorder %s12580_s16, %s12576_s15  ;;  %p12671_p1 = scmp.eq.s32.totalorder %s9226_s21, 0 }
   0x9   : > { %p12675_p2 = scmp.eq.s32.totalorder %s9226_s21, 1  ;;  %p163_p3 = scmp.eq.s32.totalorder %s9227_s22, 1 }
   0xa   : > { %s18019_s23 = scalar_select %p12671_p1, 1, 0 }
   0xb   : > { %p12681_p4 = por %p12671_p1, %p53_p0  ;;  %p9228_p5 = scmp.ge.s32.totalorder %s12596_s20, 1 }
   0xc   : > { %p12686_p6 = por %p163_p3, %p53_p0  ;;  %p170_p7 = scmp.lt.s32.totalorder %s12596_s20, 3 }
   0xd   : > { %s18021_s25 = scalar_select %p12681_p4, 1, 0 }
   0xe   : > { %s18022_s26 = scalar_select %p12686_p6, 1, 0 }
   0xf   : > { %p12691_p8 = pnand %p9228_p5, %p170_p7  ;;  %s12598_s28 = smov [#allocation5]  }
  0x10   : > { %s185_s29 = sshll.u32 %s12598_s28, 4  ;;  %s12599_s5 = smov [#allocation7]   ;;  %s12695_s29 = int_to_ptr.vmem [resolvable:$true] %s185_s29 }
  0x11   : > { %p11210_p9 = pneg %p12691_p8  ;;  %s202_s6 = sshll.u32 %s12599_s5, 4  ;;  %s12706_s6 = int_to_ptr.vmem [resolvable:$true] %s202_s6 }
  0x12   : > { %s12424_s9 = scalar_lea.hbm %s17840_s1, 27648 }
  0x13   : > { %p12702_p11 = pnand %p11210_p9, %p12671_p1  ;;  %p12425_p12 = scmp.ne.s32.totalorder %s17840_s1, %s12424_s9 }
  0x14   : > { %p12431_p5 = scmp.lt.u32.totalorder %s12424_s9, %s17840_s1 }
  0x15   : > { %p12426_p13 = pneg %p12702_p11 }
  0x17   : > { %p12427_p0 = pnand %p12426_p13, %p12425_p12 }
  0x19   : > { %p12428_p3 = pneg %p12427_p0 }
  0x1b   : > { %p12433_p7 = pnand %p12431_p5, %p12428_p3 }
  0x1d   : > { %12436 = shalt.err (!%p12433_p7)
}
  0x1e   : > { %s12437_s14 = scalar_lea.vmem %s12695_s29, 27648  ;;  %p12445_p1 = scmp.lt.s32.totalorder %s12695_s29, %s12695_s29 }
  0x1f   : > { %p12438_p9 = scmp.ne.s32.totalorder %s12695_s29, %s12437_s14  ;;  %p12446_p12 = scmp.lt.s32.totalorder %s12437_s14, %s12437_s14 }
  0x21   : > { %p12440_p10 = pnand %p12438_p9, %p12426_p13  ;;  %p12447_p0 = por %p12446_p12, %p12445_p1 }
  0x23   : > { %p12441_p6 = pneg %p12440_p10 }
  0x25   : > { %p12448_p4 = pnand %p12447_p0, %p12441_p6 }
  0x27   : > { %12451 = shalt.err (!%p12448_p4)
}
  0x28   : > { %s12600_s21 = smov 576   ;;  %s12601_s22 = smov 36  }
  0x29   : > { %11213 = dma.hbm_to_vmem [thread:$0]  (!%p12702_p11), %s17840_s1, 27648, %s12695_s29, [#allocation6], %s12600_s21, %s12600_s21, %s12601_s22  }
  0x2a   : > { %s12452_s9 = scalar_lea.hbm %s17841_s2, 144 }
  0x2b   : > { %p12453_p1 = scmp.ne.s32.totalorder %s17841_s2, %s12452_s9  ;;  %p12459_p10 = scmp.lt.u32.totalorder %s12452_s9, %s17841_s2 }
  0x2d   : > { %p12455_p4 = pnand %p12453_p1, %p12426_p13 }
  0x2f   : > { %p12456_p6 = pneg %p12455_p4 }
  0x31   : > { %p12461_p3 = pnand %p12459_p10, %p12456_p6 }
  0x33   : > { %12464 = shalt.err (!%p12461_p3)
}
  0x34   : > { %s12465_s29 = scalar_lea.vmem %s12706_s6, 144  ;;  %s12472_s14 = scalar_lea.vmem %s12706_s6, 160 }
  0x35   : > { %p12466_p5 = scmp.ne.s32.totalorder %s12706_s6, %s12465_s29  ;;  %p12473_p12 = scmp.lt.s32.totalorder %s12706_s6, %s12706_s6 }
  0x36   : > { %p12474_p0 = scmp.lt.s32.totalorder %s12472_s14, %s12465_s29 }
  0x37   : > { %p12468_p7 = pnand %p12466_p5, %p12426_p13 }
  0x38   : > { %p12475_p1 = por %p12474_p0, %p12473_p12 }
  0x39   : > { %p12469_p9 = pneg %p12468_p7 }
  0x3b   : > { %p12476_p4 = pnand %p12475_p1, %p12469_p9 }
  0x3d   : > { %12479 = shalt.err (!%p12476_p4)
}
  0x3e   : > { %11216 = dma.hbm_to_vmem [thread:$0]  (!%p12702_p11), %s17841_s2, 144, %s12706_s6, [#allocation6]  }
  0x3f   : > { %s30_s28 = sadd.s32 1, %s12592_s19  ;;  %s40_s5 = sadd.s32 1, %s12584_s17 }
  0x40   : > { %p31_p13 = scmp.ge.s32.totalorder %s30_s28, 2  ;;  %p47_p6 = scmp.ne.s32.totalorder %s12584_s17, %s12580_s16 }
  0x41   : > { %p48_p10 = scmp.eq.s32.totalorder %s12596_s20, 0  ;;  %p11227_p3 = scmp.lt.s32.totalorder %s12596_s20, 2 }
  0x42   : > { %s19052_s28 = smov (%p31_p13, %s30_s28), 0  ;;  %p12771_p7 = por %p12675_p2, %p47_p6 }
  0x43   : > { %p49_p5 = por %p48_p10, %p47_p6  ;;  %s37_s7 = ssub.s32 %s12592_s19, %s19052_s28 }
  0x44   : > { %s18025_s30 = scalar_select %p12771_p7, 1, 0 }
  0x45   : > { %s213_s8 = sand.u32 1, %s12584_s17   ;;  %p38_p9 = scmp.eq.s32.totalorder %s37_s7, 0 }
  0x46   : > { %s11193_s6 = smul.u32 192, %s213_s8  ;;  %p12778_p11 = pnand %p11227_p3, %p49_p5 }
  0x47   : > { %s12783_s10 = scalar_select %p38_p9, %s12584_s17, %s40_s5  }
  0x48   : > { %s11194_s11 = smul.u32 3072, %s12592_s19  ;;  %s217_s12 = scalar_lea.vmem [#allocation2], %s11193_s6 }
  0x49   : > { %s224_s13 = sshll.u32 %s217_s12, 4  ;;  %s12793_s21 = scalar_lea.sflag [#allocation3], %s213_s8  ;;  %s12791_s13 = int_to_ptr.vmem [resolvable:$true] %s224_s13 }
  0x4a   : > { %s12789_s14 = scalar_lea.hbm %s17839_s0, %s11194_s11  ;;  %p12482_p12 = pneg %p12778_p11 }
  0x4b   : > { %s12480_s22 = scalar_lea.hbm %s12789_s14, 3072  ;;  %s12485_s6 = scalar_lea.hbm %s17839_s0, 6144 }
  0x4c   : > { %p12481_p2 = scmp.ne.s32.totalorder %s12789_s14, %s12480_s22  ;;  %p12486_p4 = scmp.lt.u32.totalorder %s12789_s14, %s17839_s0 }
  0x4d   : > { %p12487_p13 = scmp.lt.u32.totalorder %s12485_s6, %s12480_s22  ;;  %p12489_p10 = scmp.lt.u32.totalorder %s12480_s22, %s12789_s14 }
  0x4e   : > { %p12483_p0 = pnand %p12482_p12, %p12481_p2 }
  0x4f   : > { %p12488_p6 = por %p12487_p13, %p12486_p4 }
  0x50   : > { %p12484_p1 = pneg %p12483_p0 }
  0x51   : > { %p12490_p3 = por %p12489_p10, %p12488_p6 }
  0x53   : > { %p12491_p5 = pnand %p12490_p3, %p12484_p1 }
  0x55   : > { %12494 = shalt.err (!%p12491_p5)
}
  0x56   : > { %s12495_s8 = scalar_lea.vmem %s12791_s13, 3072  ;;  %s12602_s24 = smov [#allocation2]  }
  0x57   : > { %p12496_p9 = scmp.ne.s32.totalorder %s12791_s13, %s12495_s8  ;;  %s12500_s29 = sshll.u32 %s12602_s24, 4  ;;  %s12501_s29 = int_to_ptr.vmem [resolvable:$false] %s12500_s29 }
  0x58   : > { %s12502_s5 = scalar_lea.vmem %s12501_s29, 6144  ;;  %p12503_p7 = scmp.lt.s32.totalorder %s12791_s13, %s12501_s29 }
  0x59   : > { %p12498_p2 = pnand %p12496_p9, %p12482_p12  ;;  %p12504_p4 = scmp.lt.s32.totalorder %s12502_s5, %s12495_s8 }
  0x5b   : > { %p12499_p0 = pneg %p12498_p2  ;;  %p12505_p13 = por %p12504_p4, %p12503_p7 }
  0x5d   : > { %p12506_p6 = pnand %p12505_p13, %p12499_p0 }
  0x5f   : > { %12509 = shalt.err (!%p12506_p6)
}
  0x60   : > { %s12603_s22 = smov 192   ;;  %s12604_s7 = smov 12  }
  0x61   : > { %11220 = dma.hbm_to_vmem [thread:$0]  (!%p12778_p11), %s12789_s14, 3072, %s12791_s13, %s12793_s21, %s12603_s22, %s12603_s22, %s12604_s7  }
  0x62   : > { %242 = sbr.rel (%p12691_p8) target bundleno = 6424 (0x1918), region = 36 }
  0x69   : > { %s12824_s6 = sand.u32 1, %s12580_s16   ;;  %p18027_p7 = scmp.ne.s32.totalorder %s18021_s25, 0 }
  0x6a   : > { %s11195_s11 = smul.u32 192, %s12824_s6  ;;  %s245_s12 = scalar_lea.sflag [#allocation3], %s12824_s6 }
  0x6c   : > { %s12828_s8 = scalar_lea.vmem [#allocation2], %s11195_s11 }
  0x6d   : > { %12563 = dma.done.wait (%p18027_p7), %s245_s12, 3072  }
  0x6e   : > { %12565 = vsyncadd (%p18027_p7), %s245_s12, 4294964224  ;;  %p18028_p11 = scmp.ne.s32.totalorder %s18019_s23, 0 }
  0x70   : > { %12567 = dma.done.wait (%p18028_p11), [#allocation6], 27792  }
  0x71   : > { %12569 = vsyncadd (%p18028_p11), [#allocation6], 4294939504  ;;  %v11291_v0 = vld [vmem:[#allocation5 + $0x4] ss:$36 sps:$4 sm:$0xff]   ;;  %v11293_v1 = vld [vmem:[#allocation5 + $0xc] ss:$36 sps:$4 sm:$0xff]  }
  0x72   : > { %1843 = vmatprep.subr.bf16.mxu0 %v11291_v0  ;;  %v11295_v2 = vld [vmem:[#allocation5] ss:$36 sps:$4 sm:$0xff]   ;;  %v11296_v3 = vld [vmem:[#allocation5 + $0x8] ss:$36 sps:$4 sm:$0xff]   ;;  %2069 = vmatprep.subr.bf16.mxu1 %v11293_v1  ;;  %v11299_v5 = vld [vmem:[#allocation5 + $0x54] ss:$36 sps:$4 sm:$0xff]  }
  0x73   : > { %v11297_v4 = vld [vmem:[#allocation5 + $0x4c] ss:$36 sps:$4 sm:$0xff]   ;;  %1844 = vmatpush1.bf16.msra.mxu0 %v11295_v2  ;;  %2070 = vmatpush1.bf16.msra.mxu1 %v11296_v3  ;;  %v11303_v8 = vld [vmem:[#allocation5 + $0x94] ss:$36 sps:$4 sm:$0xff]   ;;  %v11305_v9 = vld [vmem:[#allocation5 + $0x9c] ss:$36 sps:$4 sm:$0xff]  }
  0x74   : > { %v11301_v6 = vld [vmem:[#allocation5 + $0x48] ss:$36 sps:$4 sm:$0xff]   ;;  %1845 = vmatprep.subr.bf16.mxu0 %v11297_v4  ;;  %v11302_v7 = vld [vmem:[#allocation5 + $0x50] ss:$36 sps:$4 sm:$0xff]   ;;  %2071 = vmatprep.subr.bf16.mxu1 %v11299_v5  ;;  %v11308_v11 = vld [vmem:[#allocation5 + $0x98] ss:$36 sps:$4 sm:$0xff]  }
  0x75   : > { %v11307_v10 = vld [vmem:[#allocation5 + $0x90] ss:$36 sps:$4 sm:$0xff]   ;;  %v11309_v12 = vld [vmem:[#allocation5 + $0xdc] ss:$36 sps:$4 sm:$0xff]   ;;  %v11311_v13 = vld [vmem:[#allocation5 + $0xe4] ss:$36 sps:$4 sm:$0xff]  }
  0x76   : > { %v11313_v14 = vld [vmem:[#allocation5 + $0xd8] ss:$36 sps:$4 sm:$0xff]   ;;  %v11314_v15 = vld [vmem:[#allocation5 + $0xe0] ss:$36 sps:$4 sm:$0xff]   ;;  %v11317_v17 = vld [vmem:[#allocation5 + $0x12c] ss:$36 sps:$4 sm:$0xff]  }
  0x77   : > { %1846 = vmatpush1.bf16.msra.mxu0 %v11301_v6  ;;  %2072 = vmatpush1.bf16.msra.mxu1 %v11302_v7  ;;  %v11315_v16 = vld [vmem:[#allocation5 + $0x124] ss:$36 sps:$4 sm:$0xff]   ;;  %v11321_v20 = vld [vmem:[#allocation5 + $0x16c] ss:$36 sps:$4 sm:$0xff]   ;;  %v11323_v21 = vld [vmem:[#allocation5 + $0x174] ss:$36 sps:$4 sm:$0xff]  }
  0x78   : > { %1847 = vmatprep.subr.bf16.mxu0 %v11303_v8  ;;  %2073 = vmatprep.subr.bf16.mxu1 %v11305_v9  ;;  %v11319_v18 = vld [vmem:[#allocation5 + $0x120] ss:$36 sps:$4 sm:$0xff]   ;;  %v11320_v19 = vld [vmem:[#allocation5 + $0x128] ss:$36 sps:$4 sm:$0xff]   ;;  %v11326_v23 = vld [vmem:[#allocation5 + $0x170] ss:$36 sps:$4 sm:$0xff]  }
  0x79   : > { %v11325_v22 = vld [vmem:[#allocation5 + $0x168] ss:$36 sps:$4 sm:$0xff]   ;;  %v11327_v24 = vld [vmem:[#allocation5 + $0x1b4] ss:$36 sps:$4 sm:$0xff]   ;;  %v11329_v25 = vld [vmem:[#allocation5 + $0x1bc] ss:$36 sps:$4 sm:$0xff]  }
  0x7a   : > { %v11331_v26 = vld [vmem:[#allocation5 + $0x1b0] ss:$36 sps:$4 sm:$0xff]   ;;  %v11332_v27 = vld [vmem:[#allocation5 + $0x1b8] ss:$36 sps:$4 sm:$0xff]   ;;  %v11335_v29 = vld [vmem:[#allocation5 + $0x204] ss:$36 sps:$4 sm:$0xff]  }
  0x7b   : > { %1848 = vmatpush1.bf16.msra.mxu0 %v11307_v10  ;;  %2074 = vmatpush1.bf16.msra.mxu1 %v11308_v11  ;;  %v11333_v28 = vld [vmem:[#allocation5 + $0x1fc] ss:$36 sps:$4 sm:$0xff]   ;;  %v11339_v32 = vld [vmem:[#allocation5 + $0x244] ss:$36 sps:$4 sm:$0xff]   ;;  %v11341_v33 = vld [vmem:[#allocation5 + $0x24c] ss:$36 sps:$4 sm:$0xff]  }
  0x7c   : > { %1849 = vmatprep.subr.bf16.mxu0 %v11309_v12  ;;  %2075 = vmatprep.subr.bf16.mxu1 %v11311_v13  ;;  %v11337_v30 = vld [vmem:[#allocation5 + $0x1f8] ss:$36 sps:$4 sm:$0xff]   ;;  %v11338_v31 = vld [vmem:[#allocation5 + $0x200] ss:$36 sps:$4 sm:$0xff]   ;;  %v11344_v35 = vld [vmem:[#allocation5 + $0x248] ss:$36 sps:$4 sm:$0xff]  }
  0x7d   : > { %v11343_v34 = vld [vmem:[#allocation5 + $0x240] ss:$36 sps:$4 sm:$0xff]   ;;  %v11345_v36 = vld [vmem:[#allocation5 + $0x28c] ss:$36 sps:$4 sm:$0xff]   ;;  %v11347_v37 = vld [vmem:[#allocation5 + $0x294] ss:$36 sps:$4 sm:$0xff]  }
  0x7e   : > { %v11349_v38 = vld [vmem:[#allocation5 + $0x288] ss:$36 sps:$4 sm:$0xff]   ;;  %v11350_v39 = vld [vmem:[#allocation5 + $0x290] ss:$36 sps:$4 sm:$0xff]   ;;  %v11353_v41 = vld [vmem:[#allocation5 + $0x2dc] ss:$36 sps:$4 sm:$0xff]  }
  0x7f   : > { %1850 = vmatpush1.bf16.msra.mxu0 %v11313_v14  ;;  %2076 = vmatpush1.bf16.msra.mxu1 %v11314_v15  ;;  %v11351_v40 = vld [vmem:[#allocation5 + $0x2d4] ss:$36 sps:$4 sm:$0xff]   ;;  %v11357_v44 = vld [vmem:[#allocation5 + $0x31c] ss:$36 sps:$4 sm:$0xff]   ;;  %v11359_v45 = vld [vmem:[#allocation5 + $0x324] ss:$36 sps:$4 sm:$0xff]  }
  0x80   : > { %1851 = vmatprep.subr.bf16.mxu0 %v11315_v16  ;;  %2077 = vmatprep.subr.bf16.mxu1 %v11317_v17  ;;  %v11355_v42 = vld [vmem:[#allocation5 + $0x2d0] ss:$36 sps:$4 sm:$0xff]   ;;  %v11356_v43 = vld [vmem:[#allocation5 + $0x2d8] ss:$36 sps:$4 sm:$0xff]   ;;  %v11362_v47 = vld [vmem:[#allocation5 + $0x320] ss:$36 sps:$4 sm:$0xff]  }
  0x81   : > { %v11361_v46 = vld [vmem:[#allocation5 + $0x318] ss:$36 sps:$4 sm:$0xff]   ;;  %v11387_v48 = vld [vmem:[%s12828_s8 + $0x4] ss:$12 sps:$4 sm:$0xff]   ;;  %v11368_v52 = vld [vmem:[#allocation5 + $0x368] ss:$36 sps:$4 sm:$0xff]  }
  0x82   : > { %v11363_v49 = vld [vmem:[#allocation5 + $0x364] ss:$36 sps:$4 sm:$0xff]   ;;  %v11365_v50 = vld [vmem:[#allocation5 + $0x36c] ss:$36 sps:$4 sm:$0xff]   ;;  %1875 = vmatprep.mubr.bf16.mxu0 %v11387_v48  ;;  %2101 = vmatprep.mubr.bf16.mxu1 %v11387_v48  ;;  %v11371_v54 = vld [vmem:[#allocation5 + $0x3b4] ss:$36 sps:$4 sm:$0xff]  }
  0x83   : > { %1852 = vmatpush1.bf16.msra.mxu0 %v11319_v18  ;;  %2078 = vmatpush1.bf16.msra.mxu1 %v11320_v19  ;;  %v11367_v51 = vld [vmem:[#allocation5 + $0x360] ss:$36 sps:$4 sm:$0xff]   ;;  %v11369_v53 = vld [vmem:[#allocation5 + $0x3ac] ss:$36 sps:$4 sm:$0xff]   ;;  %v11375_v57 = vld [vmem:[#allocation5 + $0x3f4] ss:$36 sps:$4 sm:$0xff]  }
  0x84   : > { %1853 = vmatprep.subr.bf16.mxu0 %v11321_v20  ;;  %2079 = vmatprep.subr.bf16.mxu1 %v11323_v21  ;;  %v11373_v55 = vld [vmem:[#allocation5 + $0x3a8] ss:$36 sps:$4 sm:$0xff]   ;;  %v11374_v56 = vld [vmem:[#allocation5 + $0x3b0] ss:$36 sps:$4 sm:$0xff]   ;;  %v11377_v58 = vld [vmem:[#allocation5 + $0x3fc] ss:$36 sps:$4 sm:$0xff]  }
  0x85   : > { %v11379_v59 = vld [vmem:[#allocation5 + $0x3f0] ss:$36 sps:$4 sm:$0xff]   ;;  %v11380_v60 = vld [vmem:[#allocation5 + $0x3f8] ss:$36 sps:$4 sm:$0xff]   ;;  %v11383_v62 = vld [vmem:[#allocation5 + $0x444] ss:$36 sps:$4 sm:$0xff]  }
  0x86   : > { %v11381_v61 = vld [vmem:[#allocation5 + $0x43c] ss:$36 sps:$4 sm:$0xff]   ;;  %v11392_v1 = vld [vmem:[#allocation5 + $0x48c] ss:$36 sps:$4 sm:$0xff]   ;;  %v11413_v2 = vld [vmem:[#allocation5 + $0x484] ss:$36 sps:$4 sm:$0xff]  }
  0x87   : > { %1854 = vmatpush1.bf16.msra.mxu0 %v11325_v22  ;;  %2080 = vmatpush1.bf16.msra.mxu1 %v11326_v23  ;;  %v11385_v63 = vld [vmem:[#allocation5 + $0x438] ss:$36 sps:$4 sm:$0xff]   ;;  %v11386_v0 = vld [vmem:[#allocation5 + $0x440] ss:$36 sps:$4 sm:$0xff]   ;;  %v11390_v4 = vld [vmem:[#allocation5 + $0x488] ss:$36 sps:$4 sm:$0xff]  }
  0x88   : > { %1855 = vmatprep.subr.bf16.mxu0 %v11327_v24  ;;  %2081 = vmatprep.subr.bf16.mxu1 %v11329_v25  ;;  %v12840_v3 = vld [vmem:[%s12828_s8] ss:$12 sps:$4 sm:$0xff]   ;;  %v12843_v5 = vld [vmem:[%s12828_s8 + $0x1c] ss:$12 sps:$4 sm:$0xff]   ;;  %v11398_v6 = vld [vmem:[#allocation5 + $0x4d4] ss:$36 sps:$4 sm:$0xff]  }
  0x89   : > { %v11411_v7 = vld [vmem:[#allocation5 + $0x480] ss:$36 sps:$4 sm:$0xff]   ;;  %v11422_v8 = vld [vmem:[#allocation5 + $0x4cc] ss:$36 sps:$4 sm:$0xff]   ;;  %v11402_v14 = vld [vmem:[#allocation5 + $0x518] ss:$36 sps:$4 sm:$0xff]  }
  0x8a   : > { %v11396_v9 = vld [vmem:[#allocation5 + $0x4d0] ss:$36 sps:$4 sm:$0xff]   ;;  %v11404_v10 = vld [vmem:[#allocation5 + $0x51c] ss:$36 sps:$4 sm:$0xff]   ;;  %v11420_v11 = vld [vmem:[#allocation5 + $0x4c8] ss:$36 sps:$4 sm:$0xff]  }
  0x8b   : > { %1856 = vmatpush1.bf16.msra.mxu0 %v11331_v26  ;;  %2082 = vmatpush1.bf16.msra.mxu1 %v11332_v27  ;;  %v12850_v12 = vld [vmem:[%s12828_s8 + $0x18] ss:$12 sps:$4 sm:$0xff]   ;;  %v12853_v13 = vld [vmem:[%s12828_s8 + $0x34] ss:$12 sps:$4 sm:$0xff]   ;;  %v11419_v20 = vld [vmem:[#allocation5 + $0x5ac] ss:$36 sps:$4 sm:$0xff]  }
  0x8c   : > { %1857 = vmatprep.subr.bf16.mxu0 %v11333_v28  ;;  %2083 = vmatprep.subr.bf16.mxu1 %v11335_v29  ;;  %v11428_v15 = vld [vmem:[#allocation5 + $0x514] ss:$36 sps:$4 sm:$0xff]   ;;  %v11410_v16 = vld [vmem:[#allocation5 + $0x564] ss:$36 sps:$4 sm:$0xff]   ;;  %v11434_v18 = vld [vmem:[#allocation5 + $0x55c] ss:$36 sps:$4 sm:$0xff]  }
  0x8d   : > { %v11426_v17 = vld [vmem:[#allocation5 + $0x510] ss:$36 sps:$4 sm:$0xff]   ;;  %v11408_v19 = vld [vmem:[#allocation5 + $0x560] ss:$36 sps:$4 sm:$0xff]   ;;  %v11432_v21 = vld [vmem:[#allocation5 + $0x558] ss:$36 sps:$4 sm:$0xff]  }
  0x8e   : > { %v12860_v22 = vld [vmem:[%s12828_s8 + $0x30] ss:$12 sps:$4 sm:$0xff]   ;;  %v12863_v23 = vld [vmem:[%s12828_s8 + $0x4c] ss:$12 sps:$4 sm:$0xff]   ;;  %v11440_v26 = vld [vmem:[#allocation5 + $0x5a4] ss:$36 sps:$4 sm:$0xff]  }
  0x8f   : > { %1858 = vmatpush1.bf16.msra.mxu0 %v11337_v30  ;;  %2084 = vmatpush1.bf16.msra.mxu1 %v11338_v31  ;;  %v11417_v24 = vld [vmem:[#allocation5 + $0x5a8] ss:$36 sps:$4 sm:$0xff]   ;;  %v11431_v25 = vld [vmem:[#allocation5 + $0x5f4] ss:$36 sps:$4 sm:$0xff]   ;;  %v11438_v27 = vld [vmem:[#allocation5 + $0x5a0] ss:$36 sps:$4 sm:$0xff]  }
  0x90   : > { %1859 = vmatprep.subr.bf16.mxu0 %v11339_v32  ;;  %2085 = vmatprep.subr.bf16.mxu1 %v11341_v33  ;;  %v11446_v28 = vld [vmem:[#allocation5 + $0x5ec] ss:$36 sps:$4 sm:$0xff]   ;;  %v11443_v30 = vld [vmem:[#allocation5 + $0x63c] ss:$36 sps:$4 sm:$0xff]   ;;  %v12870_v32 = vld [vmem:[%s12828_s8 + $0x48] ss:$12 sps:$4 sm:$0xff]  }
  0x91   : > { %v11429_v29 = vld [vmem:[#allocation5 + $0x5f0] ss:$36 sps:$4 sm:$0xff]   ;;  %v11444_v31 = vld [vmem:[#allocation5 + $0x5e8] ss:$36 sps:$4 sm:$0xff]   ;;  %vm3019_vm0 = vcmask 261120   ;;  %s12606_s23 = smov 96  }
  0x92   : > { %v12873_v33 = vld [vmem:[%s12828_s8 + $0x64] ss:$12 sps:$4 sm:$0xff]   ;;  %v12903_v48 = vld [vmem:[%s12828_s8 + $0xac] ss:$12 sps:$4 sm:$0xff]   ;;  %p284_p8 = scmp.lt.s32.totalorder %s12588_s18, 1  ;;  %s12607_s14 = smov 64  }
  0x93   : > { %1860 = vmatpush1.bf16.msra.mxu0 %v11343_v34  ;;  %2086 = vmatpush1.bf16.msra.mxu1 %v11344_v35  ;;  %v11441_v34 = vld [vmem:[#allocation5 + $0x638] ss:$36 sps:$4 sm:$0xff]   ;;  %s12608_s21 = smov 32   ;;  %vm8916_vm1 = vcmask 523264   ;;  %s11196_s24 = smul.u32 384, %s12824_s6  ;;  %vm8933_vm2 = vcmask 785408  }
  0x94   : > { %1861 = vmatprep.subr.bf16.mxu0 %v11345_v36  ;;  %2087 = vmatprep.subr.bf16.mxu1 %v11347_v37  ;;  %v11452_v35 = vld [vmem:[#allocation5 + $0x634] ss:$36 sps:$4 sm:$0xff]   ;;  %v11455_v37 = vld [vmem:[#allocation5 + $0x684] ss:$36 sps:$4 sm:$0xff]   ;;  %s285_s25 = scalar_select %p284_p8, %s12588_s18, 1 }
  0x95   : > { %v11450_v36 = vld [vmem:[#allocation5 + $0x630] ss:$36 sps:$4 sm:$0xff]   ;;  %s17533_s29 = scalar_lea.vmem [#allocation8], %s11196_s24  ;;  %s11197_s5 = smul.u32 6144, %s12588_s18 }
  0x96   : > { %s13466_s13 = scalar_lea.vmem %s17842_s3, %s285_s25  ;;  %s9110_s22 = sshll.u32 %s17533_s29, 4  ;;  %s17787_s22 = int_to_ptr.vmem [resolvable:$true] %s9110_s22 }
  0x97   : > { %1862 = vmatpush1.bf16.msra.mxu0 %v11349_v38  ;;  %2088 = vmatpush1.bf16.msra.mxu1 %v11350_v39  ;;  %v11458_v38 = vld [vmem:[#allocation5 + $0x67c] ss:$36 sps:$4 sm:$0xff]   ;;  %s17784_s12 = scalar_lea.hbm %s17843_s4, %s11197_s5  ;;  %s9095_s18 = scalar_lea.sflag [#allocation4], %s12824_s6 }
  0x98   : > { %1863 = vmatprep.subr.bf16.mxu0 %v11351_v40  ;;  %2089 = vmatprep.subr.bf16.mxu1 %v11353_v41  ;;  %v11453_v39 = vld [vmem:[#allocation5 + $0x680] ss:$36 sps:$4 sm:$0xff]   ;;  %v11456_v40 = vld [vmem:[#allocation5 + $0x678] ss:$36 sps:$4 sm:$0xff]   ;;  %p19043_p1 = scmp.ne.s32.totalorder %s18025_s30, 0 }
  0x99   : > { %v11465_v41 = vld [vmem:[#allocation5 + $0x1c] ss:$36 sps:$4 sm:$0xff]  }
  0x9b   : > { %1864 = vmatpush1.bf16.msra.mxu0 %v11355_v42  ;;  %2090 = vmatpush1.bf16.msra.mxu1 %v11356_v43  ;;  %v12880_v42 = vld [vmem:[%s12828_s8 + $0x60] ss:$12 sps:$4 sm:$0xff]   ;;  %v12883_v43 = vld [vmem:[%s12828_s8 + $0x7c] ss:$12 sps:$4 sm:$0xff]  }
  0x9c   : > { %1865 = vmatprep.subr.bf16.mxu0 %v11357_v44  ;;  %2091 = vmatprep.subr.bf16.mxu1 %v11359_v45  ;;  %v11462_v44 = vld [vmem:[#allocation5 + $0x14] ss:$36 sps:$4 sm:$0xff]  }
  0x9d   : > { %v12890_v45 = vld [vmem:[%s12828_s8 + $0x78] ss:$12 sps:$4 sm:$0xff]  }
  0x9f   : > { %1866 = vmatpush1.bf16.msra.mxu0 %v11361_v46  ;;  %2092 = vmatpush1.bf16.msra.mxu1 %v11362_v47  ;;  %v12893_v46 = vld [vmem:[%s12828_s8 + $0x94] ss:$12 sps:$4 sm:$0xff]   ;;  %v12900_v47 = vld [vmem:[%s12828_s8 + $0x90] ss:$12 sps:$4 sm:$0xff]  }
  0xa0   : > { %1867 = vmatprep.subr.bf16.mxu0 %v11363_v49  ;;  %2093 = vmatprep.subr.bf16.mxu1 %v11365_v50  ;;  %v12910_v49 = vld [vmem:[%s12828_s8 + $0xa8] ss:$12 sps:$4 sm:$0xff]   ;;  %v12605_v50 = vmov 0  }
  0xa3   : > { %1868 = vmatpush1.bf16.msra.mxu0 %v11367_v51  ;;  %2094 = vmatpush1.bf16.msra.mxu1 %v11368_v52  ;;  %v12917_v51 = vld [vmem:[%s12828_s8 + $0x8] ss:$12 sps:$4 sm:$0xff]  }
  0xa4   : > { %1869 = vmatprep.subr.bf16.mxu0 %v11369_v53  ;;  %2095 = vmatprep.subr.bf16.mxu1 %v11371_v54  ;;  %v11460_v52 = vld [vmem:[#allocation5 + $0x10] ss:$36 sps:$4 sm:$0xff]   ;;  %v11463_v53 = vld [vmem:[#allocation5 + $0x18] ss:$36 sps:$4 sm:$0xff]  }
  0xa5   : > { %v11468_v54 = vld [vmem:[#allocation5 + $0x5c] ss:$36 sps:$4 sm:$0xff]  }
  0xa7   : > { %1870 = vmatpush1.bf16.msra.mxu0 %v11373_v55  ;;  %2096 = vmatpush1.bf16.msra.mxu1 %v11374_v56  ;;  %v11471_v55 = vld [vmem:[#allocation5 + $0x64] ss:$36 sps:$4 sm:$0xff]   ;;  %v11466_v56 = vld [vmem:[#allocation5 + $0x58] ss:$36 sps:$4 sm:$0xff]  }
  0xa8   : > { %1871 = vmatprep.subr.bf16.mxu0 %v11375_v57  ;;  %2097 = vmatprep.subr.bf16.mxu1 %v11377_v58  ;;  %v11469_v57 = vld [vmem:[#allocation5 + $0x60] ss:$36 sps:$4 sm:$0xff]  }
  0xa9   : > { %v11475_v58 = vld [vmem:[#allocation5 + $0xa4] ss:$36 sps:$4 sm:$0xff]  }
  0xab   : > { %1872 = vmatpush1.bf16.msra.mxu0 %v11379_v59  ;;  %2098 = vmatpush1.bf16.msra.mxu1 %v11380_v60  ;;  %v11478_v59 = vld [vmem:[#allocation5 + $0xac] ss:$36 sps:$4 sm:$0xff]  }
  0xac   : > { %1873 = vmatprep.subr.bf16.mxu0 %v11381_v61  ;;  %2099 = vmatprep.subr.bf16.mxu1 %v11383_v62  ;;  %v12924_v60 = vld [vmem:[%s12828_s8 + $0x20] ss:$12 sps:$4 sm:$0xff]  }
  0xad   : > { %v11473_v61 = vld [vmem:[#allocation5 + $0xa0] ss:$36 sps:$4 sm:$0xff]   ;;  %v11476_v62 = vld [vmem:[#allocation5 + $0xa8] ss:$36 sps:$4 sm:$0xff]  }
  0xaf   : > { %1874 = vmatpush1.bf16.msra.mxu0 %v11385_v63  ;;  %2100 = vmatpush1.bf16.msra.mxu1 %v11386_v0  ;;  %v11481_v63 = vld [vmem:[#allocation5 + $0xec] ss:$36 sps:$4 sm:$0xff]   ;;  %v11484_v0 = vld [vmem:[#allocation5 + $0xf4] ss:$36 sps:$4 sm:$0xff]  }
  0xb0   : > { %2182 = vmatprep.subr.bf16.mxu1 %v11392_v1  ;;  %1956 = vmatprep.subr.bf16.mxu0 %v11413_v2  ;;  %v11479_v1 = vld [vmem:[#allocation5 + $0xe8] ss:$36 sps:$4 sm:$0xff]   ;;  %v11482_v2 = vld [vmem:[#allocation5 + $0xf0] ss:$36 sps:$4 sm:$0xff]  }
  0xb2   : > { %1876 = vmatmul.mubr.bf16.vlgmr.msra.gmra.mrb[0].mxu0 %v12840_v3  ;;  %2102 = vmatmul.mubr.bf16.vlgmr.msra.gmra.mrb[0].mxu1 %v12840_v3 }
  0xb3   : > { %2183 = vmatpush1.bf16.msra.mxu1 %v11390_v4  ;;  %1885 = vmatprep.mubr.bf16.mxu0 %v12843_v5  ;;  %v11488_v4 = vld [vmem:[#allocation5 + $0x134] ss:$36 sps:$4 sm:$0xff]  }
  0xb4   : > { %2111 = vmatprep.mubr.bf16.mxu1 %v12843_v5  ;;  %2184 = vmatprep.subr.bf16.mxu1 %v11398_v6  ;;  %v11491_v6 = vld [vmem:[#allocation5 + $0x13c] ss:$36 sps:$4 sm:$0xff]  }
  0xb5   : > { %1957 = vmatpush1.bf16.msra.mxu0 %v11411_v7  ;;  %v12931_v7 = vld [vmem:[%s12828_s8 + $0x38] ss:$12 sps:$4 sm:$0xff]  }
  0xb6   : > { %1958 = vmatprep.subr.bf16.mxu0 %v11422_v8  ;;  %v11486_v8 = vld [vmem:[#allocation5 + $0x130] ss:$36 sps:$4 sm:$0xff]  }
  0xb7   : > { %2185 = vmatpush1.bf16.msra.mxu1 %v11396_v9  ;;  %v11489_v9 = vld [vmem:[#allocation5 + $0x138] ss:$36 sps:$4 sm:$0xff]  }
  0xb8   : > { %2186 = vmatprep.subr.bf16.mxu1 %v11404_v10  ;;  %v11494_v10 = vld [vmem:[#allocation5 + $0x17c] ss:$36 sps:$4 sm:$0xff]  }
  0xb9   : > { %1959 = vmatpush1.bf16.msra.mxu0 %v11420_v11  ;;  %v11497_v11 = vld [vmem:[#allocation5 + $0x184] ss:$36 sps:$4 sm:$0xff]  }
  0xba   : > { %1886 = vmatmul.mubr.bf16.gmra.mrb[4].mxu0 %v12850_v12  ;;  %2112 = vmatmul.mubr.bf16.gmra.mrb[4].mxu1 %v12850_v12 }
  0xbb   : > { %1895 = vmatprep.mubr.bf16.mxu0 %v12853_v13  ;;  %2121 = vmatprep.mubr.bf16.mxu1 %v12853_v13 }
  0xbc   : > { %2187 = vmatpush1.bf16.msra.mxu1 %v11402_v14  ;;  %1960 = vmatprep.subr.bf16.mxu0 %v11428_v15  ;;  %v11492_v14 = vld [vmem:[#allocation5 + $0x178] ss:$36 sps:$4 sm:$0xff]   ;;  %v11495_v15 = vld [vmem:[#allocation5 + $0x180] ss:$36 sps:$4 sm:$0xff]  }
  0xbd   : > { %2188 = vmatprep.subr.bf16.mxu1 %v11410_v16  ;;  %1961 = vmatpush1.bf16.msra.mxu0 %v11426_v17  ;;  %v11501_v16 = vld [vmem:[#allocation5 + $0x1c4] ss:$36 sps:$4 sm:$0xff]   ;;  %v11504_v17 = vld [vmem:[#allocation5 + $0x1cc] ss:$36 sps:$4 sm:$0xff]  }
  0xbe   : > { %1962 = vmatprep.subr.bf16.mxu0 %v11434_v18  ;;  %v12936_v18 = vld [vmem:[%s12828_s8 + $0x50] ss:$12 sps:$4 sm:$0xff]  }
  0xc0   : > { %2189 = vmatpush1.bf16.msra.mxu1 %v11408_v19  ;;  %v11499_v19 = vld [vmem:[#allocation5 + $0x1c0] ss:$36 sps:$4 sm:$0xff]  }
  0xc1   : > { %2190 = vmatprep.subr.bf16.mxu1 %v11419_v20  ;;  %1963 = vmatpush1.bf16.msra.mxu0 %v11432_v21  ;;  %v11502_v20 = vld [vmem:[#allocation5 + $0x1c8] ss:$36 sps:$4 sm:$0xff]  }
  0xc2   : > { %1896 = vmatmul.mubr.bf16.gmra.mrb[8].mxu0 %v12860_v22  ;;  %2122 = vmatmul.mubr.bf16.gmra.mrb[8].mxu1 %v12860_v22  ;;  %v11507_v21 = vld [vmem:[#allocation5 + $0x20c] ss:$36 sps:$4 sm:$0xff]  }
  0xc3   : > { %1905 = vmatprep.mubr.bf16.mxu0 %v12863_v23  ;;  %2131 = vmatprep.mubr.bf16.mxu1 %v12863_v23 }
  0xc4   : > { %2191 = vmatpush1.bf16.msra.mxu1 %v11417_v24  ;;  %1964 = vmatprep.subr.bf16.mxu0 %v11440_v26  ;;  %v11510_v24 = vld [vmem:[#allocation5 + $0x214] ss:$36 sps:$4 sm:$0xff]  }
  0xc5   : > { %2192 = vmatprep.subr.bf16.mxu1 %v11431_v25  ;;  %1965 = vmatpush1.bf16.msra.mxu0 %v11438_v27  ;;  %v11505_v25 = vld [vmem:[#allocation5 + $0x208] ss:$36 sps:$4 sm:$0xff]   ;;  %v11508_v26 = vld [vmem:[#allocation5 + $0x210] ss:$36 sps:$4 sm:$0xff]  }
  0xc6   : > { %1966 = vmatprep.subr.bf16.mxu0 %v11446_v28  ;;  %v11514_v27 = vld [vmem:[#allocation5 + $0x254] ss:$36 sps:$4 sm:$0xff]   ;;  %v11517_v28 = vld [vmem:[#allocation5 + $0x25c] ss:$36 sps:$4 sm:$0xff]  }
  0xc8   : > { %2193 = vmatpush1.bf16.msra.mxu1 %v11429_v29  ;;  %v12943_v29 = vld [vmem:[%s12828_s8 + $0x68] ss:$12 sps:$4 sm:$0xff]  }
  0xc9   : > { %2194 = vmatprep.subr.bf16.mxu1 %v11443_v30  ;;  %1967 = vmatpush1.bf16.msra.mxu0 %v11444_v31  ;;  %v11512_v30 = vld [vmem:[#allocation5 + $0x250] ss:$36 sps:$4 sm:$0xff]   ;;  %v11515_v31 = vld [vmem:[#allocation5 + $0x258] ss:$36 sps:$4 sm:$0xff]  }
  0xca   : > { %1906 = vmatmul.mubr.bf16.gmra.mrb[12].mxu0 %v12870_v32  ;;  %2132 = vmatmul.mubr.bf16.gmra.mrb[12].mxu1 %v12870_v32 }
  0xcb   : > { %1915 = vmatprep.mubr.bf16.mxu0 %v12873_v33  ;;  %2141 = vmatprep.mubr.bf16.mxu1 %v12873_v33 }
  0xcc   : > { %2195 = vmatpush1.bf16.msra.mxu1 %v11441_v34  ;;  %1968 = vmatprep.subr.bf16.mxu0 %v11452_v35  ;;  %v11520_v34 = vld [vmem:[#allocation5 + $0x29c] ss:$36 sps:$4 sm:$0xff]   ;;  %v11523_v35 = vld [vmem:[#allocation5 + $0x2a4] ss:$36 sps:$4 sm:$0xff]  }
  0xcd   : > { %2196 = vmatprep.subr.bf16.mxu1 %v11455_v37  ;;  %1969 = vmatpush1.bf16.msra.mxu0 %v11450_v36  ;;  %v11518_v36 = vld [vmem:[#allocation5 + $0x298] ss:$36 sps:$4 sm:$0xff]   ;;  %v11521_v37 = vld [vmem:[#allocation5 + $0x2a0] ss:$36 sps:$4 sm:$0xff]  }
  0xce   : > { %1970 = vmatprep.subr.bf16.mxu0 %v11458_v38  ;;  %v11527_v38 = vld [vmem:[#allocation5 + $0x2e4] ss:$36 sps:$4 sm:$0xff]  }
  0xd0   : > { %2197 = vmatpush1.bf16.msra.mxu1 %v11453_v39  ;;  %v11530_v39 = vld [vmem:[#allocation5 + $0x2ec] ss:$36 sps:$4 sm:$0xff]  }
  0xd1   : > { %1971 = vmatpush1.bf16.msra.mxu0 %v11456_v40  ;;  %2521 = vmatprep.subr.bf16.mxu1 %v11465_v41  ;;  %v12952_v40 = vld [vmem:[%s12828_s8 + $0x80] ss:$12 sps:$4 sm:$0xff]  }
  0xd2   : > { %1916 = vmatmul.mubr.bf16.gmra.mrb[16].mxu0 %v12880_v42  ;;  %2142 = vmatmul.mubr.bf16.gmra.mrb[16].mxu1 %v12880_v42  ;;  %v11525_v41 = vld [vmem:[#allocation5 + $0x2e0] ss:$36 sps:$4 sm:$0xff]  }
  0xd3   : > { %1925 = vmatprep.mubr.bf16.mxu0 %v12883_v43  ;;  %2151 = vmatprep.mubr.bf16.mxu1 %v12883_v43 }
  0xd4   : > { %2295 = vmatprep.subr.bf16.mxu0 %v11462_v44  ;;  %v11528_v44 = vld [vmem:[#allocation5 + $0x2e8] ss:$36 sps:$4 sm:$0xff]  }
  0xda   : > { %1926 = vmatmul.mubr.bf16.gmra.mrb[20].mxu0 %v12890_v45  ;;  %2152 = vmatmul.mubr.bf16.gmra.mrb[20].mxu1 %v12890_v45 }
  0xdb   : > { %1935 = vmatprep.mubr.bf16.mxu0 %v12893_v46  ;;  %2161 = vmatprep.mubr.bf16.mxu1 %v12893_v46 }
  0xe2   : > { %1936 = vmatmul.mubr.bf16.gmra.mrb[24].mxu0 %v12900_v47  ;;  %2162 = vmatmul.mubr.bf16.gmra.mrb[24].mxu1 %v12900_v47 }
  0xe3   : > { %1945 = vmatprep.mubr.bf16.mxu0 %v12903_v48  ;;  %2171 = vmatprep.mubr.bf16.mxu1 %v12903_v48 }
  0xea   : > { %1946 = vmatmul.mubr.bf16.gmra.mrb[28].mxu0 %v12910_v49  ;;  %2172 = vmatmul.mubr.bf16.gmra.mrb[28].mxu1 %v12910_v49 }
  0xeb   : > { %1988 = vmatprep.mubr.bf16.mxu0 %v12605_v50  ;;  %2214 = vmatprep.mubr.bf16.mxu1 %v12605_v50 }
  0xf2   : > { %1989 = vmatmul.mubr.bf16.vlgmr.msra.gmra.mrb[0].mxu0 %v12917_v51  ;;  %2215 = vmatmul.mubr.bf16.vlgmr.msra.gmra.mrb[0].mxu1 %v12917_v51 }
  0xf3   : > { %2296 = vmatpush1.bf16.msra.mxu0 %v11460_v52  ;;  %2522 = vmatpush1.bf16.msra.mxu1 %v11463_v53  ;;  %v11533_v52 = vld [vmem:[#allocation5 + $0x32c] ss:$36 sps:$4 sm:$0xff]   ;;  %v11536_v53 = vld [vmem:[#allocation5 + $0x334] ss:$36 sps:$4 sm:$0xff]  }
  0xf4   : > { %2297 = vmatprep.subr.bf16.mxu0 %v11468_v54  ;;  %2523 = vmatprep.subr.bf16.mxu1 %v11471_v55  ;;  %v11531_v54 = vld [vmem:[#allocation5 + $0x328] ss:$36 sps:$4 sm:$0xff]   ;;  %v11534_v55 = vld [vmem:[#allocation5 + $0x330] ss:$36 sps:$4 sm:$0xff]  }
  0xf5   : > { %1998 = vmatprep.mubr.bf16.mxu0 %v12605_v50  ;;  %2224 = vmatprep.mubr.bf16.mxu1 %v12605_v50 }
  0xf7   : > { %2298 = vmatpush1.bf16.msra.mxu0 %v11466_v56  ;;  %2524 = vmatpush1.bf16.msra.mxu1 %v11469_v57  ;;  %v11540_v56 = vld [vmem:[#allocation5 + $0x374] ss:$36 sps:$4 sm:$0xff]   ;;  %v11543_v57 = vld [vmem:[#allocation5 + $0x37c] ss:$36 sps:$4 sm:$0xff]  }
  0xf8   : > { %2299 = vmatprep.subr.bf16.mxu0 %v11475_v58  ;;  %2525 = vmatprep.subr.bf16.mxu1 %v11478_v59  ;;  %v12959_v58 = vld [vmem:[%s12828_s8 + $0x98] ss:$12 sps:$4 sm:$0xff]   ;;  %v11538_v59 = vld [vmem:[#allocation5 + $0x370] ss:$36 sps:$4 sm:$0xff]  }
  0xfa   : > { %1999 = vmatmul.mubr.bf16.gmra.mrb[4].mxu0 %v12924_v60  ;;  %2225 = vmatmul.mubr.bf16.gmra.mrb[4].mxu1 %v12924_v60 }
  0xfb   : > { %2300 = vmatpush1.bf16.msra.mxu0 %v11473_v61  ;;  %2526 = vmatpush1.bf16.msra.mxu1 %v11476_v62  ;;  %v11541_v61 = vld [vmem:[#allocation5 + $0x378] ss:$36 sps:$4 sm:$0xff]  }
  0xfc   : > { %2301 = vmatprep.subr.bf16.mxu0 %v11481_v63  ;;  %2527 = vmatprep.subr.bf16.mxu1 %v11484_v0  ;;  %v11546_v62 = vld [vmem:[#allocation5 + $0x3bc] ss:$36 sps:$4 sm:$0xff]   ;;  %v11549_v63 = vld [vmem:[#allocation5 + $0x3c4] ss:$36 sps:$4 sm:$0xff]  }
  0xfd   : > { %2008 = vmatprep.mubr.bf16.mxu0 %v12605_v50  ;;  %2234 = vmatprep.mubr.bf16.mxu1 %v12605_v50  ;;  %v11544_v0 = vld [vmem:[#allocation5 + $0x3b8] ss:$36 sps:$4 sm:$0xff]  }
  0xff   : > { %2302 = vmatpush1.bf16.msra.mxu0 %v11479_v1  ;;  %2528 = vmatpush1.bf16.msra.mxu1 %v11482_v2  ;;  %v11547_v1 = vld [vmem:[#allocation5 + $0x3c0] ss:$36 sps:$4 sm:$0xff]  }
 0x100   : > { %2303 = vmatprep.subr.bf16.mxu0 %v11488_v4  ;;  %2529 = vmatprep.subr.bf16.mxu1 %v11491_v6  ;;  %v11553_v2 = vld [vmem:[#allocation5 + $0x404] ss:$36 sps:$4 sm:$0xff]   ;;  %v11556_v4 = vld [vmem:[#allocation5 + $0x40c] ss:$36 sps:$4 sm:$0xff]  }
 0x101   : > { %v12966_v6 = vld [vmem:[%s12828_s8 + $0xb0] ss:$12 sps:$4 sm:$0xff]  }
 0x102   : > { %2009 = vmatmul.mubr.bf16.gmra.mrb[8].mxu0 %v12931_v7  ;;  %2235 = vmatmul.mubr.bf16.gmra.mrb[8].mxu1 %v12931_v7 }
 0x103   : > { %2304 = vmatpush1.bf16.msra.mxu0 %v11486_v8  ;;  %2530 = vmatpush1.bf16.msra.mxu1 %v11489_v9  ;;  %v11551_v8 = vld [vmem:[#allocation5 + $0x400] ss:$36 sps:$4 sm:$0xff]   ;;  %v11554_v9 = vld [vmem:[#allocation5 + $0x408] ss:$36 sps:$4 sm:$0xff]  }
 0x104   : > { %2305 = vmatprep.subr.bf16.mxu0 %v11494_v10  ;;  %2531 = vmatprep.subr.bf16.mxu1 %v11497_v11  ;;  %v11559_v10 = vld [vmem:[#allocation5 + $0x44c] ss:$36 sps:$4 sm:$0xff]   ;;  %v11562_v11 = vld [vmem:[#allocation5 + $0x454] ss:$36 sps:$4 sm:$0xff]  }
 0x105   : > { %2018 = vmatprep.mubr.bf16.mxu0 %v12605_v50  ;;  %2244 = vmatprep.mubr.bf16.mxu1 %v12605_v50 }
 0x107   : > { %2306 = vmatpush1.bf16.msra.mxu0 %v11492_v14  ;;  %2532 = vmatpush1.bf16.msra.mxu1 %v11495_v15  ;;  %v11557_v14 = vld [vmem:[#allocation5 + $0x448] ss:$36 sps:$4 sm:$0xff]   ;;  %v11560_v15 = vld [vmem:[#allocation5 + $0x450] ss:$36 sps:$4 sm:$0xff]  }
 0x108   : > { %2307 = vmatprep.subr.bf16.mxu0 %v11501_v16  ;;  %2533 = vmatprep.subr.bf16.mxu1 %v11504_v17  ;;  %v11565_v16 = vld [vmem:[#allocation5 + $0x494] ss:$36 sps:$4 sm:$0xff]   ;;  %v11568_v17 = vld [vmem:[#allocation5 + $0x49c] ss:$36 sps:$4 sm:$0xff]  }
 0x10a   : > { %2019 = vmatmul.mubr.bf16.gmra.mrb[12].mxu0 %v12936_v18  ;;  %2245 = vmatmul.mubr.bf16.gmra.mrb[12].mxu1 %v12936_v18 }
 0x10b   : > { %2308 = vmatpush1.bf16.msra.mxu0 %v11499_v19  ;;  %2534 = vmatpush1.bf16.msra.mxu1 %v11502_v20  ;;  %v12971_v19 = vld [vmem:[%s12828_s8 + $0x4] ss:$12 sps:$4 sm:$0xff]  }
 0x10c   : > { %2309 = vmatprep.subr.bf16.mxu0 %v11507_v21  ;;  %2535 = vmatprep.subr.bf16.mxu1 %v11510_v24  ;;  %v11563_v20 = vld [vmem:[#allocation5 + $0x490] ss:$36 sps:$4 sm:$0xff]   ;;  %v11566_v21 = vld [vmem:[#allocation5 + $0x498] ss:$36 sps:$4 sm:$0xff]  }
 0x10d   : > { %2028 = vmatprep.mubr.bf16.mxu0 %v12605_v50  ;;  %2254 = vmatprep.mubr.bf16.mxu1 %v12605_v50  ;;  %v11571_v24 = vld [vmem:[#allocation5 + $0x4dc] ss:$36 sps:$4 sm:$0xff]  }
 0x10f   : > { %2310 = vmatpush1.bf16.msra.mxu0 %v11505_v25  ;;  %2536 = vmatpush1.bf16.msra.mxu1 %v11508_v26  ;;  %v11574_v25 = vld [vmem:[#allocation5 + $0x4e4] ss:$36 sps:$4 sm:$0xff]   ;;  %v11569_v26 = vld [vmem:[#allocation5 + $0x4d8] ss:$36 sps:$4 sm:$0xff]  }
 0x110   : > { %2311 = vmatprep.subr.bf16.mxu0 %v11514_v27  ;;  %2537 = vmatprep.subr.bf16.mxu1 %v11517_v28  ;;  %v11572_v27 = vld [vmem:[#allocation5 + $0x4e0] ss:$36 sps:$4 sm:$0xff]  }
 0x111   : > { %v11577_v28 = vld [vmem:[#allocation5 + $0x524] ss:$36 sps:$4 sm:$0xff]  }
 0x112   : > { %2029 = vmatmul.mubr.bf16.gmra.mrb[16].mxu0 %v12943_v29  ;;  %2255 = vmatmul.mubr.bf16.gmra.mrb[16].mxu1 %v12943_v29 }
 0x113   : > { %2312 = vmatpush1.bf16.msra.mxu0 %v11512_v30  ;;  %2538 = vmatpush1.bf16.msra.mxu1 %v11515_v31  ;;  %v11580_v30 = vld [vmem:[#allocation5 + $0x52c] ss:$36 sps:$4 sm:$0xff]   ;;  %v11575_v31 = vld [vmem:[#allocation5 + $0x520] ss:$36 sps:$4 sm:$0xff]  }
 0x114   : > { %2313 = vmatprep.subr.bf16.mxu0 %v11520_v34  ;;  %2539 = vmatprep.subr.bf16.mxu1 %v11523_v35  ;;  %v11578_v34 = vld [vmem:[#allocation5 + $0x528] ss:$36 sps:$4 sm:$0xff]  }
 0x115   : > { %2038 = vmatprep.mubr.bf16.mxu0 %v12605_v50  ;;  %2264 = vmatprep.mubr.bf16.mxu1 %v12605_v50  ;;  %v11583_v35 = vld [vmem:[#allocation5 + $0x56c] ss:$36 sps:$4 sm:$0xff]  }
 0x117   : > { %2314 = vmatpush1.bf16.msra.mxu0 %v11518_v36  ;;  %2540 = vmatpush1.bf16.msra.mxu1 %v11521_v37  ;;  %v11584_v36 = vld [vmem:[#allocation5 + $0x570] ss:$36 sps:$4 sm:$0xff]  }
 0x118   : > { %2315 = vmatprep.subr.bf16.mxu0 %v11527_v38  ;;  %2541 = vmatprep.subr.bf16.mxu1 %v11530_v39  ;;  %v11589_v37 = vld [vmem:[#allocation5 + $0x5b4] ss:$36 sps:$4 sm:$0xff]   ;;  %v11592_v38 = vld [vmem:[#allocation5 + $0x5bc] ss:$36 sps:$4 sm:$0xff]  }
 0x119   : > { %v11587_v39 = vld [vmem:[#allocation5 + $0x5b0] ss:$36 sps:$4 sm:$0xff]  }
 0x11a   : > { %2039 = vmatmul.mubr.bf16.gmra.mrb[20].mxu0 %v12952_v40  ;;  %2265 = vmatmul.mubr.bf16.gmra.mrb[20].mxu1 %v12952_v40 }
 0x11b   : > { %2316 = vmatpush1.bf16.msra.mxu0 %v11525_v41  ;;  %2542 = vmatpush1.bf16.msra.mxu1 %v11528_v44  ;;  %v11590_v41 = vld [vmem:[#allocation5 + $0x5b8] ss:$36 sps:$4 sm:$0xff]  }
 0x11c   : > { %2317 = vmatprep.subr.bf16.mxu0 %v11533_v52  ;;  %2543 = vmatprep.subr.bf16.mxu1 %v11536_v53  ;;  %v11595_v44 = vld [vmem:[#allocation5 + $0x5fc] ss:$36 sps:$4 sm:$0xff]   ;;  %v11601_v53 = vld [vmem:[#allocation5 + $0x644] ss:$36 sps:$4 sm:$0xff]  }
 0x11d   : > { %2048 = vmatprep.mubr.bf16.mxu0 %v12605_v50  ;;  %2274 = vmatprep.mubr.bf16.mxu1 %v12605_v50  ;;  %v11596_v52 = vld [vmem:[#allocation5 + $0x600] ss:$36 sps:$4 sm:$0xff]  }
 0x11f   : > { %2318 = vmatpush1.bf16.msra.mxu0 %v11531_v54  ;;  %2544 = vmatpush1.bf16.msra.mxu1 %v11534_v55  ;;  %v11604_v54 = vld [vmem:[#allocation5 + $0x64c] ss:$36 sps:$4 sm:$0xff]   ;;  %v11599_v55 = vld [vmem:[#allocation5 + $0x640] ss:$36 sps:$4 sm:$0xff]  }
 0x120   : > { %2319 = vmatprep.subr.bf16.mxu0 %v11540_v56  ;;  %2545 = vmatprep.subr.bf16.mxu1 %v11543_v57  ;;  %v11602_v56 = vld [vmem:[#allocation5 + $0x648] ss:$36 sps:$4 sm:$0xff]  }
 0x121   : > { %v11607_v57 = vld [vmem:[#allocation5 + $0x68c] ss:$36 sps:$4 sm:$0xff]  }
 0x122   : > { %2049 = vmatmul.mubr.bf16.gmra.mrb[24].mxu0 %v12959_v58  ;;  %2275 = vmatmul.mubr.bf16.gmra.mrb[24].mxu1 %v12959_v58 }
 0x123   : > { %2320 = vmatpush1.bf16.msra.mxu0 %v11538_v59  ;;  %2546 = vmatpush1.bf16.msra.mxu1 %v11541_v61  ;;  %v11608_v59 = vld [vmem:[#allocation5 + $0x690] ss:$36 sps:$4 sm:$0xff]   ;;  %v11611_v61 = vld [vmem:[#allocation5 + $0x260] ss:$36 sps:$4 sm:$0xff]  }
 0x124   : > { %2321 = vmatprep.subr.bf16.mxu0 %v11546_v62  ;;  %2547 = vmatprep.subr.bf16.mxu1 %v11549_v63  ;;  %v11627_v62 = vld [vmem:[#allocation5 + $0x4a0] ss:$36 sps:$4 sm:$0xff]   ;;  %v11618_v63 = vld [vmem:[#allocation5 + $0xf8] ss:$36 sps:$4 sm:$0xff]  }
 0x125   : > { %2058 = vmatprep.mubr.bf16.mxu0 %v12605_v50  ;;  %2284 = vmatprep.mubr.bf16.mxu1 %v12605_v50 }
 0x127   : > { %2322 = vmatpush1.bf16.msra.mxu0 %v11544_v0  ;;  %2548 = vmatpush1.bf16.msra.mxu1 %v11547_v1  ;;  %v11619_v0 = vld [vmem:[#allocation5 + $0x380] ss:$36 sps:$4 sm:$0xff]  }
 0x128   : > { %2323 = vmatprep.subr.bf16.mxu0 %v11553_v2  ;;  %2549 = vmatprep.subr.bf16.mxu1 %v11556_v4  ;;  %v11631_v1 = vld [vmem:[#allocation5 + $0x5c0] ss:$36 sps:$4 sm:$0xff]   ;;  %v11621_v4 = vld [vmem:[#allocation5 + $0x3c8] ss:$36 sps:$4 sm:$0xff]  }
 0x129   : > { %v11620_v2 = vld [vmem:[#allocation5 + $0x140] ss:$36 sps:$4 sm:$0xff]  }
 0x12a   : > { %2059 = vmatmul.mubr.bf16.gmra.mrb[28].mxu0 %v12966_v6  ;;  %2285 = vmatmul.mubr.bf16.gmra.mrb[28].mxu1 %v12966_v6 }
 0x12b   : > { %2324 = vmatpush1.bf16.msra.mxu0 %v11551_v8  ;;  %2550 = vmatpush1.bf16.msra.mxu1 %v11554_v9  ;;  %v11632_v8 = vld [vmem:[#allocation5 + $0x608] ss:$36 sps:$4 sm:$0xff]  }
 0x12c   : > { %2325 = vmatprep.subr.bf16.mxu0 %v11559_v10  ;;  %2551 = vmatprep.subr.bf16.mxu1 %v11562_v11  ;;  %v11622_v9 = vld [vmem:[#allocation5 + $0x188] ss:$36 sps:$4 sm:$0xff]   ;;  %v11623_v10 = vld [vmem:[#allocation5 + $0x410] ss:$36 sps:$4 sm:$0xff]  }
 0x12d   : > { %2327 = vmatprep.mubr.bf16.mxu0 %v12971_v19  ;;  %2553 = vmatprep.mubr.bf16.mxu1 %v12971_v19  ;;  %v11633_v11 = vld [vmem:[#allocation5 + $0x650] ss:$36 sps:$4 sm:$0xff]  }
 0x12f   : > { %2326 = vmatpush1.bf16.msra.mxu0 %v11557_v14  ;;  %2552 = vmatpush1.bf16.msra.mxu1 %v11560_v15  ;;  %v11624_v14 = vld [vmem:[#allocation5 + $0x1d0] ss:$36 sps:$4 sm:$0xff]   ;;  %v11625_v15 = vld [vmem:[#allocation5 + $0x458] ss:$36 sps:$4 sm:$0xff]  }
 0x130   : > { %2408 = vmatprep.subr.bf16.mxu0 %v11565_v16  ;;  %2634 = vmatprep.subr.bf16.mxu1 %v11568_v17  ;;  %v11634_v16 = vld [vmem:[#allocation5 + $0x698] ss:$36 sps:$4 sm:$0xff]  }
 0x131   : > { %v11626_v17 = vld [vmem:[#allocation5 + $0x218] ss:$36 sps:$4 sm:$0xff]  }
 0x132   : > { %2328 = vmatmul.mubr.bf16.vlgmr.msra.gmra.mrb[32].mxu0 %v12840_v3  ;;  %2554 = vmatmul.mubr.bf16.vlgmr.msra.gmra.mrb[32].mxu1 %v12840_v3  ;;  %v11586_v3 = vld [vmem:[#allocation5 + $0x574] ss:$36 sps:$4 sm:$0xff]  }
 0x133   : > { %2337 = vmatprep.mubr.bf16.mxu0 %v12843_v5  ;;  %2563 = vmatprep.mubr.bf16.mxu1 %v12843_v5  ;;  %v11581_v5 = vld [vmem:[#allocation5 + $0x568] ss:$36 sps:$4 sm:$0xff]  }
 0x134   : > { %2409 = vmatpush1.bf16.msra.mxu0 %v11563_v20  ;;  %2635 = vmatpush1.bf16.msra.mxu1 %v11566_v21  ;;  %v12404_v20 = vld [vmem:[%s12828_s8] ss:$12 sps:$4 sm:$0xff]   ;;  %v12405_v21 = vld [vmem:[%s12828_s8 + $0x1c] ss:$12 sps:$4 sm:$0xff]  }
 0x135   : > { %2410 = vmatprep.subr.bf16.mxu0 %v11571_v24  ;;  %2636 = vmatprep.subr.bf16.mxu1 %v11574_v25  ;;  %v566_v24 = vlaneseq  ;;  %v12407_v25 = vld [vmem:[%s12828_s8 + $0x34] ss:$12 sps:$4 sm:$0xff]  }
 0x138   : > { %2411 = vmatpush1.bf16.msra.mxu0 %v11569_v26  ;;  %2637 = vmatpush1.bf16.msra.mxu1 %v11572_v27  ;;  %v13051_v26 = vld [vmem:[#allocation7] sm:$0xff] }
 0x139   : > { %2412 = vmatprep.subr.bf16.mxu0 %v11577_v28  ;;  %2638 = vmatprep.subr.bf16.mxu1 %v11580_v30  ;;  %v12408_v28 = vld [vmem:[%s12828_s8 + $0x30] ss:$12 sps:$4 sm:$0xff]  }
 0x13a   : > { %2338 = vmatmul.mubr.bf16.gmra.mrb[36].mxu0 %v12850_v12  ;;  %2564 = vmatmul.mubr.bf16.gmra.mrb[36].mxu1 %v12850_v12  ;;  %v11598_v12 = vld [vmem:[#allocation5 + $0x604] ss:$36 sps:$4 sm:$0xff]  }
 0x13b   : > { %2347 = vmatprep.mubr.bf16.mxu0 %v12853_v13  ;;  %2573 = vmatprep.mubr.bf16.mxu1 %v12853_v13  ;;  %v11593_v13 = vld [vmem:[#allocation5 + $0x5f8] ss:$36 sps:$4 sm:$0xff]  }
 0x13c   : > { %2413 = vmatpush1.bf16.msra.mxu0 %v11575_v31  ;;  %2639 = vmatpush1.bf16.msra.mxu1 %v11578_v34 }
 0x13d   : > { %2414 = vmatprep.subr.bf16.mxu0 %v11583_v35  ;;  %2640 = vmatprep.subr.bf16.mxu1 %v11586_v3 }
 0x140   : > { %2415 = vmatpush1.bf16.msra.mxu0 %v11581_v5  ;;  %2641 = vmatpush1.bf16.msra.mxu1 %v11584_v36 }
 0x141   : > { %2416 = vmatprep.subr.bf16.mxu0 %v11589_v37  ;;  %2642 = vmatprep.subr.bf16.mxu1 %v11592_v38 }
 0x142   : > { %2348 = vmatmul.mubr.bf16.gmra.mrb[40].mxu0 %v12860_v22  ;;  %2574 = vmatmul.mubr.bf16.gmra.mrb[40].mxu1 %v12860_v22  ;;  %v11610_v22 = vld [vmem:[#allocation5 + $0x694] ss:$36 sps:$4 sm:$0xff]  }
 0x143   : > { %2357 = vmatprep.mubr.bf16.mxu0 %v12863_v23  ;;  %2583 = vmatprep.mubr.bf16.mxu1 %v12863_v23  ;;  %v11605_v23 = vld [vmem:[#allocation5 + $0x688] ss:$36 sps:$4 sm:$0xff]  }
 0x144   : > { %2417 = vmatpush1.bf16.msra.mxu0 %v11587_v39  ;;  %2643 = vmatpush1.bf16.msra.mxu1 %v11590_v41 }
 0x145   : > { %2418 = vmatprep.subr.bf16.mxu0 %v11595_v44  ;;  %2644 = vmatprep.subr.bf16.mxu1 %v11598_v12 }
 0x148   : > { %2419 = vmatpush1.bf16.msra.mxu0 %v11593_v13  ;;  %2645 = vmatpush1.bf16.msra.mxu1 %v11596_v52 }
 0x149   : > { %2420 = vmatprep.subr.bf16.mxu0 %v11601_v53  ;;  %2646 = vmatprep.subr.bf16.mxu1 %v11604_v54 }
 0x14a   : > { %2358 = vmatmul.mubr.bf16.gmra.mrb[44].mxu0 %v12870_v32  ;;  %2584 = vmatmul.mubr.bf16.gmra.mrb[44].mxu1 %v12870_v32  ;;  %v11612_v32 = vld [vmem:[#allocation5 + $0x20] ss:$36 sps:$4 sm:$0xff]  }
 0x14b   : > { %2367 = vmatprep.mubr.bf16.mxu0 %v12873_v33  ;;  %2593 = vmatprep.mubr.bf16.mxu1 %v12873_v33  ;;  %v11613_v33 = vld [vmem:[#allocation5 + $0x2a8] ss:$36 sps:$4 sm:$0xff]  }
 0x14c   : > { %2421 = vmatpush1.bf16.msra.mxu0 %v11599_v55  ;;  %2647 = vmatpush1.bf16.msra.mxu1 %v11602_v56 }
 0x14d   : > { %2422 = vmatprep.subr.bf16.mxu0 %v11607_v57  ;;  %2648 = vmatprep.subr.bf16.mxu1 %v11610_v22  ;;  %v12410_v57 = vld [vmem:[%s12828_s8 + $0x48] ss:$12 sps:$4 sm:$0xff]  }
 0x150   : > { %2423 = vmatpush1.bf16.msra.mxu0 %v11605_v23  ;;  %2649 = vmatpush1.bf16.msra.mxu1 %v11608_v59  ;;  %v12411_v59 = vld [vmem:[%s12828_s8 + $0x64] ss:$12 sps:$4 sm:$0xff]  }
 0x151   : > { %9577 = vmatprep.subr.bf16.mxu0 %v11611_v61  ;;  %10041 = vmatprep.subr.bf16.mxu1 %v11627_v62 }
 0x152   : > { %2368 = vmatmul.mubr.bf16.gmra.mrb[48].mxu0 %v12880_v42  ;;  %2594 = vmatmul.mubr.bf16.gmra.mrb[48].mxu1 %v12880_v42  ;;  %v11628_v42 = vld [vmem:[#allocation5 + $0x4e8] ss:$36 sps:$4 sm:$0xff]  }
 0x153   : > { %2377 = vmatprep.mubr.bf16.mxu0 %v12883_v43  ;;  %2603 = vmatprep.mubr.bf16.mxu1 %v12883_v43  ;;  %v11614_v43 = vld [vmem:[#allocation5 + $0x68] ss:$36 sps:$4 sm:$0xff]  }
 0x15a   : > { %2378 = vmatmul.mubr.bf16.gmra.mrb[52].mxu0 %v12890_v45  ;;  %2604 = vmatmul.mubr.bf16.gmra.mrb[52].mxu1 %v12890_v45  ;;  %v11615_v45 = vld [vmem:[#allocation5 + $0x2f0] ss:$36 sps:$4 sm:$0xff]  }
 0x15b   : > { %2387 = vmatprep.mubr.bf16.mxu0 %v12893_v46  ;;  %2613 = vmatprep.mubr.bf16.mxu1 %v12893_v46  ;;  %v11629_v46 = vld [vmem:[#allocation5 + $0x530] ss:$36 sps:$4 sm:$0xff]  }
 0x162   : > { %2388 = vmatmul.mubr.bf16.gmra.mrb[56].mxu0 %v12900_v47  ;;  %2614 = vmatmul.mubr.bf16.gmra.mrb[56].mxu1 %v12900_v47  ;;  %v11616_v47 = vld [vmem:[#allocation5 + $0xb0] ss:$36 sps:$4 sm:$0xff]  }
 0x163   : > { %2397 = vmatprep.mubr.bf16.mxu0 %v12903_v48  ;;  %2623 = vmatprep.mubr.bf16.mxu1 %v12903_v48  ;;  %v11617_v48 = vld [vmem:[#allocation5 + $0x338] ss:$36 sps:$4 sm:$0xff]  }
 0x16a   : > { %2398 = vmatmul.mubr.bf16.gmra.mrb[60].mxu0 %v12910_v49  ;;  %2624 = vmatmul.mubr.bf16.gmra.mrb[60].mxu1 %v12910_v49  ;;  %v11630_v49 = vld [vmem:[#allocation5 + $0x578] ss:$36 sps:$4 sm:$0xff]  }
 0x16b   : > { %2440 = vmatprep.mubr.bf16.mxu0 %v12605_v50  ;;  %2666 = vmatprep.mubr.bf16.mxu1 %v12605_v50 }
 0x172   : > { %2441 = vmatmul.mubr.bf16.vlgmr.msra.gmra.mrb[32].mxu0 %v12917_v51  ;;  %2667 = vmatmul.mubr.bf16.vlgmr.msra.gmra.mrb[32].mxu1 %v12917_v51 }
 0x173   : > { %2450 = vmatprep.mubr.bf16.mxu0 %v12605_v50  ;;  %2676 = vmatprep.mubr.bf16.mxu1 %v12605_v50 }
 0x174   : > { %9578 = vmatpush3.bf16.msra.mxu0 %v11612_v32  ;;  %10042 = vmatpush3.bf16.msra.mxu1 %v11627_v62 }
 0x175   : > { %9579 = vmatprep.subr.bf16.mxu0 %v11613_v33  ;;  %10043 = vmatprep.subr.bf16.mxu1 %v11628_v42 }
 0x178   : > { %9580 = vmatpush3.bf16.msra.mxu0 %v11614_v43  ;;  %10044 = vmatpush3.bf16.msra.mxu1 %v11628_v42 }
 0x179   : > { %9581 = vmatprep.subr.bf16.mxu0 %v11615_v45  ;;  %10045 = vmatprep.subr.bf16.mxu1 %v11629_v46 }
 0x17a   : > { %2451 = vmatmul.mubr.bf16.gmra.mrb[36].mxu0 %v12924_v60  ;;  %2677 = vmatmul.mubr.bf16.gmra.mrb[36].mxu1 %v12924_v60 }
 0x17b   : > { %2460 = vmatprep.mubr.bf16.mxu0 %v12605_v50  ;;  %2686 = vmatprep.mubr.bf16.mxu1 %v12605_v50 }
 0x17c   : > { %9582 = vmatpush3.bf16.msra.mxu0 %v11616_v47  ;;  %10046 = vmatpush3.bf16.msra.mxu1 %v11629_v46 }
 0x17d   : > { %9583 = vmatprep.subr.bf16.mxu0 %v11617_v48  ;;  %10047 = vmatprep.subr.bf16.mxu1 %v11630_v49 }
 0x180   : > { %9584 = vmatpush3.bf16.msra.mxu0 %v11618_v63  ;;  %10048 = vmatpush3.bf16.msra.mxu1 %v11630_v49 }
 0x181   : > { %9585 = vmatprep.subr.bf16.mxu0 %v11619_v0  ;;  %10049 = vmatprep.subr.bf16.mxu1 %v11631_v1 }
 0x182   : > { %2461 = vmatmul.mubr.bf16.gmra.mrb[40].mxu0 %v12931_v7  ;;  %2687 = vmatmul.mubr.bf16.gmra.mrb[40].mxu1 %v12931_v7 }
 0x183   : > { %2470 = vmatprep.mubr.bf16.mxu0 %v12605_v50  ;;  %2696 = vmatprep.mubr.bf16.mxu1 %v12605_v50 }
 0x184   : > { %9586 = vmatpush3.bf16.msra.mxu0 %v11620_v2  ;;  %10050 = vmatpush3.bf16.msra.mxu1 %v11631_v1 }
 0x185   : > { %9587 = vmatprep.subr.bf16.mxu0 %v11621_v4  ;;  %10051 = vmatprep.subr.bf16.mxu1 %v11632_v8 }
 0x188   : > { %9588 = vmatpush3.bf16.msra.mxu0 %v11622_v9  ;;  %10052 = vmatpush3.bf16.msra.mxu1 %v11632_v8 }
 0x189   : > { %9589 = vmatprep.subr.bf16.mxu0 %v11623_v10  ;;  %10053 = vmatprep.subr.bf16.mxu1 %v11633_v11  ;;  %v12412_v10 = vld [vmem:[%s12828_s8 + $0x60] ss:$12 sps:$4 sm:$0xff]  }
 0x18a   : > { %2471 = vmatmul.mubr.bf16.gmra.mrb[44].mxu0 %v12936_v18  ;;  %2697 = vmatmul.mubr.bf16.gmra.mrb[44].mxu1 %v12936_v18 }
 0x18b   : > { %2480 = vmatprep.mubr.bf16.mxu0 %v12605_v50  ;;  %2706 = vmatprep.mubr.bf16.mxu1 %v12605_v50 }
 0x18c   : > { %9590 = vmatpush3.bf16.msra.mxu0 %v11624_v14  ;;  %10054 = vmatpush3.bf16.msra.mxu1 %v11633_v11 }
 0x18d   : > { %9591 = vmatprep.subr.bf16.mxu0 %v11625_v15  ;;  %10055 = vmatprep.subr.bf16.mxu1 %v11634_v16  ;;  %v12413_v15 = vld [vmem:[%s12828_s8 + $0x7c] ss:$12 sps:$4 sm:$0xff]  }
 0x190   : > { %9592 = vmatpush3.bf16.msra.mxu0 %v11626_v17  ;;  %10056 = vmatpush3.bf16.msra.mxu1 %v11634_v16 }
 0x192   : > { %2481 = vmatmul.mubr.bf16.gmra.mrb[48].mxu0 %v12943_v29  ;;  %2707 = vmatmul.mubr.bf16.gmra.mrb[48].mxu1 %v12943_v29 }
 0x193   : > { %2490 = vmatprep.mubr.bf16.mxu0 %v12605_v50  ;;  %2716 = vmatprep.mubr.bf16.mxu1 %v12605_v50 }
 0x19a   : > { %2491 = vmatmul.mubr.bf16.gmra.mrb[52].mxu0 %v12952_v40  ;;  %2717 = vmatmul.mubr.bf16.gmra.mrb[52].mxu1 %v12952_v40 }
 0x19b   : > { %2500 = vmatprep.mubr.bf16.mxu0 %v12605_v50  ;;  %2726 = vmatprep.mubr.bf16.mxu1 %v12605_v50 }
 0x1a2   : > { %2501 = vmatmul.mubr.bf16.gmra.mrb[56].mxu0 %v12959_v58  ;;  %2727 = vmatmul.mubr.bf16.gmra.mrb[56].mxu1 %v12959_v58 }
 0x1a3   : > { %2510 = vmatprep.mubr.bf16.mxu0 %v12605_v50  ;;  %2736 = vmatprep.mubr.bf16.mxu1 %v12605_v50  ;;  %v12406_v50 = vld [vmem:[%s12828_s8 + $0x18] ss:$12 sps:$4 sm:$0xff]  }
 0x1aa   : > { %2511 = vmatmul.mubr.bf16.gmra.mrb[60].mxu0 %v12966_v6  ;;  %2737 = vmatmul.mubr.bf16.gmra.mrb[60].mxu1 %v12966_v6 }
 0x1ab   : > { %2779 = vmatprep.mubr.bf16.mxu0 %v12971_v19  ;;  %10057 = vmatprep.mubr.bf16.mxu1 %v12917_v51  ;;  %v13047_v51 = vshrl.u32 %v566_v24, 7 }
 0x1ad   : > { %v568_v19 = vsub.s32 0, %v13047_v51  ;;  %v580_v27 = vsub.s32 3, %v13047_v51 }
 0x1af   : > { %v13069_v3 = vrot.slane %v13051_v26, %v580_v27 }
 0x1b2   : > { %2780 = vmatmul.mubr.bf16.vlgmr.msra.gmra.mrb[64].mxu0 %v12404_v20  ;;  %10058 = vmatmul.mubr.bf16.vlgmr.msra.gmra.mrb[64].mxu1 %v12924_v60  ;;  %v576_v60 = vsub.s32 2, %v13047_v51 }
 0x1b3   : > { %2787 = vmatprep.mubr.bf16.mxu0 %v12405_v21  ;;  %10061 = vmatprep.mubr.bf16.mxu1 %v12931_v7  ;;  %v572_v7 = vsub.s32 1, %v13047_v51 }
 0x1b4   : > { %v13063_v30 = vrot.slane %v13051_v26, %v576_v60 }
 0x1b5   : > { %v13066_v35 = vrot.slane %v13051_v26, %v572_v7 }
 0x1ba   : > { %2788 = vmatmul.mubr.bf16.gmra.mrb[68].mxu0 %v12406_v50  ;;  %10062 = vmatmul.mubr.bf16.gmra.mrb[68].mxu1 %v12936_v18  ;;  %v12409_v18 = vld [vmem:[%s12828_s8 + $0x4c] ss:$12 sps:$4 sm:$0xff]  }
 0x1bb   : > { %2795 = vmatprep.mubr.bf16.mxu0 %v12407_v25  ;;  %10065 = vmatprep.mubr.bf16.mxu1 %v12943_v29  ;;  %v13060_v29 = vrot.slane %v13051_v26, %v568_v19 }
 0x1c2   : > { %2796 = vmatmul.mubr.bf16.gmra.mrb[72].mxu0 %v12408_v28  ;;  %10066 = vmatmul.mubr.bf16.gmra.mrb[72].mxu1 %v12952_v40 }
 0x1c3   : > { %2803 = vmatprep.mubr.bf16.mxu0 %v12409_v18  ;;  %10069 = vmatprep.mubr.bf16.mxu1 %v12959_v58 }
 0x1c5   : > { %v1990_v31 = vpop.f32.mrb[0].mxu0  ;;  %v2216_v34 = vpop.f32.mrb[0].mxu1 }
 0x1c6   : > { %v1992_v5 = vpop.f32.mrb[1].mxu0  ;;  %v2218_v40 = vpop.f32.mrb[1].mxu1  ;;  %v10841_v58 = vadd.f32 %v1990_v31, %v13060_v29  ;;  %v10873_v38 = vadd.f32 %v2216_v34, %v13063_v30 }
 0x1c7   : > { %v1994_v36 = vpop.f32.mrb[2].mxu0  ;;  %v2220_v37 = vpop.f32.mrb[2].mxu1  ;;  %v10842_v13 = vadd.f32 %v1992_v5, %v13066_v35  ;;  %v10874_v52 = vadd.f32 %v2218_v40, %v13069_v3 }
 0x1c8   : > { %v10843_v39 = vadd.f32 %v1994_v36, %v13060_v29  ;;  %v10875_v41 = vadd.f32 %v2220_v37, %v13063_v30  ;;  %v1996_v44 = vpop.f32.mrb[3].mxu0  ;;  %v2222_v12 = vpop.f32.mrb[3].mxu1 }
 0x1c9   : > { %v10844_v53 = vadd.f32 %v1996_v44, %v13066_v35  ;;  %v10876_v54 = vadd.f32 %v2222_v12, %v13069_v3 }
 0x1ca   : > { %v13079_v55 = vpack.c.bf16 %v10843_v39, %v10841_v58  ;;  %v13081_v56 = vpack.c.bf16 %v10875_v41, %v10873_v38  ;;  %2804 = vmatmul.mubr.bf16.gmra.mrb[76].mxu0 %v12410_v57  ;;  %10070 = vmatmul.mubr.bf16.gmra.mrb[76].mxu1 %v12966_v6  ;;  %v12414_v58 = vld [vmem:[%s12828_s8 + $0x78] ss:$12 sps:$4 sm:$0xff]   ;;  %v12415_v41 = vld [vmem:[%s12828_s8 + $0x94] ss:$12 sps:$4 sm:$0xff]  }
 0x1cb   : > { %v13085_v22 = vpack.c.bf16 %v10844_v53, %v10842_v13  ;;  %v13087_v23 = vpack.c.bf16 %v10876_v54, %v10874_v52  ;;  %2811 = vmatprep.mubr.bf16.mxu0 %v12411_v59 }
 0x1cc   : > { %18029 = vst [vmem:[#allocation12_spill] sm:$0xff] %v13081_v56 }
 0x1cd   : > { %18030 = vst [vmem:[#allocation13_spill] sm:$0xff] %v13085_v22  ;;  %v2226_v61 = vpop.f32.mrb[4].mxu1  ;;  %3446 = vrot.lane.b32.xlu0 %v13087_v23, %s12606_s23  ;;  %v2000_v62 = vpop.f32.mrb[4].mxu0  ;;  %11097 = vmatprep.subr.msk.bf16.mxu0 %vm3019_vm0, %v13087_v23  ;;  %v3045_v32 = vsel %vm3019_vm0, %v13087_v23, 0 }
 0x1ce   : > { %v2002_v33 = vpop.f32.mrb[5].mxu0  ;;  %v2228_v6 = vpop.f32.mrb[5].mxu1  ;;  %10074 = vmatpush3.bf16.xpose.msra.mxu0 %v3045_v32  ;;  %v10877_v45 = vadd.f32 %v2226_v61, %v13063_v30  ;;  %v10845_v46 = vadd.f32 %v2000_v62, %v13060_v29 }
 0x1cf   : > { %v2004_v42 = vpop.f32.mrb[6].mxu0  ;;  %v2230_v43 = vpop.f32.mrb[6].mxu1  ;;  %v10846_v0 = vadd.f32 %v2002_v33, %v13066_v35  ;;  %v10878_v1 = vadd.f32 %v2228_v6, %v13069_v3 }
 0x1d0   : > { %v10847_v47 = vadd.f32 %v2004_v42, %v13060_v29  ;;  %v10879_v48 = vadd.f32 %v2230_v43, %v13063_v30  ;;  %v2006_v49 = vpop.f32.mrb[7].mxu0  ;;  %v2232_v63 = vpop.f32.mrb[7].mxu1 }
 0x1d1   : > { %v10848_v2 = vadd.f32 %v2006_v49, %v13066_v35  ;;  %v10880_v4 = vadd.f32 %v2232_v63, %v13069_v3  ;;  %v12416_v49 = vld [vmem:[%s12828_s8 + $0x90] ss:$12 sps:$4 sm:$0xff]  }
 0x1d2   : > { %v13104_v8 = vpack.c.bf16 %v10847_v47, %v10845_v46  ;;  %v13106_v9 = vpack.c.bf16 %v10879_v48, %v10877_v45  ;;  %2812 = vmatmul.mubr.bf16.gmra.mrb[80].mxu0 %v12412_v10 }
 0x1d3   : > { %v13109_v11 = vpack.c.bf16 %v10848_v2, %v10846_v0  ;;  %v13111_v14 = vpack.c.bf16 %v10880_v4, %v10878_v1  ;;  %2819 = vmatprep.mubr.bf16.mxu0 %v12413_v15  ;;  %v12417_v1 = vld [vmem:[%s12828_s8 + $0xac] ss:$12 sps:$4 sm:$0xff]  }
 0x1d4   : > { %18031 = vst [vmem:[#allocation14_spill] sm:$0xff] %v13106_v9 }
 0x1d5   : > { %18032 = vst [vmem:[#allocation15_spill] sm:$0xff] %v13109_v11  ;;  %v2236_v16 = vpop.f32.mrb[8].mxu1  ;;  %3448 = vrot.lane.b32.xlu1 %v13111_v14, %s12606_s23  ;;  %v2010_v17 = vpop.f32.mrb[8].mxu0  ;;  %11098 = vmatprep.subr.msk.bf16.mxu0 %vm3019_vm0, %v13111_v14  ;;  %v3048_v20 = vsel %vm3019_vm0, %v13111_v14, 0 }
 0x1d6   : > { %v2012_v21 = vpop.f32.mrb[9].mxu0  ;;  %v2238_v24 = vpop.f32.mrb[9].mxu1  ;;  %10076 = vmatpush3.bf16.xpose.msra.mxu0 %v3048_v20  ;;  %v10881_v19 = vadd.f32 %v2236_v16, %v13063_v30  ;;  %v10849_v60 = vadd.f32 %v2010_v17, %v13060_v29 }
 0x1d7   : > { %v2014_v50 = vpop.f32.mrb[10].mxu0  ;;  %v2240_v25 = vpop.f32.mrb[10].mxu1  ;;  %v10850_v31 = vadd.f32 %v2012_v21, %v13066_v35  ;;  %v10882_v34 = vadd.f32 %v2238_v24, %v13069_v3 }
 0x1d8   : > { %v10851_v7 = vadd.f32 %v2014_v50, %v13060_v29  ;;  %v10883_v27 = vadd.f32 %v2240_v25, %v13063_v30  ;;  %v2016_v28 = vpop.f32.mrb[11].mxu0  ;;  %v2242_v18 = vpop.f32.mrb[11].mxu1 }
 0x1d9   : > { %v10852_v5 = vadd.f32 %v2016_v28, %v13066_v35  ;;  %v10884_v40 = vadd.f32 %v2242_v18, %v13069_v3 }
 0x1da   : > { %v13128_v36 = vpack.c.bf16 %v10851_v7, %v10849_v60  ;;  %v13130_v37 = vpack.c.bf16 %v10883_v27, %v10881_v19  ;;  %2820 = vmatmul.mubr.bf16.gmra.mrb[84].mxu0 %v12414_v58 }
 0x1db   : > { %v13133_v38 = vpack.c.bf16 %v10852_v5, %v10850_v31  ;;  %v13135_v39 = vpack.c.bf16 %v10884_v40, %v10882_v34  ;;  %2827 = vmatprep.mubr.bf16.mxu0 %v12415_v41  ;;  %v12418_v5 = vld [vmem:[%s12828_s8 + $0xa8] ss:$12 sps:$4 sm:$0xff]   ;;  %s12510_s8 = scalar_lea.vmem %s17787_s22, 6144 }
 0x1dc   : > { %18033 = vst [vmem:[#allocation16_spill] sm:$0xff] %v13130_v37  ;;  %p12511_p12 = scmp.ne.s32.totalorder %s17787_s22, %s12510_s8 }
 0x1dd   : > { %18034 = vst [vmem:[#allocation17_spill] sm:$0xff] %v13133_v38  ;;  %v2246_v44 = vpop.f32.mrb[12].mxu1  ;;  %3450 = vrot.lane.b32.xlu0 %v13135_v39, %s12606_s23  ;;  %v2020_v12 = vpop.f32.mrb[12].mxu0  ;;  %11099 = vmatprep.subr.msk.bf16.mxu0 %vm3019_vm0, %v13135_v39  ;;  %v3051_v13 = vsel %vm3019_vm0, %v13135_v39, 0 }
 0x1de   : > { %v2022_v52 = vpop.f32.mrb[13].mxu0  ;;  %v2248_v53 = vpop.f32.mrb[13].mxu1  ;;  %10078 = vmatpush3.bf16.xpose.msra.mxu0 %v3051_v13  ;;  %v10885_v59 = vadd.f32 %v2246_v44, %v13063_v30  ;;  %v10853_v61 = vadd.f32 %v2020_v12, %v13060_v29  ;;  %p12512_p10 = pnand %p12511_p12, %p19043_p1 }
 0x1df   : > { %v2024_v54 = vpop.f32.mrb[14].mxu0  ;;  %v2250_v57 = vpop.f32.mrb[14].mxu1  ;;  %v10854_v42 = vadd.f32 %v2022_v52, %v13066_v35  ;;  %v10886_v43 = vadd.f32 %v2248_v53, %v13069_v3 }
 0x1e0   : > { %v10855_v62 = vadd.f32 %v2024_v54, %v13060_v29  ;;  %v10887_v32 = vadd.f32 %v2250_v57, %v13063_v30  ;;  %v2026_v33 = vpop.f32.mrb[15].mxu0  ;;  %v2252_v6 = vpop.f32.mrb[15].mxu1  ;;  %p12513_p3 = pneg %p12512_p10 }
 0x1e1   : > { %v10856_v45 = vadd.f32 %v2026_v33, %v13066_v35  ;;  %v10888_v46 = vadd.f32 %v2252_v6, %v13069_v3 }
 0x1e2   : > { %v13152_v47 = vpack.c.bf16 %v10855_v62, %v10853_v61  ;;  %v13154_v48 = vpack.c.bf16 %v10887_v32, %v10885_v59  ;;  %2828 = vmatmul.mubr.bf16.gmra.mrb[88].mxu0 %v12416_v49 }
 0x1e3   : > { %v13157_v63 = vpack.c.bf16 %v10856_v45, %v10854_v42  ;;  %v13159_v0 = vpack.c.bf16 %v10888_v46, %v10886_v43  ;;  %2835 = vmatprep.mubr.bf16.mxu0 %v12417_v1 }
 0x1e4   : > { %18035 = vst [vmem:[#allocation18_spill] sm:$0xff] %v13154_v48 }
 0x1e5   : > { %18036 = vst [vmem:[#allocation19_spill] sm:$0xff] %v13157_v63  ;;  %v2030_v2 = vpop.f32.mrb[16].mxu0  ;;  %v2256_v4 = vpop.f32.mrb[16].mxu1  ;;  %11100 = vmatprep.subr.msk.bf16.mxu0 %vm3019_vm0, %v13159_v0  ;;  %v3054_v10 = vsel %vm3019_vm0, %v13159_v0, 0 }
 0x1e6   : > { %v2032_v15 = vpop.f32.mrb[17].mxu0  ;;  %v2258_v16 = vpop.f32.mrb[17].mxu1  ;;  %10080 = vmatpush3.bf16.xpose.msra.mxu0 %v3054_v10  ;;  %v10857_v21 = vadd.f32 %v2030_v2, %v13060_v29  ;;  %v10889_v24 = vadd.f32 %v2256_v4, %v13063_v30 }
 0x1e7   : > { %v2034_v17 = vpop.f32.mrb[18].mxu0  ;;  %v2260_v20 = vpop.f32.mrb[18].mxu1  ;;  %v10858_v7 = vadd.f32 %v2032_v15, %v13066_v35  ;;  %v10890_v27 = vadd.f32 %v2258_v16, %v13069_v3 }
 0x1e8   : > { %v10859_v50 = vadd.f32 %v2034_v17, %v13060_v29  ;;  %v10891_v25 = vadd.f32 %v2260_v20, %v13063_v30  ;;  %v2036_v19 = vpop.f32.mrb[19].mxu0  ;;  %v2262_v60 = vpop.f32.mrb[19].mxu1 }
 0x1e9   : > { %v10860_v28 = vadd.f32 %v2036_v19, %v13066_v35  ;;  %v10892_v18 = vadd.f32 %v2262_v60, %v13069_v3 }
 0x1ea   : > { %v13174_v31 = vpack.c.bf16 %v10859_v50, %v10857_v21  ;;  %v13176_v34 = vpack.c.bf16 %v10891_v25, %v10889_v24  ;;  %2836 = vmatmul.mubr.bf16.gmra.mrb[92].mxu0 %v12418_v5 }
 0x1eb   : > { %v13179_v40 = vpack.c.bf16 %v10860_v28, %v10858_v7  ;;  %v13181_v58 = vpack.c.bf16 %v10892_v18, %v10890_v27  ;;  %10089 = vmatprep.mubr.msk.bf16.mxu0 %vm3019_vm0, %v13079_v55 }
 0x1ec   : > { %18037 = vst [vmem:[#allocation20_spill] sm:$0xff] %v13176_v34 }
 0x1ed   : > { %18038 = vst [vmem:[#allocation21_spill] sm:$0xff] %v13179_v40  ;;  %v2040_v41 = vpop.f32.mrb[20].mxu0  ;;  %v2266_v44 = vpop.f32.mrb[20].mxu1  ;;  %11101 = vmatprep.subr.msk.bf16.mxu0 %vm3019_vm0, %v13181_v58  ;;  %v3057_v12 = vsel %vm3019_vm0, %v13181_v58, 0 }
 0x1ee   : > { %v2042_v13 = vpop.f32.mrb[21].mxu0  ;;  %v2268_v52 = vpop.f32.mrb[21].mxu1  ;;  %10082 = vmatpush3.bf16.xpose.msra.mxu0 %v3057_v12  ;;  %v10861_v57 = vadd.f32 %v2040_v41, %v13060_v29  ;;  %v10893_v59 = vadd.f32 %v2266_v44, %v13063_v30 }
 0x1ef   : > { %v2044_v53 = vpop.f32.mrb[22].mxu0  ;;  %v2270_v54 = vpop.f32.mrb[22].mxu1  ;;  %v10862_v6 = vadd.f32 %v2042_v13, %v13066_v35  ;;  %v10894_v42 = vadd.f32 %v2268_v52, %v13069_v3 }
 0x1f0   : > { %v10863_v61 = vadd.f32 %v2044_v53, %v13060_v29  ;;  %v10895_v62 = vadd.f32 %v2270_v54, %v13063_v30  ;;  %v2046_v32 = vpop.f32.mrb[23].mxu0  ;;  %v2272_v33 = vpop.f32.mrb[23].mxu1 }
 0x1f1   : > { %v10864_v43 = vadd.f32 %v2046_v32, %v13066_v35  ;;  %v10896_v45 = vadd.f32 %v2272_v33, %v13069_v3 }
 0x1f2   : > { %v13197_v46 = vpack.c.bf16 %v10863_v61, %v10861_v57  ;;  %v13199_v49 = vpack.c.bf16 %v10895_v62, %v10893_v59 }
 0x1f3   : > { %v13201_v1 = vpack.c.bf16 %v10864_v43, %v10862_v6  ;;  %v13203_v2 = vpack.c.bf16 %v10896_v45, %v10894_v42 }
 0x1f4   : > { %18039 = vst [vmem:[#allocation22_spill] sm:$0xff] %v13199_v49 }
 0x1f5   : > { %18040 = vst [vmem:[#allocation23_spill] sm:$0xff] %v13201_v1  ;;  %v2050_v4 = vpop.f32.mrb[24].mxu0  ;;  %v2276_v10 = vpop.f32.mrb[24].mxu1  ;;  %11102 = vmatprep.subr.msk.bf16.mxu0 %vm3019_vm0, %v13203_v2  ;;  %v3060_v15 = vsel %vm3019_vm0, %v13203_v2, 0 }
 0x1f6   : > { %v2052_v16 = vpop.f32.mrb[25].mxu0  ;;  %v2278_v17 = vpop.f32.mrb[25].mxu1  ;;  %10084 = vmatpush3.bf16.xpose.msra.mxu0 %v3060_v15  ;;  %v10865_v24 = vadd.f32 %v2050_v4, %v13060_v29  ;;  %v10897_v50 = vadd.f32 %v2276_v10, %v13063_v30 }
 0x1f7   : > { %v2054_v20 = vpop.f32.mrb[26].mxu0  ;;  %v2280_v21 = vpop.f32.mrb[26].mxu1  ;;  %v10866_v27 = vadd.f32 %v2052_v16, %v13066_v35  ;;  %v10898_v28 = vadd.f32 %v2278_v17, %v13069_v3 }
 0x1f8   : > { %v10867_v25 = vadd.f32 %v2054_v20, %v13060_v29  ;;  %v10899_v19 = vadd.f32 %v2280_v21, %v13063_v30  ;;  %v2056_v60 = vpop.f32.mrb[27].mxu0  ;;  %v2282_v7 = vpop.f32.mrb[27].mxu1 }
 0x1f9   : > { %v10868_v18 = vadd.f32 %v2056_v60, %v13066_v35  ;;  %v10900_v5 = vadd.f32 %v2282_v7, %v13069_v3 }
 0x1fa   : > { %v13217_v41 = vpack.c.bf16 %v10867_v25, %v10865_v24  ;;  %v13219_v44 = vpack.c.bf16 %v10899_v19, %v10897_v50  ;;  %v588_v50 = vsub.s32 5, %v13047_v51 }
 0x1fb   : > { %v13221_v12 = vpack.c.bf16 %v10868_v18, %v10866_v27  ;;  %v13223_v13 = vpack.c.bf16 %v10900_v5, %v10898_v28 }
 0x1fc   : > { %18041 = vst [vmem:[#allocation24_spill] sm:$0xff] %v13219_v44  ;;  %v13277_v27 = vrot.slane %v13051_v26, %v588_v50 }
 0x1fd   : > { %18042 = vst [vmem:[#allocation25_spill] sm:$0xff] %v13221_v12  ;;  %v2060_v52 = vpop.f32.mrb[28].mxu0  ;;  %v2286_v53 = vpop.f32.mrb[28].mxu1  ;;  %11103 = vmatprep.subr.msk.bf16.mxu0 %vm3019_vm0, %v13223_v13  ;;  %v3063_v54 = vsel %vm3019_vm0, %v13223_v13, 0 }
 0x1fe   : > { %v2062_v57 = vpop.f32.mrb[29].mxu0  ;;  %v2288_v59 = vpop.f32.mrb[29].mxu1  ;;  %10086 = vmatpush3.bf16.xpose.msra.mxu0 %v3063_v54  ;;  %v10869_v32 = vadd.f32 %v2060_v52, %v13060_v29  ;;  %v10901_v33 = vadd.f32 %v2286_v53, %v13063_v30 }
 0x1ff   : > { %v2064_v61 = vpop.f32.mrb[30].mxu0  ;;  %v2290_v62 = vpop.f32.mrb[30].mxu1  ;;  %v10870_v4 = vadd.f32 %v2062_v57, %v13066_v35  ;;  %v10902_v10 = vadd.f32 %v2288_v59, %v13069_v3 }
 0x200   : > { %v10871_v6 = vadd.f32 %v2064_v61, %v13060_v29  ;;  %v10903_v42 = vadd.f32 %v2290_v62, %v13063_v30  ;;  %v2066_v43 = vpop.f32.mrb[31].mxu0  ;;  %v2292_v45 = vpop.f32.mrb[31].mxu1  ;;  %v592_v30 = vsub.s32 6, %v13047_v51 }
 0x201   : > { %v10872_v15 = vadd.f32 %v2066_v43, %v13066_v35  ;;  %v10904_v16 = vadd.f32 %v2292_v45, %v13069_v3  ;;  %v584_v35 = vsub.s32 4, %v13047_v51  ;;  %v596_v3 = vsub.s32 7, %v13047_v51 }
 0x202   : > { %v13237_v17 = vpack.c.bf16 %v10871_v6, %v10869_v32  ;;  %v13239_v20 = vpack.c.bf16 %v10903_v42, %v10901_v33  ;;  %v13268_v25 = vrot.slane %v13051_v26, %v592_v30 }
 0x203   : > { %v13241_v21 = vpack.c.bf16 %v10872_v15, %v10870_v4  ;;  %v13243_v24 = vpack.c.bf16 %v10904_v16, %v10902_v10  ;;  %v13271_v19 = vrot.slane %v13051_v26, %v584_v35  ;;  %v13274_v60 = vrot.slane %v13051_v26, %v596_v3 }
 0x204   : > { %18043 = vst [vmem:[#allocation26_spill] sm:$0xff] %v13239_v20 }
 0x205   : > { %18044 = vst [vmem:[#allocation27_spill] sm:$0xff] %v13241_v21  ;;  %11104 = vmatprep.subr.msk.bf16.mxu0 %vm3019_vm0, %v13243_v24  ;;  %v3066_v29 = vsel %vm3019_vm0, %v13243_v24, 0 }
 0x206   : > { %10088 = vmatpush3.bf16.xpose.msra.mxu0 %v3066_v29 }
 0x20d   : > { %10090 = vmatmul.mubr.msk.bf16.vlgmr.msra.gmra.mrb[96].mxu0 %vm3019_vm0, %v13104_v8 }
 0x20e   : > { %10093 = vmatprep.mubr.msk.bf16.mxu0 %vm3019_vm0, %v13128_v36 }
 0x215   : > { %10094 = vmatmul.mubr.msk.bf16.gmra.mrb[100].mxu0 %vm3019_vm0, %v13152_v47 }
 0x216   : > { %10097 = vmatprep.mubr.msk.bf16.mxu0 %vm3019_vm0, %v13174_v31 }
 0x21d   : > { %10098 = vmatmul.mubr.msk.bf16.gmra.mrb[104].mxu0 %vm3019_vm0, %v13197_v46 }
 0x21e   : > { %10101 = vmatprep.mubr.msk.bf16.mxu0 %vm3019_vm0, %v13217_v41 }
 0x225   : > { %10102 = vmatmul.mubr.msk.bf16.gmra.mrb[108].mxu0 %vm3019_vm0, %v13237_v17 }
 0x245   : > { %v2442_v7 = vpop.f32.mrb[32].mxu0  ;;  %v2668_v28 = vpop.f32.mrb[32].mxu1 }
 0x246   : > { %v2444_v18 = vpop.f32.mrb[33].mxu0  ;;  %v2670_v5 = vpop.f32.mrb[33].mxu1  ;;  %v10937_v53 = vadd.f32 %v2668_v28, %v13268_v25  ;;  %v10905_v51 = vadd.f32 %v2442_v7, %v13271_v19 }
 0x247   : > { %v2446_v52 = vpop.f32.mrb[34].mxu0  ;;  %v10938_v59 = vadd.f32 %v2670_v5, %v13274_v60  ;;  %v2672_v61 = vpop.f32.mrb[34].mxu1  ;;  %v10906_v62 = vadd.f32 %v2444_v18, %v13277_v27 }
 0x248   : > { %v10907_v54 = vadd.f32 %v2446_v52, %v13271_v19  ;;  %v2448_v57 = vpop.f32.mrb[35].mxu0  ;;  %v10939_v26 = vadd.f32 %v2672_v61, %v13268_v25  ;;  %v2674_v33 = vpop.f32.mrb[35].mxu1 }
 0x249   : > { %v10908_v32 = vadd.f32 %v2448_v57, %v13277_v27  ;;  %v10940_v42 = vadd.f32 %v2674_v33, %v13274_v60 }
 0x24a   : > { %v13286_v6 = vpack.c.bf16 %v10907_v54, %v10905_v51  ;;  %v13291_v45 = vpack.c.bf16 %v10939_v26, %v10937_v53 }
 0x24b   : > { %v13289_v43 = vpack.c.bf16 %v10908_v32, %v10906_v62  ;;  %v13293_v4 = vpack.c.bf16 %v10940_v42, %v10938_v59 }
 0x24c   : > { %18045 = vst [vmem:[#allocation28_spill] sm:$0xff] %v13286_v6  ;;  %10105 = vmatprep.subr.bf16.mxu1 %v13291_v45 }
 0x24d   : > { %18046 = vst [vmem:[#allocation29_spill] sm:$0xff] %v13289_v43  ;;  %v2452_v10 = vpop.f32.mrb[36].mxu0  ;;  %v2678_v15 = vpop.f32.mrb[36].mxu1  ;;  %10106 = vmatpush3.bf16.msra.mxu1 %v13291_v45 }
 0x24e   : > { %v2454_v16 = vpop.f32.mrb[37].mxu0  ;;  %v2680_v29 = vpop.f32.mrb[37].mxu1  ;;  %v10941_v35 = vadd.f32 %v2678_v15, %v13268_v25  ;;  %v10909_v3 = vadd.f32 %v2452_v10, %v13271_v19 }
 0x24f   : > { %v2456_v30 = vpop.f32.mrb[38].mxu0  ;;  %v10942_v28 = vadd.f32 %v2680_v29, %v13274_v60  ;;  %v2682_v18 = vpop.f32.mrb[38].mxu1  ;;  %v10910_v5 = vadd.f32 %v2454_v16, %v13277_v27 }
 0x250   : > { %v10911_v50 = vadd.f32 %v2456_v30, %v13271_v19  ;;  %v2458_v7 = vpop.f32.mrb[39].mxu0  ;;  %v10943_v53 = vadd.f32 %v2682_v18, %v13268_v25  ;;  %v2684_v51 = vpop.f32.mrb[39].mxu1 }
 0x251   : > { %v10912_v52 = vadd.f32 %v2458_v7, %v13277_v27  ;;  %v10944_v57 = vadd.f32 %v2684_v51, %v13274_v60 }
 0x252   : > { %v13304_v54 = vpack.c.bf16 %v10911_v50, %v10909_v3  ;;  %v13309_v61 = vpack.c.bf16 %v10943_v53, %v10941_v35 }
 0x253   : > { %v13307_v59 = vpack.c.bf16 %v10912_v52, %v10910_v5  ;;  %v13311_v62 = vpack.c.bf16 %v10944_v57, %v10942_v28 }
 0x254   : > { %18047 = vst [vmem:[#allocation30_spill] sm:$0xff] %v13304_v54  ;;  %10107 = vmatprep.subr.bf16.mxu1 %v13309_v61 }
 0x255   : > { %18048 = vst [vmem:[#allocation31_spill] sm:$0xff] %v13307_v59  ;;  %v2462_v32 = vpop.f32.mrb[40].mxu0  ;;  %v2688_v26 = vpop.f32.mrb[40].mxu1  ;;  %10108 = vmatpush3.bf16.msra.mxu1 %v13309_v61 }
 0x256   : > { %v2464_v33 = vpop.f32.mrb[41].mxu0  ;;  %v10945_v42 = vadd.f32 %v2688_v26, %v13268_v25  ;;  %v2690_v10 = vpop.f32.mrb[41].mxu1  ;;  %v10913_v30 = vadd.f32 %v2462_v32, %v13271_v19 }
 0x257   : > { %v2466_v15 = vpop.f32.mrb[42].mxu0  ;;  %v10946_v16 = vadd.f32 %v2690_v10, %v13274_v60  ;;  %v2692_v29 = vpop.f32.mrb[42].mxu1  ;;  %v10914_v28 = vadd.f32 %v2464_v33, %v13277_v27 }
 0x258   : > { %v10915_v35 = vadd.f32 %v2466_v15, %v13271_v19  ;;  %v2468_v3 = vpop.f32.mrb[43].mxu0  ;;  %v10947_v50 = vadd.f32 %v2692_v29, %v13268_v25  ;;  %v2694_v7 = vpop.f32.mrb[43].mxu1 }
 0x259   : > { %v10916_v18 = vadd.f32 %v2468_v3, %v13277_v27  ;;  %v10948_v5 = vadd.f32 %v2694_v7, %v13274_v60 }
 0x25a   : > { %v13323_v52 = vpack.c.bf16 %v10915_v35, %v10913_v30  ;;  %v13325_v53 = vpack.c.bf16 %v10947_v50, %v10945_v42 }
 0x25b   : > { %v13327_v51 = vpack.c.bf16 %v10916_v18, %v10914_v28  ;;  %v13329_v57 = vpack.c.bf16 %v10948_v5, %v10946_v16 }
 0x25c   : > { %18049 = vst [vmem:[#allocation32_spill] sm:$0xff] %v13323_v52  ;;  %10109 = vmatprep.subr.bf16.mxu1 %v13325_v53 }
 0x25d   : > { %18050 = vst [vmem:[#allocation33_spill] sm:$0xff] %v13327_v51  ;;  %v2472_v32 = vpop.f32.mrb[44].mxu0  ;;  %v2698_v26 = vpop.f32.mrb[44].mxu1  ;;  %10110 = vmatpush3.bf16.msra.mxu1 %v13325_v53 }
 0x25e   : > { %v10917_v33 = vadd.f32 %v2472_v32, %v13271_v19  ;;  %v2474_v10 = vpop.f32.mrb[45].mxu0  ;;  %v10949_v15 = vadd.f32 %v2698_v26, %v13268_v25  ;;  %v2700_v29 = vpop.f32.mrb[45].mxu1 }
 0x25f   : > { %v10918_v30 = vadd.f32 %v2474_v10, %v13277_v27  ;;  %v2476_v42 = vpop.f32.mrb[46].mxu0  ;;  %v10950_v35 = vadd.f32 %v2700_v29, %v13274_v60  ;;  %v2702_v3 = vpop.f32.mrb[46].mxu1 }
 0x260   : > { %v10919_v16 = vadd.f32 %v2476_v42, %v13271_v19  ;;  %v2478_v50 = vpop.f32.mrb[47].mxu0  ;;  %v10951_v7 = vadd.f32 %v2702_v3, %v13268_v25  ;;  %v2704_v28 = vpop.f32.mrb[47].mxu1 }
 0x261   : > { %v10920_v18 = vadd.f32 %v2478_v50, %v13277_v27  ;;  %v10952_v5 = vadd.f32 %v2704_v28, %v13274_v60 }
 0x262   : > { %v13341_v32 = vpack.c.bf16 %v10919_v16, %v10917_v33  ;;  %v13343_v26 = vpack.c.bf16 %v10951_v7, %v10949_v15 }
 0x263   : > { %v13345_v20 = vpack.c.bf16 %v10920_v18, %v10918_v30  ;;  %v13347_v10 = vpack.c.bf16 %v10952_v5, %v10950_v35 }
 0x264   : > { %18051 = vst [vmem:[#allocation34_spill] sm:$0xff] %v13341_v32  ;;  %10111 = vmatprep.subr.bf16.mxu1 %v13343_v26 }
 0x265   : > { %18052 = vst [vmem:[#allocation35_spill] sm:$0xff] %v13345_v20  ;;  %v2482_v29 = vpop.f32.mrb[48].mxu0  ;;  %v2708_v42 = vpop.f32.mrb[48].mxu1  ;;  %10112 = vmatpush3.bf16.msra.mxu1 %v13343_v26 }
 0x266   : > { %v10921_v3 = vadd.f32 %v2482_v29, %v13271_v19  ;;  %v2484_v44 = vpop.f32.mrb[49].mxu0  ;;  %v10953_v50 = vadd.f32 %v2708_v42, %v13268_v25  ;;  %v2710_v28 = vpop.f32.mrb[49].mxu1 }
 0x267   : > { %v10922_v33 = vadd.f32 %v2484_v44, %v13277_v27  ;;  %v2486_v15 = vpop.f32.mrb[50].mxu0  ;;  %v10954_v30 = vadd.f32 %v2710_v28, %v13274_v60  ;;  %v2712_v16 = vpop.f32.mrb[50].mxu1 }
 0x268   : > { %v10923_v35 = vadd.f32 %v2486_v15, %v13271_v19  ;;  %v2488_v7 = vpop.f32.mrb[51].mxu0  ;;  %v10955_v18 = vadd.f32 %v2712_v16, %v13268_v25  ;;  %v2714_v5 = vpop.f32.mrb[51].mxu1 }
 0x269   : > { %v10924_v49 = vadd.f32 %v2488_v7, %v13277_v27  ;;  %v10956_v29 = vadd.f32 %v2714_v5, %v13274_v60 }
 0x26a   : > { %v13359_v34 = vpack.c.bf16 %v10923_v35, %v10921_v3  ;;  %v13361_v42 = vpack.c.bf16 %v10955_v18, %v10953_v50 }
 0x26b   : > { %v13363_v48 = vpack.c.bf16 %v10924_v49, %v10922_v33  ;;  %v13365_v44 = vpack.c.bf16 %v10956_v29, %v10954_v30 }
 0x26c   : > { %18053 = vst [vmem:[#allocation36_spill] sm:$0xff] %v13359_v34  ;;  %10113 = vmatprep.subr.bf16.mxu1 %v13361_v42 }
 0x26d   : > { %18054 = vst [vmem:[#allocation37_spill] sm:$0xff] %v13363_v48  ;;  %v2492_v28 = vpop.f32.mrb[52].mxu0  ;;  %v2718_v15 = vpop.f32.mrb[52].mxu1  ;;  %10114 = vmatpush3.bf16.msra.mxu1 %v13361_v42 }
 0x26e   : > { %v10925_v16 = vadd.f32 %v2492_v28, %v13271_v19  ;;  %v2494_v37 = vpop.f32.mrb[53].mxu0  ;;  %v10957_v7 = vadd.f32 %v2718_v15, %v13268_v25  ;;  %v2720_v5 = vpop.f32.mrb[53].mxu1 }
 0x26f   : > { %v10926_v3 = vadd.f32 %v2494_v37, %v13277_v27  ;;  %v2496_v50 = vpop.f32.mrb[54].mxu0  ;;  %v10958_v49 = vadd.f32 %v2720_v5, %v13274_v60  ;;  %v2722_v33 = vpop.f32.mrb[54].mxu1 }
 0x270   : > { %v10927_v30 = vadd.f32 %v2496_v50, %v13271_v19  ;;  %v2498_v35 = vpop.f32.mrb[55].mxu0  ;;  %v10959_v18 = vadd.f32 %v2722_v33, %v13268_v25  ;;  %v2724_v29 = vpop.f32.mrb[55].mxu1 }
 0x271   : > { %v10928_v9 = vadd.f32 %v2498_v35, %v13277_v27  ;;  %v10960_v28 = vadd.f32 %v2724_v29, %v13274_v60 }
 0x272   : > { %v13377_v56 = vpack.c.bf16 %v10927_v30, %v10925_v16  ;;  %v13379_v15 = vpack.c.bf16 %v10959_v18, %v10957_v7 }
 0x273   : > { %v13381_v48 = vpack.c.bf16 %v10928_v9, %v10926_v3  ;;  %v13383_v37 = vpack.c.bf16 %v10960_v28, %v10958_v49 }
 0x274   : > { %18055 = vst [vmem:[#allocation38_spill] sm:$0xff] %v13377_v56  ;;  %10115 = vmatprep.subr.bf16.mxu1 %v13379_v15 }
 0x275   : > { %18056 = vst [vmem:[#allocation39_spill] sm:$0xff] %v13381_v48  ;;  %v2502_v5 = vpop.f32.mrb[56].mxu0  ;;  %v2728_v50 = vpop.f32.mrb[56].mxu1  ;;  %10116 = vmatpush3.bf16.msra.mxu1 %v13379_v15 }
 0x276   : > { %v10929_v33 = vadd.f32 %v2502_v5, %v13271_v19  ;;  %v2504_v20 = vpop.f32.mrb[57].mxu0  ;;  %v10961_v35 = vadd.f32 %v2728_v50, %v13268_v25  ;;  %v2730_v29 = vpop.f32.mrb[57].mxu1 }
 0x277   : > { %v10930_v16 = vadd.f32 %v2504_v20, %v13277_v27  ;;  %v2506_v7 = vpop.f32.mrb[58].mxu0  ;;  %v10962_v9 = vadd.f32 %v2730_v29, %v13274_v60  ;;  %v2732_v3 = vpop.f32.mrb[58].mxu1 }
 0x278   : > { %v10931_v49 = vadd.f32 %v2506_v7, %v13271_v19  ;;  %v2508_v30 = vpop.f32.mrb[59].mxu0  ;;  %v10963_v18 = vadd.f32 %v2732_v3, %v13268_v25  ;;  %v2734_v28 = vpop.f32.mrb[59].mxu1 }
 0x279   : > { %v10932_v48 = vadd.f32 %v2508_v30, %v13277_v27  ;;  %v10964_v5 = vadd.f32 %v2734_v28, %v13274_v60 }
 0x27a   : > { %v13395_v51 = vpack.c.bf16 %v10931_v49, %v10929_v33  ;;  %v13397_v50 = vpack.c.bf16 %v10963_v18, %v10961_v35 }
 0x27b   : > { %v13399_v43 = vpack.c.bf16 %v10932_v48, %v10930_v16  ;;  %v13401_v20 = vpack.c.bf16 %v10964_v5, %v10962_v9 }
 0x27c   : > { %18057 = vst [vmem:[#allocation40_spill] sm:$0xff] %v13395_v51  ;;  %10117 = vmatprep.subr.bf16.mxu1 %v13397_v50 }
 0x27d   : > { %18058 = vst [vmem:[#allocation41_spill] sm:$0xff] %v13399_v43  ;;  %18059 = vst [vmem:[#allocation42_spill] sm:$0xff] %v13401_v20  ;;  %v2512_v29 = vpop.f32.mrb[60].mxu0  ;;  %v2738_v7 = vpop.f32.mrb[60].mxu1  ;;  %10118 = vmatpush3.bf16.msra.mxu1 %v13397_v50 }
 0x27e   : > { %v10933_v3 = vadd.f32 %v2512_v29, %v13271_v19  ;;  %v10965_v30 = vadd.f32 %v2738_v7, %v13268_v25  ;;  %v2514_v59 = vpop.f32.mrb[61].mxu0  ;;  %v2740_v28 = vpop.f32.mrb[61].mxu1 }
 0x27f   : > { %v10934_v33 = vadd.f32 %v2514_v59, %v13277_v27  ;;  %v10966_v35 = vadd.f32 %v2740_v28, %v13274_v60  ;;  %v2516_v48 = vpop.f32.mrb[62].mxu0  ;;  %v2742_v16 = vpop.f32.mrb[62].mxu1 }
 0x280   : > { %v10935_v9 = vadd.f32 %v2516_v48, %v13271_v19  ;;  %v10967_v49 = vadd.f32 %v2742_v16, %v13268_v25  ;;  %v2518_v18 = vpop.f32.mrb[63].mxu0  ;;  %v2744_v5 = vpop.f32.mrb[63].mxu1 }
 0x281   : > { %v10936_v43 = vadd.f32 %v2518_v18, %v13277_v27  ;;  %v10968_v29 = vadd.f32 %v2744_v5, %v13274_v60  ;;  %v13421_v28 = vpop.permute.xlu0 %3446  ;;  %v13427_v27 = vld [vmem:[#allocation7 + $0x8] ss:$0 sm:$0xff] }
 0x282   : > { %v13413_v21 = vpack.c.bf16 %v10935_v9, %v10933_v3  ;;  %v13415_v7 = vpack.c.bf16 %v10967_v49, %v10965_v30 }
 0x283   : > { %v13417_v12 = vpack.c.bf16 %v10936_v43, %v10934_v33  ;;  %v13419_v59 = vpack.c.bf16 %v10968_v29, %v10966_v35 }
 0x284   : > { %18060 = vst [vmem:[#allocation43_spill] sm:$0xff] %v13413_v21  ;;  %10119 = vmatprep.subr.bf16.mxu1 %v13415_v7 }
 0x285   : > { %18061 = vst [vmem:[#allocation44_spill] sm:$0xff] %v13417_v12  ;;  %18062 = vst [vmem:[#allocation45_spill] sm:$0xff] %v13419_v59  ;;  %10120 = vmatpush3.bf16.msra.mxu1 %v13415_v7  ;;  %v9593_v25 = vpop.f32.mrb[64].mxu0  ;;  %v10059_v19 = vpop.f32.mrb[64].mxu1 }
 0x286   : > { %11105 = vmatprep.subr.msk.bf16.mxu1 %vm3019_vm0, %v13421_v28  ;;  %v9594_v60 = vpop.f32.mrb[65].mxu0  ;;  %v2878_v3 = vpop.f32.mrb[65].mxu1 }
 0x287   : > { %v9595_v30 = vadd.f32 %v9594_v60, %v9593_v25  ;;  %v9596_v43 = vpop.f32.mrb[66].mxu0  ;;  %v10060_v33 = vpop.f32.mrb[66].mxu1 }
 0x288   : > { %v9597_v35 = vpop.f32.mrb[67].mxu0  ;;  %v2881_v48 = vpop.f32.mrb[67].mxu1 }
 0x289   : > { %v9598_v16 = vadd.f32 %v9597_v35, %v9596_v43  ;;  %v2782_v9 = vadd.f32 %v9595_v30, %v13427_v27 }
 0x28b   : > { %v2879_v49 = vadd.f32 %v2878_v3, %v2782_v9  ;;  %v2785_v18 = vadd.f32 %v9598_v16, %v13427_v27 }
 0x28d   : > { %v2882_v5 = vadd.f32 %v2881_v48, %v2785_v18  ;;  %v9599_v29 = vpop.f32.mrb[68].mxu0  ;;  %v10063_v12 = vpop.f32.mrb[68].mxu1 }
 0x28e   : > { %v9600_v1 = vpop.f32.mrb[69].mxu0  ;;  %v2894_v40 = vpop.f32.mrb[69].mxu1 }
 0x28f   : > { %v13431_v63 = vpack.c.bf16 %v2882_v5, %v2879_v49  ;;  %v9601_v38 = vadd.f32 %v9600_v1, %v9599_v29  ;;  %v9602_v11 = vpop.f32.mrb[70].mxu0  ;;  %v10064_v25 = vpop.f32.mrb[70].mxu1 }
 0x290   : > { %v9603_v60 = vpop.f32.mrb[71].mxu0  ;;  %v2897_v22 = vpop.f32.mrb[71].mxu1 }
 0x291   : > { %18063 = vst [vmem:[#allocation46_spill] sm:$0xff] %v13431_v63  ;;  %v2790_v21 = vadd.f32 %v9601_v38, %v13427_v27  ;;  %v9604_v43 = vadd.f32 %v9603_v60, %v9602_v11 }
 0x293   : > { %v2887_v35 = vadd.f32 %v10059_v19, %v2790_v21  ;;  %v2793_v3 = vadd.f32 %v9604_v43, %v13427_v27 }
 0x295   : > { %v2890_v30 = vadd.f32 %v10060_v33, %v2793_v3  ;;  %v9605_v16 = vpop.f32.mrb[72].mxu0  ;;  %v10067_v48 = vpop.f32.mrb[72].mxu1 }
 0x296   : > { %v9606_v9 = vpop.f32.mrb[73].mxu0  ;;  %v2910_v18 = vpop.f32.mrb[73].mxu1 }
 0x297   : > { %v13435_v51 = vpack.c.bf16 %v2890_v30, %v2887_v35  ;;  %v9607_v49 = vadd.f32 %v9606_v9, %v9605_v16  ;;  %v9608_v5 = vpop.f32.mrb[74].mxu0  ;;  %v10068_v1 = vpop.f32.mrb[74].mxu1 }
 0x298   : > { %v9609_v29 = vpop.f32.mrb[75].mxu0  ;;  %v2913_v63 = vpop.f32.mrb[75].mxu1 }
 0x299   : > { %18064 = vst [vmem:[#allocation47_spill] sm:$0xff] %v13435_v51  ;;  %v9610_v56 = vadd.f32 %v9609_v29, %v9608_v5  ;;  %v2798_v34 = vadd.f32 %v9607_v49, %v13427_v27 }
 0x29b   : > { %v2895_v38 = vadd.f32 %v2894_v40, %v2798_v34  ;;  %v2801_v11 = vadd.f32 %v9610_v56, %v13427_v27 }
 0x29d   : > { %v2898_v21 = vadd.f32 %v2897_v22, %v2801_v11  ;;  %v9611_v19 = vpop.f32.mrb[76].mxu0  ;;  %v10071_v33 = vpop.f32.mrb[76].mxu1 }
 0x29e   : > { %v9612_v60 = vpop.f32.mrb[77].mxu0  ;;  %v2926_v43 = vpop.f32.mrb[77].mxu1 }
 0x29f   : > { %v13439_v3 = vpack.c.bf16 %v2898_v21, %v2895_v38  ;;  %v9613_v35 = vadd.f32 %v9612_v60, %v9611_v19  ;;  %v9614_v30 = vpop.f32.mrb[78].mxu0  ;;  %v10072_v16 = vpop.f32.mrb[78].mxu1 }
 0x2a0   : > { %v9615_v9 = vpop.f32.mrb[79].mxu0  ;;  %v2929_v51 = vpop.f32.mrb[79].mxu1 }
 0x2a1   : > { %18065 = vst [vmem:[#allocation48_spill] sm:$0xff] %v13439_v3  ;;  %v2806_v32 = vadd.f32 %v9613_v35, %v13427_v27  ;;  %v9616_v5 = vadd.f32 %v9615_v9, %v9614_v30 }
 0x2a3   : > { %v2903_v29 = vadd.f32 %v10063_v12, %v2806_v32  ;;  %v2809_v34 = vadd.f32 %v9616_v5, %v13427_v27 }
 0x2a5   : > { %v2906_v40 = vadd.f32 %v10064_v25, %v2809_v34  ;;  %v9617_v56 = vpop.f32.mrb[80].mxu0 }
 0x2a6   : > { %v9618_v22 = vpop.f32.mrb[81].mxu0 }
 0x2a7   : > { %v13443_v49 = vpack.c.bf16 %v2906_v40, %v2903_v29  ;;  %v9619_v11 = vadd.f32 %v9618_v22, %v9617_v56  ;;  %v9620_v52 = vpop.f32.mrb[82].mxu0 }
 0x2a8   : > { %v9621_v38 = vpop.f32.mrb[83].mxu0 }
 0x2a9   : > { %18066 = vst [vmem:[#allocation49_spill] sm:$0xff] %v13443_v49  ;;  %v9622_v21 = vadd.f32 %v9621_v38, %v9620_v52  ;;  %v2814_v19 = vadd.f32 %v9619_v11, %v13427_v27 }
 0x2ab   : > { %v2911_v60 = vadd.f32 %v2910_v18, %v2814_v19  ;;  %v2817_v3 = vadd.f32 %v9622_v21, %v13427_v27 }
 0x2ad   : > { %v2914_v6 = vadd.f32 %v2913_v63, %v2817_v3  ;;  %v9623_v35 = vpop.f32.mrb[84].mxu0 }
 0x2ae   : > { %v9624_v30 = vpop.f32.mrb[85].mxu0 }
 0x2af   : > { %v13447_v12 = vpack.c.bf16 %v2914_v6, %v2911_v60  ;;  %v9625_v32 = vadd.f32 %v9624_v30, %v9623_v35  ;;  %v9626_v25 = vpop.f32.mrb[86].mxu0 }
 0x2b0   : > { %v9627_v9 = vpop.f32.mrb[87].mxu0 }
 0x2b1   : > { %18067 = vst [vmem:[#allocation50_spill] sm:$0xff] %v13447_v12  ;;  %v2822_v5 = vadd.f32 %v9625_v32, %v13427_v27  ;;  %v9628_v29 = vadd.f32 %v9627_v9, %v9626_v25 }
 0x2b3   : > { %v2919_v34 = vadd.f32 %v10067_v48, %v2822_v5  ;;  %v2825_v40 = vadd.f32 %v9628_v29, %v13427_v27 }
 0x2b5   : > { %v2922_v52 = vadd.f32 %v10068_v1, %v2825_v40  ;;  %v9629_v56 = vpop.f32.mrb[88].mxu0 }
 0x2b6   : > { %v9630_v22 = vpop.f32.mrb[89].mxu0 }
 0x2b7   : > { %v13451_v18 = vpack.c.bf16 %v2922_v52, %v2919_v34  ;;  %v9631_v11 = vadd.f32 %v9630_v22, %v9629_v56  ;;  %v9632_v63 = vpop.f32.mrb[90].mxu0 }
 0x2b8   : > { %v9633_v3 = vpop.f32.mrb[91].mxu0 }
 0x2b9   : > { %18068 = vst [vmem:[#allocation51_spill] sm:$0xff] %v13451_v18  ;;  %v9634_v38 = vadd.f32 %v9633_v3, %v9632_v63  ;;  %v2830_v6 = vadd.f32 %v9631_v11, %v13427_v27 }
 0x2bb   : > { %v2927_v21 = vadd.f32 %v2926_v43, %v2830_v6  ;;  %v2833_v19 = vadd.f32 %v9634_v38, %v13427_v27 }
 0x2bd   : > { %v2930_v60 = vadd.f32 %v2929_v51, %v2833_v19  ;;  %v9635_v48 = vpop.f32.mrb[92].mxu0  ;;  %v13469_v51 = vld [vmem:[%s13466_s13] ss:$0 sm:$0xff] }
 0x2be   : > { %v9636_v35 = vpop.f32.mrb[93].mxu0 }
 0x2bf   : > { %v13455_v30 = vpack.c.bf16 %v2930_v60, %v2927_v21  ;;  %v9637_v1 = vadd.f32 %v9636_v35, %v9635_v48  ;;  %v9638_v32 = vpop.f32.mrb[94].mxu0 }
 0x2c0   : > { %v9639_v25 = vpop.f32.mrb[95].mxu0 }
 0x2c1   : > { %18069 = vst [vmem:[#allocation52_spill] sm:$0xff] %v13455_v30  ;;  %v2838_v9 = vadd.f32 %v9637_v1, %v13427_v27  ;;  %v9640_v5 = vadd.f32 %v9639_v25, %v9638_v32 }
 0x2c3   : > { %v2935_v29 = vadd.f32 %v10071_v33, %v2838_v9  ;;  %v2841_v34 = vadd.f32 %v9640_v5, %v13427_v27 }
 0x2c5   : > { %v2938_v40 = vadd.f32 %v10072_v16, %v2841_v34 }
 0x2c7   : > { %v13459_v52 = vpack.c.bf16 %v2938_v40, %v2935_v29 }
 0x2c9   : > { %18070 = vst [vmem:[#allocation53_spill] sm:$0xff] %v13459_v52 }
 0x2e0   : > { %v10091_v43 = vpop.f32.mrb[96].mxu0 }
 0x2e1   : > { %v13472_v56 = vadd.f32 %v10091_v43, %v13469_v51  ;;  %v3102_v33 = vpop.f32.mrb[97].mxu0 }
 0x2e2   : > { %v13475_v27 = vadd.f32 %v13469_v51, %v3102_v33  ;;  %v10092_v16 = vpop.f32.mrb[98].mxu0 }
 0x2e3   : > { %3169 = vmax.xlane.f32.xlu1 %v13472_v56  ;;  %v3105_v22 = vpop.f32.mrb[99].mxu0  ;;  %v13480_v11 = vadd.f32 %v10092_v16, %v13469_v51 }
 0x2e4   : > { %3165 = vmax.xlane.f32.xlu0 %v13475_v27  ;;  %v13483_v63 = vadd.f32 %v13469_v51, %v3105_v22 }
 0x2e7   : > { %3171 = vmax.xlane.f32.xlu1 %v13480_v11 }
 0x2e8   : > { %v10095_v3 = vpop.f32.mrb[100].mxu0  ;;  %3167 = vmax.xlane.f32.xlu0 %v13483_v63 }
 0x2e9   : > { %v3118_v38 = vpop.f32.mrb[101].mxu0  ;;  %v13495_v29 = vadd.f32 %v10095_v3, %v13469_v51 }
 0x2ea   : > { %v10096_v6 = vpop.f32.mrb[102].mxu0  ;;  %v13492_v5 = vadd.f32 %v13469_v51, %v3118_v38 }
 0x2eb   : > { %v3121_v21 = vpop.f32.mrb[103].mxu0  ;;  %v13500_v34 = vadd.f32 %v10096_v6, %v13469_v51 }
 0x2ec   : > { %v13508_v43 = vadd.f32 %v13469_v51, %v3121_v21 }
 0x2f0   : > { %v10099_v19 = vpop.f32.mrb[104].mxu0 }
 0x2f1   : > { %v3134_v60 = vpop.f32.mrb[105].mxu0  ;;  %v13516_v16 = vadd.f32 %v10099_v19, %v13469_v51  ;;  %v3449_v19 = vpop.permute.xlu1 %3448 }
 0x2f2   : > { %v10100_v48 = vpop.f32.mrb[106].mxu0  ;;  %v13503_v40 = vadd.f32 %v13469_v51, %v3134_v60  ;;  %v3451_v60 = vpop.permute.xlu0 %3450 }
 0x2f3   : > { %v3137_v35 = vpop.f32.mrb[107].mxu0  ;;  %v13524_v3 = vadd.f32 %v10100_v48, %v13469_v51 }
 0x2f4   : > { %v13511_v33 = vadd.f32 %v13469_v51, %v3137_v35 }
 0x2f8   : > { %3452 = vrot.lane.b32.xlu1 %v13159_v0, %s12606_s23  ;;  %v10103_v1 = vpop.f32.mrb[108].mxu0 }
 0x2f9   : > { %v3150_v32 = vpop.f32.mrb[109].mxu0  ;;  %v13519_v22 = vadd.f32 %v10103_v1, %v13469_v51 }
 0x2fa   : > { %v10104_v25 = vpop.f32.mrb[110].mxu0  ;;  %v13528_v38 = vadd.f32 %v13469_v51, %v3150_v32 }
 0x2fb   : > { %v3153_v9 = vpop.f32.mrb[111].mxu0  ;;  %v13532_v6 = vadd.f32 %v10104_v25, %v13469_v51 }
 0x2fc   : > { %v13536_v21 = vadd.f32 %v13469_v51, %v3153_v9 }
 0x2fe   : > { %3454 = vrot.lane.b32.xlu0 %v13181_v58, %s12606_s23 }
 0x31c   : > { %3173 = vmax.xlane.f32.xlu1 %v13492_v5 }
 0x31d   : > { %3177 = vmax.xlane.f32.xlu0 %v13495_v29 }
 0x320   : > { %3179 = vmax.xlane.f32.xlu1 %v13500_v34 }
 0x321   : > { %3181 = vmax.xlane.f32.xlu0 %v13503_v40 }
 0x324   : > { %3175 = vmax.xlane.f32.xlu1 %v13508_v43 }
 0x325   : > { %3183 = vmax.xlane.f32.xlu0 %v13511_v33 }
 0x328   : > { %3185 = vmax.xlane.f32.xlu1 %v13516_v16 }
 0x329   : > { %3193 = vmax.xlane.f32.xlu0 %v13519_v22 }
 0x32c   : > { %3187 = vmax.xlane.f32.xlu1 %v13524_v3 }
 0x330   : > { %3189 = vmax.xlane.f32.xlu1 %v13528_v38 }
 0x334   : > { %3195 = vmax.xlane.f32.xlu1 %v13532_v6 }
 0x338   : > { %3191 = vmax.xlane.f32.xlu1 %v13536_v21 }
 0x33f   : > { %3458 = vrot.lane.b32.xlu0 %v13223_v13, %s12606_s23 }
 0x343   : > { %3460 = vrot.lane.b32.xlu0 %v13243_v24, %s12606_s23 }
 0x347   : > { %3422 = vrot.lane.b32.xlu0 %v13079_v55, %s12606_s23 }
 0x349   : > { %3456 = vrot.lane.b32.xlu1 %v13203_v2, %s12606_s23 }
 0x34b   : > { %3426 = vrot.lane.b32.xlu0 %v13128_v36, %s12606_s23 }
 0x34d   : > { %3424 = vrot.lane.b32.xlu1 %v13104_v8, %s12606_s23 }
 0x34f   : > { %3430 = vrot.lane.b32.xlu0 %v13174_v31, %s12606_s23 }
 0x351   : > { %3428 = vrot.lane.b32.xlu1 %v13152_v47, %s12606_s23 }
 0x353   : > { %3434 = vrot.lane.b32.xlu0 %v13217_v41, %s12606_s23 }
 0x355   : > { %3432 = vrot.lane.b32.xlu1 %v13197_v46, %s12606_s23 }
 0x357   : > { %3735 = vrot.lane.b32.xlu0 %v13291_v45, %s12606_s23 }
 0x359   : > { %3436 = vrot.lane.b32.xlu1 %v13237_v17, %s12606_s23 }
 0x35b   : > { %3739 = vrot.lane.b32.xlu0 %v13325_v53, %s12606_s23 }
 0x35d   : > { %3737 = vrot.lane.b32.xlu1 %v13309_v61, %s12606_s23 }
 0x35f   : > { %3747 = vrot.lane.b32.xlu0 %v13397_v50, %s12606_s23 }
 0x361   : > { %3741 = vrot.lane.b32.xlu1 %v13343_v26, %s12606_s23 }
 0x363   : > { %3904 = vrot.lane.b32.xlu0 %v13087_v23, %s12607_s14 }
 0x365   : > { %3743 = vrot.lane.b32.xlu1 %v13361_v42, %s12606_s23 }
 0x367   : > { %3906 = vrot.lane.b32.xlu0 %v13111_v14, %s12607_s14 }
 0x369   : > { %3745 = vrot.lane.b32.xlu1 %v13379_v15, %s12606_s23 }
 0x36b   : > { %3910 = vrot.lane.b32.xlu0 %v13159_v0, %s12607_s14 }
 0x36d   : > { %3749 = vrot.lane.b32.xlu1 %v13415_v7, %s12606_s23 }
 0x370   : > { %v3170_v48 = vpop.xlane.xlu1 %3169 }
 0x371   : > { %3908 = vrot.lane.b32.xlu1 %v13135_v39, %s12607_s14  ;;  %v3166_v35 = vpop.xlane.xlu0 %3165  ;;  %v3199_v32 = vsub.f32 %v13472_v56, %v3170_v48 }
 0x372   : > { %v3197_v1 = vsub.f32 %v13475_v27, %v3166_v35 }
 0x373   : > { %v3217_v12 = vmul.f32 1.442695, %v3199_v32 }
 0x374   : > { %v3213_v25 = vmul.f32 1.442695, %v3197_v1  ;;  %v3172_v9 = vpop.xlane.xlu1 %3171 }
 0x375   : > { %v3200_v52 = vsub.f32 %v13480_v11, %v3172_v9  ;;  %v3168_v30 = vpop.xlane.xlu0 %3167 }
 0x376   : > { %v3198_v18 = vsub.f32 %v13483_v63, %v3168_v30  ;;  %11635 = vpow2.f32 %v3213_v25 }
 0x377   : > { %v3219_v49 = vmul.f32 1.442695, %v3200_v52 }
 0x378   : > { %v3215_v54 = vmul.f32 1.442695, %v3198_v18  ;;  %v3453_v18 = vpop.permute.xlu1 %3452 }
 0x379   : > { %11637 = vpow2.f32 %v3219_v49  ;;  %v3490_v49 = vsel %vm3019_vm0, %v3449_v19, 0  ;;  %v3496_v52 = vsel %vm3019_vm0, %v3453_v18, 0  ;;  %v3455_v63 = vpop.permute.xlu0 %3454 }
 0x37a   : > { %11639 = vpow2.f32 %v3215_v54  ;;  %v3487_v54 = vsel %vm3019_vm0, %v13421_v28, 0  ;;  %v3499_v28 = vsel %vm3019_vm0, %v3455_v63, 0 }
 0x37b   : > { %11641 = vpow2.f32 %v3217_v12  ;;  %v3493_v12 = vsel %vm3019_vm0, %v3451_v60, 0 }
 0x380   : > { %v13589_v59 = vpop.eup %11635 }
 0x381   : > { %18071 = vst [vmem:[#allocation54_spill] sm:$0xff] %v13589_v59 }
 0x383   : > { %v13591_v20 = vpop.eup %11637 }
 0x384   : > { %18072 = vst [vmem:[#allocation55_spill] sm:$0xff] %v13591_v20  ;;  %v13593_v27 = vpop.eup %11639 }
 0x385   : > { %18073 = vst [vmem:[#allocation56_spill] sm:$0xff] %v13593_v27  ;;  %v13595_v56 = vpop.eup %11641  ;;  %v3277_v11 = vpack.c.bf16 %v13593_v27, %v13589_v59 }
 0x386   : > { %18074 = vst [vmem:[#allocation57_spill] sm:$0xff] %v13595_v56  ;;  %v3278_v30 = vpack.c.bf16 %v13591_v20, %v13595_v56 }
 0x387   : > { %10121 = vmatprep.mubr.bf16.mxu1 %v3277_v11 }
 0x388   : > { %10122 = vmatmul.mubr.bf16.vlgmr.msra.gmra.mrb[80].mxu1 %v3278_v30 }
 0x389   : > { %10138 = vmatpush3.bf16.xpose.msra.mxu1 %v3487_v54 }
 0x38a   : > { %11106 = vmatprep.subr.msk.bf16.mxu1 %vm3019_vm0, %v3449_v19 }
 0x391   : > { %10140 = vmatpush3.bf16.xpose.msra.mxu1 %v3490_v49 }
 0x392   : > { %11107 = vmatprep.subr.msk.bf16.mxu1 %vm3019_vm0, %v3451_v60 }
 0x399   : > { %10142 = vmatpush3.bf16.xpose.msra.mxu1 %v3493_v12 }
 0x39a   : > { %11108 = vmatprep.subr.msk.bf16.mxu1 %vm3019_vm0, %v3453_v18 }
 0x3a1   : > { %10144 = vmatpush3.bf16.xpose.msra.mxu1 %v3496_v52 }
 0x3a2   : > { %11109 = vmatprep.subr.msk.bf16.mxu1 %vm3019_vm0, %v3455_v63 }
 0x3a9   : > { %10146 = vmatpush3.bf16.xpose.msra.mxu1 %v3499_v28  ;;  %v3174_v48 = vpop.xlane.xlu1 %3173 }
 0x3aa   : > { %v3201_v19 = vsub.f32 %v13492_v5, %v3174_v48  ;;  %v3178_v35 = vpop.xlane.xlu0 %3177 }
 0x3ab   : > { %v3203_v1 = vsub.f32 %v13495_v29, %v3178_v35 }
 0x3ac   : > { %v3221_v32 = vmul.f32 1.442695, %v3201_v19 }
 0x3ad   : > { %v3180_v60 = vpop.xlane.xlu1 %3179  ;;  %v3225_v11 = vmul.f32 1.442695, %v3203_v1 }
 0x3ae   : > { %v3204_v25 = vsub.f32 %v13500_v34, %v3180_v60  ;;  %v3182_v9 = vpop.xlane.xlu0 %3181  ;;  %11643 = vpow2.f32 %v3221_v32 }
 0x3af   : > { %v3205_v30 = vsub.f32 %v13503_v40, %v3182_v9  ;;  %11645 = vpow2.f32 %v3225_v11 }
 0x3b0   : > { %v3227_v54 = vmul.f32 1.442695, %v3204_v25 }
 0x3b1   : > { %v3229_v49 = vmul.f32 1.442695, %v3205_v30  ;;  %v3176_v12 = vpop.xlane.xlu1 %3175 }
 0x3b2   : > { %v3202_v18 = vsub.f32 %v13508_v43, %v3176_v12  ;;  %v3184_v52 = vpop.xlane.xlu0 %3183  ;;  %11647 = vpow2.f32 %v3227_v54 }
 0x3b3   : > { %v3206_v5 = vsub.f32 %v13511_v33, %v3184_v52  ;;  %11649 = vpow2.f32 %v3229_v49 }
 0x3b4   : > { %v3223_v29 = vmul.f32 1.442695, %v3202_v18 }
 0x3b5   : > { %v3231_v63 = vmul.f32 1.442695, %v3206_v5  ;;  %v3186_v28 = vpop.xlane.xlu1 %3185 }
 0x3b6   : > { %11651 = vpow2.f32 %v3223_v29  ;;  %v3207_v34 = vsub.f32 %v13516_v16, %v3186_v28  ;;  %v3194_v48 = vpop.xlane.xlu0 %3193 }
 0x3b7   : > { %11653 = vpow2.f32 %v3231_v63  ;;  %v3211_v29 = vsub.f32 %v13519_v22, %v3194_v48 }
 0x3b8   : > { %v3233_v40 = vmul.f32 1.442695, %v3207_v34  ;;  %v13619_v43 = vpop.eup %11643 }
 0x3b9   : > { %v3188_v19 = vpop.xlane.xlu1 %3187  ;;  %18075 = vst [vmem:[#allocation58_spill] sm:$0xff] %v13619_v43  ;;  %v13621_v32 = vpop.eup %11645 }
 0x3ba   : > { %v3208_v35 = vsub.f32 %v13524_v3, %v3188_v19  ;;  %v3459_v1 = vpop.permute.xlu0 %3458  ;;  %18076 = vst [vmem:[#allocation59_spill] sm:$0xff] %v13621_v32  ;;  %11655 = vpow2.f32 %v3233_v40 }
 0x3bc   : > { %v3235_v60 = vmul.f32 1.442695, %v3208_v35  ;;  %v13623_v25 = vpop.eup %11647 }
 0x3bd   : > { %v3190_v33 = vpop.xlane.xlu1 %3189  ;;  %18077 = vst [vmem:[#allocation60_spill] sm:$0xff] %v13623_v25  ;;  %v13625_v11 = vpop.eup %11649  ;;  %v3280_v52 = vpack.c.bf16 %v13623_v25, %v13621_v32 }
 0x3be   : > { %11657 = vpow2.f32 %v3235_v60  ;;  %v3461_v9 = vpop.permute.xlu0 %3460  ;;  %18078 = vst [vmem:[#allocation61_spill] sm:$0xff] %v13625_v11  ;;  %v3209_v30 = vsub.f32 %v13528_v38, %v3190_v33 }
 0x3c0   : > { %v13627_v16 = vpop.eup %11651  ;;  %v3237_v63 = vmul.f32 1.442695, %v3209_v30 }
 0x3c1   : > { %18079 = vst [vmem:[#allocation62_spill] sm:$0xff] %v13627_v16  ;;  %v13630_v54 = vpop.eup %11653  ;;  %v3196_v3 = vpop.xlane.xlu1 %3195  ;;  %v3279_v49 = vpack.c.bf16 %v13627_v16, %v13619_v43 }
 0x3c2   : > { %18080 = vst [vmem:[#allocation63_spill] sm:$0xff] %v13630_v54  ;;  %v3212_v12 = vsub.f32 %v13532_v6, %v3196_v3  ;;  %v3423_v18 = vpop.permute.xlu0 %3422  ;;  %v3281_v5 = vpack.c.bf16 %v13630_v54, %v13625_v11  ;;  %v3241_v6 = vmul.f32 1.442695, %v3211_v29  ;;  %11659 = vpow2.f32 %v3237_v63 }
 0x3c3   : > { %10125 = vmatprep.mubr.bf16.mxu1 %v3279_v49 }
 0x3c4   : > { %10126 = vmatmul.mubr.bf16.gmra.mrb[84].mxu1 %v3280_v52  ;;  %v3243_v38 = vmul.f32 1.442695, %v3212_v12  ;;  %v13641_v19 = vpop.eup %11655 }
 0x3c5   : > { %v3192_v28 = vpop.xlane.xlu1 %3191  ;;  %10129 = vmatprep.mubr.bf16.mxu1 %v3281_v5  ;;  %18081 = vst [vmem:[#allocation64_spill] sm:$0xff] %v13641_v19  ;;  %v3505_v5 = vsel %vm3019_vm0, %v3459_v1, 0 }
 0x3c6   : > { %v3210_v34 = vsub.f32 %v13536_v21, %v3192_v28  ;;  %v3427_v40 = vpop.permute.xlu0 %3426  ;;  %11661 = vpow2.f32 %v3243_v38 }
 0x3c8   : > { %v13643_v35 = vpop.eup %11657  ;;  %v3239_v60 = vmul.f32 1.442695, %v3210_v34 }
 0x3c9   : > { %18082 = vst [vmem:[#allocation65_spill] sm:$0xff] %v13643_v35  ;;  %v3457_v33 = vpop.permute.xlu1 %3456  ;;  %v3282_v22 = vpack.c.bf16 %v13643_v35, %v13641_v19 }
 0x3ca   : > { %11663 = vpow2.f32 %v3239_v60  ;;  %11110 = vmatprep.subr.msk.bf16.mxu1 %vm3019_vm0, %v3457_v33  ;;  %v3431_v48 = vpop.permute.xlu0 %3430  ;;  %v3502_v30 = vsel %vm3019_vm0, %v3457_v33, 0  ;;  %v3508_v60 = vsel %vm3019_vm0, %v3461_v9, 0 }
 0x3cb   : > { %11665 = vpow2.f32 %v3241_v6  ;;  %10148 = vmatpush3.bf16.xpose.msra.mxu1 %v3502_v30 }
 0x3cc   : > { %10130 = vmatmul.mubr.bf16.gmra.mrb[88].mxu1 %v3282_v22  ;;  %11111 = vmatprep.subr.msk.bf16.mxu1 %vm3019_vm0, %v3459_v1  ;;  %v13650_v12 = vpop.eup %11659 }
 0x3cd   : > { %v3425_v21 = vpop.permute.xlu1 %3424  ;;  %18083 = vst [vmem:[#allocation66_spill] sm:$0xff] %v13650_v12 }
 0x3ce   : > { %v3435_v3 = vpop.permute.xlu0 %3434 }
 0x3d0   : > { %v13653_v29 = vpop.eup %11661 }
 0x3d1   : > { %v3429_v49 = vpop.permute.xlu1 %3428  ;;  %18084 = vst [vmem:[#allocation67_spill] sm:$0xff] %v13653_v29 }
 0x3d2   : > { %v3736_v52 = vpop.permute.xlu0 %3735 }
 0x3d3   : > { %10150 = vmatpush3.bf16.xpose.msra.mxu1 %v3505_v5  ;;  %10169 = vmatprep.subr.bf16.mxu0 %v3736_v52 }
 0x3d4   : > { %v13655_v63 = vpop.eup %11663  ;;  %11112 = vmatprep.subr.msk.bf16.mxu1 %vm3019_vm0, %v3461_v9  ;;  %10170 = vmatpush3.bf16.msra.mxu0 %v3736_v52 }
 0x3d5   : > { %18085 = vst [vmem:[#allocation68_spill] sm:$0xff] %v13655_v63  ;;  %v13658_v38 = vpop.eup %11665  ;;  %v3433_v28 = vpop.permute.xlu1 %3432  ;;  %v3283_v34 = vpack.c.bf16 %v13655_v63, %v13650_v12 }
 0x3d6   : > { %18086 = vst [vmem:[#allocation69_spill] sm:$0xff] %v13658_v38  ;;  %v3284_v6 = vpack.c.bf16 %v13653_v29, %v13658_v38  ;;  %v3740_v22 = vpop.permute.xlu0 %3739 }
 0x3d7   : > { %10133 = vmatprep.mubr.bf16.mxu1 %v3283_v34 }
 0x3d8   : > { %10134 = vmatmul.mubr.bf16.gmra.mrb[92].mxu1 %v3284_v6 }
 0x3d9   : > { %v3437_v1 = vpop.permute.xlu1 %3436  ;;  %10153 = vmatprep.mubr.msk.bf16.mxu1 %vm3019_vm0, %v3423_v18 }
 0x3da   : > { %v3748_v9 = vpop.permute.xlu0 %3747 }
 0x3db   : > { %10152 = vmatpush3.bf16.xpose.msra.mxu1 %v3508_v60 }
 0x3dd   : > { %v3738_v33 = vpop.permute.xlu1 %3737 }
 0x3de   : > { %10171 = vmatprep.subr.bf16.mxu0 %v3738_v33 }
 0x3df   : > { %10172 = vmatpush3.bf16.msra.mxu0 %v3738_v33 }
 0x3e0   : > { %10173 = vmatprep.subr.bf16.mxu0 %v3740_v22 }
 0x3e1   : > { %v3742_v30 = vpop.permute.xlu1 %3741 }
 0x3e2   : > { %10154 = vmatmul.mubr.msk.bf16.vlgmr.msra.gmra.mrb[96].mxu1 %vm3019_vm0, %v3425_v21 }
 0x3e3   : > { %10157 = vmatprep.mubr.msk.bf16.mxu1 %vm3019_vm0, %v3427_v40  ;;  %10174 = vmatpush3.bf16.msra.mxu0 %v3740_v22  ;;  %v13672_v40 = vpop.permute.xlu0 %3904 }
 0x3e4   : > { %10175 = vmatprep.subr.bf16.mxu0 %v3742_v30 }
 0x3e5   : > { %v3744_v52 = vpop.permute.xlu1 %3743 }
 0x3e7   : > { %10176 = vmatpush3.bf16.msra.mxu0 %v3742_v30 }
 0x3e8   : > { %10177 = vmatprep.subr.bf16.mxu0 %v3744_v52 }
 0x3e9   : > { %v3746_v18 = vpop.permute.xlu1 %3745 }
 0x3ea   : > { %10158 = vmatmul.mubr.msk.bf16.gmra.mrb[100].mxu1 %vm3019_vm0, %v3429_v49 }
 0x3eb   : > { %10161 = vmatprep.mubr.msk.bf16.mxu1 %vm3019_vm0, %v3431_v48  ;;  %10178 = vmatpush3.bf16.msra.mxu0 %v3744_v52 }
 0x3ec   : > { %10179 = vmatprep.subr.bf16.mxu0 %v3746_v18 }
 0x3ed   : > { %v3750_v21 = vpop.permute.xlu1 %3749 }
 0x3ef   : > { %10180 = vmatpush3.bf16.msra.mxu0 %v3746_v18 }
 0x3f0   : > { %10181 = vmatprep.subr.bf16.mxu0 %v3748_v9 }
 0x3f2   : > { %10162 = vmatmul.mubr.msk.bf16.gmra.mrb[104].mxu1 %vm3019_vm0, %v3433_v28 }
 0x3f3   : > { %10165 = vmatprep.mubr.msk.bf16.mxu1 %vm3019_vm0, %v3435_v3  ;;  %10182 = vmatpush3.bf16.msra.mxu0 %v3748_v9 }
 0x3f4   : > { %10183 = vmatprep.subr.bf16.mxu0 %v3750_v21 }
 0x3f7   : > { %10184 = vmatpush3.bf16.msra.mxu0 %v3750_v21 }
 0x3f8   : > { %11113 = vmatprep.subr.msk.bf16.mxu0 %vm3019_vm0, %v13672_v40 }
 0x3fa   : > { %10166 = vmatmul.mubr.msk.bf16.gmra.mrb[108].mxu1 %vm3019_vm0, %v3437_v1 }
 0x45b   : > { %v13677_v48 = vpop.f32.mrb[80].mxu1 }
 0x45c   : > { %18087 = vst [vmem:[#allocation70_spill] sm:$0xff] %v13677_v48  ;;  %v13679_v49 = vpop.f32.mrb[81].mxu1 }
 0x45d   : > { %18088 = vst [vmem:[#allocation71_spill] sm:$0xff] %v13679_v49  ;;  %v13681_v5 = vpop.f32.mrb[82].mxu1 }
 0x45e   : > { %18089 = vst [vmem:[#allocation72_spill] sm:$0xff] %v13681_v5  ;;  %v13683_v28 = vpop.f32.mrb[83].mxu1 }
 0x45f   : > { %18090 = vst [vmem:[#allocation73_spill] sm:$0xff] %v13683_v28 }
 0x497   : > { %v13685_v34 = vpop.f32.mrb[84].mxu1 }
 0x498   : > { %18091 = vst [vmem:[#allocation74_spill] sm:$0xff] %v13685_v34  ;;  %v13687_v3 = vpop.f32.mrb[85].mxu1 }
 0x499   : > { %18092 = vst [vmem:[#allocation75_spill] sm:$0xff] %v13687_v3  ;;  %v13689_v6 = vpop.f32.mrb[86].mxu1 }
 0x49a   : > { %18093 = vst [vmem:[#allocation76_spill] sm:$0xff] %v13689_v6  ;;  %v13691_v60 = vpop.f32.mrb[87].mxu1 }
 0x49b   : > { %18094 = vst [vmem:[#allocation77_spill] sm:$0xff] %v13691_v60 }
 0x49f   : > { %v13693_v33 = vpop.f32.mrb[88].mxu1 }
 0x4a0   : > { %18095 = vst [vmem:[#allocation78_spill] sm:$0xff] %v13693_v33  ;;  %v13695_v22 = vpop.f32.mrb[89].mxu1 }
 0x4a1   : > { %18096 = vst [vmem:[#allocation79_spill] sm:$0xff] %v13695_v22  ;;  %v13697_v1 = vpop.f32.mrb[90].mxu1 }
 0x4a2   : > { %18097 = vst [vmem:[#allocation80_spill] sm:$0xff] %v13697_v1  ;;  %v13699_v30 = vpop.f32.mrb[91].mxu1 }
 0x4a3   : > { %18098 = vst [vmem:[#allocation81_spill] sm:$0xff] %v13699_v30 }
 0x4ab   : > { %v13701_v52 = vpop.f32.mrb[92].mxu1 }
 0x4ac   : > { %18099 = vst [vmem:[#allocation82_spill] sm:$0xff] %v13701_v52  ;;  %v13703_v18 = vpop.f32.mrb[93].mxu1 }
 0x4ad   : > { %18100 = vst [vmem:[#allocation83_spill] sm:$0xff] %v13703_v18  ;;  %v13705_v9 = vpop.f32.mrb[94].mxu1 }
 0x4ae   : > { %18101 = vst [vmem:[#allocation84_spill] sm:$0xff] %v13705_v9  ;;  %v13707_v21 = vpop.f32.mrb[95].mxu1 }
 0x4af   : > { %18102 = vst [vmem:[#allocation85_spill] sm:$0xff] %v13707_v21 }
 0x4b5   : > { %v10155_v34 = vpop.f32.mrb[96].mxu1 }
 0x4b6   : > { %v13710_v3 = vadd.f32 %v10155_v34, %v13469_v51  ;;  %v3544_v48 = vpop.f32.mrb[97].mxu1 }
 0x4b7   : > { %v10156_v33 = vpop.f32.mrb[98].mxu1  ;;  %v13717_v30 = vadd.f32 %v13469_v51, %v3544_v48 }
 0x4b8   : > { %3611 = vmax.xlane.f32.xlu0 %v13710_v3  ;;  %v3547_v22 = vpop.f32.mrb[99].mxu1  ;;  %v13722_v21 = vadd.f32 %v10156_v33, %v13469_v51 }
 0x4b9   : > { %v13714_v1 = vadd.f32 %v13469_v51, %v3547_v22 }
 0x4bb   : > { %3609 = vmax.xlane.f32.xlu1 %v13714_v1 }
 0x4bc   : > { %3607 = vmax.xlane.f32.xlu0 %v13717_v30 }
 0x4bd   : > { %v10159_v18 = vpop.f32.mrb[100].mxu1 }
 0x4be   : > { %v13725_v34 = vadd.f32 %v10159_v18, %v13469_v51  ;;  %v3560_v6 = vpop.f32.mrb[101].mxu1 }
 0x4bf   : > { %v10160_v49 = vpop.f32.mrb[102].mxu1  ;;  %v13733_v60 = vadd.f32 %v13469_v51, %v3560_v6 }
 0x4c0   : > { %3613 = vmax.xlane.f32.xlu0 %v13722_v21  ;;  %3619 = vmax.xlane.f32.xlu1 %v13725_v34  ;;  %v3563_v22 = vpop.f32.mrb[103].mxu1  ;;  %v13738_v18 = vadd.f32 %v10160_v49, %v13469_v51 }
 0x4c1   : > { %v13730_v48 = vadd.f32 %v13469_v51, %v3563_v22 }
 0x4c4   : > { %3617 = vmax.xlane.f32.xlu0 %v13730_v48  ;;  %3615 = vmax.xlane.f32.xlu1 %v13733_v60 }
 0x4c5   : > { %v10163_v33 = vpop.f32.mrb[104].mxu1 }
 0x4c6   : > { %v13741_v5 = vadd.f32 %v10163_v33, %v13469_v51  ;;  %v3576_v28 = vpop.f32.mrb[105].mxu1 }
 0x4c7   : > { %v10164_v52 = vpop.f32.mrb[106].mxu1  ;;  %v13746_v6 = vadd.f32 %v13469_v51, %v3576_v28 }
 0x4c8   : > { %3621 = vmax.xlane.f32.xlu1 %v13738_v18  ;;  %3627 = vmax.xlane.f32.xlu0 %v13741_v5  ;;  %v3579_v22 = vpop.f32.mrb[107].mxu1  ;;  %v13750_v38 = vadd.f32 %v10164_v52, %v13469_v51 }
 0x4c9   : > { %v13758_v11 = vadd.f32 %v13469_v51, %v3579_v22 }
 0x4cc   : > { %3623 = vmax.xlane.f32.xlu1 %v13746_v6 }
 0x4cd   : > { %v10167_v9 = vpop.f32.mrb[108].mxu1 }
 0x4ce   : > { %v3592_v49 = vpop.f32.mrb[109].mxu1  ;;  %v13762_v28 = vadd.f32 %v10167_v9, %v13469_v51 }
 0x4cf   : > { %v13753_v33 = vadd.f32 %v13469_v51, %v3592_v49  ;;  %v10168_v12 = vpop.f32.mrb[110].mxu1 }
 0x4d0   : > { %3629 = vmax.xlane.f32.xlu1 %v13750_v38  ;;  %v3595_v19 = vpop.f32.mrb[111].mxu1  ;;  %v13766_v52 = vadd.f32 %v10168_v12, %v13469_v51 }
 0x4d1   : > { %3631 = vmax.xlane.f32.xlu0 %v13753_v33  ;;  %v13784_v12 = vadd.f32 %v13469_v51, %v3595_v19  ;;  %v13821_v19 = vpop.permute.xlu1 %3908 }
 0x4d4   : > { %3625 = vmax.xlane.f32.xlu1 %v13758_v11 }
 0x4d8   : > { %3635 = vmax.xlane.f32.xlu1 %v13762_v28 }
 0x4dc   : > { %3637 = vmax.xlane.f32.xlu1 %v13766_v52 }
 0x4e7   : > { %3914 = vrot.lane.b32.xlu0 %v13203_v2, %s12607_s14 }
 0x4ed   : > { %3912 = vrot.lane.b32.xlu1 %v13181_v58, %s12607_s14 }
 0x4f1   : > { %3890 = vrot.lane.b32.xlu1 %v13104_v8, %s12607_s14 }
 0x4f5   : > { %3894 = vrot.lane.b32.xlu1 %v13152_v47, %s12607_s14 }
 0x4f9   : > { %3898 = vrot.lane.b32.xlu1 %v13197_v46, %s12607_s14 }
 0x4fd   : > { %3902 = vrot.lane.b32.xlu1 %v13237_v17, %s12607_s14 }
 0x501   : > { %4187 = vrot.lane.b32.xlu1 %v13309_v61, %s12607_s14 }
 0x505   : > { %4191 = vrot.lane.b32.xlu1 %v13343_v26, %s12607_s14 }
 0x506   : > { %3633 = vmax.xlane.f32.xlu0 %v13784_v12 }
 0x509   : > { %4193 = vrot.lane.b32.xlu1 %v13361_v42, %s12607_s14 }
 0x50d   : > { %4195 = vrot.lane.b32.xlu1 %v13379_v15, %s12607_s14 }
 0x511   : > { %4199 = vrot.lane.b32.xlu1 %v13415_v7, %s12607_s14 }
 0x515   : > { %4358 = vrot.lane.b32.xlu1 %v13135_v39, %s12608_s21  ;;  %v13813_v39 = vpop.permute.xlu0 %3906 }
 0x519   : > { %v13819_v51 = vpop.permute.xlu0 %3910 }
 0x51c   : > { %3916 = vrot.lane.b32.xlu0 %v13223_v13, %s12607_s14 }
 0x520   : > { %3918 = vrot.lane.b32.xlu0 %v13243_v24, %s12607_s14 }
 0x524   : > { %3888 = vrot.lane.b32.xlu0 %v13079_v55, %s12607_s14 }
 0x528   : > { %3892 = vrot.lane.b32.xlu0 %v13128_v36, %s12607_s14 }
 0x52c   : > { %3896 = vrot.lane.b32.xlu0 %v13174_v31, %s12607_s14 }
 0x530   : > { %3900 = vrot.lane.b32.xlu0 %v13217_v41, %s12607_s14 }
 0x534   : > { %4185 = vrot.lane.b32.xlu0 %v13291_v45, %s12607_s14 }
 0x538   : > { %4189 = vrot.lane.b32.xlu0 %v13325_v53, %s12607_s14 }
 0x53c   : > { %4197 = vrot.lane.b32.xlu0 %v13397_v50, %s12607_s14 }
 0x540   : > { %4354 = vrot.lane.b32.xlu0 %v13087_v23, %s12608_s21 }
 0x544   : > { %4356 = vrot.lane.b32.xlu0 %v13111_v14, %s12608_s21 }
 0x545   : > { %v3612_v9 = vpop.xlane.xlu0 %3611 }
 0x546   : > { %v3641_v43 = vsub.f32 %v13710_v3, %v3612_v9 }
 0x548   : > { %v3610_v22 = vpop.xlane.xlu1 %3609  ;;  %4360 = vrot.lane.b32.xlu0 %v13159_v0, %s12608_s21  ;;  %v3659_v35 = vmul.f32 1.442695, %v3641_v43 }
 0x549   : > { %v3640_v49 = vsub.f32 %v13714_v1, %v3610_v22  ;;  %v3608_v32 = vpop.xlane.xlu0 %3607 }
 0x54a   : > { %v3639_v56 = vsub.f32 %v13717_v30, %v3608_v32 }
 0x54b   : > { %v3657_v23 = vmul.f32 1.442695, %v3640_v49 }
 0x54c   : > { %v3655_v29 = vmul.f32 1.442695, %v3639_v56 }
 0x54d   : > { %11667 = vpow2.f32 %v3657_v23  ;;  %v3620_v59 = vpop.xlane.xlu1 %3619  ;;  %v3614_v63 = vpop.xlane.xlu0 %3613 }
 0x54e   : > { %11669 = vpow2.f32 %v3655_v29  ;;  %v3642_v14 = vsub.f32 %v13722_v21, %v3614_v63  ;;  %v3645_v25 = vsub.f32 %v13725_v34, %v3620_v59 }
 0x54f   : > { %11671 = vpow2.f32 %v3659_v35 }
 0x550   : > { %v3661_v54 = vmul.f32 1.442695, %v3642_v14  ;;  %v3667_v30 = vmul.f32 1.442695, %v3645_v25  ;;  %v3945_v14 = vsel %vm3019_vm0, %v13672_v40, 0 }
 0x551   : > { %v3616_v0 = vpop.xlane.xlu1 %3615  ;;  %v3618_v16 = vpop.xlane.xlu0 %3617 }
 0x552   : > { %v3643_v1 = vsub.f32 %v13733_v60, %v3616_v0  ;;  %v3644_v3 = vsub.f32 %v13730_v48, %v3618_v16  ;;  %11673 = vpow2.f32 %v3661_v54 }
 0x554   : > { %v3663_v32 = vmul.f32 1.442695, %v3643_v1  ;;  %v3665_v56 = vmul.f32 1.442695, %v3644_v3 }
 0x555   : > { %v3622_v9 = vpop.xlane.xlu1 %3621  ;;  %v3628_v25 = vpop.xlane.xlu0 %3627 }
 0x556   : > { %11675 = vpow2.f32 %v3663_v32  ;;  %v3646_v43 = vsub.f32 %v13738_v18, %v3622_v9  ;;  %v3649_v22 = vsub.f32 %v13741_v5, %v3628_v25 }
 0x557   : > { %v13835_v29 = vpop.eup %11667  ;;  %11677 = vpow2.f32 %v3665_v56 }
 0x558   : > { %18103 = vst [vmem:[#allocation86_spill] sm:$0xff] %v13835_v29  ;;  %v13837_v63 = vpop.eup %11669  ;;  %v3669_v59 = vmul.f32 1.442695, %v3646_v43  ;;  %11679 = vpow2.f32 %v3667_v30  ;;  %v3675_v32 = vmul.f32 1.442695, %v3649_v22 }
 0x559   : > { %v3624_v35 = vpop.xlane.xlu1 %3623  ;;  %v3719_v60 = vpack.c.bf16 %v13835_v29, %v13837_v63  ;;  %v13841_v16 = vpop.eup %11671 }
 0x55a   : > { %11681 = vpow2.f32 %v3669_v59  ;;  %v3647_v54 = vsub.f32 %v13746_v6, %v3624_v35 }
 0x55b   : > { %10185 = vmatprep.mubr.bf16.mxu0 %v3719_v60  ;;  %v3951_v60 = vsel %vm3019_vm0, %v13821_v19, 0 }
 0x55c   : > { %v13844_v21 = vpop.eup %11673  ;;  %v3671_v23 = vmul.f32 1.442695, %v3647_v54 }
 0x55d   : > { %v3630_v34 = vpop.xlane.xlu1 %3629  ;;  %v3720_v18 = vpack.c.bf16 %v13844_v21, %v13841_v16 }
 0x55e   : > { %v3650_v48 = vsub.f32 %v13750_v38, %v3630_v34  ;;  %11683 = vpow2.f32 %v3671_v23 }
 0x55f   : > { %10186 = vmatmul.mubr.bf16.vlgmr.msra.gmra.mrb[112].mxu0 %v3720_v18 }
 0x560   : > { %v13850_v49 = vpop.eup %11675  ;;  %v3677_v6 = vmul.f32 1.442695, %v3650_v48  ;;  %10202 = vmatpush3.bf16.xpose.msra.mxu0 %v3945_v14  ;;  %v3954_v48 = vsel %vm3019_vm0, %v13819_v51, 0 }
 0x561   : > { %v13854_v0 = vpop.eup %11677  ;;  %v3626_v1 = vpop.xlane.xlu1 %3625  ;;  %11114 = vmatprep.subr.msk.bf16.mxu0 %vm3019_vm0, %v13813_v39 }
 0x562   : > { %v3648_v38 = vsub.f32 %v13758_v11, %v3626_v1  ;;  %v3721_v5 = vpack.c.bf16 %v13854_v0, %v13850_v49  ;;  %v13861_v3 = vpop.eup %11679  ;;  %11685 = vpow2.f32 %v3677_v6  ;;  %v3948_v11 = vsel %vm3019_vm0, %v13813_v39, 0 }
 0x564   : > { %v13863_v56 = vpop.eup %11681  ;;  %v3673_v40 = vmul.f32 1.442695, %v3648_v38  ;;  %10189 = vmatprep.mubr.bf16.mxu0 %v3721_v5 }
 0x565   : > { %v3722_v30 = vpack.c.bf16 %v13863_v56, %v13861_v3  ;;  %v3636_v9 = vpop.xlane.xlu1 %3635 }
 0x566   : > { %11687 = vpow2.f32 %v3673_v40 }
 0x567   : > { %11689 = vpow2.f32 %v3675_v32  ;;  %10190 = vmatmul.mubr.bf16.gmra.mrb[116].mxu0 %v3722_v30 }
 0x568   : > { %10204 = vmatpush3.bf16.xpose.msra.mxu0 %v3948_v11  ;;  %v13871_v43 = vpop.eup %11683 }
 0x569   : > { %11115 = vmatprep.subr.msk.bf16.mxu0 %vm3019_vm0, %v13821_v19  ;;  %18104 = vst [vmem:[#allocation87_spill] sm:$0xff] %v13871_v43  ;;  %v3638_v34 = vpop.xlane.xlu1 %3637  ;;  %v3632_v19 = vpop.xlane.xlu0 %3631 }
 0x56a   : > { %v3651_v6 = vsub.f32 %v13753_v33, %v3632_v19  ;;  %v3654_v1 = vsub.f32 %v13766_v52, %v3638_v34 }
 0x56c   : > { %v13873_v59 = vpop.eup %11685  ;;  %v3679_v38 = vmul.f32 1.442695, %v3651_v6  ;;  %v3685_v5 = vmul.f32 1.442695, %v3654_v1 }
 0x56d   : > { %18105 = vst [vmem:[#allocation88_spill] sm:$0xff] %v13873_v59  ;;  %v3913_v18 = vpop.permute.xlu1 %3912  ;;  %v3915_v23 = vpop.permute.xlu0 %3914 }
 0x56e   : > { %v3957_v22 = vsel %vm3019_vm0, %v3913_v18, 0  ;;  %v3960_v14 = vsel %vm3019_vm0, %v3915_v23, 0  ;;  %11691 = vpow2.f32 %v3679_v38 }
 0x56f   : > { %11693 = vpow2.f32 %v3685_v5 }
 0x570   : > { %v13875_v35 = vpop.eup %11687  ;;  %10206 = vmatpush3.bf16.xpose.msra.mxu0 %v3951_v60 }
 0x571   : > { %18106 = vst [vmem:[#allocation89_spill] sm:$0xff] %v13875_v35  ;;  %v13879_v25 = vpop.eup %11689  ;;  %v3723_v39 = vpack.c.bf16 %v13875_v35, %v13871_v43  ;;  %11116 = vmatprep.subr.msk.bf16.mxu0 %vm3019_vm0, %v13819_v51  ;;  %v3653_v51 = vsub.f32 %v13762_v28, %v3636_v9  ;;  %v3891_v60 = vpop.permute.xlu1 %3890 }
 0x572   : > { %18107 = vst [vmem:[#allocation90_spill] sm:$0xff] %v13879_v25  ;;  %v3724_v54 = vpack.c.bf16 %v13873_v59, %v13879_v25 }
 0x573   : > { %10193 = vmatprep.mubr.bf16.mxu0 %v3723_v39  ;;  %v3683_v30 = vmul.f32 1.442695, %v3653_v51 }
 0x574   : > { %10194 = vmatmul.mubr.bf16.gmra.mrb[120].mxu0 %v3724_v54 }
 0x575   : > { %v3895_v28 = vpop.permute.xlu1 %3894 }
 0x578   : > { %10208 = vmatpush3.bf16.xpose.msra.mxu0 %v3954_v48  ;;  %v13900_v54 = vpop.eup %11691 }
 0x579   : > { %11117 = vmatprep.subr.msk.bf16.mxu0 %vm3019_vm0, %v3913_v18  ;;  %18108 = vst [vmem:[#allocation91_spill] sm:$0xff] %v13900_v54  ;;  %v13903_v34 = vpop.eup %11693  ;;  %v3899_v19 = vpop.permute.xlu1 %3898 }
 0x57a   : > { %18109 = vst [vmem:[#allocation92_spill] sm:$0xff] %v13903_v34 }
 0x57d   : > { %v3903_v1 = vpop.permute.xlu1 %3902 }
 0x580   : > { %10210 = vmatpush3.bf16.xpose.msra.mxu0 %v3957_v22 }
 0x581   : > { %11118 = vmatprep.subr.msk.bf16.mxu0 %vm3019_vm0, %v3915_v23  ;;  %v4188_v38 = vpop.permute.xlu1 %4187 }
 0x588   : > { %10212 = vmatpush3.bf16.xpose.msra.mxu0 %v3960_v14 }
 0x593   : > { %v3634_v32 = vpop.xlane.xlu0 %3633 }
 0x594   : > { %v3652_v40 = vsub.f32 %v13784_v12, %v3634_v32  ;;  %v4192_v32 = vpop.permute.xlu1 %4191 }
 0x596   : > { %v3681_v11 = vmul.f32 1.442695, %v3652_v40 }
 0x597   : > { %v3917_v39 = vpop.permute.xlu0 %3916 }
 0x598   : > { %11695 = vpow2.f32 %v3681_v11  ;;  %11119 = vmatprep.subr.msk.bf16.mxu0 %vm3019_vm0, %v3917_v39  ;;  %v3963_v33 = vsel %vm3019_vm0, %v3917_v39, 0 }
 0x599   : > { %11697 = vpow2.f32 %v3683_v30  ;;  %10214 = vmatpush3.bf16.xpose.msra.mxu0 %v3963_v33  ;;  %v4194_v30 = vpop.permute.xlu1 %4193 }
 0x59b   : > { %v3919_v52 = vpop.permute.xlu0 %3918 }
 0x59c   : > { %11120 = vmatprep.subr.msk.bf16.mxu0 %vm3019_vm0, %v3919_v52  ;;  %v3966_v12 = vsel %vm3019_vm0, %v3919_v52, 0 }
 0x59d   : > { %v4196_v11 = vpop.permute.xlu1 %4195 }
 0x59f   : > { %v3889_v9 = vpop.permute.xlu0 %3888 }
 0x5a1   : > { %10216 = vmatpush3.bf16.xpose.msra.mxu0 %v3966_v12  ;;  %v4200_v39 = vpop.permute.xlu1 %4199 }
 0x5a2   : > { %v13905_v48 = vpop.eup %11695 }
 0x5a3   : > { %18110 = vst [vmem:[#allocation93_spill] sm:$0xff] %v13905_v48  ;;  %v13907_v18 = vpop.eup %11697  ;;  %v3893_v22 = vpop.permute.xlu0 %3892  ;;  %v3725_v23 = vpack.c.bf16 %v13905_v48, %v13900_v54 }
 0x5a4   : > { %18111 = vst [vmem:[#allocation94_spill] sm:$0xff] %v13907_v18  ;;  %v3726_v14 = vpack.c.bf16 %v13903_v34, %v13907_v18 }
 0x5a5   : > { %10197 = vmatprep.mubr.bf16.mxu0 %v3725_v23 }
 0x5a6   : > { %10198 = vmatmul.mubr.bf16.gmra.mrb[124].mxu0 %v3726_v14 }
 0x5a7   : > { %10217 = vmatprep.mubr.msk.bf16.mxu0 %vm3019_vm0, %v3889_v9  ;;  %v3897_v6 = vpop.permute.xlu0 %3896 }
 0x5ab   : > { %v3901_v51 = vpop.permute.xlu0 %3900 }
 0x5ae   : > { %10218 = vmatmul.mubr.msk.bf16.vlgmr.msra.gmra.mrb[128].mxu0 %vm3019_vm0, %v3891_v60 }
 0x5af   : > { %10221 = vmatprep.mubr.msk.bf16.mxu0 %vm3019_vm0, %v3893_v22  ;;  %v4186_v5 = vpop.permute.xlu0 %4185 }
 0x5b0   : > { %10233 = vmatprep.subr.bf16.mxu1 %v4186_v5 }
 0x5b1   : > { %10234 = vmatpush3.bf16.msra.mxu1 %v4186_v5 }
 0x5b2   : > { %10235 = vmatprep.subr.bf16.mxu1 %v4188_v38 }
 0x5b3   : > { %v4190_v40 = vpop.permute.xlu0 %4189 }
 0x5b5   : > { %10236 = vmatpush3.bf16.msra.mxu1 %v4188_v38 }
 0x5b6   : > { %10222 = vmatmul.mubr.msk.bf16.gmra.mrb[132].mxu0 %vm3019_vm0, %v3895_v28  ;;  %10237 = vmatprep.subr.bf16.mxu1 %v4190_v40 }
 0x5b7   : > { %10225 = vmatprep.mubr.msk.bf16.mxu0 %vm3019_vm0, %v3897_v6  ;;  %v4198_v60 = vpop.permute.xlu0 %4197 }
 0x5b9   : > { %10238 = vmatpush3.bf16.msra.mxu1 %v4190_v40 }
 0x5ba   : > { %10239 = vmatprep.subr.bf16.mxu1 %v4192_v32 }
 0x5bb   : > { %v13921_v33 = vpop.permute.xlu0 %4354 }
 0x5bd   : > { %10240 = vmatpush3.bf16.msra.mxu1 %v4192_v32 }
 0x5be   : > { %10226 = vmatmul.mubr.msk.bf16.gmra.mrb[136].mxu0 %vm3019_vm0, %v3899_v19  ;;  %10241 = vmatprep.subr.bf16.mxu1 %v4194_v30 }
 0x5bf   : > { %10229 = vmatprep.mubr.msk.bf16.mxu0 %vm3019_vm0, %v3901_v51 }
 0x5c1   : > { %10242 = vmatpush3.bf16.msra.mxu1 %v4194_v30 }
 0x5c2   : > { %10243 = vmatprep.subr.bf16.mxu1 %v4196_v11 }
 0x5c5   : > { %10244 = vmatpush3.bf16.msra.mxu1 %v4196_v11 }
 0x5c6   : > { %10230 = vmatmul.mubr.msk.bf16.gmra.mrb[140].mxu0 %vm3019_vm0, %v3903_v1  ;;  %10245 = vmatprep.subr.bf16.mxu1 %v4198_v60 }
 0x5c9   : > { %10246 = vmatpush3.bf16.msra.mxu1 %v4198_v60  ;;  %v13958_v60 = vld [vmem:[%s13466_s13] ss:$0 sm:$0xff] }
 0x5ca   : > { %10247 = vmatprep.subr.bf16.mxu1 %v4200_v39 }
 0x5cd   : > { %10248 = vmatpush3.bf16.msra.mxu1 %v4200_v39 }
 0x5ce   : > { %11121 = vmatprep.subr.msk.bf16.mxu1 %vm3019_vm0, %v13921_v33 }
 0x632   : > { %v13925_v52 = vpop.f32.mrb[112].mxu0 }
 0x633   : > { %18112 = vst [vmem:[#allocation95_spill] sm:$0xff] %v13925_v52  ;;  %v13927_v28 = vpop.f32.mrb[113].mxu0 }
 0x634   : > { %18113 = vst [vmem:[#allocation96_spill] sm:$0xff] %v13927_v28  ;;  %v13929_v9 = vpop.f32.mrb[114].mxu0 }
 0x635   : > { %18114 = vst [vmem:[#allocation97_spill] sm:$0xff] %v13929_v9  ;;  %v13931_v12 = vpop.f32.mrb[115].mxu0 }
 0x636   : > { %18115 = vst [vmem:[#allocation98_spill] sm:$0xff] %v13931_v12 }
 0x63a   : > { %v13933_v19 = vpop.f32.mrb[116].mxu0 }
 0x63b   : > { %18116 = vst [vmem:[#allocation99_spill] sm:$0xff] %v13933_v19  ;;  %v13935_v22 = vpop.f32.mrb[117].mxu0 }
 0x63c   : > { %18117 = vst [vmem:[#allocation100_spill] sm:$0xff] %v13935_v22  ;;  %v13937_v23 = vpop.f32.mrb[118].mxu0 }
 0x63d   : > { %18118 = vst [vmem:[#allocation101_spill] sm:$0xff] %v13937_v23  ;;  %v13939_v14 = vpop.f32.mrb[119].mxu0 }
 0x63e   : > { %18119 = vst [vmem:[#allocation102_spill] sm:$0xff] %v13939_v14 }
 0x647   : > { %v13941_v6 = vpop.f32.mrb[120].mxu0 }
 0x648   : > { %18120 = vst [vmem:[#allocation103_spill] sm:$0xff] %v13941_v6  ;;  %v13943_v1 = vpop.f32.mrb[121].mxu0 }
 0x649   : > { %18121 = vst [vmem:[#allocation104_spill] sm:$0xff] %v13943_v1  ;;  %v13945_v51 = vpop.f32.mrb[122].mxu0 }
 0x64a   : > { %18122 = vst [vmem:[#allocation105_spill] sm:$0xff] %v13945_v51  ;;  %v13947_v38 = vpop.f32.mrb[123].mxu0 }
 0x64b   : > { %18123 = vst [vmem:[#allocation106_spill] sm:$0xff] %v13947_v38 }
 0x679   : > { %v13949_v5 = vpop.f32.mrb[124].mxu0 }
 0x67a   : > { %18124 = vst [vmem:[#allocation107_spill] sm:$0xff] %v13949_v5  ;;  %v13951_v32 = vpop.f32.mrb[125].mxu0 }
 0x67b   : > { %18125 = vst [vmem:[#allocation108_spill] sm:$0xff] %v13951_v32  ;;  %v13953_v40 = vpop.f32.mrb[126].mxu0 }
 0x67c   : > { %18126 = vst [vmem:[#allocation109_spill] sm:$0xff] %v13953_v40  ;;  %v13955_v30 = vpop.f32.mrb[127].mxu0 }
 0x67d   : > { %18127 = vst [vmem:[#allocation110_spill] sm:$0xff] %v13955_v30 }
 0x681   : > { %v10219_v11 = vpop.f32.mrb[128].mxu0 }
 0x682   : > { %v13961_v39 = vadd.f32 %v13958_v60, %v10219_v11  ;;  %v4002_v6 = vpop.f32.mrb[129].mxu0 }
 0x683   : > { %v10220_v1 = vpop.f32.mrb[130].mxu0  ;;  %v13968_v5 = vadd.f32 %v13958_v60, %v4002_v6 }
 0x684   : > { %4069 = vmax.xlane.f32.xlu0 %v13961_v39  ;;  %v4005_v51 = vpop.f32.mrb[131].mxu0  ;;  %v13973_v30 = vadd.f32 %v13958_v60, %v10220_v1 }
 0x685   : > { %v13965_v38 = vadd.f32 %v13958_v60, %v4005_v51 }
 0x687   : > { %4067 = vmax.xlane.f32.xlu1 %v13965_v38 }
 0x688   : > { %4065 = vmax.xlane.f32.xlu0 %v13968_v5 }
 0x689   : > { %v10223_v40 = vpop.f32.mrb[132].mxu0 }
 0x68a   : > { %v13976_v11 = vadd.f32 %v13958_v60, %v10223_v40  ;;  %v4018_v32 = vpop.f32.mrb[133].mxu0 }
 0x68b   : > { %v10224_v12 = vpop.f32.mrb[134].mxu0  ;;  %v13984_v20 = vadd.f32 %v13958_v60, %v4018_v32 }
 0x68c   : > { %4071 = vmax.xlane.f32.xlu0 %v13973_v30  ;;  %4077 = vmax.xlane.f32.xlu1 %v13976_v11  ;;  %v4021_v51 = vpop.f32.mrb[135].mxu0  ;;  %v13989_v40 = vadd.f32 %v13958_v60, %v10224_v12 }
 0x68d   : > { %v13981_v6 = vadd.f32 %v13958_v60, %v4021_v51 }
 0x690   : > { %4075 = vmax.xlane.f32.xlu0 %v13981_v6  ;;  %4073 = vmax.xlane.f32.xlu1 %v13984_v20 }
 0x691   : > { %v10227_v1 = vpop.f32.mrb[136].mxu0 }
 0x692   : > { %v13992_v27 = vadd.f32 %v13958_v60, %v10227_v1  ;;  %v4034_v23 = vpop.f32.mrb[137].mxu0 }
 0x693   : > { %v10228_v19 = vpop.f32.mrb[138].mxu0  ;;  %v13997_v32 = vadd.f32 %v13958_v60, %v4034_v23 }
 0x694   : > { %4079 = vmax.xlane.f32.xlu1 %v13989_v40  ;;  %4085 = vmax.xlane.f32.xlu0 %v13992_v27  ;;  %v4037_v51 = vpop.f32.mrb[139].mxu0  ;;  %v14001_v22 = vadd.f32 %v13958_v60, %v10228_v19 }
 0x695   : > { %v14009_v28 = vadd.f32 %v13958_v60, %v4037_v51 }
 0x698   : > { %4081 = vmax.xlane.f32.xlu1 %v13997_v32 }
 0x699   : > { %v10231_v14 = vpop.f32.mrb[140].mxu0 }
 0x69a   : > { %v4050_v12 = vpop.f32.mrb[141].mxu0  ;;  %v14013_v23 = vadd.f32 %v13958_v60, %v10231_v14 }
 0x69b   : > { %v14004_v1 = vadd.f32 %v13958_v60, %v4050_v12  ;;  %v10232_v9 = vpop.f32.mrb[142].mxu0 }
 0x69c   : > { %4087 = vmax.xlane.f32.xlu1 %v14001_v22  ;;  %v4053_v52 = vpop.f32.mrb[143].mxu0  ;;  %v14017_v19 = vadd.f32 %v13958_v60, %v10232_v9 }
 0x69d   : > { %4089 = vmax.xlane.f32.xlu0 %v14004_v1 }
 0x6a0   : > { %4083 = vmax.xlane.f32.xlu1 %v14009_v28 }
 0x6a4   : > { %4093 = vmax.xlane.f32.xlu1 %v14013_v23 }
 0x6a8   : > { %4095 = vmax.xlane.f32.xlu1 %v14017_v19 }
 0x6b3   : > { %4364 = vrot.lane.b32.xlu0 %v13203_v2, %s12608_s21  ;;  %v14035_v2 = vadd.f32 %v13958_v60, %v4053_v52 }
 0x6b9   : > { %4362 = vrot.lane.b32.xlu1 %v13181_v58, %s12608_s21 }
 0x6bd   : > { %4340 = vrot.lane.b32.xlu1 %v13104_v8, %s12608_s21  ;;  %v14060_v8 = vpop.permute.xlu0 %4356 }
 0x6c1   : > { %4344 = vrot.lane.b32.xlu1 %v13152_v47, %s12608_s21  ;;  %v14062_v47 = vpop.permute.xlu0 %4360 }
 0x6c5   : > { %4348 = vrot.lane.b32.xlu1 %v13197_v46, %s12608_s21 }
 0x6c9   : > { %4352 = vrot.lane.b32.xlu1 %v13237_v17, %s12608_s21 }
 0x6cd   : > { %4637 = vrot.lane.b32.xlu1 %v13309_v61, %s12608_s21 }
 0x6d1   : > { %4641 = vrot.lane.b32.xlu1 %v13343_v26, %s12608_s21 }
 0x6d2   : > { %4091 = vmax.xlane.f32.xlu0 %v14035_v2 }
 0x6d5   : > { %4643 = vrot.lane.b32.xlu1 %v13361_v42, %s12608_s21 }
 0x6d9   : > { %4645 = vrot.lane.b32.xlu1 %v13379_v15, %s12608_s21 }
 0x6e8   : > { %4366 = vrot.lane.b32.xlu0 %v13223_v13, %s12608_s21 }
 0x6ec   : > { %4368 = vrot.lane.b32.xlu0 %v13243_v24, %s12608_s21 }
 0x6f0   : > { %4338 = vrot.lane.b32.xlu0 %v13079_v55, %s12608_s21  ;;  %v14064_v55 = vpop.permute.xlu1 %4358 }
 0x6f4   : > { %4342 = vrot.lane.b32.xlu0 %v13128_v36, %s12608_s21 }
 0x6f8   : > { %4346 = vrot.lane.b32.xlu0 %v13174_v31, %s12608_s21 }
 0x6fc   : > { %4350 = vrot.lane.b32.xlu0 %v13217_v41, %s12608_s21 }
 0x700   : > { %4635 = vrot.lane.b32.xlu0 %v13291_v45, %s12608_s21 }
 0x704   : > { %4639 = vrot.lane.b32.xlu0 %v13325_v53, %s12608_s21 }
 0x711   : > { %v4070_v58 = vpop.xlane.xlu0 %4069 }
 0x712   : > { %v4099_v13 = vsub.f32 %v13961_v39, %v4070_v58 }
 0x714   : > { %v4068_v36 = vpop.xlane.xlu1 %4067  ;;  %v4117_v53 = vmul.f32 1.442695, %v4099_v13 }
 0x715   : > { %v4098_v46 = vsub.f32 %v13965_v38, %v4068_v36  ;;  %v4066_v31 = vpop.xlane.xlu0 %4065 }
 0x716   : > { %v4097_v41 = vsub.f32 %v13968_v5, %v4066_v31 }
 0x717   : > { %v4115_v17 = vmul.f32 1.442695, %v4098_v46 }
 0x718   : > { %v4113_v24 = vmul.f32 1.442695, %v4097_v41 }
 0x719   : > { %11699 = vpow2.f32 %v4115_v17  ;;  %v4078_v45 = vpop.xlane.xlu1 %4077  ;;  %v4072_v61 = vpop.xlane.xlu0 %4071 }
 0x71a   : > { %11701 = vpow2.f32 %v4113_v24  ;;  %v4100_v26 = vsub.f32 %v13973_v30, %v4072_v61  ;;  %v4103_v15 = vsub.f32 %v13976_v11, %v4078_v45 }
 0x71b   : > { %11703 = vpow2.f32 %v4117_v53 }
 0x71c   : > { %v4119_v42 = vmul.f32 1.442695, %v4100_v26  ;;  %v4125_v51 = vmul.f32 1.442695, %v4103_v15  ;;  %v4395_v26 = vsel %vm3019_vm0, %v13921_v33, 0 }
 0x71d   : > { %v4074_v52 = vpop.xlane.xlu1 %4073  ;;  %v4076_v9 = vpop.xlane.xlu0 %4075 }
 0x71e   : > { %v4101_v14 = vsub.f32 %v13984_v20, %v4074_v52  ;;  %v4102_v38 = vsub.f32 %v13981_v6, %v4076_v9  ;;  %11705 = vpow2.f32 %v4119_v42 }
 0x720   : > { %v4121_v5 = vmul.f32 1.442695, %v4101_v14  ;;  %v4123_v39 = vmul.f32 1.442695, %v4102_v38 }
 0x721   : > { %v4080_v12 = vpop.xlane.xlu1 %4079  ;;  %v4086_v31 = vpop.xlane.xlu0 %4085 }
 0x722   : > { %11707 = vpow2.f32 %v4121_v5  ;;  %v4104_v58 = vsub.f32 %v13989_v40, %v4080_v12  ;;  %v4107_v45 = vsub.f32 %v13992_v27, %v4086_v31  ;;  %v4404_v31 = vsel %vm3019_vm0, %v14062_v47, 0 }
 0x723   : > { %v14074_v36 = vpop.eup %11699  ;;  %11709 = vpow2.f32 %v4123_v39 }
 0x724   : > { %18128 = vst [vmem:[#allocation111_spill] sm:$0xff] %v14074_v36  ;;  %v14076_v30 = vpop.eup %11701  ;;  %v4127_v11 = vmul.f32 1.442695, %v4104_v58  ;;  %11711 = vpow2.f32 %v4125_v51  ;;  %v4133_v9 = vmul.f32 1.442695, %v4107_v45  ;;  %v4401_v58 = vsel %vm3019_vm0, %v14064_v55, 0 }
 0x725   : > { %18129 = vst [vmem:[#allocation112_spill] sm:$0xff] %v14076_v30  ;;  %v4082_v46 = vpop.xlane.xlu1 %4081  ;;  %v4177_v20 = vpack.c.bf16 %v14074_v36, %v14076_v30  ;;  %v14080_v6 = vpop.eup %11703 }
 0x726   : > { %11713 = vpow2.f32 %v4127_v11  ;;  %18130 = vst [vmem:[#allocation113_spill] sm:$0xff] %v14080_v6  ;;  %v4105_v13 = vsub.f32 %v13997_v32, %v4082_v46 }
 0x727   : > { %10249 = vmatprep.mubr.bf16.mxu1 %v4177_v20 }
 0x728   : > { %v14083_v41 = vpop.eup %11705  ;;  %v4129_v53 = vmul.f32 1.442695, %v4105_v13 }
 0x729   : > { %18131 = vst [vmem:[#allocation114_spill] sm:$0xff] %v14083_v41  ;;  %v4088_v40 = vpop.xlane.xlu1 %4087  ;;  %v4178_v24 = vpack.c.bf16 %v14083_v41, %v14080_v6 }
 0x72a   : > { %v4108_v17 = vsub.f32 %v14001_v22, %v4088_v40  ;;  %11715 = vpow2.f32 %v4129_v53 }
 0x72b   : > { %10250 = vmatmul.mubr.bf16.vlgmr.msra.gmra.mrb[112].mxu1 %v4178_v24 }
 0x72c   : > { %v14089_v61 = vpop.eup %11707  ;;  %v4135_v32 = vmul.f32 1.442695, %v4108_v17  ;;  %10266 = vmatpush3.bf16.xpose.msra.mxu1 %v4395_v26 }
 0x72d   : > { %18132 = vst [vmem:[#allocation115_spill] sm:$0xff] %v14089_v61  ;;  %v14093_v42 = vpop.eup %11709  ;;  %v4084_v15 = vpop.xlane.xlu1 %4083  ;;  %11122 = vmatprep.subr.msk.bf16.mxu1 %vm3019_vm0, %v14060_v8 }
 0x72e   : > { %18133 = vst [vmem:[#allocation116_spill] sm:$0xff] %v14093_v42  ;;  %v4106_v22 = vsub.f32 %v14009_v28, %v4084_v15  ;;  %v4179_v27 = vpack.c.bf16 %v14093_v42, %v14089_v61  ;;  %v14100_v52 = vpop.eup %11711  ;;  %11717 = vpow2.f32 %v4135_v32  ;;  %v4398_v28 = vsel %vm3019_vm0, %v14060_v8, 0 }
 0x72f   : > { %18134 = vst [vmem:[#allocation117_spill] sm:$0xff] %v14100_v52 }
 0x730   : > { %v14102_v14 = vpop.eup %11713  ;;  %v4131_v33 = vmul.f32 1.442695, %v4106_v22  ;;  %10253 = vmatprep.mubr.bf16.mxu1 %v4179_v27 }
 0x731   : > { %18135 = vst [vmem:[#allocation118_spill] sm:$0xff] %v14102_v14  ;;  %v4180_v38 = vpack.c.bf16 %v14102_v14, %v14100_v52  ;;  %v4094_v5 = vpop.xlane.xlu1 %4093 }
 0x732   : > { %11719 = vpow2.f32 %v4131_v33 }
 0x733   : > { %11721 = vpow2.f32 %v4133_v9  ;;  %10254 = vmatmul.mubr.bf16.gmra.mrb[116].mxu1 %v4180_v38 }
 0x734   : > { %10268 = vmatpush3.bf16.xpose.msra.mxu1 %v4398_v28  ;;  %v14110_v39 = vpop.eup %11715 }
 0x735   : > { %11123 = vmatprep.subr.msk.bf16.mxu1 %vm3019_vm0, %v14064_v55  ;;  %18136 = vst [vmem:[#allocation119_spill] sm:$0xff] %v14110_v39  ;;  %v4096_v20 = vpop.xlane.xlu1 %4095  ;;  %v4090_v55 = vpop.xlane.xlu0 %4089 }
 0x736   : > { %v4109_v45 = vsub.f32 %v14004_v1, %v4090_v55  ;;  %v4112_v53 = vsub.f32 %v14017_v19, %v4096_v20 }
 0x738   : > { %v14112_v51 = vpop.eup %11717  ;;  %v4137_v26 = vmul.f32 1.442695, %v4109_v45  ;;  %v4143_v32 = vmul.f32 1.442695, %v4112_v53 }
 0x739   : > { %18137 = vst [vmem:[#allocation120_spill] sm:$0xff] %v14112_v51  ;;  %v4363_v13 = vpop.permute.xlu1 %4362  ;;  %v4365_v17 = vpop.permute.xlu0 %4364 }
 0x73a   : > { %v4407_v40 = vsel %vm3019_vm0, %v4363_v13, 0  ;;  %v4410_v24 = vsel %vm3019_vm0, %v4365_v17, 0  ;;  %11723 = vpow2.f32 %v4137_v26 }
 0x73b   : > { %11725 = vpow2.f32 %v4143_v32 }
 0x73c   : > { %v14114_v12 = vpop.eup %11719  ;;  %10270 = vmatpush3.bf16.xpose.msra.mxu1 %v4401_v58 }
 0x73d   : > { %18138 = vst [vmem:[#allocation121_spill] sm:$0xff] %v14114_v12  ;;  %v14118_v11 = vpop.eup %11721  ;;  %v4181_v8 = vpack.c.bf16 %v14114_v12, %v14110_v39  ;;  %11124 = vmatprep.subr.msk.bf16.mxu1 %vm3019_vm0, %v14062_v47  ;;  %v4111_v47 = vsub.f32 %v14013_v23, %v4094_v5  ;;  %v4341_v33 = vpop.permute.xlu1 %4340 }
 0x73e   : > { %18139 = vst [vmem:[#allocation122_spill] sm:$0xff] %v14118_v11  ;;  %v4182_v46 = vpack.c.bf16 %v14112_v51, %v14118_v11 }
 0x73f   : > { %10257 = vmatprep.mubr.bf16.mxu1 %v4181_v8  ;;  %v4141_v27 = vmul.f32 1.442695, %v4111_v47 }
 0x740   : > { %10258 = vmatmul.mubr.bf16.gmra.mrb[120].mxu1 %v4182_v46 }
 0x741   : > { %v4345_v23 = vpop.permute.xlu1 %4344 }
 0x744   : > { %10272 = vmatpush3.bf16.xpose.msra.mxu1 %v4404_v31  ;;  %v14139_v5 = vpop.eup %11723 }
 0x745   : > { %11125 = vmatprep.subr.msk.bf16.mxu1 %vm3019_vm0, %v4363_v13  ;;  %18140 = vst [vmem:[#allocation123_spill] sm:$0xff] %v14139_v5  ;;  %v14142_v58 = vpop.eup %11725  ;;  %v4349_v20 = vpop.permute.xlu1 %4348 }
 0x746   : > { %18141 = vst [vmem:[#allocation124_spill] sm:$0xff] %v14142_v58 }
 0x74c   : > { %10274 = vmatpush3.bf16.xpose.msra.mxu1 %v4407_v40 }
 0x74d   : > { %11126 = vmatprep.subr.msk.bf16.mxu1 %vm3019_vm0, %v4365_v17  ;;  %v4353_v17 = vpop.permute.xlu1 %4352 }
 0x751   : > { %v4638_v45 = vpop.permute.xlu1 %4637 }
 0x754   : > { %10276 = vmatpush3.bf16.xpose.msra.mxu1 %v4410_v24 }
 0x755   : > { %v4642_v47 = vpop.permute.xlu1 %4641 }
 0x759   : > { %v4644_v32 = vpop.permute.xlu1 %4643 }
 0x75f   : > { %v4092_v15 = vpop.xlane.xlu0 %4091 }
 0x760   : > { %v4110_v22 = vsub.f32 %v14035_v2, %v4092_v15  ;;  %v4646_v15 = vpop.permute.xlu1 %4645 }
 0x762   : > { %v4139_v9 = vmul.f32 1.442695, %v4110_v22  ;;  %v18144_v22 = vld [vmem:[#allocation42_spill] sm:$0xff] }
 0x763   : > { %v4367_v38 = vpop.permute.xlu0 %4366 }
 0x764   : > { %11727 = vpow2.f32 %v4139_v9  ;;  %11127 = vmatprep.subr.msk.bf16.mxu1 %vm3019_vm0, %v4367_v38  ;;  %v4413_v1 = vsel %vm3019_vm0, %v4367_v38, 0 }
 0x765   : > { %11729 = vpow2.f32 %v4141_v27  ;;  %10278 = vmatpush3.bf16.xpose.msra.mxu1 %v4413_v1  ;;  %v18145_v27 = vld [vmem:[#allocation45_spill] sm:$0xff] }
 0x767   : > { %v4369_v19 = vpop.permute.xlu0 %4368 }
 0x768   : > { %11128 = vmatprep.subr.msk.bf16.mxu1 %vm3019_vm0, %v4369_v19  ;;  %v4416_v2 = vsel %vm3019_vm0, %v4369_v19, 0 }
 0x76b   : > { %v4339_v28 = vpop.permute.xlu0 %4338 }
 0x76d   : > { %10280 = vmatpush3.bf16.xpose.msra.mxu1 %v4416_v2 }
 0x76e   : > { %v14144_v8 = vpop.eup %11727  ;;  %10361 = vmatprep.subr.bf16.mxu1 %v13293_v4 }
 0x76f   : > { %18142 = vst [vmem:[#allocation125_spill] sm:$0xff] %v14144_v8  ;;  %v14147_v46 = vpop.eup %11729  ;;  %v4343_v31 = vpop.permute.xlu0 %4342  ;;  %v4183_v13 = vpack.c.bf16 %v14144_v8, %v14139_v5 }
 0x770   : > { %18143 = vst [vmem:[#allocation126_spill] sm:$0xff] %v14147_v46  ;;  %v4184_v55 = vpack.c.bf16 %v14142_v58, %v14147_v46 }
 0x771   : > { %10261 = vmatprep.mubr.bf16.mxu1 %v4183_v13 }
 0x772   : > { %10262 = vmatmul.mubr.bf16.gmra.mrb[124].mxu1 %v4184_v55 }
 0x773   : > { %10281 = vmatprep.mubr.msk.bf16.mxu1 %vm3019_vm0, %v4339_v28  ;;  %v4347_v40 = vpop.permute.xlu0 %4346 }
 0x777   : > { %v4351_v24 = vpop.permute.xlu0 %4350 }
 0x77a   : > { %10282 = vmatmul.mubr.msk.bf16.vlgmr.msra.gmra.mrb[128].mxu1 %vm3019_vm0, %v4341_v33 }
 0x77b   : > { %10362 = vmatpush3.bf16.msra.mxu1 %v13293_v4  ;;  %10285 = vmatprep.mubr.msk.bf16.mxu1 %vm3019_vm0, %v4343_v31  ;;  %v4636_v53 = vpop.permute.xlu0 %4635 }
 0x77c   : > { %10363 = vmatprep.subr.bf16.mxu1 %v13311_v62  ;;  %10297 = vmatprep.subr.bf16.mxu0 %v4636_v53 }
 0x77d   : > { %10298 = vmatpush3.bf16.msra.mxu0 %v4636_v53 }
 0x77e   : > { %10299 = vmatprep.subr.bf16.mxu0 %v4638_v45 }
 0x77f   : > { %10364 = vmatpush3.bf16.msra.mxu1 %v13311_v62  ;;  %v4640_v26 = vpop.permute.xlu0 %4639 }
 0x780   : > { %10365 = vmatprep.subr.bf16.mxu1 %v13329_v57 }
 0x781   : > { %10300 = vmatpush3.bf16.msra.mxu0 %v4638_v45 }
 0x782   : > { %10286 = vmatmul.mubr.msk.bf16.gmra.mrb[132].mxu1 %vm3019_vm0, %v4345_v23  ;;  %10301 = vmatprep.subr.bf16.mxu0 %v4640_v26 }
 0x783   : > { %10366 = vmatpush3.bf16.msra.mxu1 %v13329_v57  ;;  %10289 = vmatprep.mubr.msk.bf16.mxu1 %vm3019_vm0, %v4347_v40 }
 0x784   : > { %10367 = vmatprep.subr.bf16.mxu1 %v13347_v10 }
 0x785   : > { %10302 = vmatpush3.bf16.msra.mxu0 %v4640_v26 }
 0x786   : > { %10303 = vmatprep.subr.bf16.mxu0 %v4642_v47 }
 0x787   : > { %10368 = vmatpush3.bf16.msra.mxu1 %v13347_v10 }
 0x788   : > { %10369 = vmatprep.subr.bf16.mxu1 %v13365_v44 }
 0x789   : > { %10304 = vmatpush3.bf16.msra.mxu0 %v4642_v47 }
 0x78a   : > { %10290 = vmatmul.mubr.msk.bf16.gmra.mrb[136].mxu1 %vm3019_vm0, %v4349_v20  ;;  %10305 = vmatprep.subr.bf16.mxu0 %v4644_v32 }
 0x78b   : > { %10370 = vmatpush3.bf16.msra.mxu1 %v13365_v44  ;;  %10293 = vmatprep.mubr.msk.bf16.mxu1 %vm3019_vm0, %v4351_v24 }
 0x78c   : > { %10371 = vmatprep.subr.bf16.mxu1 %v13383_v37 }
 0x78d   : > { %10306 = vmatpush3.bf16.msra.mxu0 %v4644_v32 }
 0x78e   : > { %10307 = vmatprep.subr.bf16.mxu0 %v4646_v15 }
 0x78f   : > { %10372 = vmatpush3.bf16.msra.mxu1 %v13383_v37 }
 0x790   : > { %10373 = vmatprep.subr.bf16.mxu1 %v18144_v22 }
 0x791   : > { %10308 = vmatpush3.bf16.msra.mxu0 %v4646_v15 }
 0x792   : > { %10294 = vmatmul.mubr.msk.bf16.gmra.mrb[140].mxu1 %vm3019_vm0, %v4353_v17 }
 0x793   : > { %10374 = vmatpush3.bf16.msra.mxu1 %v18144_v22 }
 0x794   : > { %10375 = vmatprep.subr.bf16.mxu1 %v18145_v27 }
 0x797   : > { %10376 = vmatpush3.bf16.msra.mxu1 %v18145_v27 }
 0x7fe   : > { %v14176_v9 = vpop.f32.mrb[112].mxu1 }
 0x7ff   : > { %18146 = vst [vmem:[#allocation42_spill] sm:$0xff] %v14176_v9  ;;  %v14178_v33 = vpop.f32.mrb[113].mxu1 }
 0x800   : > { %18147 = vst [vmem:[#allocation45_spill] sm:$0xff] %v14178_v33  ;;  %v14180_v38 = vpop.f32.mrb[114].mxu1 }
 0x801   : > { %18148 = vst [vmem:[#allocation127_spill] sm:$0xff] %v14180_v38  ;;  %v14182_v1 = vpop.f32.mrb[115].mxu1 }
 0x802   : > { %18149 = vst [vmem:[#allocation128_spill] sm:$0xff] %v14182_v1 }
 0x806   : > { %v14184_v19 = vpop.f32.mrb[116].mxu1 }
 0x807   : > { %18150 = vst [vmem:[#allocation129_spill] sm:$0xff] %v14184_v19  ;;  %v14186_v23 = vpop.f32.mrb[117].mxu1 }
 0x808   : > { %18151 = vst [vmem:[#allocation130_spill] sm:$0xff] %v14186_v23  ;;  %v14188_v28 = vpop.f32.mrb[118].mxu1 }
 0x809   : > { %18152 = vst [vmem:[#allocation131_spill] sm:$0xff] %v14188_v28  ;;  %v14190_v2 = vpop.f32.mrb[119].mxu1 }
 0x80a   : > { %18153 = vst [vmem:[#allocation132_spill] sm:$0xff] %v14190_v2 }
 0x813   : > { %v14192_v20 = vpop.f32.mrb[120].mxu1 }
 0x814   : > { %18154 = vst [vmem:[#allocation133_spill] sm:$0xff] %v14192_v20  ;;  %v14194_v31 = vpop.f32.mrb[121].mxu1 }
 0x815   : > { %18155 = vst [vmem:[#allocation134_spill] sm:$0xff] %v14194_v31  ;;  %v14196_v13 = vpop.f32.mrb[122].mxu1 }
 0x816   : > { %18156 = vst [vmem:[#allocation135_spill] sm:$0xff] %v14196_v13  ;;  %v14198_v55 = vpop.f32.mrb[123].mxu1 }
 0x817   : > { %18157 = vst [vmem:[#allocation136_spill] sm:$0xff] %v14198_v55 }
 0x845   : > { %v14200_v40 = vpop.f32.mrb[124].mxu1 }
 0x846   : > { %18158 = vst [vmem:[#allocation137_spill] sm:$0xff] %v14200_v40  ;;  %v14202_v17 = vpop.f32.mrb[125].mxu1 }
 0x847   : > { %18159 = vst [vmem:[#allocation138_spill] sm:$0xff] %v14202_v17  ;;  %v14204_v24 = vpop.f32.mrb[126].mxu1 }
 0x848   : > { %18160 = vst [vmem:[#allocation139_spill] sm:$0xff] %v14204_v24  ;;  %v14206_v45 = vpop.f32.mrb[127].mxu1 }
 0x849   : > { %18161 = vst [vmem:[#allocation140_spill] sm:$0xff] %v14206_v45 }
 0x84d   : > { %v10283_v53 = vpop.f32.mrb[128].mxu1 }
 0x84e   : > { %v4461_v47 = vadd.f32 %v13958_v60, %v10283_v53  ;;  %v4452_v26 = vpop.f32.mrb[129].mxu1 }
 0x84f   : > { %v10284_v32 = vpop.f32.mrb[130].mxu1  ;;  %v4453_v31 = vadd.f32 %v13958_v60, %v4452_v26 }
 0x850   : > { %4519 = vmax.xlane.f32.xlu0 %v4461_v47  ;;  %v4455_v15 = vpop.f32.mrb[131].mxu1  ;;  %v4464_v17 = vadd.f32 %v13958_v60, %v10284_v32 }
 0x851   : > { %v4456_v20 = vadd.f32 %v13958_v60, %v4455_v15 }
 0x853   : > { %4517 = vmax.xlane.f32.xlu1 %v4456_v20 }
 0x854   : > { %4515 = vmax.xlane.f32.xlu0 %v4453_v31 }
 0x855   : > { %v10287_v40 = vpop.f32.mrb[132].mxu1 }
 0x856   : > { %v4468_v13 = vpop.f32.mrb[133].mxu1 }
 0x857   : > { %v10288_v24 = vpop.f32.mrb[134].mxu1  ;;  %v14224_v33 = vadd.f32 %v13958_v60, %v4468_v13 }
 0x858   : > { %4521 = vmax.xlane.f32.xlu0 %v4464_v17  ;;  %v4471_v45 = vpop.f32.mrb[135].mxu1  ;;  %v14240_v13 = vadd.f32 %v13958_v60, %v10288_v24 }
 0x859   : > { %v14217_v32 = vadd.f32 %v13958_v60, %v4471_v45 }
 0x85d   : > { %v10291_v19 = vpop.f32.mrb[136].mxu1 }
 0x85e   : > { %v4484_v55 = vpop.f32.mrb[137].mxu1 }
 0x85f   : > { %v10292_v53 = vpop.f32.mrb[138].mxu1 }
 0x860   : > { %v4487_v23 = vpop.f32.mrb[139].mxu1 }
 0x861   : > { %v14221_v2 = vadd.f32 %v13958_v60, %v4487_v23 }
 0x864   : > { %4649 = vrot.lane.b32.xlu1 %v13415_v7, %s12608_s21  ;;  %v14229_v7 = vadd.f32 %v13958_v60, %v10292_v53  ;;  %v14253_v53 = vadd.f32 %v13958_v60, %v10291_v19  ;;  %v18164_v19 = vld [vmem:[#allocation32_spill] sm:$0xff] }
 0x865   : > { %v10295_v28 = vpop.f32.mrb[140].mxu1 }
 0x866   : > { %v4500_v15 = vpop.f32.mrb[141].mxu1 }
 0x867   : > { %v10296_v9 = vpop.f32.mrb[142].mxu1  ;;  %v14257_v24 = vadd.f32 %v13958_v60, %v4500_v15 }
 0x868   : > { %v4503_v26 = vpop.f32.mrb[143].mxu1  ;;  %v14245_v45 = vadd.f32 %v13958_v60, %v10296_v9  ;;  %v14261_v9 = vadd.f32 %v13958_v60, %v10295_v28 }
 0x869   : > { %v14237_v23 = vadd.f32 %v13958_v60, %v4503_v26  ;;  %v18163_v26 = vld [vmem:[#allocation28_spill] sm:$0xff] }
 0x86e   : > { %4647 = vrot.lane.b32.xlu0 %v13397_v50, %s12608_s21  ;;  %v14232_v50 = vadd.f32 %v13958_v60, %v10287_v40  ;;  %v14248_v40 = vadd.f32 %v13958_v60, %v4484_v55  ;;  %v18162_v55 = vld [vmem:[#allocation30_spill] sm:$0xff] }
 0x888   : > { %4525 = vmax.xlane.f32.xlu1 %v14217_v32 }
 0x88c   : > { %4533 = vmax.xlane.f32.xlu1 %v14221_v2 }
 0x88d   : > { %4523 = vmax.xlane.f32.xlu0 %v14224_v33 }
 0x890   : > { %4537 = vmax.xlane.f32.xlu1 %v14229_v7 }
 0x891   : > { %4527 = vmax.xlane.f32.xlu0 %v14232_v50 }
 0x894   : > { %4541 = vmax.xlane.f32.xlu1 %v14237_v23 }
 0x895   : > { %4529 = vmax.xlane.f32.xlu0 %v14240_v13 }
 0x898   : > { %4545 = vmax.xlane.f32.xlu1 %v14245_v45 }
 0x899   : > { %4531 = vmax.xlane.f32.xlu0 %v14248_v40 }
 0x89d   : > { %4535 = vmax.xlane.f32.xlu0 %v14253_v53 }
 0x8a1   : > { %4539 = vmax.xlane.f32.xlu0 %v14257_v24 }
 0x8a5   : > { %4543 = vmax.xlane.f32.xlu0 %v14261_v9 }
 0x8a9   : > { %5216 = vrot.lane.b32.xlu1 %v18162_v55, %s12606_s23 }
 0x8bb   : > { %5214 = vrot.lane.b32.xlu0 %v18163_v26, %s12606_s23 }
 0x8bf   : > { %5218 = vrot.lane.b32.xlu0 %v18164_v19, %s12606_s23 }
 0x8dd   : > { %v4520_v38 = vpop.xlane.xlu0 %4519 }
 0x8de   : > { %v4549_v15 = vsub.f32 %v4461_v47, %v4520_v38  ;;  %v18171_v47 = vld [vmem:[#allocation38_spill] sm:$0xff] }
 0x8e0   : > { %v4518_v1 = vpop.xlane.xlu1 %4517  ;;  %v4567_v52 = vmul.f32 1.442695, %v4549_v15 }
 0x8e1   : > { %v4548_v46 = vsub.f32 %v4456_v20, %v4518_v1  ;;  %v4516_v5 = vpop.xlane.xlu0 %4515 }
 0x8e2   : > { %v4547_v11 = vsub.f32 %v4453_v31, %v4516_v5  ;;  %v4819_v5 = vsel %vm3019_vm0, %v18164_v19, 0 }
 0x8e3   : > { %v4565_v39 = vmul.f32 1.442695, %v4548_v46  ;;  %v18170_v46 = vld [vmem:[#allocation36_spill] sm:$0xff] }
 0x8e4   : > { %v4563_v28 = vmul.f32 1.442695, %v4547_v11  ;;  %v4650_v8 = vpop.permute.xlu1 %4649  ;;  %v4816_v11 = vsel %vm3019_vm0, %v18162_v55, 0  ;;  %v4825_v31 = vsel %vm3019_vm0, %v18170_v46, 0 }
 0x8e5   : > { %11731 = vpow2.f32 %v4565_v39  ;;  %v4522_v61 = vpop.xlane.xlu0 %4521 }
 0x8e6   : > { %11733 = vpow2.f32 %v4563_v28  ;;  %v4550_v6 = vsub.f32 %v4464_v17, %v4522_v61 }
 0x8e7   : > { %11735 = vpow2.f32 %v4567_v52  ;;  %v4813_v52 = vsel %vm3019_vm0, %v18163_v26, 0 }
 0x8e8   : > { %v4569_v30 = vmul.f32 1.442695, %v4550_v6 }
 0x8e9   : > { %v4648_v58 = vpop.permute.xlu0 %4647 }
 0x8ea   : > { %11737 = vpow2.f32 %v4569_v30  ;;  %10309 = vmatprep.subr.bf16.mxu0 %v4648_v58 }
 0x8eb   : > { %10310 = vmatpush3.bf16.msra.mxu0 %v4648_v58  ;;  %v18169_v58 = vld [vmem:[#allocation34_spill] sm:$0xff] }
 0x8ec   : > { %10311 = vmatprep.subr.bf16.mxu0 %v4650_v8 }
 0x8ef   : > { %v14270_v51 = vpop.eup %11731  ;;  %10312 = vmatpush3.bf16.msra.mxu0 %v4650_v8  ;;  %v4822_v8 = vsel %vm3019_vm0, %v18169_v58, 0 }
 0x8f0   : > { %18165 = vst [vmem:[#allocation30_spill] sm:$0xff] %v14270_v51  ;;  %v14272_v38 = vpop.eup %11733  ;;  %11129 = vmatprep.subr.msk.bf16.mxu0 %vm3019_vm0, %v18163_v26 }
 0x8f1   : > { %18166 = vst [vmem:[#allocation28_spill] sm:$0xff] %v14272_v38  ;;  %v4627_v39 = vpack.c.bf16 %v14270_v51, %v14272_v38  ;;  %v14278_v61 = vpop.eup %11735 }
 0x8f2   : > { %18167 = vst [vmem:[#allocation32_spill] sm:$0xff] %v14278_v61 }
 0x8f3   : > { %10313 = vmatprep.mubr.bf16.mxu0 %v4627_v39 }
 0x8f4   : > { %v14280_v6 = vpop.eup %11737 }
 0x8f5   : > { %18168 = vst [vmem:[#allocation141_spill] sm:$0xff] %v14280_v6  ;;  %v4628_v30 = vpack.c.bf16 %v14280_v6, %v14278_v61 }
 0x8f7   : > { %10314 = vmatmul.mubr.bf16.vlgmr.msra.gmra.mrb[144].mxu0 %v4628_v30 }
 0x8f8   : > { %10330 = vmatpush3.bf16.xpose.msra.mxu0 %v4813_v52 }
 0x8f9   : > { %11130 = vmatprep.subr.msk.bf16.mxu0 %vm3019_vm0, %v18162_v55 }
 0x900   : > { %10332 = vmatpush3.bf16.xpose.msra.mxu0 %v4816_v11 }
 0x901   : > { %11131 = vmatprep.subr.msk.bf16.mxu0 %vm3019_vm0, %v18164_v19 }
 0x908   : > { %10334 = vmatpush3.bf16.xpose.msra.mxu0 %v4819_v5 }
 0x909   : > { %11132 = vmatprep.subr.msk.bf16.mxu0 %vm3019_vm0, %v18169_v58 }
 0x910   : > { %10336 = vmatpush3.bf16.xpose.msra.mxu0 %v4822_v8  ;;  %v18172_v8 = vld [vmem:[#allocation40_spill] sm:$0xff] }
 0x911   : > { %11133 = vmatprep.subr.msk.bf16.mxu0 %vm3019_vm0, %v18170_v46 }
 0x915   : > { %v4526_v1 = vpop.xlane.xlu1 %4525 }
 0x916   : > { %v4552_v20 = vsub.f32 %v14217_v32, %v4526_v1  ;;  %v4828_v32 = vsel %vm3019_vm0, %v18171_v47, 0 }
 0x918   : > { %10338 = vmatpush3.bf16.xpose.msra.mxu0 %v4825_v31  ;;  %v4573_v15 = vmul.f32 1.442695, %v4552_v20 }
 0x919   : > { %v4534_v17 = vpop.xlane.xlu1 %4533  ;;  %11134 = vmatprep.subr.msk.bf16.mxu0 %vm3019_vm0, %v18171_v47 }
 0x91a   : > { %v4524_v28 = vpop.xlane.xlu0 %4523  ;;  %11739 = vpow2.f32 %v4573_v15  ;;  %v4556_v1 = vsub.f32 %v14221_v2, %v4534_v17 }
 0x91b   : > { %v4551_v39 = vsub.f32 %v14224_v33, %v4524_v28 }
 0x91d   : > { %v4571_v30 = vmul.f32 1.442695, %v4551_v39  ;;  %v4538_v11 = vpop.xlane.xlu1 %4537  ;;  %v4581_v39 = vmul.f32 1.442695, %v4556_v1 }
 0x91e   : > { %v4528_v52 = vpop.xlane.xlu0 %4527 }
 0x91f   : > { %11741 = vpow2.f32 %v4571_v30  ;;  %v4553_v5 = vsub.f32 %v14232_v50, %v4528_v52  ;;  %v4558_v30 = vsub.f32 %v14229_v7, %v4538_v11 }
 0x920   : > { %10340 = vmatpush3.bf16.xpose.msra.mxu0 %v4828_v32  ;;  %v4831_v32 = vsel %vm3019_vm0, %v18172_v8, 0 }
 0x921   : > { %11135 = vmatprep.subr.msk.bf16.mxu0 %vm3019_vm0, %v18172_v8  ;;  %v4575_v20 = vmul.f32 1.442695, %v4553_v5  ;;  %v4542_v28 = vpop.xlane.xlu1 %4541  ;;  %v4585_v5 = vmul.f32 1.442695, %v4558_v30 }
 0x922   : > { %v4530_v31 = vpop.xlane.xlu0 %4529  ;;  %v4560_v7 = vsub.f32 %v14237_v23, %v4542_v28 }
 0x923   : > { %v4554_v33 = vsub.f32 %v14240_v13, %v4530_v31  ;;  %11743 = vpow2.f32 %v4575_v20  ;;  %v18175_v13 = vld [vmem:[#allocation43_spill] sm:$0xff] }
 0x924   : > { %v14317_v61 = vpop.eup %11739  ;;  %v4834_v23 = vsel %vm3019_vm0, %v18175_v13, 0 }
 0x925   : > { %v4577_v15 = vmul.f32 1.442695, %v4554_v33  ;;  %18173 = vst [vmem:[#allocation34_spill] sm:$0xff] %v14317_v61  ;;  %v4546_v1 = vpop.xlane.xlu1 %4545  ;;  %v4589_v33 = vmul.f32 1.442695, %v4560_v7 }
 0x926   : > { %v4532_v50 = vpop.xlane.xlu0 %4531 }
 0x927   : > { %11745 = vpow2.f32 %v4577_v15  ;;  %v4555_v52 = vsub.f32 %v14248_v40, %v4532_v50  ;;  %v4562_v15 = vsub.f32 %v14245_v45, %v4546_v1 }
 0x928   : > { %10342 = vmatpush3.bf16.xpose.msra.mxu0 %v4831_v32  ;;  %11747 = vpow2.f32 %v4581_v39 }
 0x929   : > { %v14319_v2 = vpop.eup %11741  ;;  %v4579_v17 = vmul.f32 1.442695, %v4555_v52  ;;  %11136 = vmatprep.subr.msk.bf16.mxu0 %vm3019_vm0, %v18175_v13 }
 0x92a   : > { %18174 = vst [vmem:[#allocation36_spill] sm:$0xff] %v14319_v2  ;;  %v4536_v11 = vpop.xlane.xlu0 %4535  ;;  %v4629_v40 = vpack.c.bf16 %v14317_v61, %v14319_v2 }
 0x92b   : > { %11749 = vpow2.f32 %v4579_v17  ;;  %v4557_v20 = vsub.f32 %v14253_v53, %v4536_v11  ;;  %v4593_v53 = vmul.f32 1.442695, %v4562_v15 }
 0x92c   : > { %10317 = vmatprep.mubr.bf16.mxu0 %v4629_v40  ;;  %11751 = vpow2.f32 %v4585_v5 }
 0x92d   : > { %v4583_v31 = vmul.f32 1.442695, %v4557_v20  ;;  %v14331_v28 = vpop.eup %11743 }
 0x92e   : > { %v4540_v50 = vpop.xlane.xlu0 %4539  ;;  %18176 = vst [vmem:[#allocation38_spill] sm:$0xff] %v14331_v28 }
 0x92f   : > { %11753 = vpow2.f32 %v4583_v31  ;;  %v4559_v39 = vsub.f32 %v14257_v24, %v4540_v50 }
 0x930   : > { %10344 = vmatpush3.bf16.xpose.msra.mxu0 %v4834_v23  ;;  %11755 = vpow2.f32 %v4589_v33 }
 0x931   : > { %v14333_v30 = vpop.eup %11745  ;;  %v4587_v52 = vmul.f32 1.442695, %v4559_v39 }
 0x932   : > { %18177 = vst [vmem:[#allocation40_spill] sm:$0xff] %v14333_v30  ;;  %v4544_v32 = vpop.xlane.xlu0 %4543  ;;  %v4630_v17 = vpack.c.bf16 %v14333_v30, %v14331_v28  ;;  %v14338_v5 = vpop.eup %11747 }
 0x933   : > { %11757 = vpow2.f32 %v4587_v52  ;;  %v4561_v45 = vsub.f32 %v14261_v9, %v4544_v32  ;;  %18178 = vst [vmem:[#allocation43_spill] sm:$0xff] %v14338_v5  ;;  %v18186_v52 = vld [vmem:[#allocation13_spill] sm:$0xff] }
 0x934   : > { %10318 = vmatmul.mubr.bf16.gmra.mrb[148].mxu0 %v4630_v17  ;;  %11759 = vpow2.f32 %v4593_v53  ;;  %v18187_v53 = vld [vmem:[#allocation15_spill] sm:$0xff]  ;;  %v18188_v32 = vld [vmem:[#allocation17_spill] sm:$0xff] }
 0x935   : > { %v14340_v24 = vpop.eup %11749  ;;  %v4591_v7 = vmul.f32 1.442695, %v4561_v45  ;;  %v18189_v17 = vld [vmem:[#allocation19_spill] sm:$0xff]  ;;  %v18190_v45 = vld [vmem:[#allocation21_spill] sm:$0xff] }
 0x936   : > { %18179 = vst [vmem:[#allocation142_spill] sm:$0xff] %v14340_v24  ;;  %v14342_v11 = vpop.permute.xlu0 %5214  ;;  %v4631_v40 = vpack.c.bf16 %v14338_v5, %v14340_v24  ;;  %v14348_v1 = vpop.eup %11751 }
 0x937   : > { %11761 = vpow2.f32 %v4591_v7  ;;  %11137 = vmatprep.subr.msk.bf16.mxu1 %vm3019_vm0, %v14342_v11  ;;  %18180 = vst [vmem:[#allocation143_spill] sm:$0xff] %v14348_v1  ;;  %v18191_v7 = vld [vmem:[#allocation23_spill] sm:$0xff] }
 0x938   : > { %10321 = vmatprep.mubr.bf16.mxu0 %v4631_v40  ;;  %v18192_v40 = vld [vmem:[#allocation25_spill] sm:$0xff] }
 0x939   : > { %v14350_v9 = vpop.eup %11753 }
 0x93a   : > { %18181 = vst [vmem:[#allocation144_spill] sm:$0xff] %v14350_v9  ;;  %v4632_v20 = vpack.c.bf16 %v14348_v1, %v14350_v9  ;;  %v14354_v31 = vpop.eup %11755 }
 0x93b   : > { %18182 = vst [vmem:[#allocation145_spill] sm:$0xff] %v14354_v31 }
 0x93c   : > { %10322 = vmatmul.mubr.bf16.gmra.mrb[152].mxu0 %v4632_v20  ;;  %v18193_v20 = vld [vmem:[#allocation27_spill] sm:$0xff] }
 0x93d   : > { %v14356_v33 = vpop.eup %11757 }
 0x93e   : > { %18183 = vst [vmem:[#allocation146_spill] sm:$0xff] %v14356_v33  ;;  %v4633_v15 = vpack.c.bf16 %v14354_v31, %v14356_v33  ;;  %v14360_v50 = vpop.eup %11759 }
 0x93f   : > { %18184 = vst [vmem:[#allocation147_spill] sm:$0xff] %v14360_v50 }
 0x940   : > { %10325 = vmatprep.mubr.bf16.mxu0 %v4633_v15 }
 0x941   : > { %v14362_v39 = vpop.eup %11761 }
 0x942   : > { %18185 = vst [vmem:[#allocation148_spill] sm:$0xff] %v14362_v39  ;;  %v4634_v23 = vpack.c.bf16 %v14360_v50, %v14362_v39 }
 0x944   : > { %10326 = vmatmul.mubr.bf16.gmra.mrb[156].mxu0 %v4634_v23 }
 0x945   : > { %10345 = vmatprep.mubr.msk.bf16.mxu0 %vm3019_vm0, %v18186_v52 }
 0x94c   : > { %10346 = vmatmul.mubr.msk.bf16.vlgmr.msra.gmra.mrb[160].mxu0 %vm3019_vm0, %v18187_v53 }
 0x94d   : > { %10349 = vmatprep.mubr.msk.bf16.mxu0 %vm3019_vm0, %v18188_v32 }
 0x954   : > { %10350 = vmatmul.mubr.msk.bf16.gmra.mrb[164].mxu0 %vm3019_vm0, %v18189_v17 }
 0x955   : > { %10353 = vmatprep.mubr.msk.bf16.mxu0 %vm3019_vm0, %v18190_v45 }
 0x95c   : > { %10354 = vmatmul.mubr.msk.bf16.gmra.mrb[168].mxu0 %vm3019_vm0, %v18191_v7 }
 0x95d   : > { %10357 = vmatprep.mubr.msk.bf16.mxu0 %vm3019_vm0, %v18192_v40 }
 0x964   : > { %10358 = vmatmul.mubr.msk.bf16.gmra.mrb[172].mxu0 %vm3019_vm0, %v18193_v20 }
 0x9ca   : > { %v14382_v15 = vpop.f32.mrb[144].mxu0 }
 0x9cb   : > { %18194 = vst [vmem:[#allocation13_spill] sm:$0xff] %v14382_v15  ;;  %v14384_v23 = vpop.f32.mrb[145].mxu0 }
 0x9cc   : > { %18195 = vst [vmem:[#allocation15_spill] sm:$0xff] %v14384_v23  ;;  %v14386_v39 = vpop.f32.mrb[146].mxu0 }
 0x9cd   : > { %18196 = vst [vmem:[#allocation17_spill] sm:$0xff] %v14386_v39  ;;  %v14388_v33 = vpop.f32.mrb[147].mxu0 }
 0x9ce   : > { %18197 = vst [vmem:[#allocation19_spill] sm:$0xff] %v14388_v33 }
 0xa07   : > { %v14390_v9 = vpop.f32.mrb[148].mxu0 }
 0xa08   : > { %18198 = vst [vmem:[#allocation21_spill] sm:$0xff] %v14390_v9  ;;  %v14392_v24 = vpop.f32.mrb[149].mxu0 }
 0xa09   : > { %18199 = vst [vmem:[#allocation23_spill] sm:$0xff] %v14392_v24  ;;  %v14394_v28 = vpop.f32.mrb[150].mxu0 }
 0xa0a   : > { %18200 = vst [vmem:[#allocation25_spill] sm:$0xff] %v14394_v28  ;;  %v14396_v50 = vpop.f32.mrb[151].mxu0 }
 0xa0b   : > { %18201 = vst [vmem:[#allocation27_spill] sm:$0xff] %v14396_v50 }
 0xa0f   : > { %v14398_v31 = vpop.f32.mrb[152].mxu0 }
 0xa10   : > { %18202 = vst [vmem:[#allocation149_spill] sm:$0xff] %v14398_v31  ;;  %v14400_v1 = vpop.f32.mrb[153].mxu0 }
 0xa11   : > { %18203 = vst [vmem:[#allocation150_spill] sm:$0xff] %v14400_v1  ;;  %v14402_v5 = vpop.f32.mrb[154].mxu0 }
 0xa12   : > { %18204 = vst [vmem:[#allocation151_spill] sm:$0xff] %v14402_v5  ;;  %v14404_v15 = vpop.f32.mrb[155].mxu0 }
 0xa13   : > { %18205 = vst [vmem:[#allocation152_spill] sm:$0xff] %v14404_v15 }
 0xa17   : > { %v14406_v23 = vpop.f32.mrb[156].mxu0 }
 0xa18   : > { %18206 = vst [vmem:[#allocation153_spill] sm:$0xff] %v14406_v23  ;;  %v14408_v39 = vpop.f32.mrb[157].mxu0 }
 0xa19   : > { %18207 = vst [vmem:[#allocation154_spill] sm:$0xff] %v14408_v39  ;;  %v14410_v33 = vpop.f32.mrb[158].mxu0 }
 0xa1a   : > { %18208 = vst [vmem:[#allocation155_spill] sm:$0xff] %v14410_v33  ;;  %v14412_v9 = vpop.f32.mrb[159].mxu0 }
 0xa1b   : > { %18209 = vst [vmem:[#allocation156_spill] sm:$0xff] %v14412_v9 }
 0xa1f   : > { %v10347_v24 = vpop.f32.mrb[160].mxu0 }
 0xa20   : > { %v14415_v28 = vadd.f32 %v13958_v60, %v10347_v24  ;;  %v4870_v50 = vpop.f32.mrb[161].mxu0 }
 0xa21   : > { %v10348_v31 = vpop.f32.mrb[162].mxu0  ;;  %v14422_v23 = vadd.f32 %v13958_v60, %v4870_v50 }
 0xa22   : > { %v14418_v1 = vadd.f32 %v13958_v60, %v10348_v31  ;;  %4937 = vmax.xlane.f32.xlu0 %v14415_v28  ;;  %v4873_v5 = vpop.f32.mrb[163].mxu0 }
 0xa23   : > { %v14426_v39 = vadd.f32 %v13958_v60, %v4873_v5 }
 0xa24   : > { %4939 = vmax.xlane.f32.xlu1 %v14418_v1 }
 0xa26   : > { %4933 = vmax.xlane.f32.xlu0 %v14422_v23 }
 0xa27   : > { %v10351_v24 = vpop.f32.mrb[164].mxu0 }
 0xa28   : > { %v4886_v33 = vpop.f32.mrb[165].mxu0  ;;  %4935 = vmax.xlane.f32.xlu1 %v14426_v39  ;;  %v14435_v51 = vadd.f32 %v13958_v60, %v10351_v24 }
 0xa29   : > { %v10352_v9 = vpop.f32.mrb[166].mxu0  ;;  %v14438_v12 = vadd.f32 %v13958_v60, %v4886_v33 }
 0xa2a   : > { %v4889_v31 = vpop.f32.mrb[167].mxu0  ;;  %v14446_v42 = vadd.f32 %v13958_v60, %v10352_v9 }
 0xa2b   : > { %v14454_v33 = vadd.f32 %v13958_v60, %v4889_v31 }
 0xa2f   : > { %v10355_v15 = vpop.f32.mrb[168].mxu0 }
 0xa30   : > { %v4902_v30 = vpop.f32.mrb[169].mxu0  ;;  %v14462_v9 = vadd.f32 %v13958_v60, %v10355_v15 }
 0xa31   : > { %v10356_v2 = vpop.f32.mrb[170].mxu0  ;;  %v14442_v14 = vadd.f32 %v13958_v60, %v4902_v30 }
 0xa32   : > { %v4905_v38 = vpop.f32.mrb[171].mxu0 }
 0xa33   : > { %v14450_v41 = vadd.f32 %v13958_v60, %v4905_v38  ;;  %v14467_v38 = vadd.f32 %v13958_v60, %v10356_v2 }
 0xa37   : > { %v10359_v61 = vpop.f32.mrb[172].mxu0 }
 0xa38   : > { %v4918_v50 = vpop.f32.mrb[173].mxu0  ;;  %v14458_v30 = vadd.f32 %v13958_v60, %v10359_v61 }
 0xa39   : > { %v10360_v6 = vpop.f32.mrb[174].mxu0  ;;  %5220 = vrot.lane.b32.xlu1 %v18169_v58, %s12606_s23  ;;  %v14471_v24 = vadd.f32 %v13958_v60, %v4918_v50 }
 0xa3a   : > { %v4921_v5 = vpop.f32.mrb[175].mxu0  ;;  %v14475_v61 = vadd.f32 %v13958_v60, %v10360_v6  ;;  %v5217_v6 = vpop.permute.xlu1 %5216 }
 0xa3b   : > { %v14479_v15 = vadd.f32 %v13958_v60, %v4921_v5  ;;  %v5219_v60 = vpop.permute.xlu0 %5218 }
 0xa3c   : > { %5222 = vrot.lane.b32.xlu0 %v18170_v46, %s12606_s23 }
 0xa5b   : > { %4945 = vmax.xlane.f32.xlu0 %v14435_v51 }
 0xa5d   : > { %4941 = vmax.xlane.f32.xlu1 %v14438_v12 }
 0xa5f   : > { %4949 = vmax.xlane.f32.xlu0 %v14442_v14 }
 0xa61   : > { %4947 = vmax.xlane.f32.xlu1 %v14446_v42 }
 0xa63   : > { %4951 = vmax.xlane.f32.xlu0 %v14450_v41 }
 0xa65   : > { %4943 = vmax.xlane.f32.xlu1 %v14454_v33 }
 0xa67   : > { %4961 = vmax.xlane.f32.xlu0 %v14458_v30 }
 0xa69   : > { %4953 = vmax.xlane.f32.xlu1 %v14462_v9 }
 0xa6d   : > { %4955 = vmax.xlane.f32.xlu1 %v14467_v38 }
 0xa71   : > { %4957 = vmax.xlane.f32.xlu1 %v14471_v24 }
 0xa75   : > { %4963 = vmax.xlane.f32.xlu1 %v14475_v61 }
 0xa79   : > { %4959 = vmax.xlane.f32.xlu1 %v14479_v15 }
 0xa7d   : > { %5226 = vrot.lane.b32.xlu0 %v18172_v8, %s12606_s23 }
 0xa81   : > { %5228 = vrot.lane.b32.xlu0 %v18175_v13, %s12606_s23 }
 0xa85   : > { %5190 = vrot.lane.b32.xlu0 %v18186_v52, %s12606_s23 }
 0xa89   : > { %5194 = vrot.lane.b32.xlu0 %v18188_v32, %s12606_s23 }
 0xa8a   : > { %5224 = vrot.lane.b32.xlu1 %v18171_v47, %s12606_s23 }
 0xa8d   : > { %5198 = vrot.lane.b32.xlu0 %v18190_v45, %s12606_s23 }
 0xa8e   : > { %5192 = vrot.lane.b32.xlu1 %v18187_v53, %s12606_s23 }
 0xa91   : > { %5202 = vrot.lane.b32.xlu0 %v18192_v40, %s12606_s23 }
 0xa92   : > { %5196 = vrot.lane.b32.xlu1 %v18189_v17, %s12606_s23 }
 0xa95   : > { %5503 = vrot.lane.b32.xlu0 %v13293_v4, %s12606_s23 }
 0xa96   : > { %5200 = vrot.lane.b32.xlu1 %v18191_v7, %s12606_s23 }
 0xa99   : > { %5507 = vrot.lane.b32.xlu0 %v13329_v57, %s12606_s23 }
 0xa9a   : > { %5204 = vrot.lane.b32.xlu1 %v18193_v20, %s12606_s23 }
 0xa9d   : > { %5515 = vrot.lane.b32.xlu0 %v18144_v22, %s12606_s23 }
 0xa9e   : > { %5505 = vrot.lane.b32.xlu1 %v13311_v62, %s12606_s23 }
 0xaa1   : > { %5672 = vrot.lane.b32.xlu0 %v18163_v26, %s12607_s14 }
 0xaa2   : > { %5509 = vrot.lane.b32.xlu1 %v13347_v10, %s12606_s23 }
 0xaa5   : > { %5674 = vrot.lane.b32.xlu0 %v18162_v55, %s12607_s14 }
 0xaa6   : > { %5511 = vrot.lane.b32.xlu1 %v13365_v44, %s12606_s23 }
 0xaa9   : > { %5678 = vrot.lane.b32.xlu0 %v18169_v58, %s12607_s14 }
 0xaaa   : > { %5513 = vrot.lane.b32.xlu1 %v13383_v37, %s12606_s23 }
 0xaae   : > { %5517 = vrot.lane.b32.xlu1 %v18145_v27, %s12606_s23 }
 0xaaf   : > { %v4938_v2 = vpop.xlane.xlu0 %4937 }
 0xab0   : > { %v4967_v5 = vsub.f32 %v14415_v28, %v4938_v2 }
 0xab1   : > { %v4940_v31 = vpop.xlane.xlu1 %4939 }
 0xab2   : > { %v4968_v50 = vsub.f32 %v14418_v1, %v4940_v31  ;;  %5676 = vrot.lane.b32.xlu1 %v18164_v19, %s12607_s14  ;;  %v4985_v48 = vmul.f32 1.442695, %v4967_v5 }
 0xab3   : > { %v4934_v36 = vpop.xlane.xlu0 %4933 }
 0xab4   : > { %v4987_v18 = vmul.f32 1.442695, %v4968_v50  ;;  %v4965_v54 = vsub.f32 %v14422_v23, %v4934_v36 }
 0xab5   : > { %v4936_v25 = vpop.xlane.xlu1 %4935 }
 0xab6   : > { %v4981_v29 = vmul.f32 1.442695, %v4965_v54  ;;  %v4966_v34 = vsub.f32 %v14426_v39, %v4936_v25  ;;  %11763 = vpow2.f32 %v4987_v18  ;;  %v5261_v54 = vsel %vm3019_vm0, %v5219_v60, 0 }
 0xab7   : > { %v5223_v18 = vpop.permute.xlu0 %5222 }
 0xab8   : > { %v4983_v59 = vmul.f32 1.442695, %v4966_v34  ;;  %11765 = vpow2.f32 %v4981_v29  ;;  %v5255_v29 = vsel %vm3019_vm0, %v14342_v11, 0  ;;  %v5267_v11 = vsel %vm3019_vm0, %v5223_v18, 0 }
 0xab9   : > { %v5221_v34 = vpop.permute.xlu1 %5220 }
 0xaba   : > { %11767 = vpow2.f32 %v4983_v59  ;;  %v5258_v59 = vsel %vm3019_vm0, %v5217_v6, 0 }
 0xabb   : > { %11769 = vpow2.f32 %v4985_v48  ;;  %v5264_v48 = vsel %vm3019_vm0, %v5221_v34, 0 }
 0xac0   : > { %v14532_v1 = vpop.eup %11763 }
 0xac1   : > { %18210 = vst [vmem:[#allocation157_spill] sm:$0xff] %v14532_v1 }
 0xac2   : > { %v14534_v31 = vpop.eup %11765 }
 0xac3   : > { %18211 = vst [vmem:[#allocation158_spill] sm:$0xff] %v14534_v31 }
 0xac4   : > { %v14536_v35 = vpop.eup %11767 }
 0xac5   : > { %18212 = vst [vmem:[#allocation159_spill] sm:$0xff] %v14536_v35  ;;  %v14538_v28 = vpop.eup %11769  ;;  %v5045_v36 = vpack.c.bf16 %v14536_v35, %v14534_v31 }
 0xac6   : > { %18213 = vst [vmem:[#allocation160_spill] sm:$0xff] %v14538_v28  ;;  %v5046_v25 = vpack.c.bf16 %v14532_v1, %v14538_v28 }
 0xac7   : > { %10377 = vmatprep.mubr.bf16.mxu1 %v5045_v36 }
 0xac8   : > { %10378 = vmatmul.mubr.bf16.vlgmr.msra.gmra.mrb[144].mxu1 %v5046_v25 }
 0xac9   : > { %10394 = vmatpush3.bf16.xpose.msra.mxu1 %v5255_v29 }
 0xaca   : > { %11138 = vmatprep.subr.msk.bf16.mxu1 %vm3019_vm0, %v5217_v6 }
 0xad1   : > { %10396 = vmatpush3.bf16.xpose.msra.mxu1 %v5258_v59 }
 0xad2   : > { %11139 = vmatprep.subr.msk.bf16.mxu1 %vm3019_vm0, %v5219_v60 }
 0xad9   : > { %10398 = vmatpush3.bf16.xpose.msra.mxu1 %v5261_v54 }
 0xada   : > { %11140 = vmatprep.subr.msk.bf16.mxu1 %vm3019_vm0, %v5221_v34 }
 0xae1   : > { %10400 = vmatpush3.bf16.xpose.msra.mxu1 %v5264_v48 }
 0xae2   : > { %11141 = vmatprep.subr.msk.bf16.mxu1 %vm3019_vm0, %v5223_v18 }
 0xae8   : > { %v4946_v39 = vpop.xlane.xlu0 %4945 }
 0xae9   : > { %10402 = vmatpush3.bf16.xpose.msra.mxu1 %v5267_v11  ;;  %v4971_v5 = vsub.f32 %v14435_v51, %v4946_v39 }
 0xaea   : > { %v4942_v23 = vpop.xlane.xlu1 %4941 }
 0xaeb   : > { %v4969_v6 = vsub.f32 %v14438_v12, %v4942_v23  ;;  %v4993_v11 = vmul.f32 1.442695, %v4971_v5 }
 0xaec   : > { %v4950_v2 = vpop.xlane.xlu0 %4949 }
 0xaed   : > { %v4989_v36 = vmul.f32 1.442695, %v4969_v6  ;;  %v4973_v29 = vsub.f32 %v14442_v14, %v4950_v2 }
 0xaee   : > { %v4948_v50 = vpop.xlane.xlu1 %4947 }
 0xaef   : > { %v4972_v60 = vsub.f32 %v14446_v42, %v4948_v50  ;;  %11771 = vpow2.f32 %v4989_v36  ;;  %v4997_v23 = vmul.f32 1.442695, %v4973_v29 }
 0xaf0   : > { %v4952_v25 = vpop.xlane.xlu0 %4951 }
 0xaf1   : > { %v4995_v59 = vmul.f32 1.442695, %v4972_v60  ;;  %v4974_v54 = vsub.f32 %v14450_v41, %v4952_v25 }
 0xaf2   : > { %v4944_v34 = vpop.xlane.xlu1 %4943 }
 0xaf3   : > { %v4999_v48 = vmul.f32 1.442695, %v4974_v54  ;;  %v4970_v18 = vsub.f32 %v14454_v33, %v4944_v34  ;;  %11773 = vpow2.f32 %v4995_v59 }
 0xaf4   : > { %v4962_v12 = vpop.xlane.xlu0 %4961 }
 0xaf5   : > { %v4991_v28 = vmul.f32 1.442695, %v4970_v18  ;;  %11775 = vpow2.f32 %v4999_v48  ;;  %v4979_v18 = vsub.f32 %v14458_v30, %v4962_v12 }
 0xaf6   : > { %v4954_v42 = vpop.xlane.xlu1 %4953 }
 0xaf7   : > { %11777 = vpow2.f32 %v4991_v28  ;;  %v4975_v51 = vsub.f32 %v14462_v9, %v4954_v42 }
 0xaf8   : > { %11779 = vpow2.f32 %v4993_v11  ;;  %v5227_v14 = vpop.permute.xlu0 %5226 }
 0xaf9   : > { %11781 = vpow2.f32 %v4997_v23  ;;  %v5001_v39 = vmul.f32 1.442695, %v4975_v51  ;;  %v14564_v50 = vpop.eup %11771 }
 0xafa   : > { %v4956_v41 = vpop.xlane.xlu1 %4955  ;;  %18214 = vst [vmem:[#allocation161_spill] sm:$0xff] %v14564_v50 }
 0xafb   : > { %v4976_v6 = vsub.f32 %v14467_v38, %v4956_v41  ;;  %11783 = vpow2.f32 %v5001_v39 }
 0xafc   : > { %v14562_v2 = vpop.permute.xlu0 %5228 }
 0xafd   : > { %v5003_v33 = vmul.f32 1.442695, %v4976_v6  ;;  %v14566_v5 = vpop.eup %11773 }
 0xafe   : > { %v4958_v60 = vpop.xlane.xlu1 %4957  ;;  %18215 = vst [vmem:[#allocation162_spill] sm:$0xff] %v14566_v5 }
 0xaff   : > { %11785 = vpow2.f32 %v5003_v33  ;;  %v14568_v28 = vpop.eup %11775  ;;  %v4977_v25 = vsub.f32 %v14471_v24, %v4958_v60 }
 0xb00   : > { %18216 = vst [vmem:[#allocation163_spill] sm:$0xff] %v14568_v28  ;;  %v5191_v9 = vpop.permute.xlu0 %5190 }
 0xb01   : > { %v14570_v36 = vpop.eup %11777  ;;  %v5005_v23 = vmul.f32 1.442695, %v4977_v25 }
 0xb02   : > { %18217 = vst [vmem:[#allocation164_spill] sm:$0xff] %v14570_v36  ;;  %v14573_v29 = vpop.eup %11779  ;;  %v4964_v38 = vpop.xlane.xlu1 %4963  ;;  %v5047_v59 = vpack.c.bf16 %v14570_v36, %v14564_v50 }
 0xb03   : > { %18218 = vst [vmem:[#allocation165_spill] sm:$0xff] %v14573_v29  ;;  %v14577_v54 = vpop.eup %11781  ;;  %v4980_v34 = vsub.f32 %v14475_v61, %v4964_v38  ;;  %v5048_v48 = vpack.c.bf16 %v14566_v5, %v14573_v29  ;;  %v5009_v61 = vmul.f32 1.442695, %v4979_v18  ;;  %11787 = vpow2.f32 %v5005_v23 }
 0xb04   : > { %18219 = vst [vmem:[#allocation166_spill] sm:$0xff] %v14577_v54  ;;  %10381 = vmatprep.mubr.bf16.mxu1 %v5047_v59  ;;  %v5195_v11 = vpop.permute.xlu0 %5194  ;;  %v5049_v24 = vpack.c.bf16 %v14568_v28, %v14577_v54  ;;  %v5273_v18 = vsel %vm3019_vm0, %v5227_v14, 0 }
 0xb05   : > { %10382 = vmatmul.mubr.bf16.gmra.mrb[148].mxu1 %v5048_v48  ;;  %v5011_v42 = vmul.f32 1.442695, %v4980_v34  ;;  %v14586_v41 = vpop.eup %11783 }
 0xb06   : > { %v4960_v51 = vpop.xlane.xlu1 %4959  ;;  %10385 = vmatprep.mubr.bf16.mxu1 %v5049_v24  ;;  %18220 = vst [vmem:[#allocation167_spill] sm:$0xff] %v14586_v41 }
 0xb07   : > { %v4978_v39 = vsub.f32 %v14479_v15, %v4960_v51  ;;  %11789 = vpow2.f32 %v5011_v42 }
 0xb08   : > { %v5199_v6 = vpop.permute.xlu0 %5198 }
 0xb09   : > { %v14588_v33 = vpop.eup %11785  ;;  %v5007_v30 = vmul.f32 1.442695, %v4978_v39 }
 0xb0a   : > { %18221 = vst [vmem:[#allocation168_spill] sm:$0xff] %v14588_v33  ;;  %v5225_v12 = vpop.permute.xlu1 %5224  ;;  %v5050_v60 = vpack.c.bf16 %v14588_v33, %v14586_v41 }
 0xb0b   : > { %11791 = vpow2.f32 %v5007_v30  ;;  %11142 = vmatprep.subr.msk.bf16.mxu1 %vm3019_vm0, %v5225_v12  ;;  %v5270_v25 = vsel %vm3019_vm0, %v5225_v12, 0  ;;  %v5276_v30 = vsel %vm3019_vm0, %v14562_v2, 0 }
 0xb0c   : > { %11793 = vpow2.f32 %v5009_v61  ;;  %10404 = vmatpush3.bf16.xpose.msra.mxu1 %v5270_v25  ;;  %v5203_v15 = vpop.permute.xlu0 %5202 }
 0xb0d   : > { %10386 = vmatmul.mubr.bf16.gmra.mrb[152].mxu1 %v5050_v60  ;;  %11143 = vmatprep.subr.msk.bf16.mxu1 %vm3019_vm0, %v5227_v14  ;;  %v14595_v48 = vpop.eup %11787 }
 0xb0e   : > { %v5193_v38 = vpop.permute.xlu1 %5192  ;;  %18222 = vst [vmem:[#allocation169_spill] sm:$0xff] %v14595_v48 }
 0xb10   : > { %v5504_v59 = vpop.permute.xlu0 %5503 }
 0xb11   : > { %10425 = vmatprep.subr.bf16.mxu0 %v5504_v59  ;;  %v14598_v24 = vpop.eup %11789 }
 0xb12   : > { %v5197_v34 = vpop.permute.xlu1 %5196  ;;  %10426 = vmatpush3.bf16.msra.mxu0 %v5504_v59  ;;  %18223 = vst [vmem:[#allocation170_spill] sm:$0xff] %v14598_v24 }
 0xb14   : > { %10406 = vmatpush3.bf16.xpose.msra.mxu1 %v5273_v18  ;;  %v5508_v60 = vpop.permute.xlu0 %5507 }
 0xb15   : > { %v14600_v23 = vpop.eup %11791  ;;  %11144 = vmatprep.subr.msk.bf16.mxu1 %vm3019_vm0, %v14562_v2 }
 0xb16   : > { %18224 = vst [vmem:[#allocation171_spill] sm:$0xff] %v14600_v23  ;;  %v14604_v42 = vpop.eup %11793  ;;  %v5201_v51 = vpop.permute.xlu1 %5200  ;;  %v5051_v39 = vpack.c.bf16 %v14600_v23, %v14595_v48 }
 0xb17   : > { %18225 = vst [vmem:[#allocation172_spill] sm:$0xff] %v14604_v42  ;;  %v5052_v61 = vpack.c.bf16 %v14598_v24, %v14604_v42 }
 0xb18   : > { %10389 = vmatprep.mubr.bf16.mxu1 %v5051_v39  ;;  %v5516_v2 = vpop.permute.xlu0 %5515 }
 0xb19   : > { %10390 = vmatmul.mubr.bf16.gmra.mrb[156].mxu1 %v5052_v61 }
 0xb1a   : > { %v5205_v14 = vpop.permute.xlu1 %5204  ;;  %10409 = vmatprep.mubr.msk.bf16.mxu1 %vm3019_vm0, %v5191_v9 }
 0xb1c   : > { %10408 = vmatpush3.bf16.xpose.msra.mxu1 %v5276_v30 }
 0xb1e   : > { %v5506_v12 = vpop.permute.xlu1 %5505 }
 0xb1f   : > { %10427 = vmatprep.subr.bf16.mxu0 %v5506_v12 }
 0xb20   : > { %10428 = vmatpush3.bf16.msra.mxu0 %v5506_v12 }
 0xb21   : > { %10429 = vmatprep.subr.bf16.mxu0 %v5508_v60 }
 0xb22   : > { %v5510_v25 = vpop.permute.xlu1 %5509 }
 0xb23   : > { %10410 = vmatmul.mubr.msk.bf16.vlgmr.msra.gmra.mrb[160].mxu1 %vm3019_vm0, %v5193_v38 }
 0xb24   : > { %10413 = vmatprep.mubr.msk.bf16.mxu1 %vm3019_vm0, %v5195_v11  ;;  %10430 = vmatpush3.bf16.msra.mxu0 %v5508_v60  ;;  %v14619_v11 = vpop.permute.xlu0 %5672 }
 0xb25   : > { %10431 = vmatprep.subr.bf16.mxu0 %v5510_v25 }
 0xb26   : > { %v5512_v59 = vpop.permute.xlu1 %5511 }
 0xb28   : > { %10432 = vmatpush3.bf16.msra.mxu0 %v5510_v25 }
 0xb29   : > { %10433 = vmatprep.subr.bf16.mxu0 %v5512_v59 }
 0xb2a   : > { %v5514_v9 = vpop.permute.xlu1 %5513 }
 0xb2b   : > { %10414 = vmatmul.mubr.msk.bf16.gmra.mrb[164].mxu1 %vm3019_vm0, %v5197_v34 }
 0xb2c   : > { %10417 = vmatprep.mubr.msk.bf16.mxu1 %vm3019_vm0, %v5199_v6  ;;  %10434 = vmatpush3.bf16.msra.mxu0 %v5512_v59 }
 0xb2d   : > { %10435 = vmatprep.subr.bf16.mxu0 %v5514_v9 }
 0xb2e   : > { %v5518_v38 = vpop.permute.xlu1 %5517 }
 0xb30   : > { %10436 = vmatpush3.bf16.msra.mxu0 %v5514_v9 }
 0xb31   : > { %10437 = vmatprep.subr.bf16.mxu0 %v5516_v2 }
 0xb33   : > { %10418 = vmatmul.mubr.msk.bf16.gmra.mrb[168].mxu1 %vm3019_vm0, %v5201_v51 }
 0xb34   : > { %10421 = vmatprep.mubr.msk.bf16.mxu1 %vm3019_vm0, %v5203_v15  ;;  %10438 = vmatpush3.bf16.msra.mxu0 %v5516_v2 }
 0xb35   : > { %10439 = vmatprep.subr.bf16.mxu0 %v5518_v38 }
 0xb38   : > { %10440 = vmatpush3.bf16.msra.mxu0 %v5518_v38 }
 0xb39   : > { %11145 = vmatprep.subr.msk.bf16.mxu0 %vm3019_vm0, %v14619_v11 }
 0xb3b   : > { %10422 = vmatmul.mubr.msk.bf16.gmra.mrb[172].mxu1 %vm3019_vm0, %v5205_v14 }
 0xb9b   : > { %v14624_v6 = vpop.f32.mrb[144].mxu1 }
 0xb9c   : > { %18226 = vst [vmem:[#allocation173_spill] sm:$0xff] %v14624_v6  ;;  %v14626_v34 = vpop.f32.mrb[145].mxu1 }
 0xb9d   : > { %18227 = vst [vmem:[#allocation174_spill] sm:$0xff] %v14626_v34  ;;  %v14628_v18 = vpop.f32.mrb[146].mxu1 }
 0xb9e   : > { %18228 = vst [vmem:[#allocation175_spill] sm:$0xff] %v14628_v18  ;;  %v14630_v51 = vpop.f32.mrb[147].mxu1 }
 0xb9f   : > { %18229 = vst [vmem:[#allocation176_spill] sm:$0xff] %v14630_v51 }
 0xbd8   : > { %v14632_v15 = vpop.f32.mrb[148].mxu1 }
 0xbd9   : > { %18230 = vst [vmem:[#allocation177_spill] sm:$0xff] %v14632_v15  ;;  %v14634_v39 = vpop.f32.mrb[149].mxu1 }
 0xbda   : > { %18231 = vst [vmem:[#allocation178_spill] sm:$0xff] %v14634_v39  ;;  %v14636_v61 = vpop.f32.mrb[150].mxu1  ;;  %v14657_v39 = vld [vmem:[%s13466_s13] ss:$0 sm:$0xff] }
 0xbdb   : > { %18232 = vst [vmem:[#allocation179_spill] sm:$0xff] %v14636_v61  ;;  %v14638_v30 = vpop.f32.mrb[151].mxu1 }
 0xbdc   : > { %18233 = vst [vmem:[#allocation180_spill] sm:$0xff] %v14638_v30 }
 0xbe0   : > { %v14640_v12 = vpop.f32.mrb[152].mxu1 }
 0xbe1   : > { %18234 = vst [vmem:[#allocation181_spill] sm:$0xff] %v14640_v12  ;;  %v14642_v14 = vpop.f32.mrb[153].mxu1 }
 0xbe2   : > { %18235 = vst [vmem:[#allocation182_spill] sm:$0xff] %v14642_v14  ;;  %v14644_v60 = vpop.f32.mrb[154].mxu1 }
 0xbe3   : > { %18236 = vst [vmem:[#allocation183_spill] sm:$0xff] %v14644_v60  ;;  %v14646_v25 = vpop.f32.mrb[155].mxu1 }
 0xbe4   : > { %18237 = vst [vmem:[#allocation184_spill] sm:$0xff] %v14646_v25 }
 0xbec   : > { %v14648_v59 = vpop.f32.mrb[156].mxu1 }
 0xbed   : > { %18238 = vst [vmem:[#allocation185_spill] sm:$0xff] %v14648_v59  ;;  %v14650_v9 = vpop.f32.mrb[157].mxu1 }
 0xbee   : > { %18239 = vst [vmem:[#allocation186_spill] sm:$0xff] %v14650_v9  ;;  %v14652_v2 = vpop.f32.mrb[158].mxu1 }
 0xbef   : > { %18240 = vst [vmem:[#allocation187_spill] sm:$0xff] %v14652_v2  ;;  %v14654_v38 = vpop.f32.mrb[159].mxu1 }
 0xbf0   : > { %18241 = vst [vmem:[#allocation188_spill] sm:$0xff] %v14654_v38 }
 0xbf6   : > { %v10411_v15 = vpop.f32.mrb[160].mxu1 }
 0xbf7   : > { %v14660_v6 = vadd.f32 %v14657_v39, %v10411_v15  ;;  %v5312_v12 = vpop.f32.mrb[161].mxu1 }
 0xbf8   : > { %v10412_v14 = vpop.f32.mrb[162].mxu1  ;;  %v14667_v59 = vadd.f32 %v14657_v39, %v5312_v12 }
 0xbf9   : > { %5379 = vmax.xlane.f32.xlu0 %v14660_v6  ;;  %v5315_v60 = vpop.f32.mrb[163].mxu1  ;;  %v14672_v2 = vadd.f32 %v14657_v39, %v10412_v14 }
 0xbfa   : > { %v14664_v25 = vadd.f32 %v14657_v39, %v5315_v60 }
 0xbfc   : > { %5377 = vmax.xlane.f32.xlu1 %v14664_v25 }
 0xbfd   : > { %5375 = vmax.xlane.f32.xlu0 %v14667_v59 }
 0xbfe   : > { %v10415_v9 = vpop.f32.mrb[164].mxu1 }
 0xbff   : > { %v14675_v15 = vadd.f32 %v14657_v39, %v10415_v9  ;;  %v5328_v38 = vpop.f32.mrb[165].mxu1 }
 0xc00   : > { %v10416_v61 = vpop.f32.mrb[166].mxu1  ;;  %v14683_v34 = vadd.f32 %v14657_v39, %v5328_v38 }
 0xc01   : > { %5381 = vmax.xlane.f32.xlu0 %v14672_v2  ;;  %5387 = vmax.xlane.f32.xlu1 %v14675_v15  ;;  %v5331_v60 = vpop.f32.mrb[167].mxu1  ;;  %v14688_v9 = vadd.f32 %v14657_v39, %v10416_v61 }
 0xc02   : > { %v14680_v12 = vadd.f32 %v14657_v39, %v5331_v60 }
 0xc05   : > { %5385 = vmax.xlane.f32.xlu0 %v14680_v12  ;;  %5383 = vmax.xlane.f32.xlu1 %v14683_v34 }
 0xc06   : > { %v10419_v14 = vpop.f32.mrb[168].mxu1 }
 0xc07   : > { %v14691_v30 = vadd.f32 %v14657_v39, %v10419_v14  ;;  %v5344_v18 = vpop.f32.mrb[169].mxu1 }
 0xc08   : > { %v10420_v51 = vpop.f32.mrb[170].mxu1  ;;  %v14696_v38 = vadd.f32 %v14657_v39, %v5344_v18 }
 0xc09   : > { %5389 = vmax.xlane.f32.xlu1 %v14688_v9  ;;  %5395 = vmax.xlane.f32.xlu0 %v14691_v30  ;;  %v5347_v60 = vpop.f32.mrb[171].mxu1  ;;  %v14700_v48 = vadd.f32 %v14657_v39, %v10420_v51 }
 0xc0a   : > { %v14708_v29 = vadd.f32 %v14657_v39, %v5347_v60 }
 0xc0d   : > { %5391 = vmax.xlane.f32.xlu1 %v14696_v38 }
 0xc0e   : > { %v10423_v42 = vpop.f32.mrb[172].mxu1 }
 0xc0f   : > { %v5360_v61 = vpop.f32.mrb[173].mxu1  ;;  %v14712_v18 = vadd.f32 %v14657_v39, %v10423_v42  ;;  %v14771_v42 = vpop.permute.xlu1 %5676 }
 0xc10   : > { %v14703_v14 = vadd.f32 %v14657_v39, %v5360_v61  ;;  %v10424_v41 = vpop.f32.mrb[174].mxu1 }
 0xc11   : > { %5397 = vmax.xlane.f32.xlu1 %v14700_v48  ;;  %v5363_v54 = vpop.f32.mrb[175].mxu1  ;;  %v14716_v51 = vadd.f32 %v14657_v39, %v10424_v41 }
 0xc12   : > { %5399 = vmax.xlane.f32.xlu0 %v14703_v14  ;;  %v14734_v41 = vadd.f32 %v14657_v39, %v5363_v54 }
 0xc15   : > { %5393 = vmax.xlane.f32.xlu1 %v14708_v29 }
 0xc19   : > { %5403 = vmax.xlane.f32.xlu1 %v14712_v18 }
 0xc1d   : > { %5405 = vmax.xlane.f32.xlu1 %v14716_v51 }
 0xc28   : > { %5682 = vrot.lane.b32.xlu0 %v18171_v47, %s12607_s14 }
 0xc2e   : > { %5680 = vrot.lane.b32.xlu1 %v18170_v46, %s12607_s14 }
 0xc32   : > { %5658 = vrot.lane.b32.xlu1 %v18187_v53, %s12607_s14 }
 0xc36   : > { %5662 = vrot.lane.b32.xlu1 %v18189_v17, %s12607_s14 }
 0xc3a   : > { %5666 = vrot.lane.b32.xlu1 %v18191_v7, %s12607_s14 }
 0xc3e   : > { %5670 = vrot.lane.b32.xlu1 %v18193_v20, %s12607_s14 }
 0xc42   : > { %5955 = vrot.lane.b32.xlu1 %v13311_v62, %s12607_s14 }
 0xc46   : > { %5959 = vrot.lane.b32.xlu1 %v13347_v10, %s12607_s14 }
 0xc47   : > { %5401 = vmax.xlane.f32.xlu0 %v14734_v41 }
 0xc4a   : > { %5961 = vrot.lane.b32.xlu1 %v13365_v44, %s12607_s14 }
 0xc4e   : > { %5963 = vrot.lane.b32.xlu1 %v13383_v37, %s12607_s14 }
 0xc52   : > { %5967 = vrot.lane.b32.xlu1 %v18145_v27, %s12607_s14 }
 0xc56   : > { %6126 = vrot.lane.b32.xlu1 %v18164_v19, %s12608_s21  ;;  %v14763_v19 = vpop.permute.xlu0 %5674 }
 0xc5a   : > { %v14769_v54 = vpop.permute.xlu0 %5678 }
 0xc5d   : > { %5684 = vrot.lane.b32.xlu0 %v18172_v8, %s12607_s14 }
 0xc61   : > { %5686 = vrot.lane.b32.xlu0 %v18175_v13, %s12607_s14 }
 0xc65   : > { %5656 = vrot.lane.b32.xlu0 %v18186_v52, %s12607_s14 }
 0xc69   : > { %5660 = vrot.lane.b32.xlu0 %v18188_v32, %s12607_s14 }
 0xc6d   : > { %5664 = vrot.lane.b32.xlu0 %v18190_v45, %s12607_s14 }
 0xc71   : > { %5668 = vrot.lane.b32.xlu0 %v18192_v40, %s12607_s14 }
 0xc75   : > { %5953 = vrot.lane.b32.xlu0 %v13293_v4, %s12607_s14 }
 0xc79   : > { %5957 = vrot.lane.b32.xlu0 %v13329_v57, %s12607_s14 }
 0xc7d   : > { %5965 = vrot.lane.b32.xlu0 %v18144_v22, %s12607_s14 }
 0xc81   : > { %6122 = vrot.lane.b32.xlu0 %v18163_v26, %s12608_s21 }
 0xc85   : > { %6124 = vrot.lane.b32.xlu0 %v18162_v55, %s12608_s21 }
 0xc86   : > { %v5380_v60 = vpop.xlane.xlu0 %5379 }
 0xc87   : > { %v5409_v31 = vsub.f32 %v14660_v6, %v5380_v60 }
 0xc89   : > { %v5378_v61 = vpop.xlane.xlu1 %5377  ;;  %6128 = vrot.lane.b32.xlu0 %v18169_v58, %s12608_s21  ;;  %v5427_v36 = vmul.f32 1.442695, %v5409_v31 }
 0xc8a   : > { %v5408_v50 = vsub.f32 %v14664_v25, %v5378_v61  ;;  %v5376_v24 = vpop.xlane.xlu0 %5375 }
 0xc8b   : > { %v5407_v23 = vsub.f32 %v14667_v59, %v5376_v24 }
 0xc8c   : > { %v5425_v26 = vmul.f32 1.442695, %v5408_v50 }
 0xc8d   : > { %v5423_v33 = vmul.f32 1.442695, %v5407_v23 }
 0xc8e   : > { %11795 = vpow2.f32 %v5425_v26  ;;  %v5388_v28 = vpop.xlane.xlu1 %5387  ;;  %v5382_v5 = vpop.xlane.xlu0 %5381 }
 0xc8f   : > { %11797 = vpow2.f32 %v5423_v33  ;;  %v5410_v55 = vsub.f32 %v14672_v2, %v5382_v5  ;;  %v5413_v35 = vsub.f32 %v14675_v15, %v5388_v28 }
 0xc90   : > { %11799 = vpow2.f32 %v5427_v36 }
 0xc91   : > { %v5429_v1 = vmul.f32 1.442695, %v5410_v55  ;;  %v5435_v23 = vmul.f32 1.442695, %v5413_v35  ;;  %v5713_v55 = vsel %vm3019_vm0, %v14619_v11, 0 }
 0xc92   : > { %v5384_v58 = vpop.xlane.xlu1 %5383  ;;  %v5386_v43 = vpop.xlane.xlu0 %5385 }
 0xc93   : > { %v5411_v25 = vsub.f32 %v14683_v34, %v5384_v58  ;;  %v5412_v6 = vsub.f32 %v14680_v12, %v5386_v43  ;;  %11801 = vpow2.f32 %v5429_v1 }
 0xc95   : > { %v5431_v50 = vmul.f32 1.442695, %v5411_v25  ;;  %v5433_v24 = vmul.f32 1.442695, %v5412_v6 }
 0xc96   : > { %v5390_v59 = vpop.xlane.xlu1 %5389  ;;  %v5396_v35 = vpop.xlane.xlu0 %5395 }
 0xc97   : > { %11803 = vpow2.f32 %v5431_v50  ;;  %v5414_v31 = vsub.f32 %v14688_v9, %v5390_v59  ;;  %v5417_v60 = vsub.f32 %v14691_v30, %v5396_v35 }
 0xc98   : > { %v14785_v33 = vpop.eup %11795  ;;  %11805 = vpow2.f32 %v5433_v24 }
 0xc99   : > { %v14787_v5 = vpop.eup %11797  ;;  %v5437_v28 = vmul.f32 1.442695, %v5414_v31  ;;  %11807 = vpow2.f32 %v5435_v23  ;;  %v5443_v50 = vmul.f32 1.442695, %v5417_v60 }
 0xc9a   : > { %18242 = vst [vmem:[#allocation189_spill] sm:$0xff] %v14787_v5  ;;  %v5392_v36 = vpop.xlane.xlu1 %5391  ;;  %v5487_v34 = vpack.c.bf16 %v14785_v33, %v14787_v5  ;;  %v14791_v43 = vpop.eup %11799 }
 0xc9b   : > { %11809 = vpow2.f32 %v5437_v28  ;;  %18243 = vst [vmem:[#allocation190_spill] sm:$0xff] %v14791_v43  ;;  %v5415_v1 = vsub.f32 %v14696_v38, %v5392_v36 }
 0xc9c   : > { %10441 = vmatprep.mubr.bf16.mxu0 %v5487_v34  ;;  %v5719_v34 = vsel %vm3019_vm0, %v14771_v42, 0 }
 0xc9d   : > { %v14794_v2 = vpop.eup %11801  ;;  %v5439_v26 = vmul.f32 1.442695, %v5415_v1 }
 0xc9e   : > { %18244 = vst [vmem:[#allocation191_spill] sm:$0xff] %v14794_v2  ;;  %v5398_v15 = vpop.xlane.xlu1 %5397  ;;  %v5488_v9 = vpack.c.bf16 %v14794_v2, %v14791_v43 }
 0xc9f   : > { %v5418_v12 = vsub.f32 %v14700_v48, %v5398_v15  ;;  %11811 = vpow2.f32 %v5439_v26 }
 0xca0   : > { %10442 = vmatmul.mubr.bf16.vlgmr.msra.gmra.mrb[176].mxu0 %v5488_v9 }
 0xca1   : > { %v14800_v61 = vpop.eup %11803  ;;  %v5445_v38 = vmul.f32 1.442695, %v5418_v12  ;;  %10458 = vmatpush3.bf16.xpose.msra.mxu0 %v5713_v55  ;;  %v5722_v12 = vsel %vm3019_vm0, %v14769_v54, 0 }
 0xca2   : > { %18245 = vst [vmem:[#allocation192_spill] sm:$0xff] %v14800_v61  ;;  %v14804_v58 = vpop.eup %11805  ;;  %v5394_v25 = vpop.xlane.xlu1 %5393  ;;  %11146 = vmatprep.subr.msk.bf16.mxu0 %vm3019_vm0, %v14763_v19 }
 0xca3   : > { %18246 = vst [vmem:[#allocation193_spill] sm:$0xff] %v14804_v58  ;;  %v5416_v48 = vsub.f32 %v14708_v29, %v5394_v25  ;;  %v5489_v30 = vpack.c.bf16 %v14804_v58, %v14800_v61  ;;  %v14811_v6 = vpop.eup %11807  ;;  %11813 = vpow2.f32 %v5445_v38  ;;  %v5716_v29 = vsel %vm3019_vm0, %v14763_v19, 0 }
 0xca4   : > { %18247 = vst [vmem:[#allocation194_spill] sm:$0xff] %v14811_v6 }
 0xca5   : > { %v14813_v24 = vpop.eup %11809  ;;  %v5441_v11 = vmul.f32 1.442695, %v5416_v48  ;;  %10445 = vmatprep.mubr.bf16.mxu0 %v5489_v30 }
 0xca6   : > { %18248 = vst [vmem:[#allocation195_spill] sm:$0xff] %v14813_v24  ;;  %v5490_v23 = vpack.c.bf16 %v14813_v24, %v14811_v6  ;;  %v5404_v59 = vpop.xlane.xlu1 %5403 }
 0xca7   : > { %11815 = vpow2.f32 %v5441_v11 }
 0xca8   : > { %11817 = vpow2.f32 %v5443_v50  ;;  %10446 = vmatmul.mubr.bf16.gmra.mrb[180].mxu0 %v5490_v23 }
 0xca9   : > { %10460 = vmatpush3.bf16.xpose.msra.mxu0 %v5716_v29  ;;  %v14821_v31 = vpop.eup %11811 }
 0xcaa   : > { %11147 = vmatprep.subr.msk.bf16.mxu0 %vm3019_vm0, %v14771_v42  ;;  %18249 = vst [vmem:[#allocation196_spill] sm:$0xff] %v14821_v31  ;;  %v5406_v15 = vpop.xlane.xlu1 %5405  ;;  %v5400_v42 = vpop.xlane.xlu0 %5399 }
 0xcab   : > { %v5419_v38 = vsub.f32 %v14703_v14, %v5400_v42  ;;  %v5422_v25 = vsub.f32 %v14716_v51, %v5406_v15 }
 0xcad   : > { %v14823_v28 = vpop.eup %11813  ;;  %v5447_v48 = vmul.f32 1.442695, %v5419_v38  ;;  %v5453_v30 = vmul.f32 1.442695, %v5422_v25 }
 0xcae   : > { %18250 = vst [vmem:[#allocation197_spill] sm:$0xff] %v14823_v28  ;;  %v5681_v9 = vpop.permute.xlu1 %5680  ;;  %v5683_v26 = vpop.permute.xlu0 %5682 }
 0xcaf   : > { %v5725_v60 = vsel %vm3019_vm0, %v5681_v9, 0  ;;  %v5728_v55 = vsel %vm3019_vm0, %v5683_v26, 0  ;;  %11819 = vpow2.f32 %v5447_v48 }
 0xcb0   : > { %11821 = vpow2.f32 %v5453_v30 }
 0xcb1   : > { %v14825_v36 = vpop.eup %11815  ;;  %10462 = vmatpush3.bf16.xpose.msra.mxu0 %v5719_v34 }
 0xcb2   : > { %18251 = vst [vmem:[#allocation198_spill] sm:$0xff] %v14825_v36  ;;  %v14829_v35 = vpop.eup %11817  ;;  %v5491_v19 = vpack.c.bf16 %v14825_v36, %v14821_v31  ;;  %11148 = vmatprep.subr.msk.bf16.mxu0 %vm3019_vm0, %v14769_v54  ;;  %v5421_v54 = vsub.f32 %v14712_v18, %v5404_v59  ;;  %v5659_v34 = vpop.permute.xlu1 %5658 }
 0xcb3   : > { %18252 = vst [vmem:[#allocation199_spill] sm:$0xff] %v14829_v35  ;;  %v5492_v1 = vpack.c.bf16 %v14823_v28, %v14829_v35 }
 0xcb4   : > { %10449 = vmatprep.mubr.bf16.mxu0 %v5491_v19  ;;  %v5451_v23 = vmul.f32 1.442695, %v5421_v54 }
 0xcb5   : > { %10450 = vmatmul.mubr.bf16.gmra.mrb[184].mxu0 %v5492_v1 }
 0xcb6   : > { %v5663_v18 = vpop.permute.xlu1 %5662 }
 0xcb9   : > { %10464 = vmatpush3.bf16.xpose.msra.mxu0 %v5722_v12  ;;  %v14850_v1 = vpop.eup %11819 }
 0xcba   : > { %11149 = vmatprep.subr.msk.bf16.mxu0 %vm3019_vm0, %v5681_v9  ;;  %18253 = vst [vmem:[#allocation200_spill] sm:$0xff] %v14850_v1  ;;  %v14853_v15 = vpop.eup %11821  ;;  %v5667_v42 = vpop.permute.xlu1 %5666 }
 0xcbb   : > { %18254 = vst [vmem:[#allocation201_spill] sm:$0xff] %v14853_v15 }
 0xcbe   : > { %v5671_v25 = vpop.permute.xlu1 %5670 }
 0xcc1   : > { %10466 = vmatpush3.bf16.xpose.msra.mxu0 %v5725_v60 }
 0xcc2   : > { %11150 = vmatprep.subr.msk.bf16.mxu0 %vm3019_vm0, %v5683_v26  ;;  %v5956_v48 = vpop.permute.xlu1 %5955 }
 0xcc9   : > { %10468 = vmatpush3.bf16.xpose.msra.mxu0 %v5728_v55 }
 0xcd4   : > { %v5402_v50 = vpop.xlane.xlu0 %5401 }
 0xcd5   : > { %v5420_v11 = vsub.f32 %v14734_v41, %v5402_v50  ;;  %v5960_v50 = vpop.permute.xlu1 %5959 }
 0xcd7   : > { %v5449_v29 = vmul.f32 1.442695, %v5420_v11 }
 0xcd8   : > { %v5685_v19 = vpop.permute.xlu0 %5684 }
 0xcd9   : > { %11823 = vpow2.f32 %v5449_v29  ;;  %11151 = vmatprep.subr.msk.bf16.mxu0 %vm3019_vm0, %v5685_v19  ;;  %v5731_v14 = vsel %vm3019_vm0, %v5685_v19, 0 }
 0xcda   : > { %11825 = vpow2.f32 %v5451_v23  ;;  %10470 = vmatpush3.bf16.xpose.msra.mxu0 %v5731_v14  ;;  %v5962_v23 = vpop.permute.xlu1 %5961 }
 0xcdc   : > { %v5687_v51 = vpop.permute.xlu0 %5686 }
 0xcdd   : > { %11152 = vmatprep.subr.msk.bf16.mxu0 %vm3019_vm0, %v5687_v51  ;;  %v5734_v41 = vsel %vm3019_vm0, %v5687_v51, 0 }
 0xcde   : > { %v5964_v29 = vpop.permute.xlu1 %5963 }
 0xce0   : > { %v5657_v59 = vpop.permute.xlu0 %5656 }
 0xce2   : > { %10472 = vmatpush3.bf16.xpose.msra.mxu0 %v5734_v41  ;;  %v5968_v19 = vpop.permute.xlu1 %5967 }
 0xce3   : > { %v14855_v12 = vpop.eup %11823 }
 0xce4   : > { %18255 = vst [vmem:[#allocation202_spill] sm:$0xff] %v14855_v12  ;;  %v14857_v9 = vpop.eup %11825  ;;  %v5661_v60 = vpop.permute.xlu0 %5660  ;;  %v5493_v26 = vpack.c.bf16 %v14855_v12, %v14850_v1 }
 0xce5   : > { %18256 = vst [vmem:[#allocation203_spill] sm:$0xff] %v14857_v9  ;;  %v5494_v55 = vpack.c.bf16 %v14853_v15, %v14857_v9 }
 0xce6   : > { %10453 = vmatprep.mubr.bf16.mxu0 %v5493_v26 }
 0xce7   : > { %10454 = vmatmul.mubr.bf16.gmra.mrb[188].mxu0 %v5494_v55 }
 0xce8   : > { %10473 = vmatprep.mubr.msk.bf16.mxu0 %vm3019_vm0, %v5657_v59  ;;  %v5665_v38 = vpop.permute.xlu0 %5664 }
 0xcec   : > { %v5669_v54 = vpop.permute.xlu0 %5668 }
 0xcef   : > { %10474 = vmatmul.mubr.msk.bf16.vlgmr.msra.gmra.mrb[192].mxu0 %vm3019_vm0, %v5659_v34 }
 0xcf0   : > { %10477 = vmatprep.mubr.msk.bf16.mxu0 %vm3019_vm0, %v5661_v60  ;;  %v5954_v30 = vpop.permute.xlu0 %5953 }
 0xcf1   : > { %10489 = vmatprep.subr.bf16.mxu1 %v5954_v30 }
 0xcf2   : > { %10490 = vmatpush3.bf16.msra.mxu1 %v5954_v30 }
 0xcf3   : > { %10491 = vmatprep.subr.bf16.mxu1 %v5956_v48 }
 0xcf4   : > { %v5958_v11 = vpop.permute.xlu0 %5957 }
 0xcf6   : > { %10492 = vmatpush3.bf16.msra.mxu1 %v5956_v48 }
 0xcf7   : > { %10478 = vmatmul.mubr.msk.bf16.gmra.mrb[196].mxu0 %vm3019_vm0, %v5663_v18  ;;  %10493 = vmatprep.subr.bf16.mxu1 %v5958_v11 }
 0xcf8   : > { %10481 = vmatprep.mubr.msk.bf16.mxu0 %vm3019_vm0, %v5665_v38  ;;  %v5966_v34 = vpop.permute.xlu0 %5965 }
 0xcfa   : > { %10494 = vmatpush3.bf16.msra.mxu1 %v5958_v11 }
 0xcfb   : > { %10495 = vmatprep.subr.bf16.mxu1 %v5960_v50 }
 0xcfc   : > { %v14871_v14 = vpop.permute.xlu0 %6122 }
 0xcfe   : > { %10496 = vmatpush3.bf16.msra.mxu1 %v5960_v50 }
 0xcff   : > { %10482 = vmatmul.mubr.msk.bf16.gmra.mrb[200].mxu0 %vm3019_vm0, %v5667_v42  ;;  %10497 = vmatprep.subr.bf16.mxu1 %v5962_v23 }
 0xd00   : > { %10485 = vmatprep.mubr.msk.bf16.mxu0 %vm3019_vm0, %v5669_v54 }
 0xd02   : > { %10498 = vmatpush3.bf16.msra.mxu1 %v5962_v23 }
 0xd03   : > { %10499 = vmatprep.subr.bf16.mxu1 %v5964_v29 }
 0xd06   : > { %10500 = vmatpush3.bf16.msra.mxu1 %v5964_v29 }
 0xd07   : > { %10486 = vmatmul.mubr.msk.bf16.gmra.mrb[204].mxu0 %vm3019_vm0, %v5671_v25  ;;  %10501 = vmatprep.subr.bf16.mxu1 %v5966_v34 }
 0xd0a   : > { %10502 = vmatpush3.bf16.msra.mxu1 %v5966_v34 }
 0xd0b   : > { %10503 = vmatprep.subr.bf16.mxu1 %v5968_v19 }
 0xd0e   : > { %10504 = vmatpush3.bf16.msra.mxu1 %v5968_v19 }
 0xd0f   : > { %11153 = vmatprep.subr.msk.bf16.mxu1 %vm3019_vm0, %v14871_v14 }
 0xd73   : > { %v14875_v51 = vpop.f32.mrb[176].mxu0 }
 0xd74   : > { %18257 = vst [vmem:[#allocation204_spill] sm:$0xff] %v14875_v51  ;;  %v14877_v18 = vpop.f32.mrb[177].mxu0 }
 0xd75   : > { %18258 = vst [vmem:[#allocation205_spill] sm:$0xff] %v14877_v18  ;;  %v14879_v59 = vpop.f32.mrb[178].mxu0 }
 0xd76   : > { %18259 = vst [vmem:[#allocation206_spill] sm:$0xff] %v14879_v59  ;;  %v14881_v41 = vpop.f32.mrb[179].mxu0 }
 0xd77   : > { %18260 = vst [vmem:[#allocation207_spill] sm:$0xff] %v14881_v41 }
 0xd7b   : > { %v14883_v42 = vpop.f32.mrb[180].mxu0 }
 0xd7c   : > { %18261 = vst [vmem:[#allocation208_spill] sm:$0xff] %v14883_v42  ;;  %v14885_v60 = vpop.f32.mrb[181].mxu0 }
 0xd7d   : > { %18262 = vst [vmem:[#allocation209_spill] sm:$0xff] %v14885_v60  ;;  %v14887_v26 = vpop.f32.mrb[182].mxu0 }
 0xd7e   : > { %18263 = vst [vmem:[#allocation210_spill] sm:$0xff] %v14887_v26  ;;  %v14889_v55 = vpop.f32.mrb[183].mxu0 }
 0xd7f   : > { %18264 = vst [vmem:[#allocation211_spill] sm:$0xff] %v14889_v55 }
 0xd88   : > { %v14891_v38 = vpop.f32.mrb[184].mxu0 }
 0xd89   : > { %18265 = vst [vmem:[#allocation212_spill] sm:$0xff] %v14891_v38  ;;  %v14893_v25 = vpop.f32.mrb[185].mxu0 }
 0xd8a   : > { %18266 = vst [vmem:[#allocation213_spill] sm:$0xff] %v14893_v25  ;;  %v14895_v54 = vpop.f32.mrb[186].mxu0 }
 0xd8b   : > { %18267 = vst [vmem:[#allocation214_spill] sm:$0xff] %v14895_v54  ;;  %v14897_v48 = vpop.f32.mrb[187].mxu0 }
 0xd8c   : > { %18268 = vst [vmem:[#allocation215_spill] sm:$0xff] %v14897_v48 }
 0xdba   : > { %v14899_v30 = vpop.f32.mrb[188].mxu0 }
 0xdbb   : > { %18269 = vst [vmem:[#allocation216_spill] sm:$0xff] %v14899_v30  ;;  %v14901_v50 = vpop.f32.mrb[189].mxu0 }
 0xdbc   : > { %18270 = vst [vmem:[#allocation217_spill] sm:$0xff] %v14901_v50  ;;  %v14903_v11 = vpop.f32.mrb[190].mxu0 }
 0xdbd   : > { %18271 = vst [vmem:[#allocation218_spill] sm:$0xff] %v14903_v11  ;;  %v14905_v23 = vpop.f32.mrb[191].mxu0 }
 0xdbe   : > { %18272 = vst [vmem:[#allocation219_spill] sm:$0xff] %v14905_v23 }
 0xdc2   : > { %v10475_v29 = vpop.f32.mrb[192].mxu0 }
 0xdc3   : > { %v14908_v34 = vadd.f32 %v14657_v39, %v10475_v29  ;;  %v5770_v19 = vpop.f32.mrb[193].mxu0 }
 0xdc4   : > { %v10476_v26 = vpop.f32.mrb[194].mxu0  ;;  %v14915_v48 = vadd.f32 %v14657_v39, %v5770_v19 }
 0xdc5   : > { %5837 = vmax.xlane.f32.xlu0 %v14908_v34  ;;  %v5773_v55 = vpop.f32.mrb[195].mxu0  ;;  %v14920_v23 = vadd.f32 %v14657_v39, %v10476_v26 }
 0xdc6   : > { %v14912_v54 = vadd.f32 %v14657_v39, %v5773_v55 }
 0xdc8   : > { %5835 = vmax.xlane.f32.xlu1 %v14912_v54 }
 0xdc9   : > { %5833 = vmax.xlane.f32.xlu0 %v14915_v48 }
 0xdca   : > { %v10479_v11 = vpop.f32.mrb[196].mxu0 }
 0xdcb   : > { %v14923_v29 = vadd.f32 %v14657_v39, %v10479_v11  ;;  %v5786_v59 = vpop.f32.mrb[197].mxu0 }
 0xdcc   : > { %v10480_v41 = vpop.f32.mrb[198].mxu0  ;;  %v14931_v30 = vadd.f32 %v14657_v39, %v5786_v59 }
 0xdcd   : > { %5839 = vmax.xlane.f32.xlu0 %v14920_v23  ;;  %5845 = vmax.xlane.f32.xlu1 %v14923_v29  ;;  %v5789_v55 = vpop.f32.mrb[199].mxu0  ;;  %v14936_v11 = vadd.f32 %v14657_v39, %v10480_v41 }
 0xdce   : > { %v14928_v19 = vadd.f32 %v14657_v39, %v5789_v55 }
 0xdd1   : > { %5843 = vmax.xlane.f32.xlu0 %v14928_v19  ;;  %5841 = vmax.xlane.f32.xlu1 %v14931_v30 }
 0xdd2   : > { %v10483_v26 = vpop.f32.mrb[200].mxu0 }
 0xdd3   : > { %v14939_v50 = vadd.f32 %v14657_v39, %v10483_v26  ;;  %v5802_v38 = vpop.f32.mrb[201].mxu0 }
 0xdd4   : > { %v10484_v25 = vpop.f32.mrb[202].mxu0  ;;  %v14944_v59 = vadd.f32 %v14657_v39, %v5802_v38 }
 0xdd5   : > { %5847 = vmax.xlane.f32.xlu1 %v14936_v11  ;;  %5853 = vmax.xlane.f32.xlu0 %v14939_v50  ;;  %v5805_v55 = vpop.f32.mrb[203].mxu0  ;;  %v14948_v60 = vadd.f32 %v14657_v39, %v10484_v25 }
 0xdd6   : > { %v14956_v9 = vadd.f32 %v14657_v39, %v5805_v55 }
 0xdd9   : > { %5849 = vmax.xlane.f32.xlu1 %v14944_v59 }
 0xdda   : > { %v10487_v42 = vpop.f32.mrb[204].mxu0 }
 0xddb   : > { %v5818_v41 = vpop.f32.mrb[205].mxu0  ;;  %v14960_v38 = vadd.f32 %v14657_v39, %v10487_v42 }
 0xddc   : > { %v14951_v26 = vadd.f32 %v14657_v39, %v5818_v41  ;;  %v10488_v51 = vpop.f32.mrb[206].mxu0 }
 0xddd   : > { %5855 = vmax.xlane.f32.xlu1 %v14948_v60  ;;  %v5821_v18 = vpop.f32.mrb[207].mxu0  ;;  %v14964_v25 = vadd.f32 %v14657_v39, %v10488_v51 }
 0xdde   : > { %5857 = vmax.xlane.f32.xlu0 %v14951_v26 }
 0xde1   : > { %5851 = vmax.xlane.f32.xlu1 %v14956_v9 }
 0xde5   : > { %5861 = vmax.xlane.f32.xlu1 %v14960_v38 }
 0xde9   : > { %5863 = vmax.xlane.f32.xlu1 %v14964_v25 }
 0xdf4   : > { %6132 = vrot.lane.b32.xlu0 %v18171_v47, %s12608_s21  ;;  %v14982_v47 = vadd.f32 %v14657_v39, %v5821_v18 }
 0xdfa   : > { %6130 = vrot.lane.b32.xlu1 %v18170_v46, %s12608_s21 }
 0xdfe   : > { %6108 = vrot.lane.b32.xlu1 %v18187_v53, %s12608_s21 }
 0xe02   : > { %6112 = vrot.lane.b32.xlu1 %v18189_v17, %s12608_s21 }
 0xe06   : > { %6116 = vrot.lane.b32.xlu1 %v18191_v7, %s12608_s21 }
 0xe0a   : > { %6120 = vrot.lane.b32.xlu1 %v18193_v20, %s12608_s21 }
 0xe0e   : > { %6405 = vrot.lane.b32.xlu1 %v13311_v62, %s12608_s21  ;;  %v15007_v62 = vpop.permute.xlu0 %6124 }
 0xe12   : > { %6409 = vrot.lane.b32.xlu1 %v13347_v10, %s12608_s21  ;;  %v15009_v10 = vpop.permute.xlu0 %6128 }
 0xe13   : > { %5859 = vmax.xlane.f32.xlu0 %v14982_v47 }
 0xe16   : > { %6411 = vrot.lane.b32.xlu1 %v13365_v44, %s12608_s21  ;;  %v15011_v44 = vpop.permute.xlu1 %6126 }
 0xe1a   : > { %6413 = vrot.lane.b32.xlu1 %v13383_v37, %s12608_s21 }
 0xe29   : > { %6134 = vrot.lane.b32.xlu0 %v18172_v8, %s12608_s21 }
 0xe2d   : > { %6136 = vrot.lane.b32.xlu0 %v18175_v13, %s12608_s21 }
 0xe31   : > { %6106 = vrot.lane.b32.xlu0 %v18186_v52, %s12608_s21 }
 0xe35   : > { %6110 = vrot.lane.b32.xlu0 %v18188_v32, %s12608_s21 }
 0xe39   : > { %6114 = vrot.lane.b32.xlu0 %v18190_v45, %s12608_s21 }
 0xe3d   : > { %6118 = vrot.lane.b32.xlu0 %v18192_v40, %s12608_s21 }
 0xe41   : > { %6403 = vrot.lane.b32.xlu0 %v13293_v4, %s12608_s21 }
 0xe45   : > { %6407 = vrot.lane.b32.xlu0 %v13329_v57, %s12608_s21 }
 0xe52   : > { %v5838_v37 = vpop.xlane.xlu0 %5837 }
 0xe53   : > { %v5867_v52 = vsub.f32 %v14908_v34, %v5838_v37 }
 0xe55   : > { %v5836_v46 = vpop.xlane.xlu1 %5835  ;;  %v5885_v45 = vmul.f32 1.442695, %v5867_v52 }
 0xe56   : > { %v5866_v8 = vsub.f32 %v14912_v54, %v5836_v46  ;;  %v5834_v13 = vpop.xlane.xlu0 %5833 }
 0xe57   : > { %v5865_v53 = vsub.f32 %v14915_v48, %v5834_v13 }
 0xe58   : > { %v5883_v32 = vmul.f32 1.442695, %v5866_v8 }
 0xe59   : > { %v5881_v4 = vmul.f32 1.442695, %v5865_v53 }
 0xe5a   : > { %11827 = vpow2.f32 %v5883_v32  ;;  %v5846_v17 = vpop.xlane.xlu1 %5845  ;;  %v5840_v57 = vpop.xlane.xlu0 %5839 }
 0xe5b   : > { %11829 = vpow2.f32 %v5881_v4  ;;  %v5868_v7 = vsub.f32 %v14920_v23, %v5840_v57  ;;  %v5871_v20 = vsub.f32 %v14923_v29, %v5846_v17 }
 0xe5c   : > { %11831 = vpow2.f32 %v5885_v45  ;;  %v6163_v45 = vsel %vm3019_vm0, %v14871_v14, 0 }
 0xe5d   : > { %v5887_v40 = vmul.f32 1.442695, %v5868_v7  ;;  %v5893_v34 = vmul.f32 1.442695, %v5871_v20 }
 0xe5e   : > { %v5842_v39 = vpop.xlane.xlu1 %5841  ;;  %v5844_v51 = vpop.xlane.xlu0 %5843 }
 0xe5f   : > { %v5869_v18 = vsub.f32 %v14931_v30, %v5842_v39  ;;  %v5870_v42 = vsub.f32 %v14928_v19, %v5844_v51  ;;  %11833 = vpow2.f32 %v5887_v40 }
 0xe61   : > { %v5889_v54 = vmul.f32 1.442695, %v5869_v18  ;;  %v5891_v48 = vmul.f32 1.442695, %v5870_v42 }
 0xe62   : > { %v5848_v55 = vpop.xlane.xlu1 %5847  ;;  %v5854_v8 = vpop.xlane.xlu0 %5853 }
 0xe63   : > { %11835 = vpow2.f32 %v5889_v54  ;;  %v5872_v41 = vsub.f32 %v14936_v11, %v5848_v55  ;;  %v5875_v4 = vsub.f32 %v14939_v50, %v5854_v8  ;;  %v6169_v55 = vsel %vm3019_vm0, %v15011_v44, 0 }
 0xe64   : > { %v15021_v37 = vpop.eup %11827  ;;  %11837 = vpow2.f32 %v5891_v48 }
 0xe65   : > { %18273 = vst [vmem:[#allocation220_spill] sm:$0xff] %v15021_v37  ;;  %v15023_v23 = vpop.eup %11829  ;;  %v5895_v29 = vmul.f32 1.442695, %v5872_v41  ;;  %11839 = vpow2.f32 %v5893_v34  ;;  %v5901_v39 = vmul.f32 1.442695, %v5875_v4 }
 0xe66   : > { %18274 = vst [vmem:[#allocation221_spill] sm:$0xff] %v15023_v23  ;;  %v5850_v46 = vpop.xlane.xlu1 %5849  ;;  %v5945_v30 = vpack.c.bf16 %v15021_v37, %v15023_v23  ;;  %v15027_v19 = vpop.eup %11831 }
 0xe67   : > { %11841 = vpow2.f32 %v5895_v29  ;;  %18275 = vst [vmem:[#allocation222_spill] sm:$0xff] %v15027_v19  ;;  %v5873_v13 = vsub.f32 %v14944_v59, %v5850_v46 }
 0xe68   : > { %10505 = vmatprep.mubr.bf16.mxu1 %v5945_v30  ;;  %v6172_v30 = vsel %vm3019_vm0, %v15009_v10, 0 }
 0xe69   : > { %v15030_v52 = vpop.eup %11833  ;;  %v5897_v57 = vmul.f32 1.442695, %v5873_v13 }
 0xe6a   : > { %18276 = vst [vmem:[#allocation223_spill] sm:$0xff] %v15030_v52  ;;  %v5856_v11 = vpop.xlane.xlu1 %5855  ;;  %v5946_v32 = vpack.c.bf16 %v15030_v52, %v15027_v19 }
 0xe6b   : > { %v5876_v53 = vsub.f32 %v14948_v60, %v5856_v11  ;;  %11843 = vpow2.f32 %v5897_v57 }
 0xe6c   : > { %10506 = vmatmul.mubr.bf16.vlgmr.msra.gmra.mrb[176].mxu1 %v5946_v32 }
 0xe6d   : > { %v15036_v17 = vpop.eup %11835  ;;  %v5903_v59 = vmul.f32 1.442695, %v5876_v53  ;;  %10522 = vmatpush3.bf16.xpose.msra.mxu1 %v6163_v45 }
 0xe6e   : > { %18277 = vst [vmem:[#allocation224_spill] sm:$0xff] %v15036_v17  ;;  %v15040_v7 = vpop.eup %11837  ;;  %v5852_v40 = vpop.xlane.xlu1 %5851  ;;  %11154 = vmatprep.subr.msk.bf16.mxu1 %vm3019_vm0, %v15007_v62 }
 0xe6f   : > { %18278 = vst [vmem:[#allocation225_spill] sm:$0xff] %v15040_v7  ;;  %v5874_v60 = vsub.f32 %v14956_v9, %v5852_v40  ;;  %v5947_v50 = vpack.c.bf16 %v15040_v7, %v15036_v17  ;;  %v15047_v20 = vpop.eup %11839  ;;  %11845 = vpow2.f32 %v5903_v59  ;;  %v6166_v9 = vsel %vm3019_vm0, %v15007_v62, 0 }
 0xe70   : > { %18279 = vst [vmem:[#allocation226_spill] sm:$0xff] %v15047_v20 }
 0xe71   : > { %v15049_v51 = vpop.eup %11841  ;;  %v5899_v14 = vmul.f32 1.442695, %v5874_v60  ;;  %10509 = vmatprep.mubr.bf16.mxu1 %v5947_v50 }
 0xe72   : > { %18280 = vst [vmem:[#allocation227_spill] sm:$0xff] %v15049_v51  ;;  %v5948_v18 = vpack.c.bf16 %v15049_v51, %v15047_v20  ;;  %v5862_v42 = vpop.xlane.xlu1 %5861 }
 0xe73   : > { %11847 = vpow2.f32 %v5899_v14 }
 0xe74   : > { %11849 = vpow2.f32 %v5901_v39  ;;  %10510 = vmatmul.mubr.bf16.gmra.mrb[180].mxu1 %v5948_v18 }
 0xe75   : > { %10524 = vmatpush3.bf16.xpose.msra.mxu1 %v6166_v9  ;;  %v15057_v54 = vpop.eup %11843 }
 0xe76   : > { %11155 = vmatprep.subr.msk.bf16.mxu1 %vm3019_vm0, %v15011_v44  ;;  %18281 = vst [vmem:[#allocation228_spill] sm:$0xff] %v15057_v54  ;;  %v5864_v46 = vpop.xlane.xlu1 %5863  ;;  %v5858_v44 = vpop.xlane.xlu0 %5857 }
 0xe77   : > { %v5877_v32 = vsub.f32 %v14951_v26, %v5858_v44  ;;  %v5880_v4 = vsub.f32 %v14964_v25, %v5864_v46 }
 0xe79   : > { %v15059_v48 = vpop.eup %11845  ;;  %v5905_v57 = vmul.f32 1.442695, %v5877_v32  ;;  %v5911_v45 = vmul.f32 1.442695, %v5880_v4 }
 0xe7a   : > { %18282 = vst [vmem:[#allocation229_spill] sm:$0xff] %v15059_v48  ;;  %v6131_v8 = vpop.permute.xlu1 %6130  ;;  %v6133_v11 = vpop.permute.xlu0 %6132 }
 0xe7b   : > { %v6175_v13 = vsel %vm3019_vm0, %v6131_v8, 0  ;;  %v6178_v53 = vsel %vm3019_vm0, %v6133_v11, 0  ;;  %11851 = vpow2.f32 %v5905_v57  ;;  %v18291_v57 = vld [vmem:[#allocation48_spill] sm:$0xff] }
 0xe7c   : > { %11853 = vpow2.f32 %v5911_v45 }
 0xe7d   : > { %v15061_v34 = vpop.eup %11847  ;;  %10526 = vmatpush3.bf16.xpose.msra.mxu1 %v6169_v55 }
 0xe7e   : > { %18283 = vst [vmem:[#allocation230_spill] sm:$0xff] %v15061_v34  ;;  %v15065_v41 = vpop.eup %11849  ;;  %v5949_v62 = vpack.c.bf16 %v15061_v34, %v15057_v54  ;;  %11156 = vmatprep.subr.msk.bf16.mxu1 %vm3019_vm0, %v15009_v10  ;;  %v5879_v10 = vsub.f32 %v14960_v38, %v5862_v42  ;;  %v6109_v39 = vpop.permute.xlu1 %6108 }
 0xe7f   : > { %18284 = vst [vmem:[#allocation231_spill] sm:$0xff] %v15065_v41  ;;  %v5950_v29 = vpack.c.bf16 %v15059_v48, %v15065_v41 }
 0xe80   : > { %10513 = vmatprep.mubr.bf16.mxu1 %v5949_v62  ;;  %v5909_v60 = vmul.f32 1.442695, %v5879_v10  ;;  %v18288_v62 = vld [vmem:[#allocation46_spill] sm:$0xff]  ;;  %v18290_v10 = vld [vmem:[#allocation47_spill] sm:$0xff] }
 0xe81   : > { %10514 = vmatmul.mubr.bf16.gmra.mrb[184].mxu1 %v5950_v29 }
 0xe82   : > { %v6113_v38 = vpop.permute.xlu1 %6112 }
 0xe85   : > { %10528 = vmatpush3.bf16.xpose.msra.mxu1 %v6172_v30  ;;  %v15086_v9 = vpop.eup %11851 }
 0xe86   : > { %11157 = vmatprep.subr.msk.bf16.mxu1 %vm3019_vm0, %v6131_v8  ;;  %18285 = vst [vmem:[#allocation232_spill] sm:$0xff] %v15086_v9  ;;  %v15089_v42 = vpop.eup %11853  ;;  %v6117_v46 = vpop.permute.xlu1 %6116 }
 0xe87   : > { %18286 = vst [vmem:[#allocation233_spill] sm:$0xff] %v15089_v42 }
 0xe8d   : > { %10530 = vmatpush3.bf16.xpose.msra.mxu1 %v6175_v13 }
 0xe8e   : > { %11158 = vmatprep.subr.msk.bf16.mxu1 %vm3019_vm0, %v6133_v11  ;;  %v6121_v11 = vpop.permute.xlu1 %6120 }
 0xe92   : > { %v6406_v32 = vpop.permute.xlu1 %6405 }
 0xe95   : > { %10532 = vmatpush3.bf16.xpose.msra.mxu1 %v6178_v53 }
 0xe96   : > { %v6410_v45 = vpop.permute.xlu1 %6409 }
 0xea0   : > { %v5860_v59 = vpop.xlane.xlu0 %5859 }
 0xea1   : > { %v5878_v40 = vsub.f32 %v14982_v47, %v5860_v59 }
 0xea3   : > { %v5907_v50 = vmul.f32 1.442695, %v5878_v40  ;;  %v18292_v40 = vld [vmem:[#allocation49_spill] sm:$0xff] }
 0xea4   : > { %v6135_v14 = vpop.permute.xlu0 %6134 }
 0xea5   : > { %11855 = vpow2.f32 %v5907_v50  ;;  %11159 = vmatprep.subr.msk.bf16.mxu1 %vm3019_vm0, %v6135_v14  ;;  %v6181_v26 = vsel %vm3019_vm0, %v6135_v14, 0  ;;  %v18293_v50 = vld [vmem:[#allocation50_spill] sm:$0xff] }
 0xea6   : > { %11857 = vpow2.f32 %v5909_v60  ;;  %10534 = vmatpush3.bf16.xpose.msra.mxu1 %v6181_v26  ;;  %v6412_v60 = vpop.permute.xlu1 %6411  ;;  %v18295_v26 = vld [vmem:[#allocation52_spill] sm:$0xff] }
 0xea8   : > { %v6137_v25 = vpop.permute.xlu0 %6136 }
 0xea9   : > { %11160 = vmatprep.subr.msk.bf16.mxu1 %vm3019_vm0, %v6137_v25  ;;  %v6184_v47 = vsel %vm3019_vm0, %v6137_v25, 0  ;;  %v18296_v25 = vld [vmem:[#allocation53_spill] sm:$0xff] }
 0xeaa   : > { %v6414_v14 = vpop.permute.xlu1 %6413 }
 0xeac   : > { %v6107_v18 = vpop.permute.xlu0 %6106 }
 0xeae   : > { %10536 = vmatpush3.bf16.xpose.msra.mxu1 %v6184_v47 }
 0xeaf   : > { %v15091_v55 = vpop.eup %11855  ;;  %10617 = vmatprep.subr.bf16.mxu1 %v18288_v62 }
 0xeb0   : > { %18287 = vst [vmem:[#allocation234_spill] sm:$0xff] %v15091_v55  ;;  %v15094_v29 = vpop.eup %11857  ;;  %v6111_v30 = vpop.permute.xlu0 %6110  ;;  %v5951_v8 = vpack.c.bf16 %v15091_v55, %v15086_v9 }
 0xeb1   : > { %18289 = vst [vmem:[#allocation46_spill] sm:$0xff] %v15094_v29  ;;  %v5952_v44 = vpack.c.bf16 %v15089_v42, %v15094_v29 }
 0xeb2   : > { %10517 = vmatprep.mubr.bf16.mxu1 %v5951_v8 }
 0xeb3   : > { %10518 = vmatmul.mubr.bf16.gmra.mrb[188].mxu1 %v5952_v44 }
 0xeb4   : > { %10537 = vmatprep.mubr.msk.bf16.mxu1 %vm3019_vm0, %v6107_v18  ;;  %v6115_v13 = vpop.permute.xlu0 %6114 }
 0xeb8   : > { %v6119_v53 = vpop.permute.xlu0 %6118 }
 0xebb   : > { %10538 = vmatmul.mubr.msk.bf16.vlgmr.msra.gmra.mrb[192].mxu1 %vm3019_vm0, %v6109_v39  ;;  %v18294_v39 = vld [vmem:[#allocation51_spill] sm:$0xff] }
 0xebc   : > { %10618 = vmatpush3.bf16.msra.mxu1 %v18288_v62  ;;  %10541 = vmatprep.mubr.msk.bf16.mxu1 %vm3019_vm0, %v6111_v30  ;;  %v6404_v4 = vpop.permute.xlu0 %6403 }
 0xebd   : > { %10619 = vmatprep.subr.bf16.mxu1 %v18290_v10  ;;  %10553 = vmatprep.subr.bf16.mxu0 %v6404_v4 }
 0xebe   : > { %10554 = vmatpush3.bf16.msra.mxu0 %v6404_v4 }
 0xebf   : > { %10555 = vmatprep.subr.bf16.mxu0 %v6406_v32 }
 0xec0   : > { %10620 = vmatpush3.bf16.msra.mxu1 %v18290_v10  ;;  %v6408_v59 = vpop.permute.xlu0 %6407 }
 0xec1   : > { %10621 = vmatprep.subr.bf16.mxu1 %v18291_v57 }
 0xec2   : > { %10556 = vmatpush3.bf16.msra.mxu0 %v6406_v32 }
 0xec3   : > { %10542 = vmatmul.mubr.msk.bf16.gmra.mrb[196].mxu1 %vm3019_vm0, %v6113_v38  ;;  %10557 = vmatprep.subr.bf16.mxu0 %v6408_v59 }
 0xec4   : > { %10622 = vmatpush3.bf16.msra.mxu1 %v18291_v57  ;;  %10545 = vmatprep.mubr.msk.bf16.mxu1 %vm3019_vm0, %v6115_v13 }
 0xec5   : > { %10623 = vmatprep.subr.bf16.mxu1 %v18292_v40 }
 0xec6   : > { %10558 = vmatpush3.bf16.msra.mxu0 %v6408_v59 }
 0xec7   : > { %10559 = vmatprep.subr.bf16.mxu0 %v6410_v45 }
 0xec8   : > { %10624 = vmatpush3.bf16.msra.mxu1 %v18292_v40 }
 0xec9   : > { %10625 = vmatprep.subr.bf16.mxu1 %v18293_v50 }
 0xeca   : > { %10560 = vmatpush3.bf16.msra.mxu0 %v6410_v45 }
 0xecb   : > { %10546 = vmatmul.mubr.msk.bf16.gmra.mrb[200].mxu1 %vm3019_vm0, %v6117_v46  ;;  %10561 = vmatprep.subr.bf16.mxu0 %v6412_v60 }
 0xecc   : > { %10626 = vmatpush3.bf16.msra.mxu1 %v18293_v50  ;;  %10549 = vmatprep.mubr.msk.bf16.mxu1 %vm3019_vm0, %v6119_v53 }
 0xecd   : > { %10627 = vmatprep.subr.bf16.mxu1 %v18294_v39 }
 0xece   : > { %10562 = vmatpush3.bf16.msra.mxu0 %v6412_v60 }
 0xecf   : > { %10563 = vmatprep.subr.bf16.mxu0 %v6414_v14 }
 0xed0   : > { %10628 = vmatpush3.bf16.msra.mxu1 %v18294_v39 }
 0xed1   : > { %10629 = vmatprep.subr.bf16.mxu1 %v18295_v26 }
 0xed2   : > { %10564 = vmatpush3.bf16.msra.mxu0 %v6414_v14 }
 0xed3   : > { %10550 = vmatmul.mubr.msk.bf16.gmra.mrb[204].mxu1 %vm3019_vm0, %v6121_v11 }
 0xed4   : > { %10630 = vmatpush3.bf16.msra.mxu1 %v18295_v26 }
 0xed5   : > { %10631 = vmatprep.subr.bf16.mxu1 %v18296_v25 }
 0xed8   : > { %10632 = vmatpush3.bf16.msra.mxu1 %v18296_v25 }
 0xf3f   : > { %v15123_v38 = vpop.f32.mrb[176].mxu1 }
 0xf40   : > { %18297 = vst [vmem:[#allocation47_spill] sm:$0xff] %v15123_v38  ;;  %v15125_v18 = vpop.f32.mrb[177].mxu1 }
 0xf41   : > { %18298 = vst [vmem:[#allocation48_spill] sm:$0xff] %v15125_v18  ;;  %v15127_v47 = vpop.f32.mrb[178].mxu1 }
 0xf42   : > { %18299 = vst [vmem:[#allocation49_spill] sm:$0xff] %v15127_v47  ;;  %v15129_v46 = vpop.f32.mrb[179].mxu1 }
 0xf43   : > { %18300 = vst [vmem:[#allocation50_spill] sm:$0xff] %v15129_v46 }
 0xf47   : > { %v15131_v30 = vpop.f32.mrb[180].mxu1 }
 0xf48   : > { %18301 = vst [vmem:[#allocation51_spill] sm:$0xff] %v15131_v30  ;;  %v15133_v8 = vpop.f32.mrb[181].mxu1 }
 0xf49   : > { %18302 = vst [vmem:[#allocation52_spill] sm:$0xff] %v15133_v8  ;;  %v15135_v44 = vpop.f32.mrb[182].mxu1  ;;  %v15156_v8 = vld [vmem:[%s13466_s13] ss:$0 sm:$0xff] }
 0xf4a   : > { %18303 = vst [vmem:[#allocation53_spill] sm:$0xff] %v15135_v44  ;;  %v15137_v13 = vpop.f32.mrb[183].mxu1 }
 0xf4b   : > { %18304 = vst [vmem:[#allocation235_spill] sm:$0xff] %v15137_v13 }
 0xf54   : > { %v15139_v11 = vpop.f32.mrb[184].mxu1 }
 0xf55   : > { %18305 = vst [vmem:[#allocation236_spill] sm:$0xff] %v15139_v11  ;;  %v15141_v53 = vpop.f32.mrb[185].mxu1 }
 0xf56   : > { %18306 = vst [vmem:[#allocation237_spill] sm:$0xff] %v15141_v53  ;;  %v15143_v32 = vpop.f32.mrb[186].mxu1 }
 0xf57   : > { %18307 = vst [vmem:[#allocation238_spill] sm:$0xff] %v15143_v32  ;;  %v15145_v4 = vpop.f32.mrb[187].mxu1 }
 0xf58   : > { %18308 = vst [vmem:[#allocation239_spill] sm:$0xff] %v15145_v4 }
 0xf86   : > { %v15147_v45 = vpop.f32.mrb[188].mxu1 }
 0xf87   : > { %18309 = vst [vmem:[#allocation240_spill] sm:$0xff] %v15147_v45  ;;  %v15149_v59 = vpop.f32.mrb[189].mxu1 }
 0xf88   : > { %18310 = vst [vmem:[#allocation241_spill] sm:$0xff] %v15149_v59  ;;  %v15151_v60 = vpop.f32.mrb[190].mxu1 }
 0xf89   : > { %18311 = vst [vmem:[#allocation242_spill] sm:$0xff] %v15151_v60  ;;  %v15153_v14 = vpop.f32.mrb[191].mxu1 }
 0xf8a   : > { %18312 = vst [vmem:[#allocation243_spill] sm:$0xff] %v15153_v14 }
 0xf8e   : > { %v10539_v30 = vpop.f32.mrb[192].mxu1 }
 0xf8f   : > { %v6229_v44 = vadd.f32 %v15156_v8, %v10539_v30  ;;  %v6220_v11 = vpop.f32.mrb[193].mxu1 }
 0xf90   : > { %v10540_v38 = vpop.f32.mrb[194].mxu1  ;;  %v6221_v4 = vadd.f32 %v15156_v8, %v6220_v11 }
 0xf91   : > { %6287 = vmax.xlane.f32.xlu0 %v6229_v44  ;;  %v6223_v53 = vpop.f32.mrb[195].mxu1  ;;  %v6232_v59 = vadd.f32 %v15156_v8, %v10540_v38 }
 0xf92   : > { %v6224_v32 = vadd.f32 %v15156_v8, %v6223_v53 }
 0xf94   : > { %6285 = vmax.xlane.f32.xlu1 %v6224_v32 }
 0xf95   : > { %6283 = vmax.xlane.f32.xlu0 %v6221_v4 }
 0xf96   : > { %v10543_v45 = vpop.f32.mrb[196].mxu1 }
 0xf97   : > { %v6236_v60 = vpop.f32.mrb[197].mxu1 }
 0xf98   : > { %v10544_v14 = vpop.f32.mrb[198].mxu1  ;;  %v15174_v54 = vadd.f32 %v15156_v8, %v6236_v60 }
 0xf99   : > { %6289 = vmax.xlane.f32.xlu0 %v6232_v59  ;;  %v6239_v13 = vpop.f32.mrb[199].mxu1 }
 0xf9a   : > { %v15167_v38 = vadd.f32 %v15156_v8, %v6239_v13  ;;  %v15190_v13 = vadd.f32 %v15156_v8, %v10544_v14 }
 0xf9e   : > { %v10547_v18 = vpop.f32.mrb[200].mxu1 }
 0xf9f   : > { %v6252_v47 = vpop.f32.mrb[201].mxu1 }
 0xfa0   : > { %v10548_v30 = vpop.f32.mrb[202].mxu1 }
 0xfa1   : > { %v6255_v46 = vpop.f32.mrb[203].mxu1 }
 0xfa2   : > { %v15171_v41 = vadd.f32 %v15156_v8, %v6255_v46 }
 0xfa5   : > { %6417 = vrot.lane.b32.xlu1 %v18145_v27, %s12608_s21  ;;  %v15179_v27 = vadd.f32 %v15156_v8, %v10548_v30  ;;  %v15203_v30 = vadd.f32 %v15156_v8, %v10547_v18  ;;  %v18315_v18 = vld [vmem:[#allocation33_spill] sm:$0xff] }
 0xfa6   : > { %v10551_v29 = vpop.f32.mrb[204].mxu1 }
 0xfa7   : > { %v6268_v53 = vpop.f32.mrb[205].mxu1 }
 0xfa8   : > { %v10552_v9 = vpop.f32.mrb[206].mxu1  ;;  %v15207_v14 = vadd.f32 %v15156_v8, %v6268_v53 }
 0xfa9   : > { %v6271_v11 = vpop.f32.mrb[207].mxu1  ;;  %v15195_v60 = vadd.f32 %v15156_v8, %v10552_v9  ;;  %v15211_v9 = vadd.f32 %v15156_v8, %v10551_v29 }
 0xfaa   : > { %v15187_v46 = vadd.f32 %v15156_v8, %v6271_v11  ;;  %v18314_v11 = vld [vmem:[#allocation29_spill] sm:$0xff] }
 0xfaf   : > { %6415 = vrot.lane.b32.xlu0 %v18144_v22, %s12608_s21  ;;  %v15182_v22 = vadd.f32 %v15156_v8, %v10543_v45  ;;  %v15198_v45 = vadd.f32 %v15156_v8, %v6252_v47  ;;  %v18313_v47 = vld [vmem:[#allocation31_spill] sm:$0xff] }
 0xfc9   : > { %6293 = vmax.xlane.f32.xlu1 %v15167_v38 }
 0xfcd   : > { %6301 = vmax.xlane.f32.xlu1 %v15171_v41 }
 0xfce   : > { %6291 = vmax.xlane.f32.xlu0 %v15174_v54 }
 0xfd1   : > { %6305 = vmax.xlane.f32.xlu1 %v15179_v27 }
 0xfd2   : > { %6295 = vmax.xlane.f32.xlu0 %v15182_v22 }
 0xfd5   : > { %6309 = vmax.xlane.f32.xlu1 %v15187_v46 }
 0xfd6   : > { %6297 = vmax.xlane.f32.xlu0 %v15190_v13 }
 0xfd9   : > { %6313 = vmax.xlane.f32.xlu1 %v15195_v60 }
 0xfda   : > { %6299 = vmax.xlane.f32.xlu0 %v15198_v45 }
 0xfde   : > { %6303 = vmax.xlane.f32.xlu0 %v15203_v30 }
 0xfe2   : > { %6307 = vmax.xlane.f32.xlu0 %v15207_v14 }
 0xfe6   : > { %6311 = vmax.xlane.f32.xlu0 %v15211_v9 }
 0xfea   : > { %6984 = vrot.lane.b32.xlu1 %v18313_v47, %s12606_s23 }
 0xffc   : > { %6982 = vrot.lane.b32.xlu0 %v18314_v11, %s12606_s23 }
0x1000   : > { %6986 = vrot.lane.b32.xlu0 %v18315_v18, %s12606_s23 }
0x101e   : > { %v6288_v20 = vpop.xlane.xlu0 %6287 }
0x101f   : > { %v6317_v53 = vsub.f32 %v6229_v44, %v6288_v20 }
0x1021   : > { %v6286_v17 = vpop.xlane.xlu1 %6285  ;;  %v6335_v48 = vmul.f32 1.442695, %v6317_v53 }
0x1022   : > { %v6316_v19 = vsub.f32 %v6224_v32, %v6286_v17  ;;  %v6284_v23 = vpop.xlane.xlu0 %6283 }
0x1023   : > { %v6315_v42 = vsub.f32 %v6221_v4, %v6284_v23 }
0x1024   : > { %v6333_v55 = vmul.f32 1.442695, %v6316_v19 }
0x1025   : > { %v6331_v29 = vmul.f32 1.442695, %v6315_v42  ;;  %v6418_v37 = vpop.permute.xlu1 %6417  ;;  %v18321_v42 = vld [vmem:[#allocation37_spill] sm:$0xff] }
0x1026   : > { %11859 = vpow2.f32 %v6333_v55  ;;  %v6290_v34 = vpop.xlane.xlu0 %6289  ;;  %v6593_v32 = vsel %vm3019_vm0, %v18321_v42, 0 }
0x1027   : > { %11861 = vpow2.f32 %v6331_v29  ;;  %v6318_v51 = vsub.f32 %v6232_v59, %v6290_v34  ;;  %v18322_v59 = vld [vmem:[#allocation39_spill] sm:$0xff] }
0x1028   : > { %11863 = vpow2.f32 %v6335_v48  ;;  %v18320_v48 = vld [vmem:[#allocation35_spill] sm:$0xff] }
0x1029   : > { %v6337_v7 = vmul.f32 1.442695, %v6318_v51  ;;  %v6587_v51 = vsel %vm3019_vm0, %v18315_v18, 0  ;;  %v6590_v34 = vsel %vm3019_vm0, %v18320_v48, 0 }
0x102a   : > { %v6416_v52 = vpop.permute.xlu0 %6415 }
0x102b   : > { %11865 = vpow2.f32 %v6337_v7  ;;  %10565 = vmatprep.subr.bf16.mxu0 %v6416_v52  ;;  %v6584_v7 = vsel %vm3019_vm0, %v18313_v47, 0 }
0x102c   : > { %10566 = vmatpush3.bf16.msra.mxu0 %v6416_v52 }
0x102d   : > { %10567 = vmatprep.subr.bf16.mxu0 %v6418_v37 }
0x1030   : > { %v15220_v1 = vpop.eup %11859  ;;  %10568 = vmatpush3.bf16.msra.mxu0 %v6418_v37  ;;  %v6581_v37 = vsel %vm3019_vm0, %v18314_v11, 0 }
0x1031   : > { %18316 = vst [vmem:[#allocation31_spill] sm:$0xff] %v15220_v1  ;;  %v15222_v17 = vpop.eup %11861  ;;  %11161 = vmatprep.subr.msk.bf16.mxu0 %vm3019_vm0, %v18314_v11 }
0x1032   : > { %18317 = vst [vmem:[#allocation29_spill] sm:$0xff] %v15222_v17  ;;  %v6395_v23 = vpack.c.bf16 %v15220_v1, %v15222_v17  ;;  %v15228_v19 = vpop.eup %11863 }
0x1033   : > { %18318 = vst [vmem:[#allocation33_spill] sm:$0xff] %v15228_v19 }
0x1034   : > { %10569 = vmatprep.mubr.bf16.mxu0 %v6395_v23 }
0x1035   : > { %v15230_v20 = vpop.eup %11865 }
0x1036   : > { %18319 = vst [vmem:[#allocation244_spill] sm:$0xff] %v15230_v20  ;;  %v6396_v52 = vpack.c.bf16 %v15230_v20, %v15228_v19 }
0x1038   : > { %10570 = vmatmul.mubr.bf16.vlgmr.msra.gmra.mrb[208].mxu0 %v6396_v52 }
0x1039   : > { %10586 = vmatpush3.bf16.xpose.msra.mxu0 %v6581_v37 }
0x103a   : > { %11162 = vmatprep.subr.msk.bf16.mxu0 %vm3019_vm0, %v18313_v47 }
0x1041   : > { %10588 = vmatpush3.bf16.xpose.msra.mxu0 %v6584_v7 }
0x1042   : > { %11163 = vmatprep.subr.msk.bf16.mxu0 %vm3019_vm0, %v18315_v18 }
0x1049   : > { %10590 = vmatpush3.bf16.xpose.msra.mxu0 %v6587_v51 }
0x104a   : > { %11164 = vmatprep.subr.msk.bf16.mxu0 %vm3019_vm0, %v18320_v48 }
0x1051   : > { %10592 = vmatpush3.bf16.xpose.msra.mxu0 %v6590_v34  ;;  %v18323_v34 = vld [vmem:[#allocation41_spill] sm:$0xff] }
0x1052   : > { %11165 = vmatprep.subr.msk.bf16.mxu0 %vm3019_vm0, %v18321_v42 }
0x1056   : > { %v6294_v55 = vpop.xlane.xlu1 %6293 }
0x1057   : > { %v6320_v44 = vsub.f32 %v15167_v38, %v6294_v55  ;;  %v6596_v38 = vsel %vm3019_vm0, %v18322_v59, 0 }
0x1059   : > { %10594 = vmatpush3.bf16.xpose.msra.mxu0 %v6593_v32  ;;  %v6341_v53 = vmul.f32 1.442695, %v6320_v44 }
0x105a   : > { %v6302_v4 = vpop.xlane.xlu1 %6301  ;;  %11166 = vmatprep.subr.msk.bf16.mxu0 %vm3019_vm0, %v18322_v59 }
0x105b   : > { %v6292_v29 = vpop.xlane.xlu0 %6291  ;;  %11867 = vpow2.f32 %v6341_v53  ;;  %v6324_v55 = vsub.f32 %v15171_v41, %v6302_v4 }
0x105c   : > { %v6319_v23 = vsub.f32 %v15174_v54, %v6292_v29 }
0x105e   : > { %v6339_v52 = vmul.f32 1.442695, %v6319_v23  ;;  %v6306_v7 = vpop.xlane.xlu1 %6305  ;;  %v6349_v23 = vmul.f32 1.442695, %v6324_v55 }
0x105f   : > { %v6296_v37 = vpop.xlane.xlu0 %6295 }
0x1060   : > { %11869 = vpow2.f32 %v6339_v52  ;;  %v6321_v51 = vsub.f32 %v15182_v22, %v6296_v37  ;;  %v6326_v52 = vsub.f32 %v15179_v27, %v6306_v7 }
0x1061   : > { %10596 = vmatpush3.bf16.xpose.msra.mxu0 %v6596_v38  ;;  %v6599_v38 = vsel %vm3019_vm0, %v18323_v34, 0 }
0x1062   : > { %11167 = vmatprep.subr.msk.bf16.mxu0 %vm3019_vm0, %v18323_v34  ;;  %v6343_v44 = vmul.f32 1.442695, %v6321_v51  ;;  %v6310_v29 = vpop.xlane.xlu1 %6309  ;;  %v6353_v51 = vmul.f32 1.442695, %v6326_v52 }
0x1063   : > { %v6298_v32 = vpop.xlane.xlu0 %6297  ;;  %v6328_v27 = vsub.f32 %v15187_v46, %v6310_v29 }
0x1064   : > { %v6322_v54 = vsub.f32 %v15190_v13, %v6298_v32  ;;  %11871 = vpow2.f32 %v6343_v44  ;;  %v18326_v13 = vld [vmem:[#allocation44_spill] sm:$0xff] }
0x1065   : > { %v15267_v19 = vpop.eup %11867  ;;  %v6602_v46 = vsel %vm3019_vm0, %v18326_v13, 0 }
0x1066   : > { %v6345_v53 = vmul.f32 1.442695, %v6322_v54  ;;  %18324 = vst [vmem:[#allocation35_spill] sm:$0xff] %v15267_v19  ;;  %v6314_v55 = vpop.xlane.xlu1 %6313  ;;  %v6357_v54 = vmul.f32 1.442695, %v6328_v27 }
0x1067   : > { %v6300_v22 = vpop.xlane.xlu0 %6299 }
0x1068   : > { %11873 = vpow2.f32 %v6345_v53  ;;  %v6323_v37 = vsub.f32 %v15198_v45, %v6300_v22  ;;  %v6330_v53 = vsub.f32 %v15195_v60, %v6314_v55 }
0x1069   : > { %10598 = vmatpush3.bf16.xpose.msra.mxu0 %v6599_v38  ;;  %11875 = vpow2.f32 %v6349_v23 }
0x106a   : > { %v15269_v41 = vpop.eup %11869  ;;  %v6347_v4 = vmul.f32 1.442695, %v6323_v37  ;;  %11168 = vmatprep.subr.msk.bf16.mxu0 %vm3019_vm0, %v18326_v13 }
0x106b   : > { %18325 = vst [vmem:[#allocation37_spill] sm:$0xff] %v15269_v41  ;;  %v6304_v7 = vpop.xlane.xlu0 %6303  ;;  %v6397_v45 = vpack.c.bf16 %v15267_v19, %v15269_v41 }
0x106c   : > { %11877 = vpow2.f32 %v6347_v4  ;;  %v6325_v44 = vsub.f32 %v15203_v30, %v6304_v7  ;;  %v6361_v30 = vmul.f32 1.442695, %v6330_v53 }
0x106d   : > { %10573 = vmatprep.mubr.bf16.mxu0 %v6397_v45  ;;  %11879 = vpow2.f32 %v6353_v51 }
0x106e   : > { %v6351_v32 = vmul.f32 1.442695, %v6325_v44  ;;  %v15281_v29 = vpop.eup %11871 }
0x106f   : > { %v6308_v22 = vpop.xlane.xlu0 %6307  ;;  %18327 = vst [vmem:[#allocation39_spill] sm:$0xff] %v15281_v29 }
0x1070   : > { %11881 = vpow2.f32 %v6351_v32  ;;  %v6327_v23 = vsub.f32 %v15207_v14, %v6308_v22 }
0x1071   : > { %10600 = vmatpush3.bf16.xpose.msra.mxu0 %v6602_v46  ;;  %11883 = vpow2.f32 %v6357_v54 }
0x1072   : > { %v15283_v52 = vpop.eup %11873  ;;  %v6355_v37 = vmul.f32 1.442695, %v6327_v23 }
0x1073   : > { %18328 = vst [vmem:[#allocation41_spill] sm:$0xff] %v15283_v52  ;;  %v6312_v38 = vpop.xlane.xlu0 %6311  ;;  %v6398_v4 = vpack.c.bf16 %v15283_v52, %v15281_v29  ;;  %v15288_v51 = vpop.eup %11875 }
0x1074   : > { %11885 = vpow2.f32 %v6355_v37  ;;  %v6329_v60 = vsub.f32 %v15211_v9, %v6312_v38  ;;  %18329 = vst [vmem:[#allocation44_spill] sm:$0xff] %v15288_v51  ;;  %v18337_v37 = vld [vmem:[#allocation12_spill] sm:$0xff] }
0x1075   : > { %10574 = vmatmul.mubr.bf16.gmra.mrb[212].mxu0 %v6398_v4  ;;  %11887 = vpow2.f32 %v6361_v30  ;;  %v18338_v30 = vld [vmem:[#allocation14_spill] sm:$0xff]  ;;  %v18339_v38 = vld [vmem:[#allocation16_spill] sm:$0xff] }
0x1076   : > { %v15290_v14 = vpop.eup %11877  ;;  %v6359_v27 = vmul.f32 1.442695, %v6329_v60  ;;  %v18340_v4 = vld [vmem:[#allocation18_spill] sm:$0xff]  ;;  %v18341_v60 = vld [vmem:[#allocation20_spill] sm:$0xff] }
0x1077   : > { %18330 = vst [vmem:[#allocation245_spill] sm:$0xff] %v15290_v14  ;;  %v15292_v7 = vpop.permute.xlu0 %6982  ;;  %v6399_v45 = vpack.c.bf16 %v15288_v51, %v15290_v14  ;;  %v15298_v55 = vpop.eup %11879 }
0x1078   : > { %11889 = vpow2.f32 %v6359_v27  ;;  %11169 = vmatprep.subr.msk.bf16.mxu1 %vm3019_vm0, %v15292_v7  ;;  %18331 = vst [vmem:[#allocation246_spill] sm:$0xff] %v15298_v55  ;;  %v18342_v27 = vld [vmem:[#allocation22_spill] sm:$0xff] }
0x1079   : > { %10577 = vmatprep.mubr.bf16.mxu0 %v6399_v45  ;;  %v18343_v45 = vld [vmem:[#allocation24_spill] sm:$0xff] }
0x107a   : > { %v15300_v9 = vpop.eup %11881 }
0x107b   : > { %18332 = vst [vmem:[#allocation247_spill] sm:$0xff] %v15300_v9  ;;  %v6400_v44 = vpack.c.bf16 %v15298_v55, %v15300_v9  ;;  %v15304_v32 = vpop.eup %11883 }
0x107c   : > { %18333 = vst [vmem:[#allocation248_spill] sm:$0xff] %v15304_v32 }
0x107d   : > { %10578 = vmatmul.mubr.bf16.gmra.mrb[216].mxu0 %v6400_v44  ;;  %v18344_v44 = vld [vmem:[#allocation26_spill] sm:$0xff] }
0x107e   : > { %v15306_v54 = vpop.eup %11885 }
0x107f   : > { %18334 = vst [vmem:[#allocation249_spill] sm:$0xff] %v15306_v54  ;;  %v6401_v53 = vpack.c.bf16 %v15304_v32, %v15306_v54  ;;  %v15310_v22 = vpop.eup %11887 }
0x1080   : > { %18335 = vst [vmem:[#allocation250_spill] sm:$0xff] %v15310_v22 }
0x1081   : > { %10581 = vmatprep.mubr.bf16.mxu0 %v6401_v53 }
0x1082   : > { %v15312_v23 = vpop.eup %11889 }
0x1083   : > { %18336 = vst [vmem:[#allocation251_spill] sm:$0xff] %v15312_v23  ;;  %v6402_v46 = vpack.c.bf16 %v15310_v22, %v15312_v23 }
0x1085   : > { %10582 = vmatmul.mubr.bf16.gmra.mrb[220].mxu0 %v6402_v46 }
0x1086   : > { %10601 = vmatprep.mubr.msk.bf16.mxu0 %vm3019_vm0, %v18337_v37 }
0x108d   : > { %10602 = vmatmul.mubr.msk.bf16.vlgmr.msra.gmra.mrb[224].mxu0 %vm3019_vm0, %v18338_v30 }
0x108e   : > { %10605 = vmatprep.mubr.msk.bf16.mxu0 %vm3019_vm0, %v18339_v38 }
0x1095   : > { %10606 = vmatmul.mubr.msk.bf16.gmra.mrb[228].mxu0 %vm3019_vm0, %v18340_v4 }
0x1096   : > { %10609 = vmatprep.mubr.msk.bf16.mxu0 %vm3019_vm0, %v18341_v60 }
0x109d   : > { %10610 = vmatmul.mubr.msk.bf16.gmra.mrb[232].mxu0 %vm3019_vm0, %v18342_v27 }
0x109e   : > { %10613 = vmatprep.mubr.msk.bf16.mxu0 %vm3019_vm0, %v18343_v45 }
0x10a5   : > { %10614 = vmatmul.mubr.msk.bf16.gmra.mrb[236].mxu0 %vm3019_vm0, %v18344_v44 }
0x110b   : > { %v15332_v53 = vpop.f32.mrb[208].mxu0 }
0x110c   : > { %18345 = vst [vmem:[#allocation12_spill] sm:$0xff] %v15332_v53  ;;  %v15334_v46 = vpop.f32.mrb[209].mxu0 }
0x110d   : > { %18346 = vst [vmem:[#allocation14_spill] sm:$0xff] %v15334_v46  ;;  %v15336_v23 = vpop.f32.mrb[210].mxu0 }
0x110e   : > { %18347 = vst [vmem:[#allocation16_spill] sm:$0xff] %v15336_v23  ;;  %v15338_v54 = vpop.f32.mrb[211].mxu0 }
0x110f   : > { %18348 = vst [vmem:[#allocation18_spill] sm:$0xff] %v15338_v54 }
0x1148   : > { %v15340_v9 = vpop.f32.mrb[212].mxu0 }
0x1149   : > { %18349 = vst [vmem:[#allocation20_spill] sm:$0xff] %v15340_v9  ;;  %v15342_v14 = vpop.f32.mrb[213].mxu0 }
0x114a   : > { %18350 = vst [vmem:[#allocation22_spill] sm:$0xff] %v15342_v14  ;;  %v15344_v22 = vpop.f32.mrb[214].mxu0 }
0x114b   : > { %18351 = vst [vmem:[#allocation24_spill] sm:$0xff] %v15344_v22  ;;  %v15346_v32 = vpop.f32.mrb[215].mxu0 }
0x114c   : > { %18352 = vst [vmem:[#allocation26_spill] sm:$0xff] %v15346_v32 }
0x1150   : > { %v15348_v29 = vpop.f32.mrb[216].mxu0 }
0x1151   : > { %18353 = vst [vmem:[#allocation252_spill] sm:$0xff] %v15348_v29  ;;  %v15350_v55 = vpop.f32.mrb[217].mxu0 }
0x1152   : > { %18354 = vst [vmem:[#allocation253_spill] sm:$0xff] %v15350_v55  ;;  %v15352_v41 = vpop.f32.mrb[218].mxu0 }
0x1153   : > { %18355 = vst [vmem:[#allocation254_spill] sm:$0xff] %v15352_v41  ;;  %v15354_v53 = vpop.f32.mrb[219].mxu0 }
0x1154   : > { %18356 = vst [vmem:[#allocation255_spill] sm:$0xff] %v15354_v53 }
0x1158   : > { %v15356_v46 = vpop.f32.mrb[220].mxu0 }
0x1159   : > { %18357 = vst [vmem:[#allocation256_spill] sm:$0xff] %v15356_v46  ;;  %v15358_v23 = vpop.f32.mrb[221].mxu0 }
0x115a   : > { %18358 = vst [vmem:[#allocation257_spill] sm:$0xff] %v15358_v23  ;;  %v15360_v54 = vpop.f32.mrb[222].mxu0 }
0x115b   : > { %18359 = vst [vmem:[#allocation258_spill] sm:$0xff] %v15360_v54  ;;  %v15362_v9 = vpop.f32.mrb[223].mxu0 }
0x115c   : > { %18360 = vst [vmem:[#allocation259_spill] sm:$0xff] %v15362_v9 }
0x1160   : > { %v10603_v14 = vpop.f32.mrb[224].mxu0 }
0x1161   : > { %v15365_v22 = vadd.f32 %v15156_v8, %v10603_v14  ;;  %v6638_v32 = vpop.f32.mrb[225].mxu0 }
0x1162   : > { %v10604_v29 = vpop.f32.mrb[226].mxu0  ;;  %v15372_v46 = vadd.f32 %v15156_v8, %v6638_v32 }
0x1163   : > { %v15368_v55 = vadd.f32 %v15156_v8, %v10604_v29  ;;  %6705 = vmax.xlane.f32.xlu0 %v15365_v22  ;;  %v6641_v41 = vpop.f32.mrb[227].mxu0 }
0x1164   : > { %v15376_v23 = vadd.f32 %v15156_v8, %v6641_v41 }
0x1165   : > { %6707 = vmax.xlane.f32.xlu1 %v15368_v55 }
0x1167   : > { %6701 = vmax.xlane.f32.xlu0 %v15372_v46 }
0x1168   : > { %v10607_v14 = vpop.f32.mrb[228].mxu0 }
0x1169   : > { %v6654_v54 = vpop.f32.mrb[229].mxu0  ;;  %6703 = vmax.xlane.f32.xlu1 %v15376_v23  ;;  %v15385_v1 = vadd.f32 %v15156_v8, %v10607_v14 }
0x116a   : > { %v10608_v9 = vpop.f32.mrb[230].mxu0  ;;  %v15388_v35 = vadd.f32 %v15156_v8, %v6654_v54 }
0x116b   : > { %v6657_v29 = vpop.f32.mrb[231].mxu0  ;;  %v15396_v6 = vadd.f32 %v15156_v8, %v10608_v9 }
0x116c   : > { %v15404_v54 = vadd.f32 %v15156_v8, %v6657_v29 }
0x1170   : > { %v10611_v53 = vpop.f32.mrb[232].mxu0 }
0x1171   : > { %v6670_v17 = vpop.f32.mrb[233].mxu0  ;;  %v15412_v9 = vadd.f32 %v15156_v8, %v10611_v53 }
0x1172   : > { %v10612_v51 = vpop.f32.mrb[234].mxu0  ;;  %v15392_v31 = vadd.f32 %v15156_v8, %v6670_v17 }
0x1173   : > { %v6673_v52 = vpop.f32.mrb[235].mxu0 }
0x1174   : > { %v15400_v61 = vadd.f32 %v15156_v8, %v6673_v52  ;;  %v15417_v52 = vadd.f32 %v15156_v8, %v10612_v51  ;;  %v6985_v51 = vpop.permute.xlu1 %6984 }
0x1178   : > { %v10615_v19 = vpop.f32.mrb[236].mxu0 }
0x1179   : > { %v6686_v32 = vpop.f32.mrb[237].mxu0  ;;  %v15408_v17 = vadd.f32 %v15156_v8, %v10615_v19 }
0x117a   : > { %v10616_v20 = vpop.f32.mrb[238].mxu0  ;;  %6988 = vrot.lane.b32.xlu1 %v18320_v48, %s12606_s23  ;;  %v15421_v14 = vadd.f32 %v15156_v8, %v6686_v32 }
0x117b   : > { %v6689_v41 = vpop.f32.mrb[239].mxu0  ;;  %v15425_v19 = vadd.f32 %v15156_v8, %v10616_v20  ;;  %v6987_v20 = vpop.permute.xlu0 %6986 }
0x117c   : > { %v15429_v53 = vadd.f32 %v15156_v8, %v6689_v41 }
0x117d   : > { %6990 = vrot.lane.b32.xlu0 %v18321_v42, %s12606_s23 }
0x119c   : > { %6713 = vmax.xlane.f32.xlu0 %v15385_v1 }
0x119e   : > { %6709 = vmax.xlane.f32.xlu1 %v15388_v35 }
0x11a0   : > { %6717 = vmax.xlane.f32.xlu0 %v15392_v31 }
0x11a2   : > { %6715 = vmax.xlane.f32.xlu1 %v15396_v6 }
0x11a4   : > { %6719 = vmax.xlane.f32.xlu0 %v15400_v61 }
0x11a6   : > { %6711 = vmax.xlane.f32.xlu1 %v15404_v54 }
0x11a8   : > { %6729 = vmax.xlane.f32.xlu0 %v15408_v17 }
0x11aa   : > { %6721 = vmax.xlane.f32.xlu1 %v15412_v9 }
0x11ae   : > { %6723 = vmax.xlane.f32.xlu1 %v15417_v52 }
0x11b2   : > { %6725 = vmax.xlane.f32.xlu1 %v15421_v14 }
0x11b6   : > { %6731 = vmax.xlane.f32.xlu1 %v15425_v19 }
0x11ba   : > { %6727 = vmax.xlane.f32.xlu1 %v15429_v53 }
0x11be   : > { %6994 = vrot.lane.b32.xlu0 %v18323_v34, %s12606_s23 }
0x11c2   : > { %6996 = vrot.lane.b32.xlu0 %v18326_v13, %s12606_s23 }
0x11c6   : > { %6958 = vrot.lane.b32.xlu0 %v18337_v37, %s12606_s23 }
0x11ca   : > { %6962 = vrot.lane.b32.xlu0 %v18339_v38, %s12606_s23 }
0x11cb   : > { %6992 = vrot.lane.b32.xlu1 %v18322_v59, %s12606_s23 }
0x11ce   : > { %6966 = vrot.lane.b32.xlu0 %v18341_v60, %s12606_s23 }
0x11cf   : > { %6960 = vrot.lane.b32.xlu1 %v18338_v30, %s12606_s23 }
0x11d2   : > { %6970 = vrot.lane.b32.xlu0 %v18343_v45, %s12606_s23 }
0x11d3   : > { %6964 = vrot.lane.b32.xlu1 %v18340_v4, %s12606_s23 }
0x11d6   : > { %7271 = vrot.lane.b32.xlu0 %v18288_v62, %s12606_s23 }
0x11d7   : > { %6968 = vrot.lane.b32.xlu1 %v18342_v27, %s12606_s23 }
0x11da   : > { %7275 = vrot.lane.b32.xlu0 %v18291_v57, %s12606_s23 }
0x11db   : > { %6972 = vrot.lane.b32.xlu1 %v18344_v44, %s12606_s23 }
0x11de   : > { %7283 = vrot.lane.b32.xlu0 %v18295_v26, %s12606_s23 }
0x11df   : > { %7273 = vrot.lane.b32.xlu1 %v18290_v10, %s12606_s23 }
0x11e2   : > { %7440 = vrot.lane.b32.xlu0 %v18314_v11, %s12607_s14 }
0x11e3   : > { %7277 = vrot.lane.b32.xlu1 %v18292_v40, %s12606_s23 }
0x11e6   : > { %7442 = vrot.lane.b32.xlu0 %v18313_v47, %s12607_s14 }
0x11e7   : > { %7279 = vrot.lane.b32.xlu1 %v18293_v50, %s12606_s23 }
0x11ea   : > { %7446 = vrot.lane.b32.xlu0 %v18320_v48, %s12607_s14 }
0x11eb   : > { %7281 = vrot.lane.b32.xlu1 %v18294_v39, %s12606_s23 }
0x11ef   : > { %7285 = vrot.lane.b32.xlu1 %v18296_v25, %s12606_s23 }
0x11f0   : > { %v6706_v29 = vpop.xlane.xlu0 %6705 }
0x11f1   : > { %v6735_v43 = vsub.f32 %v15365_v22, %v6706_v29 }
0x11f2   : > { %v6708_v32 = vpop.xlane.xlu1 %6707 }
0x11f3   : > { %v6736_v41 = vsub.f32 %v15368_v55, %v6708_v32  ;;  %7444 = vrot.lane.b32.xlu1 %v18315_v18, %s12607_s14  ;;  %v6753_v58 = vmul.f32 1.442695, %v6735_v43  ;;  %v7023_v43 = vsel %vm3019_vm0, %v15292_v7, 0 }
0x11f4   : > { %v6702_v5 = vpop.xlane.xlu0 %6701 }
0x11f5   : > { %v6755_v15 = vmul.f32 1.442695, %v6736_v41  ;;  %v6733_v12 = vsub.f32 %v15372_v46, %v6702_v5 }
0x11f6   : > { %v6704_v28 = vpop.xlane.xlu1 %6703 }
0x11f7   : > { %v6749_v36 = vmul.f32 1.442695, %v6733_v12  ;;  %v6734_v24 = vsub.f32 %v15376_v23, %v6704_v28  ;;  %7448 = vrot.lane.b32.xlu1 %v18321_v42, %s12607_s14  ;;  %11891 = vpow2.f32 %v6755_v15 }
0x11f8   : > { %v6991_v15 = vpop.permute.xlu0 %6990 }
0x11f9   : > { %v6751_v2 = vmul.f32 1.442695, %v6734_v24  ;;  %11893 = vpow2.f32 %v6749_v36  ;;  %v7035_v7 = vsel %vm3019_vm0, %v6991_v15, 0 }
0x11fa   : > { %v6989_v24 = vpop.permute.xlu1 %6988 }
0x11fb   : > { %11895 = vpow2.f32 %v6751_v2  ;;  %v7026_v2 = vsel %vm3019_vm0, %v6985_v51, 0  ;;  %v7032_v36 = vsel %vm3019_vm0, %v6989_v24, 0 }
0x11fc   : > { %11897 = vpow2.f32 %v6753_v58  ;;  %v7029_v58 = vsel %vm3019_vm0, %v6987_v20, 0 }
0x1201   : > { %v15484_v55 = vpop.eup %11891 }
0x1203   : > { %v15486_v22 = vpop.eup %11893 }
0x1204   : > { %18361 = vst [vmem:[#allocation260_spill] sm:$0xff] %v15486_v22 }
0x1205   : > { %v15488_v29 = vpop.eup %11895 }
0x1206   : > { %v15490_v5 = vpop.eup %11897  ;;  %v6813_v28 = vpack.c.bf16 %v15488_v29, %v15486_v22 }
0x1207   : > { %18362 = vst [vmem:[#allocation261_spill] sm:$0xff] %v15490_v5  ;;  %v6814_v12 = vpack.c.bf16 %v15484_v55, %v15490_v5 }
0x1208   : > { %10633 = vmatprep.mubr.bf16.mxu1 %v6813_v28 }
0x1209   : > { %10634 = vmatmul.mubr.bf16.vlgmr.msra.gmra.mrb[208].mxu1 %v6814_v12 }
0x120a   : > { %10650 = vmatpush3.bf16.xpose.msra.mxu1 %v7023_v43 }
0x120b   : > { %11170 = vmatprep.subr.msk.bf16.mxu1 %vm3019_vm0, %v6985_v51 }
0x1212   : > { %10652 = vmatpush3.bf16.xpose.msra.mxu1 %v7026_v2 }
0x1213   : > { %11171 = vmatprep.subr.msk.bf16.mxu1 %vm3019_vm0, %v6987_v20 }
0x121a   : > { %10654 = vmatpush3.bf16.xpose.msra.mxu1 %v7029_v58 }
0x121b   : > { %11172 = vmatprep.subr.msk.bf16.mxu1 %vm3019_vm0, %v6989_v24 }
0x1222   : > { %10656 = vmatpush3.bf16.xpose.msra.mxu1 %v7032_v36 }
0x1223   : > { %11173 = vmatprep.subr.msk.bf16.mxu1 %vm3019_vm0, %v6991_v15 }
0x1229   : > { %v6714_v23 = vpop.xlane.xlu0 %6713 }
0x122a   : > { %10658 = vmatpush3.bf16.xpose.msra.mxu1 %v7035_v7  ;;  %v6739_v28 = vsub.f32 %v15385_v1, %v6714_v23 }
0x122b   : > { %v6710_v46 = vpop.xlane.xlu1 %6709 }
0x122c   : > { %v6737_v51 = vsub.f32 %v15388_v35, %v6710_v46  ;;  %v6761_v5 = vmul.f32 1.442695, %v6739_v28 }
0x122d   : > { %v6718_v32 = vpop.xlane.xlu0 %6717 }
0x122e   : > { %v6757_v12 = vmul.f32 1.442695, %v6737_v51  ;;  %v6741_v2 = vsub.f32 %v15392_v31, %v6718_v32 }
0x122f   : > { %v6716_v41 = vpop.xlane.xlu1 %6715 }
0x1230   : > { %v6740_v20 = vsub.f32 %v15396_v6, %v6716_v41  ;;  %11899 = vpow2.f32 %v6757_v12  ;;  %v6765_v46 = vmul.f32 1.442695, %v6741_v2 }
0x1231   : > { %v6720_v43 = vpop.xlane.xlu0 %6719 }
0x1232   : > { %v6763_v58 = vmul.f32 1.442695, %v6740_v20  ;;  %v6742_v24 = vsub.f32 %v15400_v61, %v6720_v43 }
0x1233   : > { %v6712_v36 = vpop.xlane.xlu1 %6711 }
0x1234   : > { %v6767_v15 = vmul.f32 1.442695, %v6742_v24  ;;  %v6738_v7 = vsub.f32 %v15404_v54, %v6712_v36  ;;  %11901 = vpow2.f32 %v6763_v58 }
0x1235   : > { %v6730_v35 = vpop.xlane.xlu0 %6729 }
0x1236   : > { %v6759_v22 = vmul.f32 1.442695, %v6738_v7  ;;  %11903 = vpow2.f32 %v6767_v15  ;;  %v6747_v15 = vsub.f32 %v15408_v17, %v6730_v35 }
0x1237   : > { %v6722_v6 = vpop.xlane.xlu1 %6721 }
0x1238   : > { %11905 = vpow2.f32 %v6759_v22  ;;  %v6743_v1 = vsub.f32 %v15412_v9, %v6722_v6 }
0x1239   : > { %11907 = vpow2.f32 %v6761_v5  ;;  %v6995_v31 = vpop.permute.xlu0 %6994 }
0x123a   : > { %11909 = vpow2.f32 %v6765_v46  ;;  %v6769_v23 = vmul.f32 1.442695, %v6743_v1  ;;  %v15516_v41 = vpop.eup %11899 }
0x123b   : > { %v6724_v61 = vpop.xlane.xlu1 %6723 }
0x123c   : > { %v6744_v51 = vsub.f32 %v15417_v52, %v6724_v61  ;;  %11911 = vpow2.f32 %v6769_v23 }
0x123d   : > { %v15514_v32 = vpop.permute.xlu0 %6996 }
0x123e   : > { %v6771_v54 = vmul.f32 1.442695, %v6744_v51  ;;  %v15518_v28 = vpop.eup %11901 }
0x123f   : > { %v6726_v20 = vpop.xlane.xlu1 %6725 }
0x1240   : > { %11913 = vpow2.f32 %v6771_v54  ;;  %v15520_v22 = vpop.eup %11903  ;;  %v6745_v12 = vsub.f32 %v15421_v14, %v6726_v20 }
0x1241   : > { %v6959_v9 = vpop.permute.xlu0 %6958 }
0x1242   : > { %v15522_v5 = vpop.eup %11905  ;;  %v6773_v46 = vmul.f32 1.442695, %v6745_v12 }
0x1243   : > { %v15525_v43 = vpop.eup %11907  ;;  %v6732_v52 = vpop.xlane.xlu1 %6731  ;;  %v6815_v2 = vpack.c.bf16 %v15522_v5, %v15516_v41 }
0x1244   : > { %v15529_v58 = vpop.eup %11909  ;;  %v6748_v24 = vsub.f32 %v15425_v19, %v6732_v52  ;;  %v6816_v36 = vpack.c.bf16 %v15518_v28, %v15525_v43  ;;  %v6777_v19 = vmul.f32 1.442695, %v6747_v15  ;;  %11915 = vpow2.f32 %v6773_v46 }
0x1245   : > { %18363 = vst [vmem:[#allocation262_spill] sm:$0xff] %v15529_v58  ;;  %10637 = vmatprep.mubr.bf16.mxu1 %v6815_v2  ;;  %v6963_v7 = vpop.permute.xlu0 %6962  ;;  %v6817_v14 = vpack.c.bf16 %v15520_v22, %v15529_v58  ;;  %v7041_v15 = vsel %vm3019_vm0, %v6995_v31, 0 }
0x1246   : > { %10638 = vmatmul.mubr.bf16.gmra.mrb[212].mxu1 %v6816_v36  ;;  %v6779_v6 = vmul.f32 1.442695, %v6748_v24  ;;  %v15538_v61 = vpop.eup %11911 }
0x1247   : > { %v6728_v1 = vpop.xlane.xlu1 %6727  ;;  %10641 = vmatprep.mubr.bf16.mxu1 %v6817_v14  ;;  %18364 = vst [vmem:[#allocation263_spill] sm:$0xff] %v15538_v61 }
0x1248   : > { %v6746_v23 = vsub.f32 %v15429_v53, %v6728_v1  ;;  %11917 = vpow2.f32 %v6779_v6 }
0x1249   : > { %v6967_v51 = vpop.permute.xlu0 %6966 }
0x124a   : > { %v15540_v54 = vpop.eup %11913  ;;  %v6775_v17 = vmul.f32 1.442695, %v6746_v23 }
0x124b   : > { %v6993_v35 = vpop.permute.xlu1 %6992  ;;  %v6818_v20 = vpack.c.bf16 %v15540_v54, %v15538_v61 }
0x124c   : > { %11919 = vpow2.f32 %v6775_v17  ;;  %11174 = vmatprep.subr.msk.bf16.mxu1 %vm3019_vm0, %v6993_v35  ;;  %v7038_v12 = vsel %vm3019_vm0, %v6993_v35, 0  ;;  %v7044_v17 = vsel %vm3019_vm0, %v15514_v32, 0 }
0x124d   : > { %11921 = vpow2.f32 %v6777_v19  ;;  %10660 = vmatpush3.bf16.xpose.msra.mxu1 %v7038_v12  ;;  %v6971_v53 = vpop.permute.xlu0 %6970 }
0x124e   : > { %10642 = vmatmul.mubr.bf16.gmra.mrb[216].mxu1 %v6818_v20  ;;  %11175 = vmatprep.subr.msk.bf16.mxu1 %vm3019_vm0, %v6995_v31  ;;  %v15547_v36 = vpop.eup %11915 }
0x124f   : > { %v6961_v52 = vpop.permute.xlu1 %6960  ;;  %18365 = vst [vmem:[#allocation264_spill] sm:$0xff] %v15547_v36 }
0x1251   : > { %v7272_v2 = vpop.permute.xlu0 %7271 }
0x1252   : > { %10681 = vmatprep.subr.bf16.mxu0 %v7272_v2  ;;  %v15550_v14 = vpop.eup %11917 }
0x1253   : > { %v6965_v24 = vpop.permute.xlu1 %6964  ;;  %10682 = vmatpush3.bf16.msra.mxu0 %v7272_v2 }
0x1255   : > { %10662 = vmatpush3.bf16.xpose.msra.mxu1 %v7041_v15  ;;  %v7276_v20 = vpop.permute.xlu0 %7275 }
0x1256   : > { %v15552_v46 = vpop.eup %11919  ;;  %11176 = vmatprep.subr.msk.bf16.mxu1 %vm3019_vm0, %v15514_v32 }
0x1257   : > { %v15556_v6 = vpop.eup %11921  ;;  %v6969_v1 = vpop.permute.xlu1 %6968  ;;  %v6819_v23 = vpack.c.bf16 %v15552_v46, %v15547_v36 }
0x1258   : > { %18366 = vst [vmem:[#allocation265_spill] sm:$0xff] %v15556_v6  ;;  %v6820_v19 = vpack.c.bf16 %v15550_v14, %v15556_v6 }
0x1259   : > { %10645 = vmatprep.mubr.bf16.mxu1 %v6819_v23  ;;  %v7284_v32 = vpop.permute.xlu0 %7283 }
0x125a   : > { %10646 = vmatmul.mubr.bf16.gmra.mrb[220].mxu1 %v6820_v19 }
0x125b   : > { %v6973_v31 = vpop.permute.xlu1 %6972  ;;  %10665 = vmatprep.mubr.msk.bf16.mxu1 %vm3019_vm0, %v6959_v9 }
0x125d   : > { %10664 = vmatpush3.bf16.xpose.msra.mxu1 %v7044_v17 }
0x125f   : > { %v7274_v35 = vpop.permute.xlu1 %7273 }
0x1260   : > { %10683 = vmatprep.subr.bf16.mxu0 %v7274_v35 }
0x1261   : > { %10684 = vmatpush3.bf16.msra.mxu0 %v7274_v35 }
0x1262   : > { %10685 = vmatprep.subr.bf16.mxu0 %v7276_v20 }
0x1263   : > { %v7278_v12 = vpop.permute.xlu1 %7277 }
0x1264   : > { %10666 = vmatmul.mubr.msk.bf16.vlgmr.msra.gmra.mrb[224].mxu1 %vm3019_vm0, %v6961_v52 }
0x1265   : > { %10669 = vmatprep.mubr.msk.bf16.mxu1 %vm3019_vm0, %v6963_v7  ;;  %10686 = vmatpush3.bf16.msra.mxu0 %v7276_v20  ;;  %v15571_v7 = vpop.permute.xlu0 %7440 }
0x1266   : > { %10687 = vmatprep.subr.bf16.mxu0 %v7278_v12 }
0x1267   : > { %v7280_v2 = vpop.permute.xlu1 %7279 }
0x1269   : > { %10688 = vmatpush3.bf16.msra.mxu0 %v7278_v12 }
0x126a   : > { %10689 = vmatprep.subr.bf16.mxu0 %v7280_v2 }
0x126b   : > { %v7282_v9 = vpop.permute.xlu1 %7281 }
0x126c   : > { %10670 = vmatmul.mubr.msk.bf16.gmra.mrb[228].mxu1 %vm3019_vm0, %v6965_v24 }
0x126d   : > { %10673 = vmatprep.mubr.msk.bf16.mxu1 %vm3019_vm0, %v6967_v51  ;;  %10690 = vmatpush3.bf16.msra.mxu0 %v7280_v2 }
0x126e   : > { %10691 = vmatprep.subr.bf16.mxu0 %v7282_v9 }
0x126f   : > { %v7286_v52 = vpop.permute.xlu1 %7285 }
0x1271   : > { %10692 = vmatpush3.bf16.msra.mxu0 %v7282_v9 }
0x1272   : > { %10693 = vmatprep.subr.bf16.mxu0 %v7284_v32 }
0x1274   : > { %10674 = vmatmul.mubr.msk.bf16.gmra.mrb[232].mxu1 %vm3019_vm0, %v6969_v1 }
0x1275   : > { %10677 = vmatprep.mubr.msk.bf16.mxu1 %vm3019_vm0, %v6971_v53  ;;  %10694 = vmatpush3.bf16.msra.mxu0 %v7284_v32 }
0x1276   : > { %10695 = vmatprep.subr.bf16.mxu0 %v7286_v52 }
0x1279   : > { %10696 = vmatpush3.bf16.msra.mxu0 %v7286_v52 }
0x127a   : > { %11177 = vmatprep.subr.msk.bf16.mxu0 %vm3019_vm0, %v15571_v7 }
0x127c   : > { %10678 = vmatmul.mubr.msk.bf16.gmra.mrb[236].mxu1 %vm3019_vm0, %v6973_v31 }
0x12dc   : > { %v15576_v51 = vpop.f32.mrb[208].mxu1 }
0x12dd   : > { %18367 = vst [vmem:[#allocation266_spill] sm:$0xff] %v15576_v51  ;;  %v15578_v24 = vpop.f32.mrb[209].mxu1 }
0x12de   : > { %18368 = vst [vmem:[#allocation267_spill] sm:$0xff] %v15578_v24  ;;  %v15580_v15 = vpop.f32.mrb[210].mxu1 }
0x12df   : > { %18369 = vst [vmem:[#allocation268_spill] sm:$0xff] %v15580_v15  ;;  %v15582_v1 = vpop.f32.mrb[211].mxu1 }
0x12e0   : > { %18370 = vst [vmem:[#allocation269_spill] sm:$0xff] %v15582_v1 }
0x1319   : > { %v15584_v23 = vpop.f32.mrb[212].mxu1 }
0x131a   : > { %18371 = vst [vmem:[#allocation270_spill] sm:$0xff] %v15584_v23  ;;  %v15586_v53 = vpop.f32.mrb[213].mxu1 }
0x131b   : > { %18372 = vst [vmem:[#allocation271_spill] sm:$0xff] %v15586_v53  ;;  %v15588_v19 = vpop.f32.mrb[214].mxu1 }
0x131c   : > { %18373 = vst [vmem:[#allocation272_spill] sm:$0xff] %v15588_v19  ;;  %v15590_v17 = vpop.f32.mrb[215].mxu1 }
0x131d   : > { %18374 = vst [vmem:[#allocation273_spill] sm:$0xff] %v15590_v17 }
0x1321   : > { %v15592_v35 = vpop.f32.mrb[216].mxu1 }
0x1322   : > { %18375 = vst [vmem:[#allocation274_spill] sm:$0xff] %v15592_v35  ;;  %v15594_v20 = vpop.f32.mrb[217].mxu1 }
0x1323   : > { %18376 = vst [vmem:[#allocation275_spill] sm:$0xff] %v15594_v20  ;;  %v15596_v31 = vpop.f32.mrb[218].mxu1 }
0x1324   : > { %18377 = vst [vmem:[#allocation276_spill] sm:$0xff] %v15596_v31  ;;  %v15598_v12 = vpop.f32.mrb[219].mxu1 }
0x1325   : > { %18378 = vst [vmem:[#allocation277_spill] sm:$0xff] %v15598_v12 }
0x132d   : > { %v15600_v2 = vpop.f32.mrb[220].mxu1 }
0x132e   : > { %18379 = vst [vmem:[#allocation278_spill] sm:$0xff] %v15600_v2  ;;  %v15602_v9 = vpop.f32.mrb[221].mxu1 }
0x132f   : > { %18380 = vst [vmem:[#allocation279_spill] sm:$0xff] %v15602_v9  ;;  %v15604_v32 = vpop.f32.mrb[222].mxu1 }
0x1330   : > { %18381 = vst [vmem:[#allocation280_spill] sm:$0xff] %v15604_v32  ;;  %v15606_v52 = vpop.f32.mrb[223].mxu1 }
0x1331   : > { %18382 = vst [vmem:[#allocation281_spill] sm:$0xff] %v15606_v52 }
0x1337   : > { %v10667_v23 = vpop.f32.mrb[224].mxu1 }
0x1338   : > { %v15609_v53 = vadd.f32 %v15156_v8, %v10667_v23  ;;  %v7080_v51 = vpop.f32.mrb[225].mxu1 }
0x1339   : > { %v10668_v35 = vpop.f32.mrb[226].mxu1  ;;  %v15616_v2 = vadd.f32 %v15156_v8, %v7080_v51 }
0x133a   : > { %7147 = vmax.xlane.f32.xlu0 %v15609_v53  ;;  %v7083_v20 = vpop.f32.mrb[227].mxu1  ;;  %v15621_v32 = vadd.f32 %v15156_v8, %v10668_v35 }
0x133b   : > { %v15613_v31 = vadd.f32 %v15156_v8, %v7083_v20 }
0x133d   : > { %7145 = vmax.xlane.f32.xlu1 %v15613_v31 }
0x133e   : > { %7143 = vmax.xlane.f32.xlu0 %v15616_v2 }
0x133f   : > { %v10671_v9 = vpop.f32.mrb[228].mxu1 }
0x1340   : > { %v15624_v23 = vadd.f32 %v15156_v8, %v10671_v9  ;;  %v7096_v52 = vpop.f32.mrb[229].mxu1 }
0x1341   : > { %v10672_v12 = vpop.f32.mrb[230].mxu1  ;;  %v15629_v51 = vadd.f32 %v15156_v8, %v7096_v52 }
0x1342   : > { %7149 = vmax.xlane.f32.xlu0 %v15621_v32  ;;  %7155 = vmax.xlane.f32.xlu1 %v15624_v23  ;;  %v7099_v20 = vpop.f32.mrb[231].mxu1  ;;  %v15633_v24 = vadd.f32 %v15156_v8, %v10672_v12 }
0x1346   : > { %7151 = vmax.xlane.f32.xlu1 %v15629_v51 }
0x1347   : > { %v10675_v19 = vpop.f32.mrb[232].mxu1 }
0x1348   : > { %v7112_v35 = vpop.f32.mrb[233].mxu1 }
0x1349   : > { %v10676_v17 = vpop.f32.mrb[234].mxu1  ;;  %v15637_v15 = vadd.f32 %v15156_v8, %v7112_v35  ;;  %v15669_v35 = vadd.f32 %v15156_v8, %v10675_v19 }
0x134a   : > { %7157 = vmax.xlane.f32.xlu1 %v15633_v24  ;;  %v7115_v9 = vpop.f32.mrb[235].mxu1  ;;  %v15641_v52 = vadd.f32 %v15156_v8, %v10676_v17 }
0x134b   : > { %v15645_v61 = vadd.f32 %v15156_v8, %v7115_v9 }
0x134e   : > { %7159 = vmax.xlane.f32.xlu1 %v15637_v15 }
0x134f   : > { %v10679_v1 = vpop.f32.mrb[236].mxu1 }
0x1350   : > { %v7128_v6 = vpop.f32.mrb[237].mxu1  ;;  %v15649_v58 = vadd.f32 %v15156_v8, %v10679_v1  ;;  %v15663_v1 = vadd.f32 %v15156_v8, %v7099_v20  ;;  %v15681_v20 = vld [vmem:[%s13466_s13] ss:$0 sm:$0xff] }
0x1351   : > { %v10680_v36 = vpop.f32.mrb[238].mxu1 }
0x1352   : > { %7165 = vmax.xlane.f32.xlu1 %v15641_v52  ;;  %v7131_v12 = vpop.f32.mrb[239].mxu1  ;;  %v15655_v17 = vadd.f32 %v15156_v8, %v10680_v36  ;;  %v15675_v36 = vadd.f32 %v15156_v8, %v7128_v6  ;;  %v7443_v8 = vpop.permute.xlu0 %7442 }
0x1353   : > { %v15684_v9 = vadd.f32 %v15681_v20, %v7131_v12 }
0x1356   : > { %7161 = vmax.xlane.f32.xlu1 %v15645_v61 }
0x1358   : > { %7450 = vrot.lane.b32.xlu0 %v18322_v59, %s12607_s14 }
0x135a   : > { %7171 = vmax.xlane.f32.xlu1 %v15649_v58 }
0x135e   : > { %7173 = vmax.xlane.f32.xlu1 %v15655_v17 }
0x136f   : > { %7426 = vrot.lane.b32.xlu1 %v18338_v30, %s12607_s14 }
0x1373   : > { %7430 = vrot.lane.b32.xlu1 %v18340_v4, %s12607_s14 }
0x1377   : > { %7153 = vmax.xlane.f32.xlu0 %v15663_v1  ;;  %7434 = vrot.lane.b32.xlu1 %v18342_v27, %s12607_s14 }
0x137b   : > { %7163 = vmax.xlane.f32.xlu0 %v15669_v35  ;;  %7438 = vrot.lane.b32.xlu1 %v18344_v44, %s12607_s14 }
0x137f   : > { %7723 = vrot.lane.b32.xlu1 %v18290_v10, %s12607_s14  ;;  %7167 = vmax.xlane.f32.xlu0 %v15675_v36 }
0x1383   : > { %7727 = vrot.lane.b32.xlu1 %v18292_v40, %s12607_s14  ;;  %7169 = vmax.xlane.f32.xlu0 %v15684_v9 }
0x1387   : > { %7729 = vrot.lane.b32.xlu1 %v18293_v50, %s12607_s14 }
0x138b   : > { %7731 = vrot.lane.b32.xlu1 %v18294_v39, %s12607_s14 }
0x138f   : > { %7735 = vrot.lane.b32.xlu1 %v18296_v25, %s12607_s14 }
0x1393   : > { %7894 = vrot.lane.b32.xlu1 %v18315_v18, %s12608_s21 }
0x1397   : > { %7898 = vrot.lane.b32.xlu1 %v18321_v42, %s12608_s21 }
0x1399   : > { %7452 = vrot.lane.b32.xlu0 %v18323_v34, %s12607_s14 }
0x139b   : > { %7876 = vrot.lane.b32.xlu1 %v18338_v30, %s12608_s21 }
0x139d   : > { %7454 = vrot.lane.b32.xlu0 %v18326_v13, %s12607_s14 }
0x139f   : > { %7880 = vrot.lane.b32.xlu1 %v18340_v4, %s12608_s21 }
0x13a1   : > { %7424 = vrot.lane.b32.xlu0 %v18337_v37, %s12607_s14 }
0x13a3   : > { %7884 = vrot.lane.b32.xlu1 %v18342_v27, %s12608_s21 }
0x13a5   : > { %7428 = vrot.lane.b32.xlu0 %v18339_v38, %s12607_s14 }
0x13a7   : > { %7888 = vrot.lane.b32.xlu1 %v18344_v44, %s12608_s21 }
0x13a9   : > { %7432 = vrot.lane.b32.xlu0 %v18341_v60, %s12607_s14 }
0x13ab   : > { %8173 = vrot.lane.b32.xlu1 %v18290_v10, %s12608_s21  ;;  %v7445_v10 = vpop.permute.xlu1 %7444 }
0x13ad   : > { %7436 = vrot.lane.b32.xlu0 %v18343_v45, %s12607_s14 }
0x13af   : > { %8179 = vrot.lane.b32.xlu1 %v18293_v50, %s12608_s21  ;;  %v15735_v50 = vpop.permute.xlu0 %7446  ;;  %v15739_v18 = vpop.permute.xlu1 %7448 }
0x13b1   : > { %7721 = vrot.lane.b32.xlu0 %v18288_v62, %s12607_s14 }
0x13b3   : > { %8183 = vrot.lane.b32.xlu1 %v18295_v26, %s12608_s21 }
0x13b5   : > { %7725 = vrot.lane.b32.xlu0 %v18291_v57, %s12607_s14 }
0x13b9   : > { %7733 = vrot.lane.b32.xlu0 %v18295_v26, %s12607_s14 }
0x13bd   : > { %7890 = vrot.lane.b32.xlu0 %v18314_v11, %s12608_s21 }
0x13c1   : > { %7892 = vrot.lane.b32.xlu0 %v18313_v47, %s12608_s21 }
0x13c5   : > { %7896 = vrot.lane.b32.xlu0 %v18320_v48, %s12608_s21 }
0x13c7   : > { %v7148_v42 = vpop.xlane.xlu0 %7147 }
0x13c8   : > { %v7177_v11 = vsub.f32 %v15609_v53, %v7148_v42  ;;  %v7481_v42 = vsel %vm3019_vm0, %v15571_v7, 0 }
0x13c9   : > { %7900 = vrot.lane.b32.xlu0 %v18322_v59, %s12608_s21 }
0x13ca   : > { %v7146_v26 = vpop.xlane.xlu1 %7145  ;;  %v7195_v19 = vmul.f32 1.442695, %v7177_v11 }
0x13cb   : > { %v7176_v30 = vsub.f32 %v15613_v31, %v7146_v26  ;;  %v7144_v4 = vpop.xlane.xlu0 %7143 }
0x13cc   : > { %v7175_v27 = vsub.f32 %v15616_v2, %v7144_v4  ;;  %v7493_v4 = vsel %vm3019_vm0, %v15739_v18, 0 }
0x13cd   : > { %v7193_v47 = vmul.f32 1.442695, %v7176_v30  ;;  %7902 = vrot.lane.b32.xlu0 %v18323_v34, %s12608_s21 }
0x13ce   : > { %v7191_v44 = vmul.f32 1.442695, %v7175_v27 }
0x13cf   : > { %11923 = vpow2.f32 %v7193_v47  ;;  %v15748_v48 = vpop.xlane.xlu1 %7155  ;;  %v7150_v6 = vpop.xlane.xlu0 %7149 }
0x13d0   : > { %11925 = vpow2.f32 %v7191_v44  ;;  %v7178_v59 = vsub.f32 %v15621_v32, %v7150_v6 }
0x13d1   : > { %7904 = vrot.lane.b32.xlu0 %v18326_v13, %s12608_s21  ;;  %11927 = vpow2.f32 %v7195_v19 }
0x13d2   : > { %v7197_v31 = vmul.f32 1.442695, %v7178_v59  ;;  %v18388_v59 = vld [vmem:[#allocation191_spill] sm:$0xff] }
0x13d3   : > { %v7152_v53 = vpop.xlane.xlu1 %7151 }
0x13d4   : > { %11929 = vpow2.f32 %v7197_v31 }
0x13d5   : > { %7874 = vrot.lane.b32.xlu0 %v18337_v37, %s12608_s21 }
0x13d7   : > { %v7158_v34 = vpop.xlane.xlu1 %7157  ;;  %3687 = vadd.xlane.f32.xlu1 %v13837_v63 }
0x13d8   : > { %v7182_v7 = vsub.f32 %v15633_v24, %v7158_v34 }
0x13d9   : > { %v15756_v2 = vpop.eup %11923  ;;  %7878 = vrot.lane.b32.xlu0 %v18339_v38, %s12608_s21 }
0x13da   : > { %v15760_v12 = vpop.eup %11925  ;;  %v7205_v11 = vmul.f32 1.442695, %v7182_v7 }
0x13db   : > { %3691 = vadd.xlane.f32.xlu1 %v13841_v16  ;;  %v7255_v13 = vpack.c.bf16 %v15756_v2, %v15760_v12  ;;  %v7160_v32 = vpop.xlane.xlu1 %7159  ;;  %v15767_v37 = vpop.eup %11927 }
0x13dc   : > { %v7183_v27 = vsub.f32 %v15637_v15, %v7160_v32  ;;  %v18389_v32 = vld [vmem:[#allocation193_spill] sm:$0xff] }
0x13dd   : > { %7882 = vrot.lane.b32.xlu0 %v18341_v60, %s12608_s21  ;;  %10697 = vmatprep.mubr.bf16.mxu0 %v7255_v13  ;;  %v7484_v60 = vsel %vm3019_vm0, %v7443_v8, 0 }
0x13de   : > { %v15769_v63 = vpop.eup %11929 }
0x13df   : > { %3693 = vadd.xlane.f32.xlu1 %v13844_v21  ;;  %v7256_v38 = vpack.c.bf16 %v15769_v63, %v15767_v37  ;;  %v15776_v16 = vpop.xlane.xlu1 %7165 }
0x13e0   : > { %v7186_v19 = vsub.f32 %v15641_v52, %v15776_v16 }
0x13e1   : > { %7886 = vrot.lane.b32.xlu0 %v18343_v45, %s12608_s21  ;;  %10698 = vmatmul.mubr.bf16.vlgmr.msra.gmra.mrb[240].mxu0 %v7256_v38  ;;  %v7179_v45 = vsub.f32 %v15629_v51, %v7152_v53  ;;  %v18387_v51 = vld [vmem:[#allocation92_spill] sm:$0xff] }
0x13e2   : > { %10714 = vmatpush3.bf16.xpose.msra.mxu0 %v7481_v42  ;;  %v7213_v13 = vmul.f32 1.442695, %v7186_v19  ;;  %v18397_v19 = vld [vmem:[#allocation94_spill] sm:$0xff] }
0x13e3   : > { %3695 = vadd.xlane.f32.xlu1 %v13850_v49  ;;  %11178 = vmatprep.subr.msk.bf16.mxu0 %vm3019_vm0, %v7443_v8  ;;  %v7162_v21 = vpop.xlane.xlu1 %7161  ;;  %v18386_v8 = vld [vmem:[#allocation93_spill] sm:$0xff]  ;;  %v7199_v30 = vmul.f32 1.442695, %v7179_v45 }
0x13e5   : > { %8171 = vrot.lane.b32.xlu0 %v18288_v62, %s12608_s21  ;;  %v18383_v62 = vld [vmem:[#allocation87_spill] sm:$0xff]  ;;  %11931 = vpow2.f32 %v7199_v30  ;;  %v18393_v30 = vld [vmem:[#allocation90_spill] sm:$0xff] }
0x13e6   : > { %11933 = vpow2.f32 %v7205_v11 }
0x13e7   : > { %3697 = vadd.xlane.f32.xlu1 %v13854_v0  ;;  %v15792_v49 = vpop.xlane.xlu1 %7171  ;;  %v7487_v0 = vsel %vm3019_vm0, %v7445_v10, 0 }
0x13e9   : > { %8175 = vrot.lane.b32.xlu0 %v18291_v57, %s12608_s21 }
0x13ea   : > { %10716 = vmatpush3.bf16.xpose.msra.mxu0 %v7484_v60 }
0x13eb   : > { %3699 = vadd.xlane.f32.xlu1 %v13861_v3  ;;  %11179 = vmatprep.subr.msk.bf16.mxu0 %vm3019_vm0, %v7445_v10  ;;  %v15799_v57 = vpop.xlane.xlu1 %7173  ;;  %v18384_v3 = vld [vmem:[#allocation89_spill] sm:$0xff]  ;;  %v7184_v10 = vsub.f32 %v15645_v61, %v7162_v21 }
0x13ec   : > { %v7190_v52 = vsub.f32 %v15655_v17, %v15799_v57 }
0x13ed   : > { %8177 = vrot.lane.b32.xlu0 %v18292_v40, %s12608_s21  ;;  %v7209_v24 = vmul.f32 1.442695, %v7184_v10  ;;  %v18392_v10 = vld [vmem:[#allocation198_spill] sm:$0xff] }
0x13ee   : > { %v7221_v57 = vmul.f32 1.442695, %v7190_v52 }
0x13ef   : > { %3701 = vadd.xlane.f32.xlu1 %v13863_v56  ;;  %v15806_v40 = vpop.permute.xlu1 %7426  ;;  %v7490_v56 = vsel %vm3019_vm0, %v15735_v50, 0  ;;  %11935 = vpow2.f32 %v7209_v24  ;;  %v18395_v24 = vld [vmem:[#allocation91_spill] sm:$0xff] }
0x13f1   : > { %8181 = vrot.lane.b32.xlu0 %v18294_v39, %s12608_s21  ;;  %v18385_v39 = vld [vmem:[#allocation88_spill] sm:$0xff] }
0x13f2   : > { %10718 = vmatpush3.bf16.xpose.msra.mxu0 %v7487_v0 }
0x13f3   : > { %3703 = vadd.xlane.f32.xlu1 %v18383_v62  ;;  %11180 = vmatprep.subr.msk.bf16.mxu0 %vm3019_vm0, %v15735_v50  ;;  %v15817_v26 = vpop.permute.xlu1 %7430  ;;  %v7181_v50 = vsub.f32 %v15624_v23, %v15748_v48  ;;  %v7207_v23 = vmul.f32 1.442695, %v7183_v27  ;;  %v18394_v27 = vld [vmem:[#allocation197_spill] sm:$0xff] }
0x13f5   : > { %8185 = vrot.lane.b32.xlu0 %v18296_v25, %s12608_s21  ;;  %v7451_v25 = vpop.permute.xlu0 %7450  ;;  %v7203_v44 = vmul.f32 1.442695, %v7181_v50 }
0x13f7   : > { %3705 = vadd.xlane.f32.xlu1 %v18384_v3  ;;  %v15827_v6 = vpop.permute.xlu1 %7434 }
0x13fa   : > { %10720 = vmatpush3.bf16.xpose.msra.mxu0 %v7490_v56  ;;  %v18390_v56 = vld [vmem:[#allocation195_spill] sm:$0xff] }
0x13fb   : > { %3709 = vadd.xlane.f32.xlu1 %v18385_v39  ;;  %11181 = vmatprep.subr.msk.bf16.mxu0 %vm3019_vm0, %v15739_v18  ;;  %v15835_v31 = vpop.permute.xlu1 %7438  ;;  %v18391_v39 = vld [vmem:[#allocation86_spill] sm:$0xff] }
0x13ff   : > { %3713 = vadd.xlane.f32.xlu1 %v18386_v8  ;;  %v15850_v0 = vpop.permute.xlu1 %7723 }
0x1402   : > { %10722 = vmatpush3.bf16.xpose.msra.mxu0 %v7493_v4 }
0x1403   : > { %3717 = vadd.xlane.f32.xlu1 %v18387_v51  ;;  %11182 = vmatprep.subr.msk.bf16.mxu0 %vm3019_vm0, %v7451_v25  ;;  %v7728_v50 = vpop.permute.xlu1 %7727 }
0x1404   : > { %v7154_v47 = vpop.xlane.xlu0 %7153 }
0x1405   : > { %v7180_v61 = vsub.f32 %v15663_v1, %v7154_v47  ;;  %v7496_v1 = vsel %vm3019_vm0, %v7451_v25, 0 }
0x1407   : > { %v7201_v48 = vmul.f32 1.442695, %v7180_v61  ;;  %5457 = vadd.xlane.f32.xlu1 %v14785_v33 }
0x1408   : > { %v7164_v15 = vpop.xlane.xlu0 %7163 }
0x1409   : > { %11937 = vpow2.f32 %v7201_v48  ;;  %v7185_v18 = vsub.f32 %v15669_v35, %v7164_v15  ;;  %v15839_v35 = vpop.eup %11931  ;;  %v7730_v48 = vpop.permute.xlu1 %7729 }
0x140a   : > { %11939 = vpow2.f32 %v7203_v44  ;;  %10724 = vmatpush3.bf16.xpose.msra.mxu0 %v7496_v1  ;;  %v15843_v42 = vpop.eup %11933 }
0x140b   : > { %11941 = vpow2.f32 %v7207_v23  ;;  %5461 = vadd.xlane.f32.xlu1 %v18388_v59  ;;  %v7211_v53 = vmul.f32 1.442695, %v7185_v18  ;;  %v15846_v60 = vpop.eup %11935  ;;  %v18396_v18 = vld [vmem:[#allocation202_spill] sm:$0xff] }
0x140c   : > { %v7168_v34 = vpop.xlane.xlu0 %7167 }
0x140d   : > { %v7187_v33 = vsub.f32 %v15675_v36, %v7168_v34  ;;  %11943 = vpow2.f32 %v7211_v53  ;;  %v7189_v36 = vsub.f32 %v15649_v58, %v15792_v49  ;;  %v18398_v34 = vld [vmem:[#allocation201_spill] sm:$0xff] }
0x140e   : > { %11945 = vpow2.f32 %v7213_v13  ;;  %v7732_v13 = vpop.permute.xlu1 %7731 }
0x140f   : > { %5465 = vadd.xlane.f32.xlu1 %v18389_v32  ;;  %v7215_v38 = vmul.f32 1.442695, %v7187_v33  ;;  %v7219_v8 = vmul.f32 1.442695, %v7189_v36  ;;  %v18399_v32 = vld [vmem:[#allocation189_spill] sm:$0xff] }
0x1410   : > { %v7170_v16 = vpop.xlane.xlu0 %7169 }
0x1411   : > { %v7188_v21 = vsub.f32 %v15684_v9, %v7170_v16  ;;  %11947 = vpow2.f32 %v7215_v38  ;;  %v18400_v16 = vld [vmem:[#allocation111_spill] sm:$0xff] }
0x1413   : > { %v15852_v62 = vpop.eup %11937  ;;  %v7217_v3 = vmul.f32 1.442695, %v7188_v21  ;;  %5469 = vadd.xlane.f32.xlu1 %v18390_v56  ;;  %v18401_v21 = vld [vmem:[#allocation190_spill] sm:$0xff] }
0x1414   : > { %v15855_v17 = vpop.eup %11939  ;;  %3689 = vadd.xlane.f32.xlu0 %v18391_v39  ;;  %v7453_v9 = vpop.permute.xlu0 %7452  ;;  %v7257_v45 = vpack.c.bf16 %v15852_v62, %v15839_v35  ;;  %v18402_v56 = vld [vmem:[#allocation114_spill] sm:$0xff] }
0x1415   : > { %v15860_v7 = vpop.eup %11941  ;;  %11949 = vpow2.f32 %v7217_v3  ;;  %11183 = vmatprep.subr.msk.bf16.mxu0 %vm3019_vm0, %v7453_v9  ;;  %v7499_v58 = vsel %vm3019_vm0, %v7453_v9, 0  ;;  %v7258_v49 = vpack.c.bf16 %v15843_v42, %v15855_v17  ;;  %v7736_v3 = vpop.permute.xlu1 %7735  ;;  %v18404_v9 = vld [vmem:[#allocation116_spill] sm:$0xff] }
0x1416   : > { %10701 = vmatprep.mubr.bf16.mxu0 %v7257_v45  ;;  %10726 = vmatpush3.bf16.xpose.msra.mxu0 %v7499_v58  ;;  %v7259_v25 = vpack.c.bf16 %v15846_v60, %v15860_v7  ;;  %11951 = vpow2.f32 %v7221_v57  ;;  %v18403_v57 = vld [vmem:[#allocation192_spill] sm:$0xff]  ;;  %v18405_v58 = vld [vmem:[#allocation194_spill] sm:$0xff] }
0x1417   : > { %5473 = vadd.xlane.f32.xlu1 %v18392_v10  ;;  %10702 = vmatmul.mubr.bf16.gmra.mrb[244].mxu0 %v7258_v49  ;;  %v15871_v11 = vpop.eup %11943  ;;  %11953 = vpow2.f32 %v7219_v8  ;;  %v18406_v8 = vld [vmem:[#allocation118_spill] sm:$0xff] }
0x1418   : > { %3707 = vadd.xlane.f32.xlu0 %v18393_v30  ;;  %10705 = vmatprep.mubr.bf16.mxu0 %v7259_v25  ;;  %v7455_v4 = vpop.permute.xlu0 %7454  ;;  %v15874_v51 = vpop.eup %11945  ;;  %v18407_v25 = vld [vmem:[#allocation196_spill] sm:$0xff] }
0x1419   : > { %11184 = vmatprep.subr.msk.bf16.mxu0 %vm3019_vm0, %v7455_v4  ;;  %v7502_v61 = vsel %vm3019_vm0, %v7455_v4, 0  ;;  %v7260_v44 = vpack.c.bf16 %v15874_v51, %v15871_v11  ;;  %v15904_v45 = vpop.permute.xlu1 %7894  ;;  %v18409_v4 = vld [vmem:[#allocation199_spill] sm:$0xff] }
0x141b   : > { %5477 = vadd.xlane.f32.xlu1 %v18394_v27  ;;  %v15880_v23 = vpop.eup %11947 }
0x141c   : > { %3711 = vadd.xlane.f32.xlu0 %v18395_v24  ;;  %v7425_v47 = vpop.permute.xlu0 %7424 }
0x141d   : > { %v15912_v30 = vpop.permute.xlu1 %7898 }
0x141e   : > { %10728 = vmatpush3.bf16.xpose.msra.mxu0 %v7502_v61 }
0x141f   : > { %v15882_v15 = vpop.eup %11949  ;;  %5481 = vadd.xlane.f32.xlu1 %v18396_v18  ;;  %10706 = vmatmul.mubr.bf16.gmra.mrb[248].mxu0 %v7260_v44  ;;  %v18413_v44 = vld [vmem:[#allocation125_spill] sm:$0xff] }
0x1420   : > { %3715 = vadd.xlane.f32.xlu0 %v18397_v19  ;;  %v7429_v1 = vpop.permute.xlu0 %7428  ;;  %v7261_v59 = vpack.c.bf16 %v15882_v15, %v15880_v23  ;;  %v15888_v53 = vpop.eup %11951  ;;  %v18416_v19 = vld [vmem:[#allocation124_spill] sm:$0xff] }
0x1421   : > { %v15891_v33 = vpop.eup %11953  ;;  %v15922_v24 = vpop.permute.xlu1 %7876 }
0x1422   : > { %10709 = vmatprep.mubr.bf16.mxu0 %v7261_v59  ;;  %v7262_v38 = vpack.c.bf16 %v15888_v53, %v15891_v33  ;;  %18411 = vst [vmem:[#allocation87_spill] sm:$0xff] %v15922_v24  ;;  %v18418_v59 = vld [vmem:[#allocation220_spill] sm:$0xff] }
0x1423   : > { %5485 = vadd.xlane.f32.xlu1 %v18398_v34  ;;  %v18420_v34 = vld [vmem:[#allocation113_spill] sm:$0xff] }
0x1424   : > { %5455 = vadd.xlane.f32.xlu0 %v18399_v32  ;;  %v7433_v52 = vpop.permute.xlu0 %7432 }
0x1427   : > { %4147 = vadd.xlane.f32.xlu1 %v18400_v16  ;;  %10710 = vmatmul.mubr.bf16.gmra.mrb[252].mxu0 %v7262_v38 }
0x1428   : > { %5459 = vadd.xlane.f32.xlu0 %v18401_v21  ;;  %10729 = vmatprep.mubr.msk.bf16.mxu0 %vm3019_vm0, %v7425_v47  ;;  %v7437_v36 = vpop.permute.xlu0 %7436  ;;  %v18412_v47 = vld [vmem:[#allocation200_spill] sm:$0xff]  ;;  %v18427_v21 = vld [vmem:[#allocation117_spill] sm:$0xff] }
0x142b   : > { %4151 = vadd.xlane.f32.xlu1 %v18402_v56  ;;  %v18429_v56 = vld [vmem:[#allocation227_spill] sm:$0xff] }
0x142c   : > { %5463 = vadd.xlane.f32.xlu0 %v18403_v57  ;;  %v7722_v39 = vpop.permute.xlu0 %7721  ;;  %v18430_v57 = vld [vmem:[#allocation119_spill] sm:$0xff] }
0x142d   : > { %10745 = vmatprep.subr.bf16.mxu1 %v7722_v39 }
0x142e   : > { %10746 = vmatpush3.bf16.msra.mxu1 %v7722_v39 }
0x142f   : > { %4155 = vadd.xlane.f32.xlu1 %v18404_v9  ;;  %10730 = vmatmul.mubr.msk.bf16.vlgmr.msra.gmra.mrb[0].mxu0 %vm3019_vm0, %v15806_v40  ;;  %v18408_v40 = vld [vmem:[#allocation121_spill] sm:$0xff]  ;;  %v18432_v9 = vld [vmem:[#allocation230_spill] sm:$0xff] }
0x1430   : > { %10747 = vmatprep.subr.bf16.mxu1 %v15850_v0  ;;  %5467 = vadd.xlane.f32.xlu0 %v18405_v58  ;;  %v7726_v49 = vpop.permute.xlu0 %7725  ;;  %v18433_v58 = vld [vmem:[#allocation122_spill] sm:$0xff] }
0x1431   : > { %10733 = vmatprep.mubr.msk.bf16.mxu0 %vm3019_vm0, %v7429_v1  ;;  %v18417_v1 = vld [vmem:[#allocation112_spill] sm:$0xff] }
0x1432   : > { %10748 = vmatpush3.bf16.msra.mxu1 %v15850_v0  ;;  %v18410_v0 = vld [vmem:[#allocation120_spill] sm:$0xff] }
0x1433   : > { %4159 = vadd.xlane.f32.xlu1 %v18406_v8  ;;  %10749 = vmatprep.subr.bf16.mxu1 %v7726_v49 }
0x1434   : > { %5471 = vadd.xlane.f32.xlu0 %v18407_v25  ;;  %v7734_v10 = vpop.permute.xlu0 %7733  ;;  %v18435_v25 = vld [vmem:[#allocation229_spill] sm:$0xff] }
0x1436   : > { %10750 = vmatpush3.bf16.msra.mxu1 %v7726_v49 }
0x1437   : > { %4163 = vadd.xlane.f32.xlu1 %v18408_v40  ;;  %10734 = vmatmul.mubr.msk.bf16.gmra.mrb[4].mxu0 %vm3019_vm0, %v15817_v26  ;;  %v18414_v26 = vld [vmem:[#allocation203_spill] sm:$0xff] }
0x1438   : > { %10751 = vmatprep.subr.bf16.mxu1 %v7728_v50  ;;  %5475 = vadd.xlane.f32.xlu0 %v18409_v4  ;;  %v15918_v27 = vpop.permute.xlu0 %7890  ;;  %v18438_v4 = vld [vmem:[#allocation234_spill] sm:$0xff] }
0x1439   : > { %10737 = vmatprep.mubr.msk.bf16.mxu0 %vm3019_vm0, %v7433_v52  ;;  %v18423_v52 = vld [vmem:[#allocation115_spill] sm:$0xff] }
0x143a   : > { %10752 = vmatpush3.bf16.msra.mxu1 %v7728_v50  ;;  %v15934_v50 = vpop.permute.xlu1 %7880 }
0x143b   : > { %4167 = vadd.xlane.f32.xlu1 %v18410_v0  ;;  %10753 = vmatprep.subr.bf16.mxu1 %v7730_v48  ;;  %18415 = vst [vmem:[#allocation89_spill] sm:$0xff] %v15934_v50 }
0x143c   : > { %5479 = vadd.xlane.f32.xlu0 %v18412_v47  ;;  %v15925_v61 = vpop.permute.xlu0 %7892  ;;  %v18439_v47 = vld [vmem:[#allocation126_spill] sm:$0xff] }
0x143e   : > { %10754 = vmatpush3.bf16.msra.mxu1 %v7730_v48 }
0x143f   : > { %4171 = vadd.xlane.f32.xlu1 %v18413_v44  ;;  %10738 = vmatmul.mubr.msk.bf16.gmra.mrb[8].mxu0 %vm3019_vm0, %v15827_v6  ;;  %v15943_v6 = vpop.permute.xlu1 %7884 }
0x1440   : > { %10755 = vmatprep.subr.bf16.mxu1 %v7732_v13  ;;  %5483 = vadd.xlane.f32.xlu0 %v18414_v26  ;;  %v15931_v18 = vpop.permute.xlu0 %7896  ;;  %18419 = vst [vmem:[#allocation88_spill] sm:$0xff] %v15943_v6  ;;  %v18440_v26 = vld [vmem:[#allocation233_spill] sm:$0xff] }
0x1441   : > { %10741 = vmatprep.mubr.msk.bf16.mxu0 %vm3019_vm0, %v7437_v36 }
0x1442   : > { %10756 = vmatpush3.bf16.msra.mxu1 %v7732_v13  ;;  %v18422_v13 = vld [vmem:[#allocation223_spill] sm:$0xff] }
0x1443   : > { %4175 = vadd.xlane.f32.xlu1 %v18416_v19  ;;  %10757 = vmatprep.subr.bf16.mxu1 %v7734_v10  ;;  %v15954_v16 = vpop.permute.xlu1 %7888 }
0x1444   : > { %4145 = vadd.xlane.f32.xlu0 %v18417_v1  ;;  %v15938_v48 = vpop.permute.xlu0 %7900  ;;  %18425 = vst [vmem:[#allocation191_spill] sm:$0xff] %v15954_v16  ;;  %v18441_v1 = vld [vmem:[#allocation221_spill] sm:$0xff] }
0x1446   : > { %10758 = vmatpush3.bf16.msra.mxu1 %v7734_v10  ;;  %v18436_v10 = vld [vmem:[#allocation123_spill] sm:$0xff] }
0x1447   : > { %5915 = vadd.xlane.f32.xlu1 %v18418_v59  ;;  %10742 = vmatmul.mubr.msk.bf16.gmra.mrb[12].mxu0 %vm3019_vm0, %v15835_v31  ;;  %v18426_v31 = vld [vmem:[#allocation225_spill] sm:$0xff] }
0x1448   : > { %10759 = vmatprep.subr.bf16.mxu1 %v7736_v3  ;;  %4149 = vadd.xlane.f32.xlu0 %v18420_v34  ;;  %v15946_v32 = vpop.permute.xlu0 %7902  ;;  %v18442_v34 = vld [vmem:[#allocation30_spill] sm:$0xff] }
0x1449   : > { %18421 = vst [vmem:[#allocation93_spill] sm:$0xff] %v15946_v32 }
0x144a   : > { %10760 = vmatpush3.bf16.msra.mxu1 %v7736_v3  ;;  %v8174_v3 = vpop.permute.xlu1 %8173 }
0x144b   : > { %5919 = vadd.xlane.f32.xlu1 %v18422_v13  ;;  %11185 = vmatprep.subr.msk.bf16.mxu1 %vm3019_vm0, %v15918_v27 }
0x144c   : > { %4153 = vadd.xlane.f32.xlu0 %v18423_v52  ;;  %v15952_v38 = vpop.permute.xlu0 %7904  ;;  %v18443_v52 = vld [vmem:[#allocation222_spill] sm:$0xff] }
0x144d   : > { %18424 = vst [vmem:[#allocation92_spill] sm:$0xff] %v15952_v38 }
0x144e   : > { %v8180_v8 = vpop.permute.xlu1 %8179 }
0x144f   : > { %5923 = vadd.xlane.f32.xlu1 %v18426_v31 }
0x1450   : > { %4157 = vadd.xlane.f32.xlu0 %v18427_v21  ;;  %v15958_v36 = vpop.permute.xlu0 %7874  ;;  %v18444_v21 = vld [vmem:[#allocation141_spill] sm:$0xff] }
0x1451   : > { %18428 = vst [vmem:[#allocation193_spill] sm:$0xff] %v15958_v36 }
0x1452   : > { %v8184_v0 = vpop.permute.xlu1 %8183 }
0x1453   : > { %5927 = vadd.xlane.f32.xlu1 %v18429_v56 }
0x1454   : > { %4161 = vadd.xlane.f32.xlu0 %v18430_v57  ;;  %v15962_v39 = vpop.permute.xlu0 %7878  ;;  %v18445_v57 = vld [vmem:[#allocation224_spill] sm:$0xff] }
0x1455   : > { %18431 = vst [vmem:[#allocation195_spill] sm:$0xff] %v15962_v39 }
0x1457   : > { %5931 = vadd.xlane.f32.xlu1 %v18432_v9 }
0x1458   : > { %4165 = vadd.xlane.f32.xlu0 %v18433_v58  ;;  %v15966_v49 = vpop.permute.xlu0 %7882  ;;  %v18446_v58 = vld [vmem:[#allocation34_spill] sm:$0xff] }
0x1459   : > { %18434 = vst [vmem:[#allocation86_spill] sm:$0xff] %v15966_v49 }
0x145b   : > { %5935 = vadd.xlane.f32.xlu1 %v18435_v25  ;;  %v18447_v25 = vld [vmem:[#allocation226_spill] sm:$0xff] }
0x145c   : > { %4169 = vadd.xlane.f32.xlu0 %v18436_v10  ;;  %v15970_v40 = vpop.permute.xlu0 %7886  ;;  %v18448_v10 = vld [vmem:[#allocation96_spill] sm:$0xff] }
0x145d   : > { %18437 = vst [vmem:[#allocation198_spill] sm:$0xff] %v15970_v40 }
0x145f   : > { %5939 = vadd.xlane.f32.xlu1 %v18438_v4 }
0x1460   : > { %4173 = vadd.xlane.f32.xlu0 %v18439_v47  ;;  %v8172_v44 = vpop.permute.xlu0 %8171 }
0x1461   : > { %10809 = vmatprep.subr.bf16.mxu0 %v8172_v44 }
0x1462   : > { %10810 = vmatpush3.bf16.msra.mxu0 %v8172_v44 }
0x1463   : > { %5943 = vadd.xlane.f32.xlu1 %v18440_v26  ;;  %10811 = vmatprep.subr.bf16.mxu0 %v8174_v3 }
0x1464   : > { %v3688_v19 = vpop.xlane.xlu1 %3687  ;;  %5913 = vadd.xlane.f32.xlu0 %v18441_v1  ;;  %v8176_v59 = vpop.permute.xlu0 %8175  ;;  %v18450_v1 = vld [vmem:[#allocation95_spill] sm:$0xff] }
0x1465   : > { %11955 = vrcp.f32 %v3688_v19  ;;  %v18449_v19 = vld [vmem:[#allocation228_spill] sm:$0xff] }
0x1466   : > { %10812 = vmatpush3.bf16.msra.mxu0 %v8174_v3 }
0x1467   : > { %4597 = vadd.xlane.f32.xlu1 %v18442_v34  ;;  %10813 = vmatprep.subr.bf16.mxu0 %v8176_v59 }
0x1468   : > { %v3692_v13 = vpop.xlane.xlu1 %3691  ;;  %5917 = vadd.xlane.f32.xlu0 %v18443_v52  ;;  %v8178_v31 = vpop.permute.xlu0 %8177  ;;  %v18451_v52 = vld [vmem:[#allocation231_spill] sm:$0xff] }
0x1469   : > { %11957 = vrcp.f32 %v3692_v13 }
0x146a   : > { %10814 = vmatpush3.bf16.msra.mxu0 %v8176_v59 }
0x146b   : > { %4601 = vadd.xlane.f32.xlu1 %v18444_v21  ;;  %10815 = vmatprep.subr.bf16.mxu0 %v8178_v31 }
0x146c   : > { %v3694_v56 = vpop.xlane.xlu1 %3693  ;;  %5921 = vadd.xlane.f32.xlu0 %v18445_v57  ;;  %v8182_v47 = vpop.permute.xlu0 %8181  ;;  %v18453_v57 = vld [vmem:[#allocation232_spill] sm:$0xff] }
0x146d   : > { %11959 = vrcp.f32 %v3694_v56 }
0x146e   : > { %10816 = vmatpush3.bf16.msra.mxu0 %v8178_v31 }
0x146f   : > { %v11956_v9 = vpop.eup %11955  ;;  %4605 = vadd.xlane.f32.xlu1 %v18446_v58  ;;  %10817 = vmatprep.subr.bf16.mxu0 %v8180_v8 }
0x1470   : > { %v3696_v3 = vpop.xlane.xlu1 %3695  ;;  %5925 = vadd.xlane.f32.xlu0 %v18447_v25  ;;  %v15983_v4 = vmul.f32 %v11956_v9, %v18448_v10  ;;  %v18454_v9 = vld [vmem:[#allocation100_spill] sm:$0xff]  ;;  %v18455_v25 = vld [vmem:[#allocation46_spill] sm:$0xff] }
0x1471   : > { %11961 = vrcp.f32 %v3696_v3 }
0x1472   : > { %10818 = vmatpush3.bf16.msra.mxu0 %v8180_v8  ;;  %v18452_v8 = vld [vmem:[#allocation97_spill] sm:$0xff] }
0x1473   : > { %v11958_v44 = vpop.eup %11957  ;;  %7229 = vadd.xlane.f32.xlu1 %v15769_v63  ;;  %10819 = vmatprep.subr.bf16.mxu0 %v8182_v47  ;;  %v8186_v63 = vpop.permute.xlu0 %8185 }
0x1474   : > { %v3698_v26 = vpop.xlane.xlu1 %3697  ;;  %5929 = vadd.xlane.f32.xlu0 %v18449_v19  ;;  %v15988_v59 = vmul.f32 %v11958_v44, %v18450_v1  ;;  %v18457_v44 = vld [vmem:[#allocation28_spill] sm:$0xff] }
0x1475   : > { %11963 = vrcp.f32 %v3698_v26  ;;  %v18458_v26 = vld [vmem:[#allocation99_spill] sm:$0xff] }
0x1476   : > { %10820 = vmatpush3.bf16.msra.mxu0 %v8182_v47 }
0x1477   : > { %v11960_v34 = vpop.eup %11959  ;;  %7225 = vadd.xlane.f32.xlu1 %v15756_v2  ;;  %10821 = vmatprep.subr.bf16.mxu0 %v8184_v0 }
0x1478   : > { %v3700_v13 = vpop.xlane.xlu1 %3699  ;;  %5933 = vadd.xlane.f32.xlu0 %v18451_v52  ;;  %v15993_v31 = vmul.f32 %v11960_v34, %v18452_v8  ;;  %v18459_v34 = vld [vmem:[#allocation32_spill] sm:$0xff] }
0x1479   : > { %11965 = vrcp.f32 %v3700_v13  ;;  %v18460_v13 = vld [vmem:[#allocation101_spill] sm:$0xff]  ;;  %v18462_v8 = vld [vmem:[#allocation36_spill] sm:$0xff] }
0x147a   : > { %10822 = vmatpush3.bf16.msra.mxu0 %v8184_v0  ;;  %v18456_v0 = vld [vmem:[#allocation102_spill] sm:$0xff] }
0x147b   : > { %v11962_v21 = vpop.eup %11961  ;;  %7237 = vadd.xlane.f32.xlu1 %v15843_v42  ;;  %10823 = vmatprep.subr.bf16.mxu0 %v8186_v63 }
0x147c   : > { %v3702_v56 = vpop.xlane.xlu1 %3701  ;;  %5937 = vadd.xlane.f32.xlu0 %v18453_v57  ;;  %v15998_v58 = vmul.f32 %v11962_v21, %v18454_v9 }
0x147d   : > { %11967 = vrcp.f32 %v3702_v56  ;;  %v18465_v56 = vld [vmem:[#allocation43_spill] sm:$0xff] }
0x147e   : > { %10824 = vmatpush3.bf16.msra.mxu0 %v8186_v63 }
0x147f   : > { %v11964_v2 = vpop.eup %11963  ;;  %7233 = vadd.xlane.f32.xlu1 %v15852_v62 }
0x1480   : > { %v16001_v3 = vpop.xlane.xlu1 %3703  ;;  %5941 = vadd.xlane.f32.xlu0 %v18455_v25  ;;  %v16005_v10 = vmul.f32 %v11964_v2, %v18456_v0  ;;  %v18471_v2 = vld [vmem:[#allocation147_spill] sm:$0xff]  ;;  %v18474_v0 = vld [vmem:[#allocation244_spill] sm:$0xff] }
0x1481   : > { %v18473_v25 = vld [vmem:[#allocation31_spill] sm:$0xff] }
0x1483   : > { %v11966_v42 = vpop.eup %11965  ;;  %7245 = vadd.xlane.f32.xlu1 %v15874_v51 }
0x1484   : > { %v16008_v47 = vpop.xlane.xlu1 %3705  ;;  %4595 = vadd.xlane.f32.xlu0 %v18457_v44  ;;  %v16012_v19 = vmul.f32 %v11966_v42, %v18458_v26 }
0x1487   : > { %v11968_v1 = vpop.eup %11967  ;;  %7241 = vadd.xlane.f32.xlu1 %v15846_v60  ;;  %v18463_v60 = vld [vmem:[#allocation40_spill] sm:$0xff] }
0x1488   : > { %v16015_v62 = vpop.xlane.xlu1 %3709  ;;  %4599 = vadd.xlane.f32.xlu0 %v18459_v34  ;;  %v16019_v52 = vmul.f32 %v11968_v1, %v18460_v13 }
0x148a   : > { %18461 = vst [vmem:[#allocation90_spill] sm:$0xff] %v16019_v52 }
0x148b   : > { %7253 = vadd.xlane.f32.xlu1 %v15888_v53  ;;  %v18467_v53 = vld [vmem:[#allocation143_spill] sm:$0xff] }
0x148c   : > { %v16022_v51 = vpop.xlane.xlu1 %3713  ;;  %4603 = vadd.xlane.f32.xlu0 %v18462_v8 }
0x148f   : > { %7249 = vadd.xlane.f32.xlu1 %v15882_v15  ;;  %v18469_v15 = vld [vmem:[#allocation145_spill] sm:$0xff] }
0x1490   : > { %v16026_v63 = vpop.xlane.xlu1 %3717  ;;  %7227 = vadd.xlane.f32.xlu0 %v15767_v37 }
0x1493   : > { %4609 = vadd.xlane.f32.xlu1 %v18463_v60 }
0x1494   : > { %v16030_v21 = vpop.xlane.xlu1 %5457  ;;  %7223 = vadd.xlane.f32.xlu0 %v15760_v12 }
0x1495   : > { %18464 = vst [vmem:[#allocation197_spill] sm:$0xff] %v16030_v21 }
0x1497   : > { %4613 = vadd.xlane.f32.xlu1 %v18465_v56 }
0x1498   : > { %v16034_v57 = vpop.xlane.xlu1 %5461  ;;  %7235 = vadd.xlane.f32.xlu0 %v15855_v17 }
0x1499   : > { %18466 = vst [vmem:[#allocation91_spill] sm:$0xff] %v16034_v57 }
0x149b   : > { %4617 = vadd.xlane.f32.xlu1 %v18467_v53 }
0x149c   : > { %v16038_v9 = vpop.xlane.xlu1 %5465  ;;  %7231 = vadd.xlane.f32.xlu0 %v15839_v35 }
0x149d   : > { %18468 = vst [vmem:[#allocation202_spill] sm:$0xff] %v16038_v9  ;;  %v18522_v9 = vld [vmem:[#allocation44_spill] sm:$0xff] }
0x149f   : > { %4621 = vadd.xlane.f32.xlu1 %v18469_v15 }
0x14a0   : > { %7243 = vadd.xlane.f32.xlu0 %v15871_v11  ;;  %v16043_v37 = vpop.xlane.xlu1 %5469  ;;  %v18476_v11 = vld [vmem:[#allocation35_spill] sm:$0xff] }
0x14a1   : > { %18470 = vst [vmem:[#allocation94_spill] sm:$0xff] %v16043_v37  ;;  %v16051_v17 = vpop.xlane.xlu0 %3689  ;;  %v18519_v37 = vld [vmem:[#allocation142_spill] sm:$0xff] }
0x14a2   : > { %11969 = vrcp.f32 %v16051_v17 }
0x14a3   : > { %4625 = vadd.xlane.f32.xlu1 %v18471_v2 }
0x14a4   : > { %7239 = vadd.xlane.f32.xlu0 %v15860_v7  ;;  %v16047_v12 = vpop.xlane.xlu1 %5473  ;;  %v18478_v7 = vld [vmem:[#allocation41_spill] sm:$0xff] }
0x14a5   : > { %18472 = vst [vmem:[#allocation201_spill] sm:$0xff] %v16047_v12  ;;  %v16058_v42 = vpop.xlane.xlu0 %3707 }
0x14a7   : > { %6365 = vadd.xlane.f32.xlu1 %v18473_v25 }
0x14a8   : > { %7251 = vadd.xlane.f32.xlu0 %v15891_v33  ;;  %v16055_v35 = vpop.xlane.xlu1 %5477 }
0x14a9   : > { %18475 = vst [vmem:[#allocation189_spill] sm:$0xff] %v16055_v35  ;;  %v16065_v1 = vpop.xlane.xlu0 %3711 }
0x14ab   : > { %6369 = vadd.xlane.f32.xlu1 %v18474_v0 }
0x14ac   : > { %7247 = vadd.xlane.f32.xlu0 %v15880_v23  ;;  %v16060_v44 = vpop.xlane.xlu1 %5481 }
0x14ad   : > { %18477 = vst [vmem:[#allocation111_spill] sm:$0xff] %v16060_v44  ;;  %v16075_v8 = vpop.xlane.xlu0 %3715 }
0x14af   : > { %6373 = vadd.xlane.f32.xlu1 %v18476_v11 }
0x14b0   : > { %v16073_v23 = vpop.xlane.xlu1 %5485 }
0x14b1   : > { %18483 = vst [vmem:[#allocation194_spill] sm:$0xff] %v16073_v23  ;;  %v16079_v56 = vpop.xlane.xlu0 %5455 }
0x14b3   : > { %6377 = vadd.xlane.f32.xlu1 %v18478_v7 }
0x14b4   : > { %v16063_v26 = vpop.f32.mrb[240].mxu0  ;;  %v16077_v60 = vpop.xlane.xlu1 %4147 }
0x14b5   : > { %18479 = vst [vmem:[#allocation190_spill] sm:$0xff] %v16063_v26  ;;  %v16067_v33 = vpop.f32.mrb[241].mxu0  ;;  %18484 = vst [vmem:[#allocation118_spill] sm:$0xff] %v16077_v60  ;;  %v16083_v15 = vpop.xlane.xlu0 %5459 }
0x14b6   : > { %18480 = vst [vmem:[#allocation114_spill] sm:$0xff] %v16067_v33  ;;  %v16069_v34 = vpop.f32.mrb[242].mxu0 }
0x14b7   : > { %18481 = vst [vmem:[#allocation192_spill] sm:$0xff] %v16069_v34  ;;  %v16071_v13 = vpop.f32.mrb[243].mxu0 }
0x14b8   : > { %18482 = vst [vmem:[#allocation116_spill] sm:$0xff] %v16071_v13  ;;  %v16081_v53 = vpop.xlane.xlu1 %4151 }
0x14b9   : > { %18485 = vst [vmem:[#allocation196_spill] sm:$0xff] %v16081_v53  ;;  %v16087_v25 = vpop.xlane.xlu0 %5463 }
0x14bc   : > { %v16085_v2 = vpop.xlane.xlu1 %4155 }
0x14bd   : > { %18486 = vst [vmem:[#allocation121_spill] sm:$0xff] %v16085_v2  ;;  %v16091_v11 = vpop.xlane.xlu0 %5467 }
0x14c0   : > { %v16089_v0 = vpop.xlane.xlu1 %4159 }
0x14c1   : > { %18487 = vst [vmem:[#allocation199_spill] sm:$0xff] %v16089_v0  ;;  %v16095_v34 = vpop.xlane.xlu0 %5471 }
0x14c4   : > { %v16093_v7 = vpop.xlane.xlu1 %4163 }
0x14c5   : > { %18488 = vst [vmem:[#allocation120_spill] sm:$0xff] %v16093_v7  ;;  %v16099_v60 = vpop.xlane.xlu0 %5475 }
0x14c8   : > { %v16097_v13 = vpop.xlane.xlu1 %4167 }
0x14c9   : > { %18489 = vst [vmem:[#allocation200_spill] sm:$0xff] %v16097_v13  ;;  %v16103_v53 = vpop.xlane.xlu0 %5479 }
0x14cc   : > { %v16101_v16 = vpop.xlane.xlu1 %4171 }
0x14cd   : > { %18490 = vst [vmem:[#allocation125_spill] sm:$0xff] %v16101_v16  ;;  %v16111_v0 = vpop.xlane.xlu0 %5483 }
0x14ce   : > { %18494 = vst [vmem:[#allocation220_spill] sm:$0xff] %v16111_v0  ;;  %v18530_v0 = vld [vmem:[#allocation29_spill] sm:$0xff] }
0x14d0   : > { %v16105_v40 = vpop.xlane.xlu1 %4175 }
0x14d1   : > { %18491 = vst [vmem:[#allocation203_spill] sm:$0xff] %v16105_v40  ;;  %v16119_v13 = vpop.xlane.xlu0 %4145 }
0x14d2   : > { %18498 = vst [vmem:[#allocation225_spill] sm:$0xff] %v16119_v13 }
0x14d4   : > { %v16117_v50 = vpop.xlane.xlu1 %5915 }
0x14d5   : > { %18497 = vst [vmem:[#allocation115_spill] sm:$0xff] %v16117_v50 }
0x14d8   : > { %v16127_v40 = vpop.xlane.xlu1 %5919 }
0x14d9   : > { %18502 = vst [vmem:[#allocation230_spill] sm:$0xff] %v16127_v40 }
0x14ea   : > { %v16107_v2 = vpop.f32.mrb[244].mxu0 }
0x14eb   : > { %18492 = vst [vmem:[#allocation124_spill] sm:$0xff] %v16107_v2  ;;  %v16109_v6 = vpop.f32.mrb[245].mxu0 }
0x14ec   : > { %18493 = vst [vmem:[#allocation112_spill] sm:$0xff] %v16109_v6  ;;  %v16113_v49 = vpop.f32.mrb[246].mxu0  ;;  %v16131_v6 = vpop.xlane.xlu0 %4149 }
0x14ed   : > { %18495 = vst [vmem:[#allocation113_spill] sm:$0xff] %v16113_v49  ;;  %v16115_v7 = vpop.f32.mrb[247].mxu0  ;;  %18504 = vst [vmem:[#allocation229_spill] sm:$0xff] %v16131_v6  ;;  %v16135_v49 = vpop.xlane.xlu1 %5923 }
0x14ee   : > { %18496 = vst [vmem:[#allocation223_spill] sm:$0xff] %v16115_v7  ;;  %18506 = vst [vmem:[#allocation234_spill] sm:$0xff] %v16135_v49 }
0x14f2   : > { %v16121_v23 = vpop.f32.mrb[248].mxu0 }
0x14f3   : > { %18499 = vst [vmem:[#allocation117_spill] sm:$0xff] %v16121_v23  ;;  %v16123_v16 = vpop.f32.mrb[249].mxu0  ;;  %v16143_v23 = vpop.xlane.xlu0 %4153 }
0x14f4   : > { %18500 = vst [vmem:[#allocation227_spill] sm:$0xff] %v16123_v16  ;;  %v16125_v44 = vpop.f32.mrb[250].mxu0  ;;  %18510 = vst [vmem:[#allocation30_spill] sm:$0xff] %v16143_v23  ;;  %v16145_v16 = vpop.xlane.xlu1 %5927 }
0x14f5   : > { %18501 = vst [vmem:[#allocation119_spill] sm:$0xff] %v16125_v44  ;;  %v16129_v2 = vpop.f32.mrb[251].mxu0  ;;  %18511 = vst [vmem:[#allocation222_spill] sm:$0xff] %v16145_v16 }
0x14f6   : > { %18503 = vst [vmem:[#allocation122_spill] sm:$0xff] %v16129_v2 }
0x14f7   : > { %v16150_v6 = vpop.xlane.xlu0 %4157 }
0x14f8   : > { %18512 = vst [vmem:[#allocation141_spill] sm:$0xff] %v16150_v6 }
0x14fa   : > { %v16133_v39 = vpop.f32.mrb[252].mxu0 }
0x14fb   : > { %18505 = vst [vmem:[#allocation123_spill] sm:$0xff] %v16133_v39  ;;  %v16137_v7 = vpop.f32.mrb[253].mxu0 }
0x14fc   : > { %18507 = vst [vmem:[#allocation126_spill] sm:$0xff] %v16137_v7  ;;  %v16139_v50 = vpop.f32.mrb[254].mxu0  ;;  %v16156_v7 = vpop.xlane.xlu1 %5931 }
0x14fd   : > { %18508 = vst [vmem:[#allocation233_spill] sm:$0xff] %v16139_v50  ;;  %v16141_v13 = vpop.f32.mrb[255].mxu0  ;;  %18513 = vst [vmem:[#allocation224_spill] sm:$0xff] %v16156_v7 }
0x14fe   : > { %18509 = vst [vmem:[#allocation221_spill] sm:$0xff] %v16141_v13 }
0x1500   : > { %v16171_v35 = vpop.xlane.xlu1 %5935 }
0x1501   : > { %18515 = vst [vmem:[#allocation226_spill] sm:$0xff] %v16171_v35 }
0x1502   : > { %v10731_v44 = vpop.f32.mrb[0].mxu0 }
0x1503   : > { %v16148_v40 = vadd.f32 %v15681_v20, %v10731_v44  ;;  %v7538_v2 = vpop.f32.mrb[1].mxu0  ;;  %v16163_v44 = vpop.xlane.xlu0 %4161 }
0x1504   : > { %v10732_v39 = vpop.f32.mrb[2].mxu0  ;;  %v16159_v23 = vadd.f32 %v15681_v20, %v7538_v2  ;;  %18514 = vst [vmem:[#allocation34_spill] sm:$0xff] %v16163_v44  ;;  %v16182_v26 = vpop.xlane.xlu1 %5939 }
0x1505   : > { %v7541_v24 = vpop.f32.mrb[3].mxu0  ;;  %7605 = vmax.xlane.f32.xlu0 %v16148_v40  ;;  %v16166_v6 = vadd.f32 %v15681_v20, %v10732_v39  ;;  %v18517_v39 = vld [vmem:[#allocation38_spill] sm:$0xff]  ;;  %18518 = vst [vmem:[#allocation228_spill] sm:$0xff] %v16182_v26 }
0x1506   : > { %v16154_v49 = vadd.f32 %v15681_v20, %v7541_v24 }
0x1507   : > { %v16178_v44 = vpop.xlane.xlu0 %4165 }
0x1508   : > { %7603 = vmax.xlane.f32.xlu1 %v16154_v49  ;;  %18516 = vst [vmem:[#allocation96_spill] sm:$0xff] %v16178_v44  ;;  %v16191_v44 = vpop.xlane.xlu1 %5943 }
0x1509   : > { %7601 = vmax.xlane.f32.xlu0 %v16159_v23  ;;  %18521 = vst [vmem:[#allocation231_spill] sm:$0xff] %v16191_v44 }
0x150a   : > { %v10735_v16 = vpop.f32.mrb[4].mxu0 }
0x150b   : > { %v16169_v50 = vadd.f32 %v15681_v20, %v10735_v16  ;;  %v7554_v24 = vpop.f32.mrb[5].mxu0 }
0x150c   : > { %v10736_v13 = vpop.f32.mrb[6].mxu0  ;;  %v16176_v7 = vadd.f32 %v15681_v20, %v7554_v24  ;;  %v16189_v24 = vpop.xlane.xlu0 %4169 }
0x150d   : > { %7613 = vmax.xlane.f32.xlu1 %v16169_v50  ;;  %v7557_v2 = vpop.f32.mrb[7].mxu0  ;;  %7607 = vmax.xlane.f32.xlu0 %v16166_v6  ;;  %v16185_v12 = vadd.f32 %v15681_v20, %v10736_v13  ;;  %18520 = vst [vmem:[#allocation95_spill] sm:$0xff] %v16189_v24  ;;  %v16202_v24 = vpop.xlane.xlu1 %4597 }
0x150e   : > { %18526 = vst [vmem:[#allocation232_spill] sm:$0xff] %v16202_v24  ;;  %v18532_v24 = vld [vmem:[#allocation33_spill] sm:$0xff]  ;;  %v16239_v52 = vadd.f32 %v15681_v20, %v7557_v2  ;;  %v18546_v2 = vld [vmem:[#allocation56_spill] sm:$0xff] }
0x1510   : > { %v16198_v57 = vpop.xlane.xlu0 %4173 }
0x1511   : > { %7609 = vmax.xlane.f32.xlu1 %v16176_v7  ;;  %4607 = vadd.xlane.f32.xlu0 %v18517_v39  ;;  %v18523_v39 = vld [vmem:[#allocation144_spill] sm:$0xff]  ;;  %18524 = vst [vmem:[#allocation97_spill] sm:$0xff] %v16198_v57  ;;  %v16214_v57 = vpop.xlane.xlu1 %4601 }
0x1512   : > { %v10739_v16 = vpop.f32.mrb[8].mxu0  ;;  %18529 = vst [vmem:[#allocation46_spill] sm:$0xff] %v16214_v57  ;;  %v18534_v57 = vld [vmem:[#allocation37_spill] sm:$0xff] }
0x1513   : > { %v7570_v35 = vpop.f32.mrb[9].mxu0 }
0x1514   : > { %v10740_v33 = vpop.f32.mrb[10].mxu0  ;;  %v16196_v26 = vadd.f32 %v15681_v20, %v7570_v35  ;;  %v16209_v35 = vpop.xlane.xlu0 %5913 }
0x1515   : > { %7615 = vmax.xlane.f32.xlu1 %v16185_v12  ;;  %v7573_v36 = vpop.f32.mrb[11].mxu0  ;;  %4611 = vadd.xlane.f32.xlu0 %v18519_v37  ;;  %v18525_v37 = vld [vmem:[#allocation146_spill] sm:$0xff]  ;;  %v16205_v44 = vadd.f32 %v15681_v20, %v10740_v33  ;;  %18528 = vst [vmem:[#allocation100_spill] sm:$0xff] %v16209_v35 }
0x1518   : > { %v16221_v33 = vpop.xlane.xlu0 %5917 }
0x1519   : > { %6381 = vadd.xlane.f32.xlu1 %v18522_v9  ;;  %4615 = vadd.xlane.f32.xlu0 %v18523_v39  ;;  %v18527_v9 = vld [vmem:[#allocation148_spill] sm:$0xff]  ;;  %v16212_v39 = vadd.f32 %v15681_v20, %v7573_v36  ;;  %18531 = vst [vmem:[#allocation102_spill] sm:$0xff] %v16221_v33  ;;  %v18538_v33 = vld [vmem:[#allocation39_spill] sm:$0xff] }
0x151a   : > { %v10743_v38 = vpop.f32.mrb[12].mxu0 }
0x151b   : > { %v7586_v13 = vpop.f32.mrb[13].mxu0 }
0x151c   : > { %v10744_v21 = vpop.f32.mrb[14].mxu0  ;;  %v16232_v35 = vpop.xlane.xlu0 %5921 }
0x151d   : > { %7617 = vmax.xlane.f32.xlu1 %v16196_v26  ;;  %v7589_v32 = vpop.f32.mrb[15].mxu0  ;;  %4619 = vadd.xlane.f32.xlu0 %v18525_v37  ;;  %v16219_v37 = vadd.f32 %v15681_v20, %v10743_v38  ;;  %v16228_v36 = vadd.f32 %v15681_v20, %v10744_v21  ;;  %18535 = vst [vmem:[#allocation99_spill] sm:$0xff] %v16232_v35  ;;  %v18537_v38 = vld [vmem:[#allocation246_spill] sm:$0xff]  ;;  %v18543_v35 = vld [vmem:[#allocation245_spill] sm:$0xff] }
0x1521   : > { %7623 = vmax.xlane.f32.xlu1 %v16205_v44  ;;  %4623 = vadd.xlane.f32.xlu0 %v18527_v9  ;;  %v16225_v9 = vpop.xlane.xlu1 %4605 }
0x1522   : > { %18533 = vst [vmem:[#allocation28_spill] sm:$0xff] %v16225_v9  ;;  %v18540_v9 = vld [vmem:[#allocation248_spill] sm:$0xff] }
0x1525   : > { %7619 = vmax.xlane.f32.xlu1 %v16212_v39  ;;  %6363 = vadd.xlane.f32.xlu0 %v18530_v0  ;;  %v16234_v0 = vpop.xlane.xlu1 %7229 }
0x1526   : > { %18536 = vst [vmem:[#allocation32_spill] sm:$0xff] %v16234_v0 }
0x1529   : > { %7629 = vmax.xlane.f32.xlu1 %v16219_v37  ;;  %6367 = vadd.xlane.f32.xlu0 %v18532_v24  ;;  %v16241_v24 = vpop.xlane.xlu0 %5925  ;;  %v16245_v21 = vpop.xlane.xlu1 %7225 }
0x152a   : > { %18539 = vst [vmem:[#allocation101_spill] sm:$0xff] %v16241_v24  ;;  %18541 = vst [vmem:[#allocation36_spill] sm:$0xff] %v16245_v21  ;;  %v18548_v21 = vld [vmem:[#allocation55_spill] sm:$0xff] }
0x152d   : > { %7631 = vmax.xlane.f32.xlu1 %v16228_v36  ;;  %6371 = vadd.xlane.f32.xlu0 %v18534_v57  ;;  %v18542_v57 = vld [vmem:[#allocation250_spill] sm:$0xff]  ;;  %v16249_v0 = vpop.xlane.xlu0 %5929 }
0x152e   : > { %18544 = vst [vmem:[#allocation40_spill] sm:$0xff] %v16249_v0 }
0x1531   : > { %6385 = vadd.xlane.f32.xlu1 %v18537_v38  ;;  %6375 = vadd.xlane.f32.xlu0 %v18538_v33  ;;  %v16252_v38 = vadd.f32 %v15681_v20, %v10739_v16  ;;  %v16254_v33 = vpop.xlane.xlu1 %7237  ;;  %v16261_v24 = vpop.xlane.xlu0 %5933  ;;  %v16268_v16 = vadd.f32 %v15681_v20, %v7589_v32  ;;  %v18560_v32 = vld [vmem:[#allocation65_spill] sm:$0xff] }
0x1532   : > { %18545 = vst [vmem:[#allocation43_spill] sm:$0xff] %v16254_v33  ;;  %18547 = vst [vmem:[#allocation143_spill] sm:$0xff] %v16261_v24  ;;  %v18555_v24 = vld [vmem:[#allocation247_spill] sm:$0xff] }
0x1533   : > { %18550 = vst [vmem:[#allocation147_spill] sm:$0xff] %v16268_v16  ;;  %v18557_v33 = vld [vmem:[#allocation63_spill] sm:$0xff] }
0x1535   : > { %6389 = vadd.xlane.f32.xlu1 %v18540_v9  ;;  %7611 = vmax.xlane.f32.xlu0 %v16239_v52  ;;  %v16259_v9 = vadd.f32 %v15681_v20, %v7586_v13  ;;  %v18554_v13 = vld [vmem:[#allocation60_spill] sm:$0xff] }
0x1539   : > { %6393 = vadd.xlane.f32.xlu1 %v18542_v57  ;;  %6379 = vadd.xlane.f32.xlu0 %v18543_v35  ;;  %v16265_v35 = vpop.xlane.xlu1 %7233  ;;  %v18551_v57 = vld [vmem:[#allocation62_spill] sm:$0xff] }
0x153a   : > { %18549 = vst [vmem:[#allocation145_spill] sm:$0xff] %v16265_v35  ;;  %v18558_v35 = vld [vmem:[#allocation249_spill] sm:$0xff] }
0x153d   : > { %3247 = vadd.xlane.f32.xlu1 %v18546_v2  ;;  %7621 = vmax.xlane.f32.xlu0 %v16252_v38  ;;  %v16272_v2 = vpop.xlane.xlu0 %5937  ;;  %v16274_v0 = vpop.xlane.xlu1 %7245 }
0x153e   : > { %18552 = vst [vmem:[#allocation31_spill] sm:$0xff] %v16272_v2  ;;  %18553 = vst [vmem:[#allocation244_spill] sm:$0xff] %v16274_v0  ;;  %v18564_v0 = vld [vmem:[#allocation68_spill] sm:$0xff] }
0x1541   : > { %3251 = vadd.xlane.f32.xlu1 %v18548_v21  ;;  %7625 = vmax.xlane.f32.xlu0 %v16259_v9  ;;  %v16278_v21 = vpop.xlane.xlu0 %5941  ;;  %v16282_v20 = vpop.xlane.xlu1 %7241 }
0x1542   : > { %18556 = vst [vmem:[#allocation35_spill] sm:$0xff] %v16278_v21  ;;  %18559 = vst [vmem:[#allocation41_spill] sm:$0xff] %v16282_v20  ;;  %v18567_v21 = vld [vmem:[#allocation67_spill] sm:$0xff] }
0x1543   : > { %v18570_v20 = vld [vmem:[#allocation159_spill] sm:$0xff] }
0x1545   : > { %3255 = vadd.xlane.f32.xlu1 %v18551_v57  ;;  %7627 = vmax.xlane.f32.xlu0 %v16268_v16  ;;  %v18561_v57 = vld [vmem:[#allocation251_spill] sm:$0xff]  ;;  %v16286_v16 = vpop.xlane.xlu0 %4595  ;;  %v16288_v2 = vpop.xlane.xlu1 %7253 }
0x1546   : > { %18562 = vst [vmem:[#allocation38_spill] sm:$0xff] %v16286_v16  ;;  %18563 = vst [vmem:[#allocation142_spill] sm:$0xff] %v16288_v2  ;;  %v18574_v2 = vld [vmem:[#allocation157_spill] sm:$0xff] }
0x1549   : > { %3259 = vadd.xlane.f32.xlu1 %v18554_v13  ;;  %6383 = vadd.xlane.f32.xlu0 %v18555_v24  ;;  %v18565_v13 = vld [vmem:[#allocation54_spill] sm:$0xff]  ;;  %v16292_v24 = vpop.xlane.xlu0 %4599 }
0x154a   : > { %18566 = vst [vmem:[#allocation44_spill] sm:$0xff] %v16292_v24  ;;  %v18577_v24 = vld [vmem:[#allocation164_spill] sm:$0xff] }
0x154d   : > { %3263 = vadd.xlane.f32.xlu1 %v18557_v33  ;;  %6387 = vadd.xlane.f32.xlu0 %v18558_v35  ;;  %v18568_v33 = vld [vmem:[#allocation57_spill] sm:$0xff]  ;;  %v16296_v35 = vpop.xlane.xlu1 %7249 }
0x154e   : > { %18569 = vst [vmem:[#allocation144_spill] sm:$0xff] %v16296_v35  ;;  %v18580_v35 = vld [vmem:[#allocation162_spill] sm:$0xff] }
0x1551   : > { %3267 = vadd.xlane.f32.xlu1 %v18560_v32  ;;  %6391 = vadd.xlane.f32.xlu0 %v18561_v57  ;;  %v18571_v32 = vld [vmem:[#allocation58_spill] sm:$0xff]  ;;  %v16300_v57 = vpop.xlane.xlu0 %4603  ;;  %v16302_v16 = vpop.xlane.xlu1 %4609 }
0x1552   : > { %18572 = vst [vmem:[#allocation146_spill] sm:$0xff] %v16300_v57  ;;  %18573 = vst [vmem:[#allocation148_spill] sm:$0xff] %v16302_v16  ;;  %v18584_v16 = vld [vmem:[#allocation163_spill] sm:$0xff] }
0x1555   : > { %3271 = vadd.xlane.f32.xlu1 %v18564_v0  ;;  %3245 = vadd.xlane.f32.xlu0 %v18565_v13  ;;  %v18575_v0 = vld [vmem:[#allocation59_spill] sm:$0xff]  ;;  %v16306_v13 = vpop.xlane.xlu0 %7227 }
0x1556   : > { %18576 = vst [vmem:[#allocation29_spill] sm:$0xff] %v16306_v13  ;;  %v18586_v13 = vld [vmem:[#allocation168_spill] sm:$0xff] }
0x1559   : > { %3275 = vadd.xlane.f32.xlu1 %v18567_v21  ;;  %3249 = vadd.xlane.f32.xlu0 %v18568_v33  ;;  %v18578_v21 = vld [vmem:[#allocation61_spill] sm:$0xff]  ;;  %v16310_v33 = vpop.xlane.xlu1 %4613 }
0x155a   : > { %18579 = vst [vmem:[#allocation33_spill] sm:$0xff] %v16310_v33  ;;  %v18589_v33 = vld [vmem:[#allocation171_spill] sm:$0xff] }
0x155d   : > { %5015 = vadd.xlane.f32.xlu1 %v18570_v20  ;;  %3253 = vadd.xlane.f32.xlu0 %v18571_v32  ;;  %v18581_v20 = vld [vmem:[#allocation64_spill] sm:$0xff]  ;;  %v16314_v32 = vpop.xlane.xlu0 %7223  ;;  %v16316_v57 = vpop.xlane.xlu1 %4617 }
0x155e   : > { %18582 = vst [vmem:[#allocation37_spill] sm:$0xff] %v16314_v32  ;;  %18583 = vst [vmem:[#allocation246_spill] sm:$0xff] %v16316_v57  ;;  %v18592_v57 = vld [vmem:[#allocation170_spill] sm:$0xff] }
0x1561   : > { %5019 = vadd.xlane.f32.xlu1 %v18574_v2  ;;  %3257 = vadd.xlane.f32.xlu0 %v18575_v0  ;;  %v18585_v2 = vld [vmem:[#allocation66_spill] sm:$0xff]  ;;  %v16320_v0 = vpop.xlane.xlu0 %7235 }
0x1565   : > { %5023 = vadd.xlane.f32.xlu1 %v18577_v24  ;;  %3261 = vadd.xlane.f32.xlu0 %v18578_v21  ;;  %v18587_v24 = vld [vmem:[#allocation69_spill] sm:$0xff]  ;;  %v16324_v21 = vpop.xlane.xlu1 %4621 }
0x1566   : > { %18588 = vst [vmem:[#allocation39_spill] sm:$0xff] %v16324_v21 }
0x1569   : > { %5027 = vadd.xlane.f32.xlu1 %v18580_v35  ;;  %3265 = vadd.xlane.f32.xlu0 %v18581_v20  ;;  %v18590_v35 = vld [vmem:[#allocation158_spill] sm:$0xff]  ;;  %v16328_v20 = vpop.xlane.xlu0 %7231  ;;  %v16330_v32 = vpop.xlane.xlu1 %4625 }
0x156a   : > { %18591 = vst [vmem:[#allocation248_spill] sm:$0xff] %v16330_v32 }
0x156d   : > { %5031 = vadd.xlane.f32.xlu1 %v18584_v16  ;;  %3269 = vadd.xlane.f32.xlu0 %v18585_v2  ;;  %v18593_v16 = vld [vmem:[#allocation160_spill] sm:$0xff]  ;;  %v16334_v2 = vpop.xlane.xlu0 %7243 }
0x1571   : > { %5035 = vadd.xlane.f32.xlu1 %v18586_v13  ;;  %3273 = vadd.xlane.f32.xlu0 %v18587_v24  ;;  %v18594_v13 = vld [vmem:[#allocation161_spill] sm:$0xff]  ;;  %v16338_v24 = vpop.xlane.xlu1 %6365 }
0x1572   : > { %18595 = vst [vmem:[#allocation250_spill] sm:$0xff] %v16338_v24 }
0x1575   : > { %5039 = vadd.xlane.f32.xlu1 %v18589_v33  ;;  %5013 = vadd.xlane.f32.xlu0 %v18590_v35  ;;  %v18596_v33 = vld [vmem:[#allocation165_spill] sm:$0xff]  ;;  %v16342_v35 = vpop.xlane.xlu0 %7239  ;;  %v16344_v21 = vpop.xlane.xlu1 %6369 }
0x1576   : > { %18597 = vst [vmem:[#allocation245_spill] sm:$0xff] %v16344_v21 }
0x1579   : > { %5043 = vadd.xlane.f32.xlu1 %v18592_v57  ;;  %5017 = vadd.xlane.f32.xlu0 %v18593_v16  ;;  %v18598_v57 = vld [vmem:[#allocation166_spill] sm:$0xff]  ;;  %v16348_v16 = vpop.xlane.xlu0 %7251 }
0x157d   : > { %6783 = vadd.xlane.f32.xlu1 %v15488_v29  ;;  %5021 = vadd.xlane.f32.xlu0 %v18594_v13  ;;  %v18599_v29 = vld [vmem:[#allocation167_spill] sm:$0xff]  ;;  %v16352_v13 = vpop.xlane.xlu1 %6373 }
0x157e   : > { %18600 = vst [vmem:[#allocation56_spill] sm:$0xff] %v16352_v13 }
0x1581   : > { %6787 = vadd.xlane.f32.xlu1 %v15484_v55  ;;  %5025 = vadd.xlane.f32.xlu0 %v18596_v33  ;;  %v18601_v55 = vld [vmem:[#allocation169_spill] sm:$0xff]  ;;  %v16356_v33 = vpop.xlane.xlu0 %7247  ;;  %v16358_v24 = vpop.xlane.xlu1 %6377 }
0x1582   : > { %18602 = vst [vmem:[#allocation55_spill] sm:$0xff] %v16358_v24 }
0x1585   : > { %6791 = vadd.xlane.f32.xlu1 %v15522_v5  ;;  %5029 = vadd.xlane.f32.xlu0 %v18598_v57  ;;  %v18603_v5 = vld [vmem:[#allocation172_spill] sm:$0xff] }
0x1589   : > { %6795 = vadd.xlane.f32.xlu1 %v15518_v28  ;;  %5033 = vadd.xlane.f32.xlu0 %v18599_v29  ;;  %v18604_v28 = vld [vmem:[#allocation260_spill] sm:$0xff] }
0x158d   : > { %6799 = vadd.xlane.f32.xlu1 %v15520_v22  ;;  %5037 = vadd.xlane.f32.xlu0 %v18601_v55 }
0x1591   : > { %6803 = vadd.xlane.f32.xlu1 %v15540_v54  ;;  %5041 = vadd.xlane.f32.xlu0 %v18603_v5  ;;  %v18605_v54 = vld [vmem:[#allocation261_spill] sm:$0xff] }
0x1592   : > { %v7606_v57 = vpop.xlane.xlu0 %7605 }
0x1593   : > { %v7635_v22 = vsub.f32 %v16148_v40, %v7606_v57 }
0x1595   : > { %v7604_v21 = vpop.xlane.xlu1 %7603  ;;  %6807 = vadd.xlane.f32.xlu1 %v15552_v46  ;;  %6781 = vadd.xlane.f32.xlu0 %v18604_v28  ;;  %v7653_v28 = vmul.f32 1.442695, %v7635_v22 }
0x1596   : > { %v7634_v29 = vsub.f32 %v16154_v49, %v7604_v21  ;;  %v7602_v13 = vpop.xlane.xlu0 %7601 }
0x1597   : > { %v7633_v55 = vsub.f32 %v16159_v23, %v7602_v13  ;;  %v11970_v23 = vpop.eup %11969 }
0x1598   : > { %v7651_v32 = vmul.f32 1.442695, %v7634_v29  ;;  %v18607_v29 = vld [vmem:[#allocation98_spill] sm:$0xff] }
0x1599   : > { %v7649_v24 = vmul.f32 1.442695, %v7633_v55  ;;  %6811 = vadd.xlane.f32.xlu1 %v15550_v14  ;;  %6785 = vadd.xlane.f32.xlu0 %v18605_v54  ;;  %v3873_v22 = vmul.f32 %v11970_v23, %v18607_v29  ;;  %v18610_v23 = vld [vmem:[#allocation264_spill] sm:$0xff] }
0x159a   : > { %11971 = vpow2.f32 %v7651_v32  ;;  %v16370_v5 = vpop.xlane.xlu1 %7613  ;;  %v7608_v46 = vpop.xlane.xlu0 %7607 }
0x159b   : > { %11973 = vpow2.f32 %v7649_v24  ;;  %v7636_v49 = vsub.f32 %v16166_v6, %v7608_v46  ;;  %v18606_v6 = vld [vmem:[#allocation262_spill] sm:$0xff] }
0x159c   : > { %11975 = vpow2.f32 %v7653_v28 }
0x159d   : > { %v7655_v21 = vmul.f32 1.442695, %v7636_v49  ;;  %6789 = vadd.xlane.f32.xlu0 %v15516_v41 }
0x159e   : > { %v16374_v40 = vpop.xlane.xlu0 %4607  ;;  %v16376_v17 = vpop.xlane.xlu1 %7609 }
0x159f   : > { %11977 = vpow2.f32 %v7655_v21  ;;  %v7931_v21 = vsel %vm3019_vm0, %v15918_v27, 0 }
0x15a0   : > { %11979 = vrcp.f32 %v16001_v3 }
0x15a1   : > { %6793 = vadd.xlane.f32.xlu0 %v15525_v43  ;;  %v18608_v43 = vld [vmem:[#allocation263_spill] sm:$0xff]  ;;  %11981 = vrcp.f32 %v16058_v42 }
0x15a2   : > { %v16379_v14 = vpop.xlane.xlu0 %4611  ;;  %v7616_v24 = vpop.xlane.xlu1 %7615  ;;  %11983 = vrcp.f32 %v16065_v1 }
0x15a3   : > { %11985 = vrcp.f32 %v16075_v8  ;;  %v7637_v8 = vsub.f32 %v16176_v7, %v16376_v17  ;;  %v18616_v7 = vld [vmem:[#allocation108_spill] sm:$0xff] }
0x15a4   : > { %v16381_v32 = vpop.eup %11971  ;;  %11987 = vrcp.f32 %v16079_v56 }
0x15a5   : > { %v16383_v13 = vpop.eup %11973  ;;  %6797 = vadd.xlane.f32.xlu0 %v18606_v6  ;;  %11989 = vrcp.f32 %v16083_v15 }
0x15a6   : > { %v16386_v57 = vpop.xlane.xlu0 %4615  ;;  %v7713_v41 = vpack.c.bf16 %v16381_v32, %v16383_v13  ;;  %v16391_v55 = vpop.eup %11975  ;;  %11991 = vrcp.f32 %v16087_v25  ;;  %v7940_v25 = vsel %vm3019_vm0, %v15931_v18, 0 }
0x15a7   : > { %v16400_v28 = vpop.xlane.xlu1 %6381  ;;  %11993 = vrcp.f32 %v16091_v11  ;;  %v18619_v11 = vld [vmem:[#allocation205_spill] sm:$0xff] }
0x15a8   : > { %10761 = vmatprep.mubr.bf16.mxu1 %v7713_v41  ;;  %18609 = vst [vmem:[#allocation62_spill] sm:$0xff] %v16400_v28  ;;  %v18611_v41 = vld [vmem:[#allocation265_spill] sm:$0xff] }
0x15a9   : > { %6801 = vadd.xlane.f32.xlu0 %v18608_v43  ;;  %v16394_v54 = vpop.eup %11977 }
0x15aa   : > { %8342 = vrot.lane.b32.xlu1 %v3873_v22, %s12608_s21  ;;  %v16397_v46 = vpop.xlane.xlu0 %4619  ;;  %v7714_v49 = vpack.c.bf16 %v16394_v54, %v16391_v55  ;;  %v11980_v29 = vpop.eup %11979 }
0x15ab   : > { %v7618_v3 = vpop.xlane.xlu1 %7617 }
0x15ac   : > { %10762 = vmatmul.mubr.bf16.vlgmr.msra.gmra.mrb[240].mxu1 %v7714_v49  ;;  %v11982_v49 = vpop.eup %11981 }
0x15ad   : > { %6805 = vadd.xlane.f32.xlu0 %v18610_v23  ;;  %10778 = vmatpush3.bf16.xpose.msra.mxu1 %v7931_v21  ;;  %v11984_v23 = vpop.eup %11983 }
0x15ae   : > { %8344 = vrot.lane.b32.xlu1 %v15988_v59, %s12608_s21  ;;  %v16409_v6 = vpop.xlane.xlu0 %4623  ;;  %11186 = vmatprep.subr.msk.bf16.mxu1 %vm3019_vm0, %v15925_v61  ;;  %v7934_v59 = vsel %vm3019_vm0, %v15925_v61, 0  ;;  %v7639_v61 = vsub.f32 %v16169_v50, %v16370_v5  ;;  %v3884_v5 = vmul.f32 %v11984_v23, %v18616_v7  ;;  %v11986_v17 = vpop.eup %11985 }
0x15af   : > { %v7624_v22 = vpop.xlane.xlu1 %7623 }
0x15b0   : > { %v7661_v50 = vmul.f32 1.442695, %v7639_v61 }
0x15b1   : > { %6809 = vadd.xlane.f32.xlu0 %v18611_v41 }
0x15b2   : > { %8348 = vrot.lane.b32.xlu1 %v15998_v58, %s12608_s21  ;;  %v16417_v27 = vpop.xlane.xlu0 %6363  ;;  %v18612_v58 = vld [vmem:[#allocation104_spill] sm:$0xff]  ;;  %11995 = vpow2.f32 %v7661_v50 }
0x15b3   : > { %v3880_v43 = vmul.f32 %v11980_v29, %v18612_v58  ;;  %v7620_v41 = vpop.xlane.xlu1 %7619  ;;  %v7937_v29 = vsel %vm3019_vm0, %v15904_v45, 0 }
0x15b4   : > { %v7642_v56 = vsub.f32 %v16212_v39, %v7620_v41  ;;  %v18617_v39 = vld [vmem:[#allocation107_spill] sm:$0xff] }
0x15b5   : > { %10780 = vmatpush3.bf16.xpose.msra.mxu1 %v7934_v59  ;;  %v7640_v59 = vsub.f32 %v16185_v12, %v7616_v24  ;;  %v7641_v12 = vsub.f32 %v16196_v26, %v7618_v3  ;;  %v7644_v3 = vsub.f32 %v16205_v44, %v7624_v22 }
0x15b6   : > { %8352 = vrot.lane.b32.xlu1 %v16012_v19, %s12608_s21  ;;  %v16424_v42 = vpop.xlane.xlu0 %6367  ;;  %11187 = vmatprep.subr.msk.bf16.mxu1 %vm3019_vm0, %v15904_v45  ;;  %v18614_v19 = vld [vmem:[#allocation103_spill] sm:$0xff] }
0x15b7   : > { %v3882_v21 = vmul.f32 %v11982_v49, %v18614_v19  ;;  %v7663_v45 = vmul.f32 1.442695, %v7640_v59  ;;  %v7667_v49 = vmul.f32 1.442695, %v7642_v56  ;;  %v16455_v61 = vpop.xlane.xlu1 %7629  ;;  %v3886_v19 = vmul.f32 %v11986_v17, %v18617_v39  ;;  %v18620_v59 = vld [vmem:[#allocation204_spill] sm:$0xff] }
0x15b8   : > { %v7665_v26 = vmul.f32 1.442695, %v7641_v12  ;;  %v7671_v44 = vmul.f32 1.442695, %v7644_v3 }
0x15ba   : > { %8356 = vrot.lane.b32.xlu1 %v3880_v43, %s12608_s21  ;;  %v16431_v1 = vpop.xlane.xlu0 %6371  ;;  %v7657_v43 = vmul.f32 1.442695, %v7637_v8 }
0x15bb   : > { %18613 = vst [vmem:[#allocation60_spill] sm:$0xff] %v16431_v1  ;;  %v7632_v22 = vpop.xlane.xlu1 %7631 }
0x15bc   : > { %11997 = vpow2.f32 %v7657_v43 }
0x15bd   : > { %10782 = vmatpush3.bf16.xpose.msra.mxu1 %v7937_v29  ;;  %11999 = vpow2.f32 %v7663_v45 }
0x15be   : > { %8360 = vrot.lane.b32.xlu1 %v3882_v21, %s12608_s21  ;;  %v16443_v58 = vpop.xlane.xlu0 %6375  ;;  %11188 = vmatprep.subr.msk.bf16.mxu1 %vm3019_vm0, %v15931_v18  ;;  %v11988_v21 = vpop.eup %11987 }
0x15bf   : > { %18615 = vst [vmem:[#allocation247_spill] sm:$0xff] %v16443_v58  ;;  %v5640_v8 = vmul.f32 %v11988_v21, %v18619_v11  ;;  %v11990_v18 = vpop.eup %11989  ;;  %v18625_v21 = vld [vmem:[#allocation208_spill] sm:$0xff] }
0x15c0   : > { %v5642_v50 = vmul.f32 %v11990_v18, %v18620_v59  ;;  %v18629_v59 = vld [vmem:[#allocation197_spill] sm:$0xff] }
0x15c2   : > { %8364 = vrot.lane.b32.xlu1 %v3884_v5, %s12608_s21  ;;  %v7612_v24 = vpop.xlane.xlu0 %7611  ;;  %v7943_v5 = vsel %vm3019_vm0, %v15912_v30, 0 }
0x15c3   : > { %v7638_v15 = vsub.f32 %v16239_v52, %v7612_v24 }
0x15c5   : > { %v7659_v23 = vmul.f32 1.442695, %v7638_v15  ;;  %10784 = vmatpush3.bf16.xpose.msra.mxu1 %v7940_v25 }
0x15c6   : > { %8368 = vrot.lane.b32.xlu1 %v3886_v19, %s12608_s21  ;;  %v16462_v52 = vpop.xlane.xlu0 %6379  ;;  %11189 = vmatprep.subr.msk.bf16.mxu1 %vm3019_vm0, %v15912_v30  ;;  %v7647_v30 = vsub.f32 %v16219_v37, %v16455_v61  ;;  %v18622_v37 = vld [vmem:[#allocation147_spill] sm:$0xff]  ;;  %v18623_v61 = vld [vmem:[#allocation90_spill] sm:$0xff] }
0x15c7   : > { %18618 = vst [vmem:[#allocation63_spill] sm:$0xff] %v16462_v52  ;;  %12001 = vpow2.f32 %v7659_v23  ;;  %8340 = vrot.lane.b32.xlu0 %v15983_v4, %s12608_s21  ;;  %v11992_v4 = vpop.eup %11991 }
0x15c8   : > { %12003 = vpow2.f32 %v7667_v49  ;;  %v11994_v56 = vpop.eup %11993  ;;  %v7677_v19 = vmul.f32 1.442695, %v7647_v30 }
0x15c9   : > { %12005 = vrcp.f32 %v16008_v47  ;;  %v7648_v47 = vsub.f32 %v16228_v36, %v7632_v22  ;;  %v18621_v36 = vld [vmem:[#allocation209_spill] sm:$0xff]  ;;  %v5646_v23 = vmul.f32 %v11994_v56, %v18625_v21  ;;  %v18638_v21 = vld [vmem:[#allocation202_spill] sm:$0xff] }
0x15ca   : > { %12007 = vpow2.f32 %v7665_v26  ;;  %8532 = vrot.lane.b32.xlu1 %v5640_v8, %s12608_s21  ;;  %v7622_v41 = vpop.xlane.xlu0 %7621  ;;  %v5644_v17 = vmul.f32 %v11992_v4, %v18621_v36  ;;  %v18626_v8 = vld [vmem:[#allocation106_spill] sm:$0xff]  ;;  %v18627_v22 = vld [vmem:[#allocation93_spill] sm:$0xff] }
0x15cb   : > { %12009 = vrcp.f32 %v16095_v34  ;;  %v7643_v29 = vsub.f32 %v16252_v38, %v7622_v41  ;;  %8346 = vrot.lane.b32.xlu0 %v15993_v31, %s12608_s21  ;;  %v16481_v34 = vpop.eup %11995  ;;  %v7679_v45 = vmul.f32 1.442695, %v7648_v47 }
0x15cc   : > { %12011 = vrcp.f32 %v16015_v62  ;;  %v16484_v38 = vpop.eup %11997 }
0x15cd   : > { %12013 = vrcp.f32 %v16099_v60  ;;  %v7669_v7 = vmul.f32 1.442695, %v7643_v29  ;;  %10786 = vmatpush3.bf16.xpose.msra.mxu1 %v7943_v5  ;;  %v16491_v60 = vpop.eup %11999  ;;  %v18631_v5 = vld [vmem:[#allocation37_spill] sm:$0xff] }
0x15ce   : > { %12015 = vpow2.f32 %v7671_v44  ;;  %8536 = vrot.lane.b32.xlu1 %v5642_v50, %s12608_s21  ;;  %v7626_v31 = vpop.xlane.xlu0 %7625  ;;  %11190 = vmatprep.subr.msk.bf16.mxu1 %vm3019_vm0, %v15938_v48  ;;  %v18630_v50 = vld [vmem:[#allocation105_spill] sm:$0xff] }
0x15cf   : > { %12017 = vpow2.f32 %v7669_v7  ;;  %v7645_v62 = vsub.f32 %v16259_v9, %v7626_v31  ;;  %8350 = vrot.lane.b32.xlu0 %v16005_v10, %s12608_s21 }
0x15d0   : > { %12019 = vrcp.f32 %v16022_v51  ;;  %v7716_v51 = vpack.c.bf16 %v16491_v60, %v16481_v34 }
0x15d1   : > { %v16496_v43 = vpop.eup %12001  ;;  %12021 = vrcp.f32 %v16026_v63  ;;  %v7673_v9 = vmul.f32 1.442695, %v7645_v62  ;;  %v18624_v63 = vld [vmem:[#allocation220_spill] sm:$0xff] }
0x15d2   : > { %v16499_v12 = vpop.eup %12003  ;;  %8540 = vrot.lane.b32.xlu1 %v5644_v17, %s12608_s21  ;;  %v7628_v10 = vpop.xlane.xlu0 %7627  ;;  %v7715_v24 = vpack.c.bf16 %v16496_v43, %v16484_v38  ;;  %12023 = vrcp.f32 %v16103_v53  ;;  %v7946_v53 = vsel %vm3019_vm0, %v15938_v48, 0  ;;  %v18628_v48 = vld [vmem:[#allocation213_spill] sm:$0xff]  ;;  %v18632_v62 = vld [vmem:[#allocation212_spill] sm:$0xff]  ;;  %v18633_v17 = vld [vmem:[#allocation91_spill] sm:$0xff] }
0x15d3   : > { %v12006_v15 = vpop.eup %12005  ;;  %v7646_v49 = vsub.f32 %v18622_v37, %v7628_v10  ;;  %8354 = vrot.lane.b32.xlu0 %v18623_v61, %s12608_s21  ;;  %12025 = vrcp.f32 %v18624_v63  ;;  %v18634_v10 = vld [vmem:[#allocation110_spill] sm:$0xff]  ;;  %v18635_v37 = vld [vmem:[#allocation29_spill] sm:$0xff] }
0x15d4   : > { %v16511_v39 = vpop.eup %12007  ;;  %10765 = vmatprep.mubr.bf16.mxu1 %v7715_v24  ;;  %12027 = vpow2.f32 %v7679_v45  ;;  %v3881_v18 = vmul.f32 %v12006_v15, %v18626_v8  ;;  %v7949_v45 = vsel %vm3019_vm0, %v18627_v22, 0  ;;  %v18640_v8 = vld [vmem:[#allocation216_spill] sm:$0xff] }
0x15d5   : > { %v12010_v25 = vpop.eup %12009  ;;  %v7675_v26 = vmul.f32 1.442695, %v7646_v49  ;;  %10766 = vmatmul.mubr.bf16.gmra.mrb[244].mxu1 %v7716_v51  ;;  %v7717_v3 = vpack.c.bf16 %v16499_v12, %v16511_v39  ;;  %12029 = vpow2.f32 %v7673_v9  ;;  %v18636_v49 = vld [vmem:[#allocation92_spill] sm:$0xff]  ;;  %v18637_v51 = vld [vmem:[#allocation217_spill] sm:$0xff] }
0x15d6   : > { %v12012_v11 = vpop.eup %12011  ;;  %10788 = vmatpush3.bf16.xpose.msra.mxu1 %v7946_v53  ;;  %8544 = vrot.lane.b32.xlu1 %v5646_v23, %s12608_s21  ;;  %v5648_v29 = vmul.f32 %v12010_v25, %v18628_v48  ;;  %v18639_v25 = vld [vmem:[#allocation109_spill] sm:$0xff]  ;;  %v7952_v48 = vsel %vm3019_vm0, %v18636_v49, 0 }
0x15d7   : > { %v12014_v44 = vpop.eup %12013  ;;  %12031 = vpow2.f32 %v7675_v26  ;;  %11191 = vmatprep.subr.msk.bf16.mxu1 %vm3019_vm0, %v18627_v22  ;;  %10769 = vmatprep.mubr.bf16.mxu1 %v7717_v3  ;;  %v3883_v56 = vmul.f32 %v12012_v11, %v18630_v50  ;;  %v18641_v22 = vld [vmem:[#allocation94_spill] sm:$0xff]  ;;  %v18643_v50 = vld [vmem:[#allocation193_spill] sm:$0xff] }
0x15d8   : > { %v16523_v41 = vpop.eup %12015  ;;  %12033 = vpow2.f32 %v7677_v19  ;;  %8358 = vrot.lane.b32.xlu0 %v3881_v18, %s12608_s21  ;;  %v5650_v30 = vmul.f32 %v12014_v44, %v18632_v62 }
0x15d9   : > { %v16527_v4 = vpop.eup %12017  ;;  %12035 = vrcp.f32 %v18629_v59 }
0x15da   : > { %8548 = vrot.lane.b32.xlu1 %v5648_v29, %s12608_s21  ;;  %v7718_v47 = vpack.c.bf16 %v16523_v41, %v16527_v4  ;;  %v12020_v7 = vpop.eup %12019  ;;  %12037 = vrcp.f32 %v18631_v5  ;;  %v18642_v29 = vld [vmem:[#allocation207_spill] sm:$0xff]  ;;  %v18645_v5 = vld [vmem:[#allocation201_spill] sm:$0xff] }
0x15db   : > { %v12022_v31 = vpop.eup %12021  ;;  %12039 = vrcp.f32 %v18633_v17  ;;  %v3885_v24 = vmul.f32 %v12020_v7, %v18634_v10  ;;  %v18650_v10 = vld [vmem:[#allocation195_spill] sm:$0xff] }
0x15dc   : > { %8362 = vrot.lane.b32.xlu0 %v3883_v56, %s12608_s21  ;;  %v12024_v36 = vpop.eup %12023  ;;  %12041 = vrcp.f32 %v18635_v37  ;;  %v3887_v26 = vmul.f32 %v12022_v31, %v18639_v25  ;;  %v18644_v56 = vld [vmem:[#allocation114_spill] sm:$0xff] }
0x15dd   : > { %10770 = vmatmul.mubr.bf16.gmra.mrb[248].mxu1 %v7718_v47  ;;  %v12026_v9 = vpop.eup %12025  ;;  %v5652_v63 = vmul.f32 %v12024_v36, %v18637_v51  ;;  %12043 = vrcp.f32 %v18638_v21  ;;  %v18646_v31 = vld [vmem:[#allocation206_spill] sm:$0xff]  ;;  %v18653_v21 = vld [vmem:[#allocation111_spill] sm:$0xff] }
0x15de   : > { %10790 = vmatpush3.bf16.xpose.msra.mxu1 %v7949_v45  ;;  %8552 = vrot.lane.b32.xlu1 %v5650_v30, %s12608_s21  ;;  %v16542_v15 = vpop.eup %12027  ;;  %12045 = vrcp.f32 %v16328_v20  ;;  %v5654_v18 = vmul.f32 %v12026_v9, %v18640_v8  ;;  %v18648_v45 = vld [vmem:[#allocation189_spill] sm:$0xff]  ;;  %v18649_v9 = vld [vmem:[#allocation87_spill] sm:$0xff]  ;;  %v18654_v25 = vld [vmem:[#allocation210_spill] sm:$0xff] }
0x15df   : > { %11192 = vmatprep.subr.msk.bf16.mxu1 %vm3019_vm0, %v18636_v49  ;;  %v16547_v61 = vpop.eup %12029  ;;  %12047 = vrcp.f32 %v18641_v22  ;;  %v18658_v22 = vld [vmem:[#allocation86_spill] sm:$0xff] }
0x15e0   : > { %8366 = vrot.lane.b32.xlu0 %v3885_v24, %s12608_s21  ;;  %12049 = vrcp.f32 %v16320_v0  ;;  %v18647_v0 = vld [vmem:[#allocation190_spill] sm:$0xff]  ;;  %v18651_v24 = vld [vmem:[#allocation211_spill] sm:$0xff] }
0x15e1   : > { %v16551_v19 = vpop.eup %12031  ;;  %12051 = vrcp.f32 %v18645_v5 }
0x15e2   : > { %v16554_v23 = vpop.eup %12033  ;;  %8556 = vrot.lane.b32.xlu1 %v5652_v63, %s12608_s21  ;;  %v7719_v53 = vpack.c.bf16 %v16551_v19, %v16547_v61  ;;  %12053 = vrcp.f32 %v16342_v35  ;;  %v18652_v35 = vld [vmem:[#allocation112_spill] sm:$0xff] }
0x15e3   : > { %v12036_v3 = vpop.eup %12035  ;;  %v7720_v11 = vpack.c.bf16 %v16542_v15, %v16554_v23  ;;  %12055 = vrcp.f32 %v18648_v45  ;;  %v18667_v45 = vld [vmem:[#allocation145_spill] sm:$0xff] }
0x15e4   : > { %8370 = vrot.lane.b32.xlu0 %v3887_v26, %s12608_s21  ;;  %10773 = vmatprep.mubr.bf16.mxu1 %v7719_v53  ;;  %v12038_v44 = vpop.eup %12037  ;;  %v5641_v20 = vmul.f32 %v12036_v3, %v18642_v29  ;;  %12057 = vrcp.f32 %v18653_v21  ;;  %v18655_v3 = vld [vmem:[#allocation124_spill] sm:$0xff] }
0x15e5   : > { %10774 = vmatmul.mubr.bf16.gmra.mrb[252].mxu1 %v7720_v11  ;;  %v12040_v59 = vpop.eup %12039  ;;  %v7408_v47 = vmul.f32 %v12038_v44, %v18644_v56  ;;  %v18657_v44 = vld [vmem:[#allocation89_spill] sm:$0xff]  ;;  %v18661_v56 = vld [vmem:[#allocation36_spill] sm:$0xff] }
0x15e6   : > { %10792 = vmatpush3.bf16.xpose.msra.mxu1 %v7952_v48  ;;  %8560 = vrot.lane.b32.xlu1 %v5654_v18, %s12608_s21  ;;  %v12042_v7 = vpop.eup %12041  ;;  %v5643_v62 = vmul.f32 %v12040_v59, %v18646_v31  ;;  %v18656_v18 = vld [vmem:[#allocation194_spill] sm:$0xff]  ;;  %v18659_v48 = vld [vmem:[#allocation215_spill] sm:$0xff]  ;;  %v18663_v31 = vld [vmem:[#allocation32_spill] sm:$0xff] }
0x15e7   : > { %10793 = vmatprep.mubr.msk.bf16.mxu1 %vm3019_vm0, %v18643_v50  ;;  %v12044_v30 = vpop.eup %12043  ;;  %v7410_v36 = vmul.f32 %v12042_v7, %v18647_v0  ;;  %12059 = vrcp.f32 %v18656_v18  ;;  %v18660_v59 = vld [vmem:[#allocation227_spill] sm:$0xff]  ;;  %v18672_v21 = vld [vmem:[#allocation192_spill] sm:$0xff] }
0x15e8   : > { %8534 = vrot.lane.b32.xlu0 %v5641_v20, %s12608_s21  ;;  %v12046_v17 = vpop.eup %12045  ;;  %v5645_v37 = vmul.f32 %v12044_v30, %v18651_v24  ;;  %12061 = vrcp.f32 %v18661_v56  ;;  %v18665_v30 = vld [vmem:[#allocation198_spill] sm:$0xff]  ;;  %v18666_v0 = vld [vmem:[#allocation219_spill] sm:$0xff] }
0x15e9   : > { %v12048_v49 = vpop.eup %12047  ;;  %v7412_v51 = vmul.f32 %v12046_v17, %v18652_v35  ;;  %12063 = vrcp.f32 %v18663_v31  ;;  %v18671_v35 = vld [vmem:[#allocation116_spill] sm:$0xff] }
0x15ea   : > { %8724 = vrot.lane.b32.xlu1 %v7408_v47, %s12608_s21  ;;  %v12050_v63 = vpop.eup %12049  ;;  %v5647_v26 = vmul.f32 %v12048_v49, %v18654_v25  ;;  %v18662_v47 = vld [vmem:[#allocation214_spill] sm:$0xff]  ;;  %12065 = vrcp.f32 %v18667_v45  ;;  %v18670_v49 = vld [vmem:[#allocation191_spill] sm:$0xff] }
0x15eb   : > { %v12052_v53 = vpop.eup %12051  ;;  %v7414_v11 = vmul.f32 %v12050_v63, %v18655_v3 }
0x15ec   : > { %8538 = vrot.lane.b32.xlu0 %v5643_v62, %s12608_s21  ;;  %v12054_v8 = vpop.eup %12053  ;;  %v5649_v29 = vmul.f32 %v12052_v53, %v18659_v48  ;;  %v18664_v62 = vld [vmem:[#allocation88_spill] sm:$0xff]  ;;  %v18673_v53 = vld [vmem:[#allocation223_spill] sm:$0xff] }
0x15ed   : > { %10794 = vmatmul.mubr.msk.bf16.vlgmr.msra.gmra.mrb[0].mxu1 %vm3019_vm0, %v18649_v9  ;;  %v12056_v20 = vpop.eup %12055  ;;  %v7416_v50 = vmul.f32 %v12054_v8, %v18660_v59  ;;  %v18668_v9 = vld [vmem:[#allocation218_spill] sm:$0xff]  ;;  %v18674_v8 = vld [vmem:[#allocation113_spill] sm:$0xff]  ;;  %v16644_v59 = vpop.xlane.xlu0 %6383 }
0x15ee   : > { %8728 = vrot.lane.b32.xlu1 %v7410_v36, %s12608_s21  ;;  %10797 = vmatprep.mubr.msk.bf16.mxu1 %vm3019_vm0, %v18650_v10  ;;  %v5651_v7 = vmul.f32 %v12056_v20, %v18662_v47  ;;  %v12058_v5 = vpop.eup %12057  ;;  %18680 = vst [vmem:[#allocation67_spill] sm:$0xff] %v16644_v59 }
0x15ef   : > { %v5653_v36 = vmul.f32 %v12058_v5, %v18666_v0 }
0x15f0   : > { %8542 = vrot.lane.b32.xlu0 %v5645_v37, %s12608_s21  ;;  %v18669_v37 = vld [vmem:[#allocation43_spill] sm:$0xff] }
0x15f1   : > { %v12060_v17 = vpop.eup %12059  ;;  %12067 = vrcp.f32 %v18669_v37 }
0x15f2   : > { %8732 = vrot.lane.b32.xlu1 %v7412_v51, %s12608_s21  ;;  %v5655_v10 = vmul.f32 %v12060_v17, %v18668_v9  ;;  %v12062_v24 = vpop.eup %12061  ;;  %12069 = vrcp.f32 %v16334_v2 }
0x15f3   : > { %v7409_v51 = vmul.f32 %v12062_v24, %v18671_v35  ;;  %v12064_v63 = vpop.eup %12063 }
0x15f4   : > { %8546 = vrot.lane.b32.xlu0 %v5647_v26, %s12608_s21  ;;  %v7411_v25 = vmul.f32 %v12064_v63, %v18672_v21  ;;  %v12066_v26 = vpop.eup %12065 }
0x15f5   : > { %10798 = vmatmul.mubr.msk.bf16.gmra.mrb[4].mxu1 %vm3019_vm0, %v18657_v44  ;;  %v7413_v3 = vmul.f32 %v12066_v26, %v18673_v53  ;;  %v16629_v44 = vpop.xlane.xlu1 %6385 }
0x15f6   : > { %8736 = vrot.lane.b32.xlu1 %v7414_v11, %s12608_s21  ;;  %10801 = vmatprep.mubr.msk.bf16.mxu1 %vm3019_vm0, %v18658_v22  ;;  %18675 = vst [vmem:[#allocation249_spill] sm:$0xff] %v16629_v44 }
0x15f8   : > { %8550 = vrot.lane.b32.xlu0 %v5649_v29, %s12608_s21 }
0x15f9   : > { %v16631_v22 = vpop.xlane.xlu1 %6389 }
0x15fa   : > { %8740 = vrot.lane.b32.xlu1 %v7416_v50, %s12608_s21  ;;  %18676 = vst [vmem:[#allocation65_spill] sm:$0xff] %v16631_v22 }
0x15fb   : > { %v12068_v11 = vpop.eup %12067 }
0x15fc   : > { %8554 = vrot.lane.b32.xlu0 %v5651_v7, %s12608_s21  ;;  %v7415_v18 = vmul.f32 %v12068_v11, %v18674_v8 }
0x15fd   : > { %10802 = vmatmul.mubr.msk.bf16.gmra.mrb[8].mxu1 %vm3019_vm0, %v18664_v62  ;;  %v16634_v48 = vpop.xlane.xlu1 %6393 }
0x15fe   : > { %10805 = vmatprep.mubr.msk.bf16.mxu1 %vm3019_vm0, %v18665_v30  ;;  %18677 = vst [vmem:[#allocation251_spill] sm:$0xff] %v16634_v48 }
0x1600   : > { %8558 = vrot.lane.b32.xlu0 %v5653_v36, %s12608_s21 }
0x1601   : > { %v16638_v29 = vpop.xlane.xlu1 %3247 }
0x1602   : > { %18678 = vst [vmem:[#allocation68_spill] sm:$0xff] %v16638_v29 }
0x1604   : > { %8562 = vrot.lane.b32.xlu0 %v5655_v10, %s12608_s21 }
0x1605   : > { %10806 = vmatmul.mubr.msk.bf16.gmra.mrb[12].mxu1 %vm3019_vm0, %v18670_v49  ;;  %v16641_v20 = vpop.xlane.xlu1 %3251 }
0x1606   : > { %18679 = vst [vmem:[#allocation54_spill] sm:$0xff] %v16641_v20 }
0x1608   : > { %8726 = vrot.lane.b32.xlu0 %v7409_v51, %s12608_s21 }
0x160c   : > { %8730 = vrot.lane.b32.xlu0 %v7411_v25, %s12608_s21 }
0x1610   : > { %8734 = vrot.lane.b32.xlu0 %v7413_v3, %s12608_s21 }
0x1614   : > { %8738 = vrot.lane.b32.xlu0 %v7415_v18, %s12608_s21 }
0x161e   : > { %7687 = vadd.xlane.f32.xlu1 %v16394_v54  ;;  %v16648_v54 = vpop.xlane.xlu1 %3255 }
0x161f   : > { %18681 = vst [vmem:[#allocation57_spill] sm:$0xff] %v16648_v54  ;;  %v16778_v54 = vld [vmem:[%s13466_s13] ss:$0 sm:$0xff] }
0x1622   : > { %7683 = vadd.xlane.f32.xlu1 %v16381_v32  ;;  %v16651_v32 = vpop.xlane.xlu0 %6387 }
0x1623   : > { %18682 = vst [vmem:[#allocation159_spill] sm:$0xff] %v16651_v32 }
0x1626   : > { %7695 = vadd.xlane.f32.xlu1 %v16491_v60  ;;  %v16654_v60 = vpop.xlane.xlu1 %3259 }
0x1627   : > { %18683 = vst [vmem:[#allocation58_spill] sm:$0xff] %v16654_v60 }
0x162a   : > { %7691 = vadd.xlane.f32.xlu1 %v16496_v43  ;;  %v16658_v43 = vpop.xlane.xlu0 %6391 }
0x162b   : > { %18684 = vst [vmem:[#allocation157_spill] sm:$0xff] %v16658_v43 }
0x162e   : > { %7703 = vadd.xlane.f32.xlu1 %v16523_v41  ;;  %v16671_v41 = vpop.xlane.xlu1 %3263 }
0x162f   : > { %18688 = vst [vmem:[#allocation162_spill] sm:$0xff] %v16671_v41 }
0x1632   : > { %7699 = vadd.xlane.f32.xlu1 %v16499_v12  ;;  %v16661_v12 = vpop.xlane.xlu0 %3245 }
0x1633   : > { %7685 = vadd.xlane.f32.xlu0 %v16391_v55  ;;  %18685 = vst [vmem:[#allocation59_spill] sm:$0xff] %v16661_v12 }
0x1636   : > { %7711 = vadd.xlane.f32.xlu1 %v16542_v15  ;;  %v16665_v55 = vpop.xlane.xlu0 %3249 }
0x1637   : > { %7681 = vadd.xlane.f32.xlu0 %v16383_v13  ;;  %18686 = vst [vmem:[#allocation164_spill] sm:$0xff] %v16665_v55 }
0x163a   : > { %7707 = vadd.xlane.f32.xlu1 %v16551_v19  ;;  %v16668_v13 = vpop.xlane.xlu0 %3253 }
0x163b   : > { %7693 = vadd.xlane.f32.xlu0 %v16481_v34  ;;  %18687 = vst [vmem:[#allocation61_spill] sm:$0xff] %v16668_v13  ;;  %v16673_v34 = vpop.xlane.xlu1 %3267 }
0x163c   : > { %18689 = vst [vmem:[#allocation64_spill] sm:$0xff] %v16673_v34 }
0x163e   : > { %v16675_v15 = vpop.xlane.xlu0 %3257 }
0x163f   : > { %7689 = vadd.xlane.f32.xlu0 %v16484_v38  ;;  %18690 = vst [vmem:[#allocation163_spill] sm:$0xff] %v16675_v15  ;;  %v16677_v38 = vpop.xlane.xlu1 %3271 }
0x1640   : > { %18691 = vst [vmem:[#allocation66_spill] sm:$0xff] %v16677_v38 }
0x1642   : > { %v16679_v19 = vpop.xlane.xlu0 %3261 }
0x1643   : > { %7701 = vadd.xlane.f32.xlu0 %v16527_v4  ;;  %18692 = vst [vmem:[#allocation168_spill] sm:$0xff] %v16679_v19  ;;  %v16681_v4 = vpop.xlane.xlu1 %3275 }
0x1647   : > { %7697 = vadd.xlane.f32.xlu0 %v16511_v39  ;;  %v16683_v39 = vpop.xlane.xlu0 %3265  ;;  %v16685_v50 = vpop.xlane.xlu1 %5015 }
0x1648   : > { %18693 = vst [vmem:[#allocation69_spill] sm:$0xff] %v16683_v39 }
0x164b   : > { %7709 = vadd.xlane.f32.xlu0 %v16554_v23  ;;  %v16687_v23 = vpop.xlane.xlu0 %3269  ;;  %v16689_v56 = vpop.xlane.xlu1 %5019 }
0x164c   : > { %18694 = vst [vmem:[#allocation171_spill] sm:$0xff] %v16687_v23 }
0x164f   : > { %7705 = vadd.xlane.f32.xlu0 %v16547_v61  ;;  %v16691_v61 = vpop.xlane.xlu0 %3273  ;;  %v16693_v47 = vpop.xlane.xlu1 %5023 }
0x1650   : > { %18695 = vst [vmem:[#allocation158_spill] sm:$0xff] %v16691_v61  ;;  %18696 = vst [vmem:[#allocation170_spill] sm:$0xff] %v16693_v47 }
0x1653   : > { %v16695_v7 = vpop.xlane.xlu0 %5013  ;;  %v16697_v5 = vpop.xlane.xlu1 %5027 }
0x1654   : > { %18697 = vst [vmem:[#allocation160_spill] sm:$0xff] %v16695_v7  ;;  %18698 = vst [vmem:[#allocation161_spill] sm:$0xff] %v16697_v5  ;;  %v18824_v5 = vld [vmem:[#allocation40_spill] sm:$0xff]  ;;  %v18830_v7 = vld [vmem:[#allocation231_spill] sm:$0xff] }
0x1657   : > { %v16699_v31 = vpop.xlane.xlu0 %5017  ;;  %v16705_v0 = vpop.xlane.xlu1 %5031 }
0x1658   : > { %18699 = vst [vmem:[#allocation165_spill] sm:$0xff] %v16699_v31  ;;  %18700 = vst [vmem:[#allocation166_spill] sm:$0xff] %v16705_v0 }
0x165b   : > { %v16709_v17 = vpop.xlane.xlu0 %5021  ;;  %v16713_v9 = vpop.xlane.xlu1 %5035 }
0x165c   : > { %18701 = vst [vmem:[#allocation167_spill] sm:$0xff] %v16709_v17  ;;  %18702 = vst [vmem:[#allocation169_spill] sm:$0xff] %v16713_v9  ;;  %v18764_v17 = vld [vmem:[#allocation225_spill] sm:$0xff] }
0x165f   : > { %v16715_v10 = vpop.xlane.xlu0 %5025  ;;  %v16717_v24 = vpop.xlane.xlu1 %5039 }
0x1660   : > { %18703 = vst [vmem:[#allocation172_spill] sm:$0xff] %v16715_v10  ;;  %18704 = vst [vmem:[#allocation260_spill] sm:$0xff] %v16717_v24  ;;  %v18754_v10 = vld [vmem:[#allocation144_spill] sm:$0xff] }
0x1663   : > { %v16719_v37 = vpop.xlane.xlu0 %5029  ;;  %v16721_v49 = vpop.xlane.xlu1 %5043 }
0x1664   : > { %18705 = vst [vmem:[#allocation261_spill] sm:$0xff] %v16719_v37  ;;  %18706 = vst [vmem:[#allocation262_spill] sm:$0xff] %v16721_v49 }
0x1667   : > { %v16723_v35 = vpop.xlane.xlu0 %5033  ;;  %v16725_v51 = vpop.xlane.xlu1 %6783 }
0x1668   : > { %18707 = vst [vmem:[#allocation98_spill] sm:$0xff] %v16723_v35  ;;  %18708 = vst [vmem:[#allocation263_spill] sm:$0xff] %v16725_v51  ;;  %v18732_v51 = vld [vmem:[#allocation122_spill] sm:$0xff] }
0x166b   : > { %v16727_v63 = vpop.xlane.xlu0 %5037  ;;  %v16729_v21 = vpop.xlane.xlu1 %6787 }
0x166c   : > { %18709 = vst [vmem:[#allocation264_spill] sm:$0xff] %v16727_v63  ;;  %18710 = vst [vmem:[#allocation265_spill] sm:$0xff] %v16729_v21 }
0x166f   : > { %v16731_v25 = vpop.xlane.xlu0 %5041  ;;  %v16733_v26 = vpop.xlane.xlu1 %6791 }
0x1670   : > { %18711 = vst [vmem:[#allocation104_spill] sm:$0xff] %v16731_v25  ;;  %18712 = vst [vmem:[#allocation103_spill] sm:$0xff] %v16733_v26  ;;  %v18729_v25 = vld [vmem:[#allocation117_spill] sm:$0xff] }
0x1673   : > { %v16735_v53 = vpop.xlane.xlu0 %6781  ;;  %v16745_v23 = vpop.xlane.xlu1 %6795 }
0x1674   : > { %18713 = vst [vmem:[#allocation108_spill] sm:$0xff] %v16735_v53  ;;  %18714 = vst [vmem:[#allocation107_spill] sm:$0xff] %v16745_v23 }
0x1677   : > { %v16747_v39 = vpop.xlane.xlu0 %6785  ;;  %v16753_v15 = vpop.xlane.xlu1 %6799 }
0x1678   : > { %18715 = vst [vmem:[#allocation205_spill] sm:$0xff] %v16747_v39  ;;  %18716 = vst [vmem:[#allocation204_spill] sm:$0xff] %v16753_v15  ;;  %v12070_v39 = vpop.eup %12069 }
0x167b   : > { %v16757_v34 = vpop.xlane.xlu0 %6789  ;;  %v16761_v32 = vpop.xlane.xlu1 %6803 }
0x167c   : > { %18717 = vst [vmem:[#allocation209_spill] sm:$0xff] %v16757_v34  ;;  %18718 = vst [vmem:[#allocation147_spill] sm:$0xff] %v16761_v32  ;;  %v18725_v34 = vld [vmem:[#allocation41_spill] sm:$0xff] }
0x167d   : > { %12071 = vrcp.f32 %v18725_v34 }
0x167f   : > { %v16701_v62 = vpop.f32.mrb[240].mxu1  ;;  %v16765_v55 = vpop.xlane.xlu0 %6793 }
0x1680   : > { %v16703_v30 = vpop.f32.mrb[241].mxu1  ;;  %18719 = vst [vmem:[#allocation90_spill] sm:$0xff] %v16765_v55  ;;  %v16773_v12 = vpop.xlane.xlu1 %6807 }
0x1681   : > { %v16707_v36 = vpop.f32.mrb[242].mxu1  ;;  %18720 = vst [vmem:[#allocation220_spill] sm:$0xff] %v16773_v12 }
0x1682   : > { %v16711_v45 = vpop.f32.mrb[243].mxu1 }
0x1683   : > { %v16775_v22 = vpop.xlane.xlu0 %6797 }
0x1684   : > { %18721 = vst [vmem:[#allocation208_spill] sm:$0xff] %v16775_v22  ;;  %v16787_v29 = vpop.xlane.xlu1 %6811 }
0x1685   : > { %18722 = vst [vmem:[#allocation106_spill] sm:$0xff] %v16787_v29 }
0x1687   : > { %v16791_v22 = vpop.xlane.xlu0 %6801 }
0x1688   : > { %18723 = vst [vmem:[#allocation93_spill] sm:$0xff] %v16791_v22  ;;  %v7418_v22 = vmul.f32 %v12070_v39, %v18729_v25 }
0x16a8   : > { %v16737_v3 = vpop.f32.mrb[244].mxu1 }
0x16a9   : > { %v16739_v11 = vpop.f32.mrb[245].mxu1 }
0x16aa   : > { %v16741_v8 = vpop.f32.mrb[246].mxu1 }
0x16ab   : > { %v16743_v18 = vpop.f32.mrb[247].mxu1 }
0x16b0   : > { %v16749_v19 = vpop.f32.mrb[248].mxu1 }
0x16b1   : > { %v16751_v38 = vpop.f32.mrb[249].mxu1 }
0x16b2   : > { %v16755_v43 = vpop.f32.mrb[250].mxu1 }
0x16b3   : > { %v16759_v13 = vpop.f32.mrb[251].mxu1 }
0x16b8   : > { %v16763_v41 = vpop.f32.mrb[252].mxu1 }
0x16b9   : > { %v16767_v48 = vpop.f32.mrb[253].mxu1 }
0x16ba   : > { %v16769_v59 = vpop.f32.mrb[254].mxu1 }
0x16bb   : > { %v16771_v60 = vpop.f32.mrb[255].mxu1 }
0x16c0   : > { %v10795_v52 = vpop.f32.mrb[0].mxu1 }
0x16c1   : > { %v16781_v44 = vadd.f32 %v16778_v54, %v10795_v52  ;;  %v7988_v58 = vpop.f32.mrb[1].mxu1  ;;  %v16793_v52 = vpop.permute.xlu1 %8342 }
0x16c2   : > { %v16784_v20 = vadd.f32 %v16778_v54, %v7988_v58  ;;  %v10796_v28 = vpop.f32.mrb[2].mxu1  ;;  %18724 = vst [vmem:[#allocation213_spill] sm:$0xff] %v16793_v52  ;;  %v16796_v58 = vpop.xlane.xlu0 %6805 }
0x16c3   : > { %8055 = vmax.xlane.f32.xlu1 %v16781_v44  ;;  %v7991_v1 = vpop.f32.mrb[3].mxu1  ;;  %18726 = vst [vmem:[#allocation197_spill] sm:$0xff] %v16796_v58  ;;  %v12072_v52 = vpop.eup %12071 }
0x16c4   : > { %8051 = vmax.xlane.f32.xlu0 %v16784_v20  ;;  %v7417_v35 = vmul.f32 %v12072_v52, %v18732_v51 }
0x16c5   : > { %v16798_v23 = vpop.permute.xlu1 %8344 }
0x16c6   : > { %18727 = vst [vmem:[#allocation105_spill] sm:$0xff] %v16798_v23  ;;  %v16800_v53 = vpop.xlane.xlu0 %6809 }
0x16c7   : > { %18728 = vst [vmem:[#allocation37_spill] sm:$0xff] %v16800_v53 }
0x16c8   : > { %v10799_v12 = vpop.f32.mrb[4].mxu1 }
0x16c9   : > { %v8004_v55 = vpop.f32.mrb[5].mxu1  ;;  %v16804_v63 = vpop.permute.xlu1 %8348 }
0x16ca   : > { %v10800_v32 = vpop.f32.mrb[6].mxu1  ;;  %18730 = vst [vmem:[#allocation212_spill] sm:$0xff] %v16804_v63  ;;  %v16806_v34 = vpop.permute.xlu0 %8340 }
0x16cb   : > { %v8007_v15 = vpop.f32.mrb[7].mxu1  ;;  %18731 = vst [vmem:[#allocation91_spill] sm:$0xff] %v16806_v34 }
0x16cd   : > { %v16810_v37 = vpop.permute.xlu1 %8352 }
0x16ce   : > { %18733 = vst [vmem:[#allocation110_spill] sm:$0xff] %v16810_v37  ;;  %v16812_v24 = vpop.permute.xlu0 %8346  ;;  %v16831_v37 = vadd.f32 %v16778_v54, %v10796_v28  ;;  %v16851_v28 = vadd.f32 %v16778_v54, %v10799_v12  ;;  %v16871_v12 = vadd.f32 %v16778_v54, %v8007_v15 }
0x16cf   : > { %18734 = vst [vmem:[#allocation29_spill] sm:$0xff] %v16812_v24  ;;  %v16834_v24 = vadd.f32 %v16778_v54, %v8004_v55 }
0x16d0   : > { %v10803_v29 = vpop.f32.mrb[8].mxu1 }
0x16d1   : > { %v8020_v26 = vpop.f32.mrb[9].mxu1  ;;  %v16814_v39 = vpop.permute.xlu1 %8356 }
0x16d2   : > { %v10804_v2 = vpop.f32.mrb[10].mxu1  ;;  %18735 = vst [vmem:[#allocation92_spill] sm:$0xff] %v16814_v39 }
0x16d3   : > { %v8023_v21 = vpop.f32.mrb[11].mxu1 }
0x16d4   : > { %8744 = vrot.lane.b32.xlu1 %v7418_v22, %s12608_s21  ;;  %v16816_v22 = vpop.permute.xlu0 %8350  ;;  %v16854_v55 = vadd.f32 %v16778_v54, %v8023_v21 }
0x16d5   : > { %18736 = vst [vmem:[#allocation217_spill] sm:$0xff] %v16816_v22  ;;  %v16818_v25 = vpop.permute.xlu1 %8360 }
0x16d6   : > { %18737 = vst [vmem:[#allocation202_spill] sm:$0xff] %v16818_v25  ;;  %v16839_v25 = vadd.f32 %v16778_v54, %v7991_v1 }
0x16d8   : > { %v10807_v58 = vpop.f32.mrb[12].mxu1  ;;  %v16820_v63 = vpop.permute.xlu0 %8354 }
0x16d9   : > { %v8036_v49 = vpop.f32.mrb[13].mxu1  ;;  %18738 = vst [vmem:[#allocation109_spill] sm:$0xff] %v16820_v63  ;;  %v16822_v34 = vpop.permute.xlu1 %8364 }
0x16da   : > { %v10808_v23 = vpop.f32.mrb[14].mxu1  ;;  %8742 = vrot.lane.b32.xlu0 %v7417_v35, %s12608_s21  ;;  %18739 = vst [vmem:[#allocation216_spill] sm:$0xff] %v16822_v34 }
0x16db   : > { %v8039_v53 = vpop.f32.mrb[15].mxu1 }
0x16dc   : > { %v16824_v51 = vpop.permute.xlu0 %8358  ;;  %v16878_v22 = vadd.f32 %v16778_v54, %v8039_v53  ;;  %v16896_v53 = vadd.f32 %v16778_v54, %v10807_v58 }
0x16dd   : > { %18740 = vst [vmem:[#allocation94_spill] sm:$0xff] %v16824_v51  ;;  %v16826_v52 = vpop.permute.xlu1 %8368  ;;  %v16846_v51 = vadd.f32 %v16778_v54, %v10804_v2  ;;  %v16863_v2 = vadd.f32 %v16778_v54, %v10800_v32  ;;  %v16883_v32 = vadd.f32 %v16778_v54, %v10803_v29 }
0x16de   : > { %18741 = vst [vmem:[#allocation207_spill] sm:$0xff] %v16826_v52 }
0x16e0   : > { %v16828_v35 = vpop.permute.xlu0 %8362 }
0x16e1   : > { %18742 = vst [vmem:[#allocation193_spill] sm:$0xff] %v16828_v35  ;;  %v16841_v34 = vpop.permute.xlu1 %8532 }
0x16e2   : > { %18743 = vst [vmem:[#allocation114_spill] sm:$0xff] %v16841_v34 }
0x16e4   : > { %v16843_v39 = vpop.permute.xlu0 %8366 }
0x16e5   : > { %18744 = vst [vmem:[#allocation201_spill] sm:$0xff] %v16843_v39  ;;  %v16857_v1 = vpop.permute.xlu1 %8536  ;;  %v16866_v39 = vadd.f32 %v16778_v54, %v10808_v23 }
0x16e6   : > { %18745 = vst [vmem:[#allocation206_spill] sm:$0xff] %v16857_v1  ;;  %v18751_v1 = vld [vmem:[#allocation244_spill] sm:$0xff] }
0x16e7   : > { %12073 = vrcp.f32 %v18751_v1 }
0x16e8   : > { %v16859_v35 = vpop.permute.xlu0 %8370  ;;  %12075 = vrcp.f32 %v18754_v10 }
0x16e9   : > { %18746 = vst [vmem:[#allocation190_spill] sm:$0xff] %v16859_v35  ;;  %v16873_v21 = vpop.permute.xlu1 %8540 }
0x16ea   : > { %18747 = vst [vmem:[#allocation189_spill] sm:$0xff] %v16873_v21  ;;  %v16891_v21 = vadd.f32 %v16778_v54, %v8020_v26  ;;  %v18755_v26 = vld [vmem:[#allocation142_spill] sm:$0xff] }
0x16eb   : > { %12077 = vrcp.f32 %v18755_v26  ;;  %v18762_v26 = vld [vmem:[#allocation196_spill] sm:$0xff] }
0x16ec   : > { %v16875_v63 = vpop.permute.xlu0 %8534  ;;  %12079 = vrcp.f32 %v16356_v33 }
0x16ed   : > { %18748 = vst [vmem:[#allocation87_spill] sm:$0xff] %v16875_v63  ;;  %v16886_v23 = vpop.permute.xlu1 %8544  ;;  %v18813_v63 = vld [vmem:[#allocation222_spill] sm:$0xff] }
0x16ee   : > { %18749 = vst [vmem:[#allocation195_spill] sm:$0xff] %v16886_v23  ;;  %v16905_v23 = vadd.f32 %v16778_v54, %v8036_v49 }
0x16f0   : > { %v16888_v15 = vpop.permute.xlu0 %8538 }
0x16f1   : > { %18750 = vst [vmem:[#allocation211_spill] sm:$0xff] %v16888_v15  ;;  %v16898_v34 = vpop.permute.xlu1 %8548  ;;  %v12074_v58 = vpop.eup %12073 }
0x16f2   : > { %18752 = vst [vmem:[#allocation112_spill] sm:$0xff] %v16898_v34  ;;  %v18758_v34 = vld [vmem:[#allocation118_spill] sm:$0xff]  ;;  %v12076_v9 = vpop.eup %12075 }
0x16f3   : > { %12081 = vrcp.f32 %v18758_v34  ;;  %v18765_v34 = vld [vmem:[#allocation121_spill] sm:$0xff] }
0x16f4   : > { %v16900_v29 = vpop.permute.xlu0 %8542  ;;  %12083 = vrcp.f32 %v16348_v16 }
0x16f5   : > { %18753 = vst [vmem:[#allocation111_spill] sm:$0xff] %v16900_v29  ;;  %v16909_v1 = vpop.permute.xlu1 %8552  ;;  %v18759_v29 = vld [vmem:[#allocation119_spill] sm:$0xff]  ;;  %12085 = vrcp.f32 %v18762_v26  ;;  %v12078_v15 = vpop.eup %12077 }
0x16f6   : > { %18756 = vst [vmem:[#allocation210_spill] sm:$0xff] %v16909_v1  ;;  %v7419_v10 = vmul.f32 %v12074_v58, %v18759_v29  ;;  %v18763_v1 = vld [vmem:[#allocation221_spill] sm:$0xff]  ;;  %12087 = vrcp.f32 %v18764_v17  ;;  %v12080_v33 = vpop.eup %12079  ;;  %v18771_v17 = vld [vmem:[#allocation199_spill] sm:$0xff] }
0x16f7   : > { %12089 = vrcp.f32 %v18765_v34  ;;  %v18768_v58 = vld [vmem:[#allocation233_spill] sm:$0xff] }
0x16f8   : > { %8057 = vmax.xlane.f32.xlu1 %v16831_v37  ;;  %v16911_v52 = vpop.permute.xlu0 %8546 }
0x16f9   : > { %8059 = vmax.xlane.f32.xlu0 %v16834_v24  ;;  %18757 = vst [vmem:[#allocation124_spill] sm:$0xff] %v16911_v52  ;;  %v16917_v54 = vpop.permute.xlu1 %8556  ;;  %v7421_v52 = vmul.f32 %v12076_v9, %v18763_v1  ;;  %v18770_v9 = vld [vmem:[#allocation126_spill] sm:$0xff] }
0x16fa   : > { %18760 = vst [vmem:[#allocation194_spill] sm:$0xff] %v16917_v54  ;;  %v7423_v54 = vmul.f32 %v12078_v15, %v18768_v58  ;;  %v7420_v1 = vmul.f32 %v12080_v33, %v18770_v9  ;;  %v18776_v58 = vld [vmem:[#allocation123_spill] sm:$0xff]  ;;  %v18777_v33 = vld [vmem:[#allocation120_spill] sm:$0xff] }
0x16fb   : > { %v18778_v9 = vld [vmem:[#allocation127_spill] sm:$0xff] }
0x16fc   : > { %8053 = vmax.xlane.f32.xlu1 %v16839_v25  ;;  %v16919_v49 = vpop.permute.xlu0 %8550 }
0x16fd   : > { %8073 = vmax.xlane.f32.xlu0 %v16846_v51  ;;  %18761 = vst [vmem:[#allocation89_spill] sm:$0xff] %v16919_v49  ;;  %v16927_v29 = vpop.permute.xlu1 %8560  ;;  %v12082_v49 = vpop.eup %12081 }
0x16fe   : > { %18766 = vst [vmem:[#allocation86_spill] sm:$0xff] %v16927_v29  ;;  %v12084_v26 = vpop.eup %12083  ;;  %v18773_v29 = vld [vmem:[#allocation30_spill] sm:$0xff] }
0x16ff   : > { %v12086_v0 = vpop.eup %12085 }
0x1700   : > { %8063 = vmax.xlane.f32.xlu1 %v16851_v28  ;;  %v16929_v16 = vpop.permute.xlu0 %8554 }
0x1701   : > { %8069 = vmax.xlane.f32.xlu0 %v16854_v55  ;;  %18767 = vst [vmem:[#allocation215_spill] sm:$0xff] %v16929_v16  ;;  %v16939_v16 = vpop.permute.xlu1 %8724 }
0x1702   : > { %18774 = vst [vmem:[#allocation227_spill] sm:$0xff] %v16939_v16 }
0x1704   : > { %8065 = vmax.xlane.f32.xlu1 %v16863_v2  ;;  %v16941_v15 = vpop.permute.xlu0 %8558 }
0x1705   : > { %8081 = vmax.xlane.f32.xlu0 %v16866_v39  ;;  %18775 = vst [vmem:[#allocation36_spill] sm:$0xff] %v16941_v15  ;;  %v18781_v15 = vld [vmem:[#allocation200_spill] sm:$0xff] }
0x1708   : > { %8061 = vmax.xlane.f32.xlu1 %v16871_v12 }
0x1709   : > { %8077 = vmax.xlane.f32.xlu0 %v16878_v22 }
0x170c   : > { %8071 = vmax.xlane.f32.xlu1 %v16883_v32 }
0x1710   : > { %8067 = vmax.xlane.f32.xlu1 %v16891_v21 }
0x1714   : > { %8079 = vmax.xlane.f32.xlu1 %v16896_v53 }
0x1718   : > { %8075 = vmax.xlane.f32.xlu1 %v16905_v23 }
0x171f   : > { %8746 = vrot.lane.b32.xlu0 %v7419_v10, %s12608_s21  ;;  %v18769_v10 = vld [vmem:[#allocation229_spill] sm:$0xff] }
0x1720   : > { %12091 = vrcp.f32 %v18769_v10  ;;  %v12088_v10 = vpop.eup %12087 }
0x1721   : > { %12093 = vrcp.f32 %v18771_v17  ;;  %v12090_v17 = vpop.eup %12089 }
0x1722   : > { %12095 = vrcp.f32 %v18773_v29  ;;  %v18780_v29 = vld [vmem:[#allocation45_spill] sm:$0xff] }
0x1723   : > { %8750 = vrot.lane.b32.xlu0 %v7421_v52, %s12608_s21  ;;  %v18772_v52 = vld [vmem:[#allocation128_spill] sm:$0xff]  ;;  %12097 = vrcp.f32 %v18777_v33 }
0x1724   : > { %v4323_v34 = vmul.f32 %v12082_v49, %v18772_v52  ;;  %v18779_v49 = vld [vmem:[#allocation141_spill] sm:$0xff]  ;;  %v4322_v52 = vmul.f32 %v12088_v10, %v18780_v29 }
0x1725   : > { %12099 = vrcp.f32 %v18779_v49  ;;  %v18787_v10 = vld [vmem:[#allocation125_spill] sm:$0xff] }
0x1726   : > { %12101 = vrcp.f32 %v18781_v15  ;;  %v18788_v15 = vld [vmem:[#allocation131_spill] sm:$0xff] }
0x1727   : > { %8754 = vrot.lane.b32.xlu0 %v7423_v54, %s12608_s21  ;;  %v7422_v54 = vmul.f32 %v12084_v26, %v18776_v58  ;;  %v16954_v26 = vpop.permute.xlu0 %8562  ;;  %v18784_v58 = vld [vmem:[#allocation132_spill] sm:$0xff] }
0x1728   : > { %18783 = vst [vmem:[#allocation32_spill] sm:$0xff] %v16954_v26  ;;  %v18789_v26 = vld [vmem:[#allocation96_spill] sm:$0xff] }
0x1729   : > { %8748 = vrot.lane.b32.xlu1 %v7420_v1, %s12608_s21  ;;  %v4325_v1 = vmul.f32 %v12086_v0, %v18778_v9  ;;  %v18785_v0 = vld [vmem:[#allocation34_spill] sm:$0xff] }
0x172a   : > { %v12092_v16 = vpop.eup %12091  ;;  %12103 = vrcp.f32 %v18785_v0  ;;  %v18786_v9 = vld [vmem:[#allocation42_spill] sm:$0xff] }
0x172b   : > { %8406 = vrot.lane.b32.xlu0 %v4323_v34, %s12607_s14  ;;  %v16952_v34 = vpop.permute.xlu1 %8728  ;;  %v12094_v33 = vpop.eup %12093  ;;  %12105 = vrcp.f32 %v18787_v10 }
0x172c   : > { %18782 = vst [vmem:[#allocation214_spill] sm:$0xff] %v16952_v34  ;;  %v12096_v49 = vpop.eup %12095  ;;  %v4329_v29 = vmul.f32 %v12094_v33, %v18788_v15  ;;  %12107 = vrcp.f32 %v18789_v26  ;;  %v18795_v33 = vld [vmem:[#allocation95_spill] sm:$0xff]  ;;  %v18796_v26 = vld [vmem:[#allocation129_spill] sm:$0xff] }
0x172d   : > { %8752 = vrot.lane.b32.xlu1 %v7422_v54, %s12608_s21  ;;  %v4327_v54 = vmul.f32 %v12090_v17, %v18784_v58  ;;  %v12098_v34 = vpop.eup %12097  ;;  %v16967_v17 = vpop.permute.xlu0 %8726  ;;  %v18792_v58 = vld [vmem:[#allocation130_spill] sm:$0xff] }
0x172e   : > { %18791 = vst [vmem:[#allocation198_spill] sm:$0xff] %v16967_v17  ;;  %v18797_v17 = vld [vmem:[#allocation115_spill] sm:$0xff] }
0x172f   : > { %8410 = vrot.lane.b32.xlu0 %v4325_v1, %s12607_s14  ;;  %v4324_v1 = vmul.f32 %v12092_v16, %v18786_v9  ;;  %v12100_v0 = vpop.eup %12099  ;;  %v18793_v16 = vld [vmem:[#allocation203_spill] sm:$0xff]  ;;  %v18794_v9 = vld [vmem:[#allocation136_spill] sm:$0xff] }
0x1730   : > { %12109 = vrcp.f32 %v18793_v16  ;;  %v12102_v10 = vpop.eup %12101  ;;  %v4328_v15 = vmul.f32 %v12100_v0, %v18796_v26  ;;  %v18803_v0 = vld [vmem:[#allocation230_spill] sm:$0xff] }
0x1731   : > { %8404 = vrot.lane.b32.xlu1 %v4322_v52, %s12607_s14  ;;  %v16965_v52 = vpop.permute.xlu1 %8732  ;;  %12111 = vrcp.f32 %v18795_v33 }
0x1732   : > { %18790 = vst [vmem:[#allocation88_spill] sm:$0xff] %v16965_v52  ;;  %12113 = vrcp.f32 %v18797_v17  ;;  %v18804_v17 = vld [vmem:[#allocation140_spill] sm:$0xff] }
0x1733   : > { %8414 = vrot.lane.b32.xlu0 %v4327_v54, %s12607_s14  ;;  %v4326_v54 = vmul.f32 %v12096_v49, %v18792_v58  ;;  %v16980_v49 = vpop.permute.xlu0 %8730  ;;  %v18800_v58 = vld [vmem:[#allocation135_spill] sm:$0xff] }
0x1734   : > { %v12104_v52 = vpop.eup %12103  ;;  %18799 = vst [vmem:[#allocation145_spill] sm:$0xff] %v16980_v49  ;;  %v18805_v49 = vld [vmem:[#allocation100_spill] sm:$0xff] }
0x1735   : > { %8408 = vrot.lane.b32.xlu1 %v4324_v1, %s12607_s14  ;;  %v4331_v1 = vmul.f32 %v12098_v34, %v18794_v9  ;;  %v12106_v16 = vpop.eup %12105  ;;  %v18801_v34 = vld [vmem:[#allocation97_spill] sm:$0xff]  ;;  %v18802_v9 = vld [vmem:[#allocation134_spill] sm:$0xff] }
0x1736   : > { %12115 = vrcp.f32 %v18801_v34  ;;  %v12108_v33 = vpop.eup %12107  ;;  %v4335_v26 = vmul.f32 %v12106_v16, %v18804_v17  ;;  %v18811_v16 = vld [vmem:[#allocation102_spill] sm:$0xff] }
0x1737   : > { %8418 = vrot.lane.b32.xlu0 %v4329_v29, %s12607_s14  ;;  %v16978_v29 = vpop.permute.xlu1 %8736  ;;  %12117 = vrcp.f32 %v18803_v0 }
0x1738   : > { %18798 = vst [vmem:[#allocation219_spill] sm:$0xff] %v16978_v29  ;;  %12119 = vrcp.f32 %v18805_v49  ;;  %v18812_v49 = vld [vmem:[#allocation138_spill] sm:$0xff] }
0x1739   : > { %8412 = vrot.lane.b32.xlu1 %v4326_v54, %s12607_s14  ;;  %v4333_v54 = vmul.f32 %v12102_v10, %v18800_v58  ;;  %v16993_v10 = vpop.permute.xlu0 %8734  ;;  %v18808_v58 = vld [vmem:[#allocation133_spill] sm:$0xff] }
0x173a   : > { %v12110_v29 = vpop.eup %12109  ;;  %18807 = vst [vmem:[#allocation43_spill] sm:$0xff] %v16993_v10 }
0x173b   : > { %8422 = vrot.lane.b32.xlu0 %v4331_v1, %s12607_s14  ;;  %v4330_v1 = vmul.f32 %v12104_v52, %v18802_v9  ;;  %v12112_v34 = vpop.eup %12111  ;;  %v18809_v52 = vld [vmem:[#allocation234_spill] sm:$0xff]  ;;  %v18810_v9 = vld [vmem:[#allocation139_spill] sm:$0xff] }
0x173c   : > { %12121 = vrcp.f32 %v18809_v52  ;;  %v12114_v0 = vpop.eup %12113  ;;  %v18816_v52 = vld [vmem:[#allocation99_spill] sm:$0xff] }
0x173d   : > { %8416 = vrot.lane.b32.xlu1 %v4328_v15, %s12607_s14  ;;  %v16991_v15 = vpop.permute.xlu1 %8740  ;;  %12123 = vrcp.f32 %v18811_v16 }
0x173e   : > { %18806 = vst [vmem:[#allocation218_spill] sm:$0xff] %v16991_v15  ;;  %v4334_v15 = vmul.f32 %v12112_v34, %v18812_v49  ;;  %12125 = vrcp.f32 %v18813_v63  ;;  %v18819_v63 = vld [vmem:[#allocation49_spill] sm:$0xff] }
0x173f   : > { %8426 = vrot.lane.b32.xlu0 %v4333_v54, %s12607_s14  ;;  %v4332_v54 = vmul.f32 %v12108_v33, %v18808_v58  ;;  %v18815_v33 = vld [vmem:[#allocation50_spill] sm:$0xff]  ;;  %12127 = vrcp.f32 %v18816_v52 }
0x1740   : > { %v12116_v10 = vpop.eup %12115  ;;  %v6091_v58 = vmul.f32 %v12114_v0, %v18815_v33  ;;  %v18821_v0 = vld [vmem:[#allocation48_spill] sm:$0xff] }
0x1741   : > { %8420 = vrot.lane.b32.xlu1 %v4330_v1, %s12607_s14  ;;  %v4337_v1 = vmul.f32 %v12110_v29, %v18810_v9  ;;  %v7688_v17 = vpop.xlane.xlu1 %7687  ;;  %v18817_v29 = vld [vmem:[#allocation137_spill] sm:$0xff] }
0x1742   : > { %v4336_v9 = vmul.f32 %v12116_v10, %v18817_v29  ;;  %v18823_v10 = vld [vmem:[#allocation235_spill] sm:$0xff] }
0x1743   : > { %8430 = vrot.lane.b32.xlu0 %v4335_v26, %s12607_s14  ;;  %v17004_v26 = vpop.permute.xlu0 %8738 }
0x1744   : > { %18814 = vst [vmem:[#allocation191_spill] sm:$0xff] %v17004_v26 }
0x1745   : > { %8424 = vrot.lane.b32.xlu1 %v4332_v54, %s12607_s14  ;;  %v12118_v54 = vpop.eup %12117  ;;  %v7684_v34 = vpop.xlane.xlu1 %7683 }
0x1746   : > { %v12120_v16 = vpop.eup %12119  ;;  %v6093_v26 = vmul.f32 %v12118_v54, %v18819_v63  ;;  %v18825_v54 = vld [vmem:[#allocation47_spill] sm:$0xff] }
0x1747   : > { %8434 = vrot.lane.b32.xlu0 %v4337_v1, %s12607_s14  ;;  %v18818_v1 = vld [vmem:[#allocation224_spill] sm:$0xff]  ;;  %v7686_v49 = vpop.xlane.xlu0 %7685  ;;  %v12122_v31 = vpop.eup %12121  ;;  %v6090_v33 = vmul.f32 %v12120_v16, %v18821_v0  ;;  %v18827_v16 = vld [vmem:[#allocation53_spill] sm:$0xff] }
0x1748   : > { %12129 = vrcp.f32 %v18818_v1  ;;  %v12124_v52 = vpop.eup %12123  ;;  %v6095_v29 = vmul.f32 %v12122_v31, %v18823_v10  ;;  %v18829_v31 = vld [vmem:[#allocation52_spill] sm:$0xff] }
0x1749   : > { %8428 = vrot.lane.b32.xlu1 %v4334_v15, %s12607_s14  ;;  %v18820_v15 = vld [vmem:[#allocation101_spill] sm:$0xff]  ;;  %v12126_v1 = vpop.eup %12125  ;;  %v6092_v63 = vmul.f32 %v12124_v52, %v18825_v54  ;;  %v18831_v52 = vld [vmem:[#allocation239_spill] sm:$0xff] }
0x174a   : > { %12131 = vrcp.f32 %v18820_v15  ;;  %v12128_v15 = vpop.eup %12127  ;;  %v6097_v0 = vmul.f32 %v12126_v1, %v18827_v16  ;;  %v18833_v1 = vld [vmem:[#allocation51_spill] sm:$0xff] }
0x174b   : > { %8598 = vrot.lane.b32.xlu0 %v6091_v58, %s12607_s14  ;;  %v18822_v58 = vld [vmem:[#allocation226_spill] sm:$0xff]  ;;  %v7682_v35 = vpop.xlane.xlu0 %7681 }
0x174c   : > { %12133 = vrcp.f32 %v18822_v58 }
0x174d   : > { %8432 = vrot.lane.b32.xlu1 %v4336_v9, %s12607_s14  ;;  %12135 = vrcp.f32 %v18824_v5  ;;  %v7696_v9 = vpop.xlane.xlu1 %7695  ;;  %v6094_v5 = vmul.f32 %v12128_v15, %v18829_v31  ;;  %v18834_v15 = vld [vmem:[#allocation238_spill] sm:$0xff]  ;;  %v18835_v31 = vld [vmem:[#allocation35_spill] sm:$0xff] }
0x174f   : > { %8602 = vrot.lane.b32.xlu0 %v6093_v26, %s12607_s14  ;;  %v18826_v26 = vld [vmem:[#allocation228_spill] sm:$0xff]  ;;  %v7694_v47 = vpop.xlane.xlu0 %7693 }
0x1750   : > { %12137 = vrcp.f32 %v18826_v26 }
0x1751   : > { %8596 = vrot.lane.b32.xlu1 %v6090_v33, %s12607_s14  ;;  %v18828_v33 = vld [vmem:[#allocation143_spill] sm:$0xff] }
0x1752   : > { %v12130_v58 = vpop.eup %12129  ;;  %12139 = vrcp.f32 %v18828_v33 }
0x1753   : > { %8606 = vrot.lane.b32.xlu0 %v6095_v29, %s12607_s14  ;;  %12141 = vrcp.f32 %v18830_v7  ;;  %v7692_v29 = vpop.xlane.xlu1 %7691  ;;  %v6099_v54 = vmul.f32 %v12130_v58, %v18831_v52  ;;  %v18836_v58 = vld [vmem:[#allocation237_spill] sm:$0xff] }
0x1754   : > { %v12132_v10 = vpop.eup %12131 }
0x1755   : > { %8600 = vrot.lane.b32.xlu1 %v6092_v63, %s12607_s14  ;;  %v18832_v63 = vld [vmem:[#allocation31_spill] sm:$0xff]  ;;  %v6096_v16 = vmul.f32 %v12132_v10, %v18833_v1 }
0x1756   : > { %v12134_v26 = vpop.eup %12133  ;;  %12143 = vrcp.f32 %v18832_v63  ;;  %v18837_v10 = vld [vmem:[#allocation243_spill] sm:$0xff] }
0x1757   : > { %8610 = vrot.lane.b32.xlu0 %v6097_v0, %s12607_s14  ;;  %v12136_v33 = vpop.eup %12135  ;;  %12145 = vrcp.f32 %v7684_v34  ;;  %v6101_v0 = vmul.f32 %v12134_v26, %v18834_v15  ;;  %v7704_v61 = vpop.xlane.xlu1 %7703  ;;  %v18838_v26 = vld [vmem:[#allocation236_spill] sm:$0xff] }
0x1758   : > { %12147 = vrcp.f32 %v18835_v31  ;;  %v6098_v52 = vmul.f32 %v12136_v33, %v18836_v58 }
0x1759   : > { %8604 = vrot.lane.b32.xlu1 %v6094_v5, %s12607_s14  ;;  %v7690_v5 = vpop.xlane.xlu0 %7689  ;;  %12149 = vrcp.f32 %v7688_v17  ;;  %v18840_v17 = vld [vmem:[#allocation241_spill] sm:$0xff] }
0x175a   : > { %v12138_v7 = vpop.eup %12137  ;;  %12151 = vrcp.f32 %v7682_v35 }
0x175b   : > { %8614 = vrot.lane.b32.xlu0 %v6099_v54, %s12607_s14  ;;  %v6103_v54 = vmul.f32 %v12138_v7, %v18837_v10  ;;  %12153 = vrcp.f32 %v7692_v29  ;;  %v7700_v15 = vpop.xlane.xlu1 %7699 }
0x175c   : > { %v12140_v63 = vpop.eup %12139  ;;  %12155 = vrcp.f32 %v7686_v49 }
0x175d   : > { %8608 = vrot.lane.b32.xlu1 %v6096_v16, %s12607_s14  ;;  %v12142_v34 = vpop.eup %12141  ;;  %v6100_v1 = vmul.f32 %v12140_v63, %v18838_v26  ;;  %v7702_v31 = vpop.xlane.xlu0 %7701  ;;  %12157 = vrcp.f32 %v7696_v9 }
0x175e   : > { %12159 = vrcp.f32 %v7690_v5 }
0x175f   : > { %8618 = vrot.lane.b32.xlu0 %v6101_v0, %s12607_s14  ;;  %v18839_v0 = vld [vmem:[#allocation242_spill] sm:$0xff]  ;;  %v7712_v29 = vpop.xlane.xlu1 %7711  ;;  %12161 = vrcp.f32 %v7700_v15 }
0x1760   : > { %v12144_v16 = vpop.eup %12143  ;;  %v6105_v33 = vmul.f32 %v12142_v34, %v18839_v0  ;;  %12163 = vrcp.f32 %v7694_v47 }
0x1761   : > { %8612 = vrot.lane.b32.xlu1 %v6098_v52, %s12607_s14  ;;  %v12146_v58 = vpop.eup %12145  ;;  %v6102_v7 = vmul.f32 %v12144_v16, %v18840_v17  ;;  %v7698_v10 = vpop.xlane.xlu0 %7697  ;;  %12165 = vrcp.f32 %v7704_v61 }
0x1762   : > { %v12148_v52 = vpop.eup %12147  ;;  %v7859_v35 = vmul.f32 %v12146_v58, %v16711_v45  ;;  %12167 = vrcp.f32 %v7698_v10  ;;  %v18843_v10 = vld [vmem:[#allocation46_spill] sm:$0xff] }
0x1763   : > { %8622 = vrot.lane.b32.xlu0 %v6103_v54, %s12607_s14  ;;  %v12150_v63 = vpop.eup %12149  ;;  %v18841_v54 = vld [vmem:[#allocation240_spill] sm:$0xff]  ;;  %v7708_v5 = vpop.xlane.xlu1 %7707 }
0x1764   : > { %v6104_v34 = vmul.f32 %v12148_v52, %v18841_v54  ;;  %v12152_v26 = vpop.eup %12151  ;;  %v7861_v49 = vmul.f32 %v12150_v63, %v16707_v36  ;;  %12169 = vrcp.f32 %v7708_v5 }
0x1765   : > { %8616 = vrot.lane.b32.xlu1 %v6100_v1, %s12607_s14  ;;  %v12154_v1 = vpop.eup %12153  ;;  %v7858_v45 = vmul.f32 %v12152_v26, %v16703_v30  ;;  %v7710_v16 = vpop.xlane.xlu0 %7709  ;;  %12171 = vrcp.f32 %v7702_v31  ;;  %v18842_v31 = vld [vmem:[#allocation232_spill] sm:$0xff]  ;;  %v18844_v26 = vld [vmem:[#allocation38_spill] sm:$0xff] }
0x1766   : > { %v12156_v9 = vpop.eup %12155  ;;  %v7863_v0 = vmul.f32 %v12154_v1, %v16743_v18  ;;  %12173 = vrcp.f32 %v7712_v29 }
0x1767   : > { %8626 = vrot.lane.b32.xlu0 %v6105_v33, %s12607_s14  ;;  %v12158_v33 = vpop.eup %12157  ;;  %v7860_v36 = vmul.f32 %v12156_v9, %v16701_v62 }
0x1768   : > { %v12160_v15 = vpop.eup %12159  ;;  %v7865_v47 = vmul.f32 %v12158_v33, %v16741_v8 }
0x1769   : > { %8620 = vrot.lane.b32.xlu1 %v6102_v7, %s12607_s14  ;;  %v12162_v30 = vpop.eup %12161  ;;  %v7706_v61 = vpop.xlane.xlu0 %7705  ;;  %v7862_v58 = vmul.f32 %v12160_v15, %v16739_v11 }
0x176a   : > { %v12164_v18 = vpop.eup %12163  ;;  %v7867_v17 = vmul.f32 %v12162_v30, %v16759_v13  ;;  %12175 = vrcp.f32 %v7706_v61  ;;  %v8056_v7 = vpop.xlane.xlu1 %8055  ;;  %v18848_v30 = vld [vmem:[#allocation146_spill] sm:$0xff] }
0x176b   : > { %8790 = vrot.lane.b32.xlu0 %v7859_v35, %s12607_s14  ;;  %v12166_v62 = vpop.eup %12165  ;;  %v7864_v8 = vmul.f32 %v12164_v18, %v16737_v3  ;;  %12177 = vrcp.f32 %v18842_v31 }
0x176c   : > { %v12168_v52 = vpop.eup %12167  ;;  %v7869_v11 = vmul.f32 %v12166_v62, %v16755_v43  ;;  %12179 = vrcp.f32 %v7710_v16  ;;  %v18846_v16 = vld [vmem:[#allocation44_spill] sm:$0xff] }
0x176d   : > { %8624 = vrot.lane.b32.xlu1 %v6104_v34, %s12607_s14  ;;  %v8052_v35 = vpop.xlane.xlu0 %8051  ;;  %v7866_v13 = vmul.f32 %v12168_v52, %v16751_v38  ;;  %12181 = vrcp.f32 %v18843_v10  ;;  %v18845_v38 = vld [vmem:[#allocation28_spill] sm:$0xff]  ;;  %v18853_v10 = vld [vmem:[#allocation246_spill] sm:$0xff] }
0x176e   : > { %v12170_v63 = vpop.eup %12169  ;;  %v17074_v54 = vpop.permute.xlu1 %8744  ;;  %12183 = vrcp.f32 %v18844_v26 }
0x176f   : > { %8794 = vrot.lane.b32.xlu0 %v7861_v49, %s12607_s14  ;;  %v12172_v29 = vpop.eup %12171  ;;  %v7871_v3 = vmul.f32 %v12170_v63, %v16771_v60  ;;  %12185 = vrcp.f32 %v18845_v38 }
0x1770   : > { %v12174_v34 = vpop.eup %12173  ;;  %v7868_v43 = vmul.f32 %v12172_v29, %v16749_v19  ;;  %12187 = vrcp.f32 %v18846_v16  ;;  %v18856_v16 = vld [vmem:[#allocation39_spill] sm:$0xff] }
0x1771   : > { %8788 = vrot.lane.b32.xlu1 %v7858_v45, %s12607_s14  ;;  %v17079_v49 = vpop.permute.xlu0 %8742  ;;  %v8083_v45 = vsub.f32 %v16784_v20, %v8052_v35  ;;  %v7873_v5 = vmul.f32 %v12174_v34, %v16769_v59  ;;  %v18851_v35 = vld [vmem:[#allocation17_spill] sm:$0xff]  ;;  %v18854_v34 = vld [vmem:[#allocation27_spill] sm:$0xff] }
0x1773   : > { %8798 = vrot.lane.b32.xlu0 %v7863_v0, %s12607_s14  ;;  %v8099_v20 = vmul.f32 1.442695, %v8083_v45 }
0x1774   : > { %v12176_v1 = vpop.eup %12175 }
0x1775   : > { %8792 = vrot.lane.b32.xlu1 %v7860_v36, %s12607_s14  ;;  %v12178_v60 = vpop.eup %12177  ;;  %v8085_v36 = vsub.f32 %v16781_v44, %v8056_v7  ;;  %v7870_v19 = vmul.f32 %v12176_v1, %v16767_v48 }
0x1776   : > { %v12180_v15 = vpop.eup %12179 }
0x1777   : > { %8802 = vrot.lane.b32.xlu0 %v7865_v47, %s12607_s14  ;;  %v18847_v47 = vld [vmem:[#allocation148_spill] sm:$0xff]  ;;  %v8103_v48 = vmul.f32 1.442695, %v8085_v36  ;;  %v7872_v7 = vmul.f32 %v12180_v15, %v16763_v41 }
0x1778   : > { %12189 = vrcp.f32 %v18847_v47  ;;  %v18857_v36 = vld [vmem:[#allocation248_spill] sm:$0xff] }
0x1779   : > { %8796 = vrot.lane.b32.xlu1 %v7862_v58, %s12607_s14  ;;  %12191 = vrcp.f32 %v18848_v30  ;;  %v18849_v58 = vld [vmem:[#allocation19_spill] sm:$0xff] }
0x177a   : > { %v4773_v18 = vmul.f32 %v12178_v60, %v18849_v58 }
0x177b   : > { %8806 = vrot.lane.b32.xlu0 %v7867_v17, %s12607_s14  ;;  %v18850_v17 = vld [vmem:[#allocation33_spill] sm:$0xff] }
0x177c   : > { %12193 = vrcp.f32 %v18850_v17 }
0x177d   : > { %8800 = vrot.lane.b32.xlu1 %v7864_v8, %s12607_s14  ;;  %12195 = vrcp.f32 %v16374_v40  ;;  %v18852_v40 = vld [vmem:[#allocation15_spill] sm:$0xff] }
0x177e   : > { %12197 = vpow2.f32 %v8099_v20 }
0x177f   : > { %8810 = vrot.lane.b32.xlu0 %v7869_v11, %s12607_s14 }
0x1781   : > { %8804 = vrot.lane.b32.xlu1 %v7866_v13, %s12607_s14 }
0x1783   : > { %8814 = vrot.lane.b32.xlu0 %v7871_v3, %s12607_s14 }
0x1785   : > { %v8058_v9 = vpop.xlane.xlu1 %8057  ;;  %8808 = vrot.lane.b32.xlu1 %v7868_v43, %s12607_s14 }
0x1786   : > { %v8086_v0 = vsub.f32 %v16831_v37, %v8058_v9  ;;  %v8060_v33 = vpop.xlane.xlu0 %8059  ;;  %v12182_v37 = vpop.eup %12181 }
0x1787   : > { %8818 = vrot.lane.b32.xlu0 %v7873_v5, %s12607_s14  ;;  %v12184_v8 = vpop.eup %12183  ;;  %v4775_v11 = vmul.f32 %v12182_v37, %v18851_v35  ;;  %v8087_v41 = vsub.f32 %v16834_v24, %v8060_v33  ;;  %v18855_v5 = vld [vmem:[#allocation13_spill] sm:$0xff] }
0x1788   : > { %v8105_v61 = vmul.f32 1.442695, %v8086_v0  ;;  %v12186_v63 = vpop.eup %12185  ;;  %v4772_v13 = vmul.f32 %v12184_v8, %v18852_v40  ;;  %v18861_v35 = vld [vmem:[#allocation21_spill] sm:$0xff] }
0x1789   : > { %v8054_v59 = vpop.xlane.xlu1 %8053  ;;  %8812 = vrot.lane.b32.xlu1 %v7870_v19, %s12607_s14  ;;  %v12188_v29 = vpop.eup %12187  ;;  %v4777_v26 = vmul.f32 %v12186_v63, %v18854_v34  ;;  %v8107_v0 = vmul.f32 1.442695, %v8087_v41 }
0x178a   : > { %v8084_v44 = vsub.f32 %v16839_v25, %v8054_v59  ;;  %v17098_v62 = vpop.xlane.xlu0 %8073  ;;  %12199 = vpow2.f32 %v8105_v61  ;;  %v12190_v43 = vpop.eup %12189  ;;  %v4774_v60 = vmul.f32 %v12188_v29, %v18855_v5  ;;  %v18859_v59 = vld [vmem:[#allocation23_spill] sm:$0xff] }
0x178b   : > { %8470 = vrot.lane.b32.xlu0 %v4773_v18, %s12606_s23  ;;  %v12192_v45 = vpop.eup %12191 }
0x178c   : > { %v8101_v52 = vmul.f32 1.442695, %v8084_v44  ;;  %v12194_v24 = vpop.eup %12193  ;;  %v4776_v58 = vmul.f32 %v12192_v45, %v18859_v59 }
0x178d   : > { %v8064_v31 = vpop.xlane.xlu1 %8063  ;;  %8816 = vrot.lane.b32.xlu1 %v7872_v7, %s12607_s14  ;;  %v12196_v33 = vpop.eup %12195 }
0x178e   : > { %12201 = vpow2.f32 %v8101_v52  ;;  %v8070_v25 = vpop.xlane.xlu0 %8069  ;;  %v8089_v9 = vsub.f32 %v16851_v28, %v8064_v31  ;;  %v17122_v47 = vpop.eup %12197  ;;  %v8094_v31 = vsub.f32 %v16846_v51, %v17098_v62 }
0x178f   : > { %12203 = vpow2.f32 %v8103_v48  ;;  %8474 = vrot.lane.b32.xlu0 %v4775_v11, %s12606_s23  ;;  %v8092_v37 = vsub.f32 %v16854_v55, %v8070_v25  ;;  %v4778_v11 = vmul.f32 %v12196_v33, %v18861_v35  ;;  %v18862_v25 = vld [vmem:[#allocation250_spill] sm:$0xff]  ;;  %v18866_v33 = vld [vmem:[#allocation149_spill] sm:$0xff] }
0x1790   : > { %12205 = vrcp.f32 %v18853_v10  ;;  %v8111_v61 = vmul.f32 1.442695, %v8089_v9  ;;  %v8121_v34 = vmul.f32 1.442695, %v8094_v31  ;;  %v18870_v35 = vld [vmem:[#allocation153_spill] sm:$0xff] }
0x1791   : > { %v8066_v3 = vpop.xlane.xlu1 %8065  ;;  %8468 = vrot.lane.b32.xlu1 %v4772_v13, %s12606_s23  ;;  %12207 = vrcp.f32 %v16379_v14  ;;  %v8117_v40 = vmul.f32 1.442695, %v8092_v37 }
0x1792   : > { %v8090_v1 = vsub.f32 %v16863_v2, %v8066_v3  ;;  %v17113_v38 = vpop.xlane.xlu0 %8081  ;;  %12209 = vrcp.f32 %v18856_v16  ;;  %v18858_v2 = vld [vmem:[#allocation25_spill] sm:$0xff] }
0x1793   : > { %8478 = vrot.lane.b32.xlu0 %v4777_v26, %s12606_s23  ;;  %12211 = vrcp.f32 %v18857_v36  ;;  %v4779_v15 = vmul.f32 %v12190_v43, %v18858_v2  ;;  %v18864_v26 = vld [vmem:[#allocation150_spill] sm:$0xff] }
0x1794   : > { %v8113_v19 = vmul.f32 1.442695, %v8090_v1  ;;  %12213 = vrcp.f32 %v16386_v57  ;;  %v17126_v30 = vpop.eup %12199 }
0x1795   : > { %v8062_v14 = vpop.xlane.xlu1 %8061  ;;  %8472 = vrot.lane.b32.xlu1 %v4774_v60, %s12606_s23  ;;  %12215 = vrcp.f32 %v16397_v46 }
0x1796   : > { %v8088_v28 = vsub.f32 %v16871_v12, %v8062_v14  ;;  %v8078_v20 = vpop.xlane.xlu0 %8077  ;;  %12217 = vpow2.f32 %v8107_v0  ;;  %v18860_v12 = vld [vmem:[#allocation152_spill] sm:$0xff] }
0x1797   : > { %8482 = vrot.lane.b32.xlu0 %v4779_v15, %s12606_s23  ;;  %12219 = vpow2.f32 %v8113_v19  ;;  %v4781_v48 = vmul.f32 %v12194_v24, %v18860_v12  ;;  %v8096_v45 = vsub.f32 %v16878_v22, %v8078_v20  ;;  %v8098_v22 = vsub.f32 %v16866_v39, %v17113_v38 }
0x1798   : > { %v17131_v18 = vpop.eup %12201  ;;  %v8109_v17 = vmul.f32 1.442695, %v8088_v28 }
0x1799   : > { %v17134_v44 = vpop.eup %12203  ;;  %v8072_v57 = vpop.xlane.xlu1 %8071  ;;  %8476 = vrot.lane.b32.xlu1 %v4776_v58, %s12606_s23  ;;  %v8163_v46 = vpack.c.bf16 %v17131_v18, %v17122_v47  ;;  %v8125_v14 = vmul.f32 1.442695, %v8096_v45  ;;  %v8129_v37 = vmul.f32 1.442695, %v8098_v22 }
0x179a   : > { %v12206_v7 = vpop.eup %12205  ;;  %v8164_v8 = vpack.c.bf16 %v17126_v30, %v17134_v44  ;;  %12221 = vpow2.f32 %v8109_v17  ;;  %v8093_v52 = vsub.f32 %v16883_v32, %v8072_v57  ;;  %v17143_v55 = vpop.permute.xlu0 %8746  ;;  %v18863_v32 = vld [vmem:[#allocation151_spill] sm:$0xff]  ;;  %v18868_v17 = vld [vmem:[#allocation154_spill] sm:$0xff] }
0x179b   : > { %12223 = vpow2.f32 %v8111_v61  ;;  %8486 = vrot.lane.b32.xlu0 %v4781_v48, %s12606_s23  ;;  %10825 = vmatprep.mubr.bf16.mxu0 %v8163_v46  ;;  %v12208_v63 = vpop.eup %12207  ;;  %v4783_v10 = vmul.f32 %v12206_v7, %v18863_v32  ;;  %v18869_v7 = vld [vmem:[#allocation18_spill] sm:$0xff] }
0x179c   : > { %12225 = vrcp.f32 %v18862_v25  ;;  %10826 = vmatmul.mubr.bf16.vlgmr.msra.gmra.mrb[16].mxu0 %v8164_v8  ;;  %v8119_v13 = vmul.f32 1.442695, %v8093_v52  ;;  %v12210_v41 = vpop.eup %12209  ;;  %v4780_v43 = vmul.f32 %v12208_v63, %v18864_v26 }
0x179d   : > { %v8068_v29 = vpop.xlane.xlu1 %8067  ;;  %8480 = vrot.lane.b32.xlu1 %v4778_v11, %s12606_s23  ;;  %12227 = vrcp.f32 %v16409_v6  ;;  %v12212_v3 = vpop.eup %12211 }
0x179e   : > { %v8091_v51 = vsub.f32 %v16891_v21, %v8068_v29  ;;  %v17154_v62 = vpop.permute.xlu0 %8750  ;;  %12229 = vrcp.f32 %v16417_v27  ;;  %v12214_v1 = vpop.eup %12213  ;;  %v18865_v21 = vld [vmem:[#allocation156_spill] sm:$0xff] }
0x179f   : > { %8490 = vrot.lane.b32.xlu0 %v4783_v10, %s12606_s23  ;;  %12231 = vpow2.f32 %v8117_v40  ;;  %v12216_v5 = vpop.eup %12215  ;;  %v4785_v60 = vmul.f32 %v12210_v41, %v18865_v21  ;;  %v4782_v36 = vmul.f32 %v12214_v1, %v18866_v33  ;;  %v18871_v10 = vld [vmem:[#allocation14_spill] sm:$0xff]  ;;  %v18872_v1 = vld [vmem:[#allocation12_spill] sm:$0xff] }
0x17a0   : > { %v8115_v9 = vmul.f32 1.442695, %v8091_v51  ;;  %12233 = vpow2.f32 %v8119_v13  ;;  %v17162_v24 = vpop.eup %12217  ;;  %v4784_v57 = vmul.f32 %v12216_v5, %v18868_v17 }
0x17a1   : > { %v8080_v6 = vpop.xlane.xlu1 %8079  ;;  %8484 = vrot.lane.b32.xlu1 %v4780_v43, %s12606_s23  ;;  %v17167_v0 = vpop.eup %12219 }
0x17a2   : > { %12235 = vpow2.f32 %v8115_v9  ;;  %v8097_v27 = vsub.f32 %v16896_v53, %v8080_v6  ;;  %v17165_v16 = vpop.permute.xlu0 %8754  ;;  %v18867_v53 = vld [vmem:[#allocation155_spill] sm:$0xff] }
0x17a3   : > { %12237 = vpow2.f32 %v8121_v34  ;;  %8494 = vrot.lane.b32.xlu0 %v4785_v60, %s12606_s23  ;;  %v4787_v20 = vmul.f32 %v12212_v3, %v18867_v53  ;;  %v18875_v53 = vld [vmem:[#allocation84_spill] sm:$0xff] }
0x17a4   : > { %v17173_v19 = vpop.eup %12221  ;;  %v8127_v15 = vmul.f32 1.442695, %v8097_v27  ;;  %12239 = vrcp.f32 %v16424_v42 }
0x17a5   : > { %v17175_v2 = vpop.eup %12223  ;;  %v8076_v28 = vpop.xlane.xlu1 %8075  ;;  %8488 = vrot.lane.b32.xlu1 %v4782_v36, %s12606_s23  ;;  %v8165_v61 = vpack.c.bf16 %v17173_v19, %v17162_v24  ;;  %12241 = vpow2.f32 %v8125_v14  ;;  %v18873_v14 = vld [vmem:[#allocation158_spill] sm:$0xff] }
0x17a6   : > { %v12226_v59 = vpop.eup %12225  ;;  %v8166_v39 = vpack.c.bf16 %v17167_v0, %v17175_v2  ;;  %v8095_v38 = vsub.f32 %v16905_v23, %v8076_v28  ;;  %v17185_v58 = vpop.permute.xlu0 %8406  ;;  %12243 = vpow2.f32 %v8127_v15  ;;  %v18874_v28 = vld [vmem:[#allocation170_spill] sm:$0xff] }
0x17a7   : > { %8498 = vrot.lane.b32.xlu0 %v4787_v20, %s12606_s23  ;;  %10829 = vmatprep.mubr.bf16.mxu0 %v8165_v61  ;;  %v12228_v12 = vpop.eup %12227  ;;  %v6541_v23 = vmul.f32 %v12226_v59, %v18869_v7  ;;  %v18876_v59 = vld [vmem:[#allocation160_spill] sm:$0xff]  ;;  %v18880_v7 = vld [vmem:[#allocation165_spill] sm:$0xff] }
0x17a8   : > { %v8123_v48 = vmul.f32 1.442695, %v8095_v38  ;;  %10830 = vmatmul.mubr.bf16.gmra.mrb[20].mxu0 %v8166_v39  ;;  %v12230_v46 = vpop.eup %12229  ;;  %v4786_v11 = vmul.f32 %v12228_v12, %v18870_v35  ;;  %v18877_v39 = vld [vmem:[#allocation190_spill] sm:$0xff] }
0x17a9   : > { %v17189_v42 = vpop.permute.xlu1 %8748  ;;  %8492 = vrot.lane.b32.xlu1 %v4784_v57, %s12606_s23  ;;  %v17193_v8 = vpop.eup %12231  ;;  %v6540_v41 = vmul.f32 %v12230_v46, %v18871_v10  ;;  %v18879_v57 = vld [vmem:[#allocation176_spill] sm:$0xff] }
0x17aa   : > { %12245 = vpow2.f32 %v8123_v48  ;;  %v17195_v52 = vpop.permute.xlu0 %8410  ;;  %v17197_v31 = vpop.eup %12233 }
0x17ab   : > { %12247 = vpow2.f32 %v8129_v37  ;;  %8662 = vrot.lane.b32.xlu0 %v6541_v23, %s12606_s23  ;;  %v18878_v37 = vld [vmem:[#allocation161_spill] sm:$0xff]  ;;  %v18881_v23 = vld [vmem:[#allocation87_spill] sm:$0xff] }
0x17ac   : > { %v17201_v63 = vpop.eup %12235  ;;  %12249 = vrcp.f32 %v16681_v4 }
0x17ad   : > { %v17203_v25 = vpop.eup %12237  ;;  %v17205_v40 = vpop.permute.xlu1 %8752  ;;  %8496 = vrot.lane.b32.xlu1 %v4786_v11, %s12606_s23  ;;  %v8167_v13 = vpack.c.bf16 %v17193_v8, %v17201_v63  ;;  %12251 = vrcp.f32 %v16685_v50 }
0x17ae   : > { %v8168_v29 = vpack.c.bf16 %v17203_v25, %v17197_v31  ;;  %v17212_v32 = vpop.permute.xlu0 %8414  ;;  %v12240_v51 = vpop.eup %12239  ;;  %12253 = vrcp.f32 %v16689_v56 }
0x17af   : > { %10833 = vmatprep.mubr.bf16.mxu0 %v8167_v13  ;;  %v17218_v34 = vpop.eup %12241  ;;  %v6542_v45 = vmul.f32 %v12240_v51, %v18872_v1  ;;  %12255 = vrcp.f32 %v18873_v14  ;;  %v18882_v13 = vld [vmem:[#allocation166_spill] sm:$0xff] }
0x17b0   : > { %10834 = vmatmul.mubr.bf16.gmra.mrb[24].mxu0 %v8168_v29  ;;  %v17222_v43 = vpop.eup %12243  ;;  %12257 = vrcp.f32 %v18874_v28  ;;  %v18886_v28 = vld [vmem:[#allocation169_spill] sm:$0xff] }
0x17b1   : > { %v17215_v3 = vpop.permute.xlu1 %8404  ;;  %8660 = vrot.lane.b32.xlu1 %v6540_v41, %s12606_s23  ;;  %12259 = vrcp.f32 %v18876_v59  ;;  %v18883_v41 = vld [vmem:[#allocation175_spill] sm:$0xff] }
0x17b2   : > { %v17220_v26 = vpop.permute.xlu0 %8418  ;;  %12261 = vrcp.f32 %v18878_v37  ;;  %v18889_v37 = vld [vmem:[#allocation207_spill] sm:$0xff] }
0x17b3   : > { %12263 = vrcp.f32 %v18880_v7  ;;  %v18891_v7 = vld [vmem:[#allocation111_spill] sm:$0xff] }
0x17b4   : > { %v17226_v9 = vpop.eup %12245  ;;  %12265 = vrcp.f32 %v18882_v13  ;;  %v18893_v13 = vld [vmem:[#allocation174_spill] sm:$0xff] }
0x17b5   : > { %v17228_v5 = vpop.eup %12247  ;;  %v17230_v6 = vpop.permute.xlu1 %8408  ;;  %8664 = vrot.lane.b32.xlu1 %v6542_v45, %s12606_s23  ;;  %v8169_v21 = vpack.c.bf16 %v17218_v34, %v17226_v9 }
0x17b6   : > { %v8170_v60 = vpack.c.bf16 %v17228_v5, %v17222_v43  ;;  %v17237_v27 = vpop.permute.xlu0 %8422  ;;  %v12250_v33 = vpop.eup %12249 }
0x17b7   : > { %10837 = vmatprep.mubr.bf16.mxu0 %v8169_v21  ;;  %v3413_v20 = vmul.f32 %v12250_v33, %v18875_v53  ;;  %v12252_v50 = vpop.eup %12251  ;;  %v18884_v21 = vld [vmem:[#allocation167_spill] sm:$0xff]  ;;  %v18887_v53 = vld [vmem:[#allocation82_spill] sm:$0xff] }
0x17b8   : > { %10838 = vmatmul.mubr.bf16.gmra.mrb[28].mxu0 %v8170_v60  ;;  %v5167_v12 = vmul.f32 %v12252_v50, %v18879_v57  ;;  %v12254_v48 = vpop.eup %12253  ;;  %12267 = vrcp.f32 %v18884_v21  ;;  %v18885_v60 = vld [vmem:[#allocation211_spill] sm:$0xff] }
0x17b9   : > { %v17240_v4 = vpop.permute.xlu1 %8412  ;;  %v8915_v38 = vsel %vm3019_vm0, %v3413_v20, %v18877_v39  ;;  %v12256_v10 = vpop.eup %12255  ;;  %v5169_v51 = vmul.f32 %v12254_v48, %v18883_v41  ;;  %12269 = vrcp.f32 %v18886_v28  ;;  %v18888_v39 = vld [vmem:[#allocation180_spill] sm:$0xff] }
0x17ba   : > { %v17242_v22 = vpop.permute.xlu0 %8426  ;;  %v8951_v35 = vsel %vm3019_vm0, %v5167_v12, %v18881_v23  ;;  %v12258_v1 = vpop.eup %12257  ;;  %v3412_v20 = vmul.f32 %v12256_v10, %v18887_v53  ;;  %v18890_v48 = vld [vmem:[#allocation172_spill] sm:$0xff]  ;;  %v18896_v53 = vld [vmem:[#allocation261_spill] sm:$0xff] }
0x17bb   : > { %v8953_v33 = vsel %vm3019_vm0, %v5169_v51, %v18885_v60  ;;  %v12260_v59 = vpop.eup %12259  ;;  %12271 = vrcp.f32 %v18890_v48  ;;  %v18900_v48 = vld [vmem:[#allocation184_spill] sm:$0xff] }
0x17bc   : > { %v8914_v57 = vsel %vm3019_vm0, %v3412_v20, %v18889_v37  ;;  %v5166_v10 = vmul.f32 %v12260_v59, %v18893_v13  ;;  %v18897_v20 = vld [vmem:[#allocation124_spill] sm:$0xff]  ;;  %v18899_v37 = vld [vmem:[#allocation173_spill] sm:$0xff] }
0x17bd   : > { %v17245_v36 = vpop.permute.xlu1 %8416 }
0x17be   : > { %v17248_v15 = vpop.permute.xlu0 %8430 }
0x17c1   : > { %v17252_v61 = vpop.permute.xlu1 %8420 }
0x17c2   : > { %v8435_v56 = vpop.permute.xlu0 %8434 }
0x17c3   : > { %v17259_v17 = vsel %vm8916_vm1, %v8915_v38, %v8435_v56  ;;  %v5171_v38 = vmul.f32 %v12258_v1, %v18888_v39  ;;  %v12262_v56 = vpop.eup %12261  ;;  %v18894_v1 = vld [vmem:[#allocation179_spill] sm:$0xff] }
0x17c4   : > { %v12264_v51 = vpop.eup %12263  ;;  %v5173_v21 = vmul.f32 %v12262_v56, %v18894_v1  ;;  %v18903_v1 = vld [vmem:[#allocation89_spill] sm:$0xff] }
0x17c5   : > { %v17262_v46 = vpop.permute.xlu1 %8424  ;;  %v12266_v60 = vpop.eup %12265  ;;  %v5168_v56 = vmul.f32 %v12264_v51, %v18899_v37 }
0x17c6   : > { %v8599_v11 = vpop.permute.xlu0 %8598 }
0x17c7   : > { %v17269_v29 = vsel %vm8916_vm1, %v8951_v35, %v8599_v11  ;;  %v18892_v11 = vld [vmem:[#allocation260_spill] sm:$0xff] }
0x17c8   : > { %12273 = vrcp.f32 %v18892_v11 }
0x17c9   : > { %v17272_v45 = vpop.permute.xlu1 %8428  ;;  %12275 = vrcp.f32 %v18896_v53 }
0x17ca   : > { %8135 = vadd.xlane.f32.xlu0 %v17134_v44  ;;  %v8603_v14 = vpop.permute.xlu0 %8602  ;;  %v8955_v44 = vsel %vm3019_vm0, %v5171_v38, %v18891_v7  ;;  %v18898_v38 = vld [vmem:[#allocation262_spill] sm:$0xff]  ;;  %v5175_v7 = vmul.f32 %v12266_v60, %v18900_v48  ;;  %v18908_v48 = vld [vmem:[#allocation264_spill] sm:$0xff] }
0x17cb   : > { %v17281_v50 = vsel %vm8916_vm1, %v8953_v33, %v8603_v14  ;;  %v18895_v33 = vld [vmem:[#allocation114_spill] sm:$0xff]  ;;  %12277 = vrcp.f32 %v18898_v38  ;;  %v18907_v38 = vld [vmem:[#allocation189_spill] sm:$0xff] }
0x17cc   : > { %v8950_v14 = vsel %vm3019_vm0, %v5166_v10, %v18895_v33  ;;  %v18902_v10 = vld [vmem:[#allocation98_spill] sm:$0xff]  ;;  %v18904_v33 = vld [vmem:[#allocation263_spill] sm:$0xff] }
0x17cd   : > { %v8433_v12 = vpop.permute.xlu1 %8432  ;;  %12279 = vrcp.f32 %v18902_v10 }
0x17ce   : > { %v17290_v23 = vsel %vm8916_vm1, %v8914_v57, %v8433_v12  ;;  %8131 = vadd.xlane.f32.xlu0 %v17122_v47  ;;  %v8607_v35 = vpop.permute.xlu0 %8606  ;;  %v8957_v47 = vsel %vm3019_vm0, %v5173_v21, %v18897_v20  ;;  %v12268_v12 = vpop.eup %12267  ;;  %12281 = vrcp.f32 %v18904_v33  ;;  %v18906_v20 = vld [vmem:[#allocation183_spill] sm:$0xff] }
0x17cf   : > { %v17296_v41 = vsel %vm8916_vm1, %v8955_v44, %v8607_v35  ;;  %v12270_v44 = vpop.eup %12269  ;;  %v18901_v35 = vld [vmem:[#allocation206_spill] sm:$0xff]  ;;  %12283 = vrcp.f32 %v18908_v48  ;;  %v18913_v33 = vld [vmem:[#allocation195_spill] sm:$0xff] }
0x17d0   : > { %v8952_v11 = vsel %vm3019_vm0, %v5168_v56, %v18901_v35  ;;  %v12272_v53 = vpop.eup %12271 }
0x17d1   : > { %v8597_v28 = vpop.permute.xlu1 %8596 }
0x17d2   : > { %v17305_v39 = vsel %vm8916_vm1, %v8950_v14, %v8597_v28  ;;  %8143 = vadd.xlane.f32.xlu0 %v17175_v2  ;;  %v8611_v59 = vpop.permute.xlu0 %8610  ;;  %v8959_v2 = vsel %vm3019_vm0, %v5175_v7, %v18903_v1  ;;  %v18905_v14 = vld [vmem:[#allocation178_spill] sm:$0xff] }
0x17d3   : > { %v17311_v57 = vsel %vm8916_vm1, %v8957_v47, %v8611_v59  ;;  %v5170_v60 = vmul.f32 %v12268_v12, %v18905_v14  ;;  %v5177_v47 = vmul.f32 %v12270_v44, %v18906_v20  ;;  %v12274_v59 = vpop.eup %12273  ;;  %v18911_v44 = vld [vmem:[#allocation177_spill] sm:$0xff]  ;;  %v18914_v20 = vld [vmem:[#allocation104_spill] sm:$0xff] }
0x17d4   : > { %v12276_v1 = vpop.eup %12275 }
0x17d5   : > { %v8601_v13 = vpop.permute.xlu1 %8600  ;;  %v8954_v37 = vsel %vm3019_vm0, %v5170_v60, %v18907_v38 }
0x17d6   : > { %v17320_v21 = vsel %vm8916_vm1, %v8952_v11, %v8601_v13  ;;  %8139 = vadd.xlane.f32.xlu0 %v17162_v24  ;;  %v8615_v51 = vpop.permute.xlu0 %8614  ;;  %v18909_v24 = vld [vmem:[#allocation215_spill] sm:$0xff]  ;;  %v18910_v11 = vld [vmem:[#allocation265_spill] sm:$0xff]  ;;  %v5172_v13 = vmul.f32 %v12272_v53, %v18911_v44 }
0x17d7   : > { %v17326_v28 = vsel %vm8916_vm1, %v8959_v2, %v8615_v51  ;;  %v8961_v7 = vsel %vm3019_vm0, %v5177_v47, %v18909_v24  ;;  %12285 = vrcp.f32 %v18910_v11  ;;  %v12278_v51 = vpop.eup %12277  ;;  %v18919_v11 = vld [vmem:[#allocation112_spill] sm:$0xff] }
0x17d8   : > { %v8956_v14 = vsel %vm3019_vm0, %v5172_v13, %v18913_v33  ;;  %12287 = vrcp.f32 %v18914_v20  ;;  %v12280_v24 = vpop.eup %12279 }
0x17d9   : > { %v8605_v56 = vpop.permute.xlu1 %8604  ;;  %8137 = vadd.xlane.f32.xlu1 %v17126_v30  ;;  %v18912_v30 = vld [vmem:[#allocation188_spill] sm:$0xff] }
0x17da   : > { %v17336_v12 = vsel %vm8916_vm1, %v8954_v37, %v8605_v56  ;;  %8151 = vadd.xlane.f32.xlu0 %v17197_v31  ;;  %v8619_v35 = vpop.permute.xlu0 %8618  ;;  %v5179_v2 = vmul.f32 %v12274_v59, %v18912_v30  ;;  %v18915_v31 = vld [vmem:[#allocation36_spill] sm:$0xff]  ;;  %v18916_v37 = vld [vmem:[#allocation103_spill] sm:$0xff]  ;;  %v18917_v59 = vld [vmem:[#allocation182_spill] sm:$0xff] }
0x17db   : > { %v17342_v10 = vsel %vm8916_vm1, %v8961_v7, %v8619_v35  ;;  %12289 = vrcp.f32 %v18916_v37  ;;  %v5174_v56 = vmul.f32 %v12276_v1, %v18917_v59  ;;  %v12282_v35 = vpop.eup %12281  ;;  %v18920_v30 = vld [vmem:[#allocation108_spill] sm:$0xff]  ;;  %v18925_v37 = vld [vmem:[#allocation210_spill] sm:$0xff] }
0x17dc   : > { %v8963_v47 = vsel %vm3019_vm0, %v5179_v2, %v18915_v31  ;;  %12291 = vrcp.f32 %v18920_v30  ;;  %v12284_v31 = vpop.eup %12283 }
0x17dd   : > { %v8609_v60 = vpop.permute.xlu1 %8608  ;;  %8133 = vadd.xlane.f32.xlu1 %v17131_v18  ;;  %v18918_v18 = vld [vmem:[#allocation187_spill] sm:$0xff]  ;;  %v8958_v44 = vsel %vm3019_vm0, %v5174_v56, %v18919_v11 }
0x17de   : > { %v17352_v53 = vsel %vm8916_vm1, %v8956_v14, %v8609_v60  ;;  %8147 = vadd.xlane.f32.xlu0 %v17201_v63  ;;  %v8623_v38 = vpop.permute.xlu0 %8622  ;;  %v5181_v7 = vmul.f32 %v12278_v51, %v18918_v18  ;;  %v18921_v63 = vld [vmem:[#allocation32_spill] sm:$0xff]  ;;  %v18922_v14 = vld [vmem:[#allocation107_spill] sm:$0xff]  ;;  %v18923_v51 = vld [vmem:[#allocation181_spill] sm:$0xff] }
0x17df   : > { %v17358_v48 = vsel %vm8916_vm1, %v8963_v47, %v8623_v38  ;;  %12293 = vrcp.f32 %v18922_v14  ;;  %v5176_v60 = vmul.f32 %v12280_v24, %v18923_v51  ;;  %v18926_v18 = vld [vmem:[#allocation205_spill] sm:$0xff]  ;;  %v18931_v14 = vld [vmem:[#allocation194_spill] sm:$0xff] }
0x17e0   : > { %v8965_v2 = vsel %vm3019_vm0, %v5181_v7, %v18921_v63  ;;  %12295 = vrcp.f32 %v18926_v18 }
0x17e1   : > { %v8613_v13 = vpop.permute.xlu1 %8612  ;;  %8145 = vadd.xlane.f32.xlu1 %v17167_v0  ;;  %v18924_v0 = vld [vmem:[#allocation269_spill] sm:$0xff]  ;;  %v12286_v38 = vpop.eup %12285  ;;  %v8960_v59 = vsel %vm3019_vm0, %v5176_v60, %v18925_v37 }
0x17e2   : > { %v17368_v1 = vsel %vm8916_vm1, %v8958_v44, %v8613_v13  ;;  %8159 = vadd.xlane.f32.xlu0 %v17222_v43  ;;  %v8627_v33 = vpop.permute.xlu0 %8626  ;;  %v6935_v47 = vmul.f32 %v12282_v35, %v18924_v0  ;;  %v18927_v43 = vld [vmem:[#allocation198_spill] sm:$0xff]  ;;  %v18928_v44 = vld [vmem:[#allocation204_spill] sm:$0xff]  ;;  %v12288_v63 = vpop.eup %12287  ;;  %v18932_v0 = vld [vmem:[#allocation209_spill] sm:$0xff] }
0x17e3   : > { %v17374_v20 = vsel %vm8916_vm1, %v8965_v2, %v8627_v33  ;;  %12297 = vrcp.f32 %v18928_v44  ;;  %v18929_v35 = vld [vmem:[#allocation186_spill] sm:$0xff]  ;;  %v18937_v44 = vld [vmem:[#allocation245_spill] sm:$0xff] }
0x17e4   : > { %v8999_v7 = vsel %vm3019_vm0, %v6935_v47, %v18927_v43  ;;  %v5178_v13 = vmul.f32 %v12284_v31, %v18929_v35  ;;  %12299 = vrcp.f32 %v18932_v0  ;;  %v18938_v35 = vld [vmem:[#allocation86_spill] sm:$0xff]  ;;  %v18941_v0 = vld [vmem:[#allocation220_spill] sm:$0xff] }
0x17e5   : > { %v8617_v56 = vpop.permute.xlu1 %8616  ;;  %8141 = vadd.xlane.f32.xlu1 %v17173_v19  ;;  %v18930_v19 = vld [vmem:[#allocation268_spill] sm:$0xff]  ;;  %v12290_v33 = vpop.eup %12289 }
0x17e6   : > { %v17384_v24 = vsel %vm8916_vm1, %v8960_v59, %v8617_v56  ;;  %8155 = vadd.xlane.f32.xlu0 %v17226_v9  ;;  %v8791_v11 = vpop.permute.xlu0 %8790  ;;  %v6937_v2 = vmul.f32 %v12286_v38, %v18930_v19  ;;  %v8962_v51 = vsel %vm3019_vm0, %v5178_v13, %v18931_v14  ;;  %v18933_v9 = vld [vmem:[#allocation145_spill] sm:$0xff]  ;;  %v18934_v59 = vld [vmem:[#allocation147_spill] sm:$0xff]  ;;  %v12292_v43 = vpop.eup %12291 }
0x17e7   : > { %v17390_v30 = vsel %vm8916_vm1, %v8999_v7, %v8791_v11  ;;  %12301 = vrcp.f32 %v18934_v59  ;;  %v18935_v56 = vld [vmem:[#allocation185_spill] sm:$0xff]  ;;  %v18940_v14 = vld [vmem:[#allocation43_spill] sm:$0xff]  ;;  %v18944_v59 = vld [vmem:[#allocation272_spill] sm:$0xff] }
0x17e8   : > { %v9001_v47 = vsel %vm3019_vm0, %v6937_v2, %v18933_v9  ;;  %v5180_v38 = vmul.f32 %v12288_v63, %v18935_v56  ;;  %v18936_v7 = vld [vmem:[#allocation273_spill] sm:$0xff]  ;;  %12303 = vrcp.f32 %v18937_v44  ;;  %v18939_v2 = vld [vmem:[#allocation90_spill] sm:$0xff] }
0x17e9   : > { %v8621_v60 = vpop.permute.xlu1 %8620  ;;  %8153 = vadd.xlane.f32.xlu1 %v17203_v25  ;;  %v6939_v11 = vmul.f32 %v12290_v33, %v18936_v7  ;;  %v12294_v25 = vpop.eup %12293  ;;  %12305 = vrcp.f32 %v18939_v2  ;;  %v18942_v33 = vld [vmem:[#allocation267_spill] sm:$0xff] }
0x17ea   : > { %v17400_v31 = vsel %vm8916_vm1, %v8962_v51, %v8621_v60  ;;  %v8795_v37 = vpop.permute.xlu0 %8794  ;;  %v8964_v13 = vsel %vm3019_vm0, %v5180_v38, %v18938_v35  ;;  %12307 = vrcp.f32 %v18941_v0  ;;  %v6934_v9 = vmul.f32 %v12292_v43, %v18942_v33  ;;  %v18945_v38 = vld [vmem:[#allocation56_spill] sm:$0xff]  ;;  %v18946_v7 = vld [vmem:[#allocation227_spill] sm:$0xff] }
0x17eb   : > { %v17405_v18 = vsel %vm8916_vm1, %v9001_v47, %v8795_v37  ;;  %v9003_v63 = vsel %vm3019_vm0, %v6939_v11, %v18940_v14  ;;  %v12296_v37 = vpop.eup %12295  ;;  %v6941_v56 = vmul.f32 %v12294_v25, %v18944_v59  ;;  %12309 = vrcp.f32 %v18945_v38  ;;  %v18947_v35 = vld [vmem:[#allocation208_spill] sm:$0xff]  ;;  %v18949_v14 = vld [vmem:[#allocation106_spill] sm:$0xff]  ;;  %v18951_v33 = vld [vmem:[#allocation55_spill] sm:$0xff] }
0x17ec   : > { %v8998_v11 = vsel %vm3019_vm0, %v6934_v9, %v18946_v7  ;;  %12311 = vrcp.f32 %v18947_v35  ;;  %v18950_v25 = vld [vmem:[#allocation266_spill] sm:$0xff]  ;;  %v18953_v38 = vld [vmem:[#allocation68_spill] sm:$0xff] }
0x17ed   : > { %v8625_v19 = vpop.permute.xlu1 %8624  ;;  %8149 = vadd.xlane.f32.xlu1 %v17193_v8  ;;  %v12298_v8 = vpop.eup %12297  ;;  %12313 = vrcp.f32 %v18949_v14 }
0x17ee   : > { %v17416_v51 = vsel %vm8916_vm1, %v8964_v13, %v8625_v19  ;;  %v8799_v60 = vpop.permute.xlu0 %8798  ;;  %v18948_v13 = vld [vmem:[#allocation191_spill] sm:$0xff]  ;;  %v12300_v0 = vpop.eup %12299  ;;  %12315 = vrcp.f32 %v18951_v33  ;;  %v18959_v33 = vld [vmem:[#allocation62_spill] sm:$0xff] }
0x17ef   : > { %v17421_v47 = vsel %vm8916_vm1, %v9003_v63, %v8799_v60  ;;  %v9005_v43 = vsel %vm3019_vm0, %v6941_v56, %v18948_v13  ;;  %v6936_v63 = vmul.f32 %v12296_v37, %v18950_v25  ;;  %12317 = vrcp.f32 %v18953_v38  ;;  %v18954_v56 = vld [vmem:[#allocation214_spill] sm:$0xff] }
0x17f0   : > { %18943 = vst [vmem:[#allocation116_spill] sm:$0xff] %v17421_v47 }
0x17f1   : > { %v8789_v44 = vpop.permute.xlu1 %8788  ;;  %8161 = vadd.xlane.f32.xlu1 %v17228_v5  ;;  %v18952_v5 = vld [vmem:[#allocation277_spill] sm:$0xff]  ;;  %v12302_v59 = vpop.eup %12301  ;;  %v9000_v7 = vsel %vm3019_vm0, %v6936_v63, %v18954_v56  ;;  %v18961_v56 = vld [vmem:[#allocation54_spill] sm:$0xff] }
0x17f2   : > { %v17432_v19 = vsel %vm8916_vm1, %v8998_v11, %v8789_v44  ;;  %v8803_v2 = vpop.permute.xlu0 %8802  ;;  %v6943_v9 = vmul.f32 %v12298_v8, %v18952_v5  ;;  %v18955_v44 = vld [vmem:[#allocation93_spill] sm:$0xff]  ;;  %v18956_v8 = vld [vmem:[#allocation60_spill] sm:$0xff] }
0x17f3   : > { %v17437_v60 = vsel %vm8916_vm1, %v9005_v43, %v8803_v2  ;;  %12319 = vrcp.f32 %v18955_v44  ;;  %v12304_v43 = vpop.eup %12303  ;;  %v18957_v2 = vld [vmem:[#allocation271_spill] sm:$0xff] }
0x17f4   : > { %v9007_v37 = vsel %vm3019_vm0, %v6943_v9, %v17079_v49  ;;  %12321 = vrcp.f32 %v18956_v8  ;;  %v6938_v14 = vmul.f32 %v12300_v0, %v18957_v2  ;;  %v12306_v63 = vpop.eup %12305  ;;  %v18962_v49 = vld [vmem:[#allocation88_spill] sm:$0xff] }
0x17f5   : > { %v8793_v11 = vpop.permute.xlu1 %8792  ;;  %8157 = vadd.xlane.f32.xlu1 %v17218_v34  ;;  %12323 = vrcp.f32 %v18959_v33  ;;  %v18960_v34 = vld [vmem:[#allocation276_spill] sm:$0xff]  ;;  %v12308_v38 = vpop.eup %12307  ;;  %v18967_v33 = vld [vmem:[#allocation270_spill] sm:$0xff] }
0x17f6   : > { %v17449_v35 = vsel %vm8916_vm1, %v9000_v7, %v8793_v11  ;;  %v8807_v13 = vpop.permute.xlu0 %8806  ;;  %v6945_v5 = vmul.f32 %v12302_v59, %v18960_v34  ;;  %12325 = vrcp.f32 %v18961_v56  ;;  %v9002_v9 = vsel %vm3019_vm0, %v6938_v14, %v18962_v49  ;;  %v18963_v11 = vld [vmem:[#allocation197_spill] sm:$0xff]  ;;  %v12310_v2 = vpop.eup %12309  ;;  %v18966_v59 = vld [vmem:[#allocation247_spill] sm:$0xff] }
0x17f7   : > { %v17454_v25 = vsel %vm8916_vm1, %v9007_v37, %v8807_v13  ;;  %12327 = vrcp.f32 %v18963_v11  ;;  %v18965_v13 = vld [vmem:[#allocation16_spill] sm:$0xff]  ;;  %v6940_v34 = vmul.f32 %v12306_v63, %v18967_v33  ;;  %v12312_v14 = vpop.eup %12311  ;;  %v18969_v49 = vld [vmem:[#allocation249_spill] sm:$0xff] }
0x17f8   : > { %18958 = vst [vmem:[#allocation192_spill] sm:$0xff] %v17454_v25  ;;  %v9009_v0 = vsel %vm3019_vm0, %v6945_v5, %v17143_v55  ;;  %v6543_v8 = vmul.f32 %v12304_v43, %v18965_v13  ;;  %12329 = vrcp.f32 %v18966_v59  ;;  %v18970_v11 = vld [vmem:[#allocation281_spill] sm:$0xff]  ;;  %v12314_v55 = vpop.eup %12313 }
0x17f9   : > { %v8797_v7 = vpop.permute.xlu1 %8796  ;;  %12331 = vrcp.f32 %v18969_v49  ;;  %v6947_v25 = vmul.f32 %v12308_v38, %v18970_v11  ;;  %v18971_v5 = vld [vmem:[#allocation57_spill] sm:$0xff]  ;;  %v12316_v13 = vpop.eup %12315  ;;  %v18975_v49 = vld [vmem:[#allocation63_spill] sm:$0xff] }
0x17fa   : > { %v17465_v44 = vsel %vm8916_vm1, %v9002_v9, %v8797_v7  ;;  %v8811_v37 = vpop.permute.xlu0 %8810  ;;  %12333 = vrcp.f32 %v18971_v5  ;;  %v18972_v9 = vld [vmem:[#allocation219_spill] sm:$0xff]  ;;  %v18973_v59 = vld [vmem:[#allocation37_spill] sm:$0xff]  ;;  %v12318_v33 = vpop.eup %12317 }
0x17fb   : > { %18964 = vst [vmem:[#allocation223_spill] sm:$0xff] %v17465_v44  ;;  %v17471_v56 = vsel %vm8916_vm1, %v9009_v0, %v8811_v37  ;;  %v9004_v43 = vsel %vm3019_vm0, %v6940_v34, %v18972_v9  ;;  %12335 = vrcp.f32 %v18973_v59  ;;  %v9011_v63 = vsel %vm3019_vm0, %v6947_v25, %v17154_v62  ;;  %v18974_v37 = vld [vmem:[#allocation26_spill] sm:$0xff]  ;;  %v18976_v11 = vld [vmem:[#allocation275_spill] sm:$0xff]  ;;  %v18978_v59 = vld [vmem:[#allocation65_spill] sm:$0xff] }
0x17fc   : > { %18968 = vst [vmem:[#allocation113_spill] sm:$0xff] %v17471_v56  ;;  %8666 = vrot.lane.b32.xlu0 %v6543_v8, %s12606_s23  ;;  %v6545_v8 = vmul.f32 %v12310_v2, %v18974_v37  ;;  %12337 = vrcp.f32 %v18975_v49  ;;  %v6942_v5 = vmul.f32 %v12312_v14, %v18976_v11  ;;  %v18979_v56 = vld [vmem:[#allocation280_spill] sm:$0xff]  ;;  %v18982_v14 = vld [vmem:[#allocation58_spill] sm:$0xff]  ;;  %v18987_v44 = vld [vmem:[#allocation251_spill] sm:$0xff] }
0x17fd   : > { %v8801_v7 = vpop.permute.xlu1 %8800  ;;  %v12320_v9 = vpop.eup %12319  ;;  %12339 = vrcp.f32 %v18978_v59  ;;  %v6949_v62 = vmul.f32 %v12314_v55, %v18979_v56  ;;  %v18983_v55 = vld [vmem:[#allocation24_spill] sm:$0xff]  ;;  %v18984_v59 = vld [vmem:[#allocation67_spill] sm:$0xff] }
0x17fe   : > { %v17483_v0 = vsel %vm8916_vm1, %v9004_v43, %v8801_v7  ;;  %v8815_v38 = vpop.permute.xlu0 %8814  ;;  %v12322_v25 = vpop.eup %12321  ;;  %v18980_v43 = vld [vmem:[#allocation59_spill] sm:$0xff]  ;;  %v18981_v7 = vld [vmem:[#allocation218_spill] sm:$0xff] }
0x17ff   : > { %v17489_v34 = vsel %vm8916_vm1, %v9011_v63, %v8815_v38  ;;  %12341 = vrcp.f32 %v18980_v43  ;;  %v9006_v2 = vsel %vm3019_vm0, %v6942_v5, %v18981_v7  ;;  %v12324_v49 = vpop.eup %12323  ;;  %v9013_v63 = vsel %vm3019_vm0, %v6949_v62, %v17165_v16  ;;  %v18985_v43 = vld [vmem:[#allocation73_spill] sm:$0xff]  ;;  %v18986_v5 = vld [vmem:[#allocation274_spill] sm:$0xff] }
0x1800   : > { %18977 = vst [vmem:[#allocation41_spill] sm:$0xff] %v17489_v34  ;;  %8670 = vrot.lane.b32.xlu0 %v6545_v8, %s12606_s23  ;;  %12343 = vrcp.f32 %v18982_v14  ;;  %v6547_v8 = vmul.f32 %v12316_v13, %v18983_v55  ;;  %v12326_v11 = vpop.eup %12325  ;;  %v3399_v34 = vmul.f32 %v12318_v33, %v18985_v43  ;;  %v6944_v7 = vmul.f32 %v12320_v9, %v18986_v5  ;;  %v18988_v16 = vld [vmem:[#allocation22_spill] sm:$0xff]  ;;  %v18989_v13 = vld [vmem:[#allocation164_spill] sm:$0xff]  ;;  %v18993_v5 = vld [vmem:[#allocation159_spill] sm:$0xff] }
0x1801   : > { %v8805_v37 = vpop.permute.xlu1 %8804  ;;  %12345 = vrcp.f32 %v18984_v59  ;;  %v12328_v14 = vpop.eup %12327  ;;  %v6544_v62 = vmul.f32 %v12322_v25, %v18988_v16  ;;  %v18992_v59 = vld [vmem:[#allocation255_spill] sm:$0xff]  ;;  %v18994_v16 = vld [vmem:[#allocation72_spill] sm:$0xff] }
0x1802   : > { %v17502_v38 = vsel %vm8916_vm1, %v9006_v2, %v8805_v37  ;;  %v8819_v56 = vpop.permute.xlu0 %8818  ;;  %12347 = vrcp.f32 %v18987_v44  ;;  %v12330_v2 = vpop.eup %12329  ;;  %v18990_v37 = vld [vmem:[#allocation213_spill] sm:$0xff]  ;;  %v9008_v33 = vsel %vm3019_vm0, %v6944_v7, %v17074_v54  ;;  %v6549_v43 = vmul.f32 %v12324_v49, %v18992_v59  ;;  %v18995_v7 = vld [vmem:[#allocation279_spill] sm:$0xff] }
0x1803   : > { %v17509_v47 = vsel %vm8916_vm1, %v9013_v63, %v8819_v56  ;;  %12349 = vrcp.f32 %v18989_v13  ;;  %v8901_v55 = vsel %vm3019_vm0, %v3399_v34, %v18990_v37  ;;  %v12332_v63 = vpop.eup %12331  ;;  %v18991_v56 = vld [vmem:[#allocation162_spill] sm:$0xff]  ;;  %v3401_v54 = vmul.f32 %v12326_v11, %v18994_v16 }
0x1804   : > { %8674 = vrot.lane.b32.xlu0 %v6547_v8, %s12606_s23  ;;  %12351 = vrcp.f32 %v18991_v56  ;;  %v8918_v44 = vsel %vm8916_vm1, %v8901_v55, %v17185_v58  ;;  %v12334_v34 = vpop.eup %12333  ;;  %v6946_v13 = vmul.f32 %v12328_v14, %v18995_v7  ;;  %v18996_v58 = vld [vmem:[#allocation20_spill] sm:$0xff]  ;;  %v18997_v55 = vld [vmem:[#allocation61_spill] sm:$0xff] }
0x1805   : > { %v8809_v9 = vpop.permute.xlu1 %8808  ;;  %12353 = vrcp.f32 %v18993_v5  ;;  %v12336_v56 = vpop.eup %12335  ;;  %v19000_v5 = vld [vmem:[#allocation254_spill] sm:$0xff]  ;;  %v19001_v7 = vld [vmem:[#allocation157_spill] sm:$0xff] }
0x1806   : > { %v17523_v25 = vsel %vm8916_vm1, %v9008_v33, %v8809_v9  ;;  %8668 = vrot.lane.b32.xlu1 %v6544_v62, %s12606_s23  ;;  %v8471_v8 = vpop.permute.xlu0 %8470  ;;  %v6546_v62 = vmul.f32 %v12330_v2, %v18996_v58  ;;  %v12338_v49 = vpop.eup %12337  ;;  %12355 = vrcp.f32 %v18997_v55  ;;  %v18998_v33 = vld [vmem:[#allocation29_spill] sm:$0xff]  ;;  %v9010_v14 = vsel %vm3019_vm0, %v6946_v13, %v17189_v42  ;;  %v19003_v13 = vld [vmem:[#allocation278_spill] sm:$0xff] }
0x1807   : > { %v8935_v37 = vsel %vm8933_vm2, %v8918_v44, %v8471_v8  ;;  %v8903_v11 = vsel %vm3019_vm0, %v3401_v54, %v18998_v33  ;;  %v12340_v44 = vpop.eup %12339  ;;  %v18999_v8 = vld [vmem:[#allocation64_spill] sm:$0xff]  ;;  %v6551_v16 = vmul.f32 %v12332_v63, %v19000_v5  ;;  %v6948_v58 = vmul.f32 %v12336_v56, %v19003_v13  ;;  %v19007_v56 = vld [vmem:[#allocation259_spill] sm:$0xff] }
0x1808   : > { %9049 = vst [vmem:[%s17533_s29 + $0x18] sm:$0xff] %v8935_v37  ;;  %8678 = vrot.lane.b32.xlu0 %v6549_v43, %s12606_s23  ;;  %12357 = vrcp.f32 %v18999_v8  ;;  %v8920_v59 = vsel %vm8916_vm1, %v8903_v11, %v17195_v52  ;;  %v19002_v37 = vld [vmem:[#allocation77_spill] sm:$0xff]  ;;  %v6553_v5 = vmul.f32 %v12340_v44, %v19007_v56  ;;  %v19015_v56 = vld [vmem:[#allocation70_spill] sm:$0xff] }
0x1809   : > { %v8813_v9 = vpop.permute.xlu1 %8812  ;;  %v12342_v54 = vpop.eup %12341  ;;  %12359 = vrcp.f32 %v19001_v7  ;;  %v3403_v42 = vmul.f32 %v12334_v34, %v19002_v37  ;;  %v19004_v52 = vld [vmem:[#allocation253_spill] sm:$0xff]  ;;  %v9012_v34 = vsel %vm3019_vm0, %v6948_v58, %v17205_v40  ;;  %v19009_v7 = vld [vmem:[#allocation71_spill] sm:$0xff] }
0x180a   : > { %v17547_v43 = vsel %vm8916_vm1, %v9010_v14, %v8813_v9  ;;  %8672 = vrot.lane.b32.xlu1 %v6546_v62, %s12606_s23  ;;  %v8475_v2 = vpop.permute.xlu0 %8474  ;;  %v12344_v33 = vpop.eup %12343  ;;  %v6548_v11 = vmul.f32 %v12338_v49, %v19004_v52  ;;  %v19005_v62 = vld [vmem:[#allocation163_spill] sm:$0xff]  ;;  %v19006_v9 = vld [vmem:[#allocation217_spill] sm:$0xff] }
0x180b   : > { %v8937_v55 = vsel %vm8933_vm2, %v8920_v59, %v8475_v2  ;;  %v12346_v14 = vpop.eup %12345  ;;  %12361 = vrcp.f32 %v19005_v62  ;;  %v8905_v63 = vsel %vm3019_vm0, %v3403_v42, %v19006_v9  ;;  %v19008_v2 = vld [vmem:[#allocation66_spill] sm:$0xff]  ;;  %v19011_v52 = vld [vmem:[#allocation91_spill] sm:$0xff] }
0x180c   : > { %9055 = vst [vmem:[%s17533_s29 + $0x48] sm:$0xff] %v8937_v55  ;;  %8682 = vrot.lane.b32.xlu0 %v6551_v16, %s12606_s23  ;;  %v12348_v59 = vpop.eup %12347  ;;  %12363 = vrcp.f32 %v19008_v2  ;;  %v3398_v16 = vmul.f32 %v12342_v54, %v19009_v7  ;;  %v8922_v49 = vsel %vm8916_vm1, %v8905_v63, %v17212_v32  ;;  %v19010_v55 = vld [vmem:[#allocation76_spill] sm:$0xff] }
0x180d   : > { %v8817_v8 = vpop.permute.xlu1 %8816  ;;  %v12350_v13 = vpop.eup %12349  ;;  %v3405_v40 = vmul.f32 %v12344_v33, %v19010_v55  ;;  %v19012_v32 = vld [vmem:[#allocation252_spill] sm:$0xff]  ;;  %v19017_v55 = vld [vmem:[#allocation81_spill] sm:$0xff] }
0x180e   : > { %v17569_v37 = vsel %vm8916_vm1, %v9012_v34, %v8817_v8  ;;  %8676 = vrot.lane.b32.xlu1 %v6548_v11, %s12606_s23  ;;  %v8479_v42 = vpop.permute.xlu0 %8478  ;;  %v12352_v44 = vpop.eup %12351  ;;  %v8900_v62 = vsel %vm3019_vm0, %v3398_v16, %v19011_v52  ;;  %v6550_v54 = vmul.f32 %v12346_v14, %v19012_v32  ;;  %v19013_v63 = vld [vmem:[#allocation168_spill] sm:$0xff]  ;;  %v19014_v11 = vld [vmem:[#allocation109_spill] sm:$0xff]  ;;  %v3400_v2 = vmul.f32 %v12350_v13, %v19015_v56  ;;  %v19016_v16 = vld [vmem:[#allocation258_spill] sm:$0xff] }
0x180f   : > { %v8939_v58 = vsel %vm8933_vm2, %v8922_v49, %v8479_v42  ;;  %v12354_v9 = vpop.eup %12353  ;;  %12365 = vrcp.f32 %v19013_v63  ;;  %v8907_v34 = vsel %vm3019_vm0, %v3405_v40, %v19014_v11  ;;  %v8917_v33 = vsel %vm8916_vm1, %v8900_v62, %v17215_v3  ;;  %v19018_v52 = vld [vmem:[#allocation105_spill] sm:$0xff] }
0x1810   : > { %9061 = vst [vmem:[%s17533_s29 + $0x78] sm:$0xff] %v8939_v58  ;;  %8686 = vrot.lane.b32.xlu0 %v6553_v5, %s12606_s23  ;;  %v8924_v7 = vsel %vm8916_vm1, %v8907_v34, %v17220_v26  ;;  %v6555_v49 = vmul.f32 %v12348_v59, %v19016_v16  ;;  %v12356_v42 = vpop.eup %12355  ;;  %v3407_v58 = vmul.f32 %v12352_v44, %v19017_v55  ;;  %v19019_v26 = vld [vmem:[#allocation257_spill] sm:$0xff]  ;;  %v19021_v59 = vld [vmem:[#allocation94_spill] sm:$0xff]  ;;  %v19022_v34 = vld [vmem:[#allocation75_spill] sm:$0xff] }
0x1811   : > { %v8469_v8 = vpop.permute.xlu1 %8468  ;;  %v8902_v13 = vsel %vm3019_vm0, %v3400_v2, %v19018_v52  ;;  %v6552_v62 = vmul.f32 %v12354_v9, %v19019_v26  ;;  %v19026_v55 = vld [vmem:[#allocation171_spill] sm:$0xff] }
0x1812   : > { %v8934_v5 = vsel %vm8933_vm2, %v8917_v33, %v8469_v8  ;;  %8680 = vrot.lane.b32.xlu1 %v6550_v54, %s12606_s23  ;;  %v8483_v14 = vpop.permute.xlu0 %8482  ;;  %v12358_v3 = vpop.eup %12357  ;;  %v19020_v54 = vld [vmem:[#allocation69_spill] sm:$0xff]  ;;  %v8909_v44 = vsel %vm3019_vm0, %v3407_v58, %v19021_v59  ;;  %v8919_v63 = vsel %vm8916_vm1, %v8902_v13, %v17230_v6  ;;  %v3402_v33 = vmul.f32 %v12356_v42, %v19022_v34  ;;  %v19024_v6 = vld [vmem:[#allocation212_spill] sm:$0xff]  ;;  %v19028_v13 = vld [vmem:[#allocation74_spill] sm:$0xff] }
0x1813   : > { %9046 = vst [vmem:[%s17533_s29] sm:$0xff] %v8934_v5  ;;  %v8941_v40 = vsel %vm8933_vm2, %v8924_v7, %v8483_v14  ;;  %v12360_v32 = vpop.eup %12359  ;;  %12367 = vrcp.f32 %v19020_v54  ;;  %v8926_v8 = vsel %vm8916_vm1, %v8909_v44, %v17237_v27  ;;  %v19023_v7 = vld [vmem:[#allocation80_spill] sm:$0xff]  ;;  %v19027_v58 = vld [vmem:[#allocation193_spill] sm:$0xff] }
0x1814   : > { %9067 = vst [vmem:[%s17533_s29 + $0xa8] sm:$0xff] %v8941_v40  ;;  %8690 = vrot.lane.b32.xlu0 %v6555_v49, %s12606_s23  ;;  %v3409_v5 = vmul.f32 %v12358_v3, %v19023_v7  ;;  %v8904_v49 = vsel %vm3019_vm0, %v3402_v33, %v19024_v6  ;;  %v19025_v42 = vld [vmem:[#allocation256_spill] sm:$0xff]  ;;  %12369 = vrcp.f32 %v19026_v55  ;;  %v19029_v44 = vld [vmem:[#allocation85_spill] sm:$0xff]  ;;  %v19034_v55 = vld [vmem:[#allocation78_spill] sm:$0xff] }
0x1815   : > { %v8473_v11 = vpop.permute.xlu1 %8472  ;;  %v12362_v2 = vpop.eup %12361  ;;  %v6554_v27 = vmul.f32 %v12360_v32, %v19025_v42  ;;  %v8921_v3 = vsel %vm8916_vm1, %v8904_v49, %v17240_v4  ;;  %v19030_v4 = vld [vmem:[#allocation110_spill] sm:$0xff]  ;;  %v19031_v33 = vld [vmem:[#allocation201_spill] sm:$0xff]  ;;  %v19033_v49 = vld [vmem:[#allocation92_spill] sm:$0xff] }
0x1816   : > { %v8936_v56 = vsel %vm8933_vm2, %v8919_v63, %v8473_v11  ;;  %8684 = vrot.lane.b32.xlu1 %v6552_v62, %s12606_s23  ;;  %v8487_v9 = vpop.permute.xlu0 %8486  ;;  %v12364_v16 = vpop.eup %12363  ;;  %v8911_v40 = vsel %vm3019_vm0, %v3409_v5, %v19027_v58  ;;  %v3404_v26 = vmul.f32 %v12362_v2, %v19028_v13  ;;  %v19035_v13 = vld [vmem:[#allocation202_spill] sm:$0xff] }
0x1817   : > { %9052 = vst [vmem:[%s17533_s29 + $0x30] sm:$0xff] %v8936_v56  ;;  %v8943_v14 = vsel %vm8933_vm2, %v8926_v8, %v8487_v9  ;;  %v8928_v62 = vsel %vm8916_vm1, %v8911_v40, %v17242_v22  ;;  %v3411_v63 = vmul.f32 %v12364_v16, %v19029_v44  ;;  %v19032_v9 = vld [vmem:[#allocation79_spill] sm:$0xff] }
0x1818   : > { %9073 = vst [vmem:[%s17533_s29 + $0xd8] sm:$0xff] %v8943_v14  ;;  %v8906_v34 = vsel %vm3019_vm0, %v3404_v26, %v19030_v4 }
0x1819   : > { %v8477_v52 = vpop.permute.xlu1 %8476  ;;  %v12366_v59 = vpop.eup %12365  ;;  %v8913_v22 = vsel %vm3019_vm0, %v3411_v63, %v19031_v33  ;;  %v8923_v8 = vsel %vm8916_vm1, %v8906_v34, %v17245_v36  ;;  %v19037_v63 = vld [vmem:[#allocation216_spill] sm:$0xff] }
0x181a   : > { %v8938_v54 = vsel %vm8933_vm2, %v8921_v3, %v8477_v52  ;;  %8688 = vrot.lane.b32.xlu1 %v6554_v27, %s12606_s23  ;;  %v8491_v32 = vpop.permute.xlu0 %8490  ;;  %v3406_v2 = vmul.f32 %v12366_v59, %v19032_v9  ;;  %v8930_v7 = vsel %vm8916_vm1, %v8913_v22, %v17248_v15 }
0x181b   : > { %9058 = vst [vmem:[%s17533_s29 + $0x60] sm:$0xff] %v8938_v54  ;;  %v8945_v11 = vsel %vm8933_vm2, %v8928_v62, %v8491_v32  ;;  %v19036_v54 = vld [vmem:[#allocation83_spill] sm:$0xff] }
0x181c   : > { %9079 = vst [vmem:[%s17533_s29 + $0x108] sm:$0xff] %v8945_v11  ;;  %v8908_v42 = vsel %vm3019_vm0, %v3406_v2, %v19033_v49 }
0x181d   : > { %v8481_v56 = vpop.permute.xlu1 %8480  ;;  %v12368_v16 = vpop.eup %12367  ;;  %v8925_v36 = vsel %vm8916_vm1, %v8908_v42, %v17252_v61 }
0x181e   : > { %v8940_v5 = vsel %vm8933_vm2, %v8923_v8, %v8481_v56  ;;  %v8495_v14 = vpop.permute.xlu0 %8494  ;;  %v3408_v58 = vmul.f32 %v12368_v16, %v19034_v55  ;;  %v12370_v3 = vpop.eup %12369 }
0x181f   : > { %9064 = vst [vmem:[%s17533_s29 + $0x90] sm:$0xff] %v8940_v5  ;;  %v8947_v6 = vsel %vm8933_vm2, %v8930_v7, %v8495_v14  ;;  %v3410_v32 = vmul.f32 %v12370_v3, %v19036_v54 }
0x1820   : > { %9085 = vst [vmem:[%s17533_s29 + $0x138] sm:$0xff] %v8947_v6  ;;  %v8910_v26 = vsel %vm3019_vm0, %v3408_v58, %v19035_v13 }
0x1821   : > { %v8485_v27 = vpop.permute.xlu1 %8484  ;;  %v8927_v61 = vsel %vm8916_vm1, %v8910_v26, %v17262_v46  ;;  %v8912_v11 = vsel %vm3019_vm0, %v3410_v32, %v19037_v63 }
0x1822   : > { %v8942_v15 = vsel %vm8933_vm2, %v8925_v36, %v8485_v27  ;;  %v8499_v40 = vpop.permute.xlu0 %8498  ;;  %v8929_v4 = vsel %vm8916_vm1, %v8912_v11, %v17272_v45 }
0x1823   : > { %9070 = vst [vmem:[%s17533_s29 + $0xc0] sm:$0xff] %v8942_v15  ;;  %v8949_v52 = vsel %vm8933_vm2, %v17259_v17, %v8499_v40 }
0x1824   : > { %9091 = vst [vmem:[%s17533_s29 + $0x168] sm:$0xff] %v8949_v52 }
0x1825   : > { %v8489_v62 = vpop.permute.xlu1 %8488 }
0x1826   : > { %v8944_v59 = vsel %vm8933_vm2, %v8927_v61, %v8489_v62  ;;  %v8663_v44 = vpop.permute.xlu0 %8662 }
0x1827   : > { %9076 = vst [vmem:[%s17533_s29 + $0xf0] sm:$0xff] %v8944_v59  ;;  %v8983_v17 = vsel %vm8933_vm2, %v17269_v29, %v8663_v44 }
0x1828   : > { %9050 = vst [vmem:[%s17533_s29 + $0x20] sm:$0xff] %v8983_v17 }
0x1829   : > { %v8493_v46 = vpop.permute.xlu1 %8492 }
0x182a   : > { %v8946_v34 = vsel %vm8933_vm2, %v8929_v4, %v8493_v46 }
0x182b   : > { %9082 = vst [vmem:[%s17533_s29 + $0x120] sm:$0xff] %v8946_v34 }
0x182d   : > { %v8497_v33 = vpop.permute.xlu1 %8496 }
0x182e   : > { %v8948_v22 = vsel %vm8933_vm2, %v17290_v23, %v8497_v33 }
0x182f   : > { %9088 = vst [vmem:[%s17533_s29 + $0x150] sm:$0xff] %v8948_v22 }
0x1831   : > { %v8661_v8 = vpop.permute.xlu1 %8660 }
0x1832   : > { %v8982_v29 = vsel %vm8933_vm2, %v17305_v39, %v8661_v8 }
0x1833   : > { %9047 = vst [vmem:[%s17533_s29 + $0x8] sm:$0xff] %v8982_v29 }
0x1835   : > { %v8665_v56 = vpop.permute.xlu1 %8664 }
0x1836   : > { %v8984_v9 = vsel %vm8933_vm2, %v17320_v21, %v8665_v56 }
0x1837   : > { %9053 = vst [vmem:[%s17533_s29 + $0x38] sm:$0xff] %v8984_v9 }
0x1857   : > { %v8136_v45 = vpop.xlane.xlu0 %8135 }
0x1858   : > { %12371 = vrcp.f32 %v8136_v45 }
0x185b   : > { %v8132_v2 = vpop.xlane.xlu0 %8131 }
0x185f   : > { %v8144_v7 = vpop.xlane.xlu0 %8143 }
0x1862   : > { %v12372_v39 = vpop.eup %12371 }
0x1863   : > { %v8140_v5 = vpop.xlane.xlu0 %8139 }
0x1866   : > { %v8138_v14 = vpop.xlane.xlu1 %8137 }
0x1867   : > { %12373 = vrcp.f32 %v8138_v14  ;;  %v8152_v16 = vpop.xlane.xlu0 %8151 }
0x1868   : > { %12375 = vrcp.f32 %v8132_v2 }
0x186a   : > { %v8134_v23 = vpop.xlane.xlu1 %8133 }
0x186b   : > { %12377 = vrcp.f32 %v8134_v23  ;;  %v8148_v6 = vpop.xlane.xlu0 %8147 }
0x186c   : > { %12379 = vrcp.f32 %v8144_v7 }
0x186e   : > { %v8146_v49 = vpop.xlane.xlu1 %8145 }
0x186f   : > { %v10827_v42 = vpop.f32.mrb[16].mxu0  ;;  %v17677_v36 = vpop.xlane.xlu0 %8159  ;;  %12381 = vrcp.f32 %v8146_v49 }
0x1870   : > { %v8310_v27 = vmul.f32 %v12372_v39, %v10827_v42  ;;  %v8229_v21 = vpop.f32.mrb[17].mxu0  ;;  %12383 = vrcp.f32 %v8140_v5 }
0x1871   : > { %v12374_v55 = vpop.eup %12373  ;;  %v10828_v58 = vpop.f32.mrb[18].mxu0 }
0x1872   : > { %v8311_v15 = vmul.f32 %v12374_v55, %v10828_v58  ;;  %v8142_v40 = vpop.xlane.xlu1 %8141  ;;  %v8232_v3 = vpop.f32.mrb[19].mxu0  ;;  %8856 = vrot.lane.b32.xlu1 %v8310_v27, %s12606_s23 }
0x1873   : > { %v12376_v52 = vpop.eup %12375  ;;  %v8156_v13 = vpop.xlane.xlu0 %8155  ;;  %12385 = vrcp.f32 %v8142_v40 }
0x1874   : > { %v8308_v26 = vmul.f32 %v12376_v52, %v8229_v21  ;;  %8858 = vrot.lane.b32.xlu0 %v8311_v15, %s12606_s23  ;;  %12387 = vrcp.f32 %v8152_v16 }
0x1875   : > { %v12378_v61 = vpop.eup %12377 }
0x1876   : > { %v8309_v62 = vmul.f32 %v12378_v61, %v8232_v3  ;;  %v8154_v54 = vpop.xlane.xlu1 %8153  ;;  %8852 = vrot.lane.b32.xlu1 %v8308_v26, %s12606_s23  ;;  %v12380_v17 = vpop.eup %12379 }
0x1877   : > { %v8667_v32 = vpop.permute.xlu0 %8666  ;;  %12389 = vrcp.f32 %v8154_v54 }
0x1878   : > { %v8985_v59 = vsel %vm8933_vm2, %v17281_v50, %v8667_v32  ;;  %8854 = vrot.lane.b32.xlu0 %v8309_v62, %s12606_s23  ;;  %12391 = vrcp.f32 %v8148_v6 }
0x1879   : > { %9056 = vst [vmem:[%s17533_s29 + $0x50] sm:$0xff] %v8985_v59  ;;  %v12382_v33 = vpop.eup %12381 }
0x187a   : > { %v8150_v44 = vpop.xlane.xlu1 %8149  ;;  %v12384_v22 = vpop.eup %12383 }
0x187b   : > { %v10831_v63 = vpop.f32.mrb[20].mxu0  ;;  %v8671_v11 = vpop.permute.xlu0 %8670  ;;  %12393 = vrcp.f32 %v8150_v44 }
0x187c   : > { %v8314_v4 = vmul.f32 %v12380_v17, %v10831_v63  ;;  %v8987_v46 = vsel %vm8933_vm2, %v17296_v41, %v8671_v11  ;;  %v8245_v34 = vpop.f32.mrb[21].mxu0  ;;  %12395 = vrcp.f32 %v8156_v13 }
0x187d   : > { %9062 = vst [vmem:[%s17533_s29 + $0x80] sm:$0xff] %v8987_v46  ;;  %v10832_v50 = vpop.f32.mrb[22].mxu0  ;;  %v12386_v9 = vpop.eup %12385  ;;  %v8312_v2 = vmul.f32 %v12384_v22, %v8245_v34 }
0x187e   : > { %v8315_v8 = vmul.f32 %v12382_v33, %v10832_v50  ;;  %v8248_v29 = vpop.f32.mrb[23].mxu0  ;;  %v8162_v56 = vpop.xlane.xlu1 %8161  ;;  %8864 = vrot.lane.b32.xlu1 %v8314_v4, %s12606_s23 }
0x187f   : > { %v8675_v45 = vpop.permute.xlu0 %8674  ;;  %v8313_v41 = vmul.f32 %v12386_v9, %v8248_v29  ;;  %v12388_v14 = vpop.eup %12387 }
0x1880   : > { %v8989_v7 = vsel %vm8933_vm2, %v17311_v57, %v8675_v45  ;;  %8866 = vrot.lane.b32.xlu0 %v8315_v8, %s12606_s23 }
0x1881   : > { %9068 = vst [vmem:[%s17533_s29 + $0xb0] sm:$0xff] %v8989_v7  ;;  %v12390_v57 = vpop.eup %12389 }
0x1882   : > { %v8158_v5 = vpop.xlane.xlu1 %8157  ;;  %8860 = vrot.lane.b32.xlu1 %v8312_v2, %s12606_s23  ;;  %v12392_v27 = vpop.eup %12391 }
0x1883   : > { %12397 = vrcp.f32 %v8158_v5  ;;  %v10835_v16 = vpop.f32.mrb[24].mxu0  ;;  %v8679_v23 = vpop.permute.xlu0 %8678 }
0x1884   : > { %v8318_v6 = vmul.f32 %v12388_v14, %v10835_v16  ;;  %v8991_v49 = vsel %vm8933_vm2, %v17326_v28, %v8679_v23  ;;  %v8261_v39 = vpop.f32.mrb[25].mxu0  ;;  %8862 = vrot.lane.b32.xlu0 %v8313_v41, %s12606_s23  ;;  %12399 = vrcp.f32 %v17677_v36  ;;  %v19038_v16 = vld [vmem:[#allocation223_spill] sm:$0xff] }
0x1885   : > { %9074 = vst [vmem:[%s17533_s29 + $0xe0] sm:$0xff] %v8991_v49  ;;  %v10836_v42 = vpop.f32.mrb[26].mxu0  ;;  %v12394_v15 = vpop.eup %12393  ;;  %12401 = vrcp.f32 %v8162_v56  ;;  %v8316_v3 = vmul.f32 %v12392_v27, %v8261_v39 }
0x1886   : > { %v8319_v21 = vmul.f32 %v12390_v57, %v10836_v42  ;;  %v8264_v55 = vpop.f32.mrb[27].mxu0  ;;  %v8669_v58 = vpop.permute.xlu1 %8668  ;;  %8872 = vrot.lane.b32.xlu1 %v8318_v6, %s12606_s23  ;;  %v19039_v6 = vld [vmem:[#allocation116_spill] sm:$0xff]  ;;  %v19040_v57 = vld [vmem:[#allocation113_spill] sm:$0xff] }
0x1887   : > { %v8986_v28 = vsel %vm8933_vm2, %v17336_v12, %v8669_v58  ;;  %v8683_v40 = vpop.permute.xlu0 %8682  ;;  %v8317_v36 = vmul.f32 %v12394_v15, %v8264_v55  ;;  %v12396_v62 = vpop.eup %12395  ;;  %v19041_v58 = vld [vmem:[#allocation192_spill] sm:$0xff] }
0x1888   : > { %9059 = vst [vmem:[%s17533_s29 + $0x68] sm:$0xff] %v8986_v28  ;;  %v8993_v52 = vsel %vm8933_vm2, %v17342_v10, %v8683_v40  ;;  %8874 = vrot.lane.b32.xlu0 %v8319_v21, %s12606_s23 }
0x1889   : > { %9080 = vst [vmem:[%s17533_s29 + $0x110] sm:$0xff] %v8993_v52 }
0x188a   : > { %v8673_v13 = vpop.permute.xlu1 %8672  ;;  %8868 = vrot.lane.b32.xlu1 %v8316_v3, %s12606_s23  ;;  %v19042_v3 = vld [vmem:[#allocation41_spill] sm:$0xff] }
0x188b   : > { %v8988_v26 = vsel %vm8933_vm2, %v17352_v53, %v8673_v13  ;;  %v10839_v61 = vpop.f32.mrb[28].mxu0  ;;  %v8687_v12 = vpop.permute.xlu0 %8686 }
0x188c   : > { %9065 = vst [vmem:[%s17533_s29 + $0x98] sm:$0xff] %v8988_v26  ;;  %v8995_v54 = vsel %vm8933_vm2, %v17358_v48, %v8687_v12  ;;  %v8277_v32 = vpop.f32.mrb[29].mxu0  ;;  %8870 = vrot.lane.b32.xlu0 %v8317_v36, %s12606_s23 }
0x188d   : > { %v12398_v10 = vpop.eup %12397  ;;  %9086 = vst [vmem:[%s17533_s29 + $0x140] sm:$0xff] %v8995_v54  ;;  %v8320_v59 = vmul.f32 %v12396_v62, %v8277_v32  ;;  %v10840_v44 = vpop.f32.mrb[30].mxu0 }
0x188e   : > { %v8677_v17 = vpop.permute.xlu1 %8676  ;;  %v8280_v63 = vpop.f32.mrb[31].mxu0 }
0x188f   : > { %v8990_v53 = vsel %vm8933_vm2, %v17368_v1, %v8677_v17  ;;  %v8321_v11 = vmul.f32 %v12398_v10, %v8280_v63  ;;  %8876 = vrot.lane.b32.xlu1 %v8320_v59, %s12606_s23  ;;  %v8691_v4 = vpop.permute.xlu0 %8690  ;;  %v12400_v48 = vpop.eup %12399 }
0x1890   : > { %9071 = vst [vmem:[%s17533_s29 + $0xc8] sm:$0xff] %v8990_v53  ;;  %v8997_v46 = vsel %vm8933_vm2, %v17374_v20, %v8691_v4  ;;  %v8322_v34 = vmul.f32 %v12400_v48, %v10839_v61  ;;  %v12402_v33 = vpop.eup %12401 }
0x1891   : > { %9092 = vst [vmem:[%s17533_s29 + $0x170] sm:$0xff] %v8997_v46  ;;  %8878 = vrot.lane.b32.xlu0 %v8321_v11, %s12606_s23  ;;  %v8323_v22 = vmul.f32 %v12402_v33, %v10840_v44 }
0x1892   : > { %v8681_v50 = vpop.permute.xlu1 %8680 }
0x1893   : > { %v8992_v1 = vsel %vm8933_vm2, %v17384_v24, %v8681_v50  ;;  %8880 = vrot.lane.b32.xlu1 %v8322_v34, %s12606_s23 }
0x1894   : > { %9077 = vst [vmem:[%s17533_s29 + $0xf8] sm:$0xff] %v8992_v1 }
0x1895   : > { %8882 = vrot.lane.b32.xlu0 %v8323_v22, %s12606_s23  ;;  %s12609_s23 = smov [#allocation8]  }
0x1896   : > { %v8685_v20 = vpop.permute.xlu1 %8684  ;;  %s12514_s25 = sshll.u32 %s12609_s23, 4  ;;  %s12515_s25 = int_to_ptr.vmem [resolvable:$false] %s12514_s25 }
0x1897   : > { %v8994_v8 = vsel %vm8933_vm2, %v17400_v31, %v8685_v20  ;;  %s12516_s27 = scalar_lea.vmem %s12515_s25, 12288  ;;  %p12517_p5 = scmp.lt.s32.totalorder %s17787_s22, %s12515_s25 }
0x1898   : > { %9083 = vst [vmem:[%s17533_s29 + $0x128] sm:$0xff] %v8994_v8  ;;  %p12518_p9 = scmp.lt.s32.totalorder %s12516_s27, %s12510_s8 }
0x189a   : > { %v8689_v29 = vpop.permute.xlu1 %8688  ;;  %p12519_p2 = por %p12518_p9, %p12517_p5 }
0x189b   : > { %v8996_v56 = vsel %vm8933_vm2, %v17416_v51, %v8689_v29 }
0x189c   : > { %9089 = vst [vmem:[%s17533_s29 + $0x158] sm:$0xff] %v8996_v56  ;;  %p12520_p0 = pnand %p12519_p2, %p12513_p3 }
0x18e4   : > { %v8857_v9 = vpop.permute.xlu1 %8856 }
0x18e5   : > { %v9032_v24 = vsel %vm8933_vm2, %v17449_v35, %v8857_v9 }
0x18e6   : > { %9054 = vst [vmem:[%s17533_s29 + $0x40] sm:$0xff] %v9032_v24  ;;  %v8859_v45 = vpop.permute.xlu0 %8858 }
0x18e7   : > { %v9033_v2 = vsel %vm8933_vm2, %v17405_v18, %v8859_v45 }
0x18e8   : > { %9057 = vst [vmem:[%s17533_s29 + $0x58] sm:$0xff] %v9033_v2  ;;  %v8853_v31 = vpop.permute.xlu1 %8852 }
0x18e9   : > { %v9030_v7 = vsel %vm8933_vm2, %v17432_v19, %v8853_v31 }
0x18ea   : > { %9048 = vst [vmem:[%s17533_s29 + $0x10] sm:$0xff] %v9030_v7  ;;  %v8855_v51 = vpop.permute.xlu0 %8854 }
0x18eb   : > { %v9031_v41 = vsel %vm8933_vm2, %v17390_v30, %v8855_v51 }
0x18ec   : > { %9051 = vst [vmem:[%s17533_s29 + $0x28] sm:$0xff] %v9031_v41 }
0x18f0   : > { %v8865_v35 = vpop.permute.xlu1 %8864 }
0x18f1   : > { %v9036_v5 = vsel %vm8933_vm2, %v17483_v0, %v8865_v35 }
0x18f2   : > { %9066 = vst [vmem:[%s17533_s29 + $0xa0] sm:$0xff] %v9036_v5  ;;  %v8867_v18 = vpop.permute.xlu0 %8866 }
0x18f3   : > { %v9037_v14 = vsel %vm8933_vm2, %v17437_v60, %v8867_v18 }
0x18f4   : > { %9069 = vst [vmem:[%s17533_s29 + $0xb8] sm:$0xff] %v9037_v14  ;;  %v8861_v19 = vpop.permute.xlu1 %8860 }
0x18f5   : > { %v9034_v23 = vsel %vm8933_vm2, %v19038_v16, %v8861_v19 }
0x18f6   : > { %9060 = vst [vmem:[%s17533_s29 + $0x70] sm:$0xff] %v9034_v23  ;;  %v8863_v30 = vpop.permute.xlu0 %8862 }
0x18f7   : > { %v9035_v49 = vsel %vm8933_vm2, %v19039_v6, %v8863_v30 }
0x18f8   : > { %9063 = vst [vmem:[%s17533_s29 + $0x88] sm:$0xff] %v9035_v49  ;;  %v8873_v0 = vpop.permute.xlu1 %8872 }
0x18f9   : > { %v9040_v39 = vsel %vm8933_vm2, %v17523_v25, %v8873_v0 }
0x18fa   : > { %9078 = vst [vmem:[%s17533_s29 + $0x100] sm:$0xff] %v9040_v39  ;;  %v8875_v60 = vpop.permute.xlu0 %8874 }
0x18fb   : > { %v9041_v42 = vsel %vm8933_vm2, %v19040_v57, %v8875_v60 }
0x18fc   : > { %9081 = vst [vmem:[%s17533_s29 + $0x118] sm:$0xff] %v9041_v42  ;;  %v8869_v27 = vpop.permute.xlu1 %8868 }
0x18fd   : > { %v9038_v21 = vsel %vm8933_vm2, %v17502_v38, %v8869_v27 }
0x18fe   : > { %9072 = vst [vmem:[%s17533_s29 + $0xd0] sm:$0xff] %v9038_v21  ;;  %v8871_v55 = vpop.permute.xlu0 %8870 }
0x18ff   : > { %v9039_v15 = vsel %vm8933_vm2, %v19041_v58, %v8871_v55 }
0x1900   : > { %9075 = vst [vmem:[%s17533_s29 + $0xe8] sm:$0xff] %v9039_v15 }
0x1901   : > { %v8877_v25 = vpop.permute.xlu1 %8876 }
0x1902   : > { %v9042_v28 = vsel %vm8933_vm2, %v17547_v43, %v8877_v25 }
0x1903   : > { %9084 = vst [vmem:[%s17533_s29 + $0x130] sm:$0xff] %v9042_v28  ;;  %v8879_v40 = vpop.permute.xlu0 %8878 }
0x1904   : > { %v9043_v38 = vsel %vm8933_vm2, %v19042_v3, %v8879_v40 }
0x1905   : > { %9087 = vst [vmem:[%s17533_s29 + $0x148] sm:$0xff] %v9043_v38  ;;  %v8881_v52 = vpop.permute.xlu1 %8880 }
0x1906   : > { %v9044_v36 = vsel %vm8933_vm2, %v17569_v37, %v8881_v52 }
0x1907   : > { %9090 = vst [vmem:[%s17533_s29 + $0x160] sm:$0xff] %v9044_v36  ;;  %v8883_v43 = vpop.permute.xlu0 %8882 }
0x1908   : > { %v9045_v13 = vsel %vm8933_vm2, %v17509_v47, %v8883_v43 }
0x1909   : > { %9093 = vst [vmem:[%s17533_s29 + $0x178] sm:$0xff] %v9045_v13 }
0x190a   : > { %12523 = shalt.err (!%p12520_p0)
}
0x190b   : > { %s12524_s9 = scalar_lea.hbm %s17784_s12, 6144  ;;  %s12528_s21 = scalar_lea.hbm %s17843_s4, 12288 }
0x190c   : > { %p12525_p4 = scmp.ne.s32.totalorder %s17784_s12, %s12524_s9  ;;  %p12529_p7 = scmp.lt.u32.totalorder %s17784_s12, %s17843_s4 }
0x190d   : > { %p12530_p11 = scmp.lt.u32.totalorder %s12528_s21, %s12524_s9  ;;  %p12532_p12 = scmp.lt.u32.totalorder %s12524_s9, %s17784_s12 }
0x190e   : > { %p12526_p13 = pnand %p12525_p4, %p19043_p1 }
0x190f   : > { %p12531_p8 = por %p12530_p11, %p12529_p7 }
0x1910   : > { %p12527_p6 = pneg %p12526_p13 }
0x1911   : > { %p12533_p10 = por %p12532_p12, %p12531_p8 }
0x1913   : > { %p12534_p3 = pnand %p12533_p10, %p12527_p6 }
0x1915   : > { %12537 = shalt.err (!%p12534_p3)
}
0x1916   : > { %s12610_s5 = smov 384   ;;  %s12611_s7 = smov 24  }
0x1917   : > { %11208 = dma.vmem_to_hbm [thread:$0]  (%p19043_p1), %s17787_s22, 6144, %s17784_s12, %s9095_s18, %s12610_s5, %s12610_s5, %s12611_s7  }
0x1918 PF: > { %s9125_s11 = sand.u32 1, %s12576_s15   ;;  %p19044_p5 = scmp.ne.s32.totalorder %s18022_s26, 0 }
0x1919   : > { %p19045_p9 = scmp.ge.s32.totalorder %s12596_s20, 2  ;;  %s9126_s8 = scalar_lea.sflag [#allocation4], %s9125_s11 }
0x191b   : > { %p11222_p2 = pnand %p19045_p9, %p19044_p5 }
0x191d   : > { %12571 = dma.done.wait (!%p11222_p2), %s9126_s8, 6144  }
0x191e   : > { %12573 = vsyncadd (!%p11222_p2), %s9126_s8, 4294961152  ;;  %s21_s20 = sadd.s32 1, %s12596_s20   ;;  %s19046_s15 = smov %s12580_s16 }
0x191f   : > { %p18_p0 = scmp.ge.s32.totalorder %s21_s20, 4   ;;  %s19047_s16 = smov %s12584_s17 }
0x1920   : > { %s19048_s17 = smov %s12783_s10  ;;  %s19049_s18 = smov %s12592_s19 }
0x1921   : > { %s19050_s19 = smov %s19052_s28  ;;  %20 = sbr.rel (!%p18_p0) target bundleno = 7 (0x7), region = 94 }
0x1928   :  { %9131 = vsyncpa [#allocation3], 1 }
0x1929   :  { %9133 = vsyncpa [#allocation3 + $0x1], 1 }
0x192a   :  { %9134 = vsyncpa [#allocation6], 1 }
0x192b   :  { %9135 = vsyncpa [#allocation4], 1 }
0x192c   :  { %9137 = vsyncpa [#allocation4 + $0x1], 1 }

</bundles_post_ra>
